<compile_context>
chip_gen: v5e
topology: v5e:2x2
jax: 0.10.0
libtpu: 0.0.40
codegen_flags: <defaults>
</compile_context>

<pallas_src>
import functools

import numpy as np
import jax
import jax.numpy as jnp
from jax.experimental import pallas as pl
from jax.experimental.pallas import tpu as pltpu


# (stride_h, stride_w, pad_h, pad_w) for each ConvTranspose2d(k=4, bias=False)
_LAYER_CFGS = (
    (1, 1, 0, 0),   # ConvTranspose2d(100, 8g, 4, 1,      0)
    (2, 1, 2, 2),   # ConvTranspose2d(8g,  4g, 4, (2,1), (2,2))
    (2, 1, 1, 2),   # ConvTranspose2d(4g,  2g, 4, (2,1), (1,2))
    (2, 1, 1, 1),   # ConvTranspose2d(2g,   g, 4, (2,1), (1,1))
    (2, 1, 1, 1),   # ConvTranspose2d(g,    1, 4, (2,1), (1,1))
)
_K = 4

_VMEM = pl.BlockSpec(memory_space=pltpu.MemorySpace.VMEM)


# ----------------------------- Pallas kernel -------------------------------

def _generator_kernel(*refs, layer_meta):
    """Fused 5-layer generator forward.

    refs = [x2d,
            M0, G0, GT0, gamma0, beta0,
            M1, G1, GT1, gamma1, beta1,
            M2, G2, GT2, gamma2, beta2,
            M3, G3, GT3, gamma3, beta3,
            M4,
            out]
      x2d   : (N, cin0*ih0*iw0)                activations, batch on sublanes
      M_i   : (cin*ih*iw, cout*oh*ow) bf16     dense transposed-conv operator
      G_i   : (cout*oh*ow, cout) f32 0/1       per-channel column-grouping
      GT_i  : (cout, cout*oh*ow) f32 0/1       its transpose (broadcast back)
      gamma/beta : (1, cout) f32               BatchNorm2d affine params
      out   : (N, oh_last*ow_last) f32         tanh output
    layer_meta: tuple of static (has_bn, 1/(N*oh*ow)) per layer.
    """
    out_ref = refs[-1]
    h = refs[0][...].astype(jnp.float32)                     # (N, F_in0)
    pos = 1
    for has_bn, inv_count in layer_meta:
        m_ref = refs[pos]
        pos += 1
        # ConvTranspose2d as one MXU dot (taps folded into K).
        y = jnp.dot(h.astype(jnp.bfloat16), m_ref[...],
                    preferred_element_type=jnp.float32)      # (N, F_out) f32

        if has_bn:
            g_ref = refs[pos]        # (F_out, cout)
            gt_ref = refs[pos + 1]   # (cout, F_out)
            gamma_ref = refs[pos + 2]
            beta_ref = refs[pos + 3]
            pos += 4

            grp = g_ref[...]
            inv = jnp.float32(inv_count)
            # Per-channel sums over (batch, spatial) via the grouping matmul.
            s = jnp.sum(jnp.dot(y, grp, preferred_element_type=jnp.float32),
                        axis=0, keepdims=True)               # (1, cout)
            sq = jnp.sum(jnp.dot(y * y, grp, preferred_element_type=jnp.float32),
                         axis=0, keepdims=True)              # (1, cout)
            mean = s * inv
            var = jnp.maximum(sq * inv - mean * mean, 0.0)
            scale = gamma_ref[...] * jax.lax.rsqrt(var + jnp.float32(1e-5))
            shift = beta_ref[...] - mean * scale             # (1, cout)
            # Broadcast per-channel (scale, shift) back over spatial lanes
            # with one small matmul against GT.
            ss = jnp.concatenate([scale, shift], axis=0)     # (2, cout)
            ssw = jnp.dot(ss, gt_ref[...],
                          preferred_element_type=jnp.float32)  # (2, F_out)
            yn = y * ssw[0:1, :] + ssw[1:2, :]
            h = jnp.maximum(yn, 0.2 * yn)                    # LeakyReLU(0.2)
        else:
            out_ref[...] = jnp.tanh(y)


# ------------------------------ host-side glue ------------------------------

def _geometry(ih0, iw0):
    """Per-layer spatial geometry (ih, iw, oh, ow, sh, sw, ph, pw)."""
    geoms = []
    ih, iw = ih0, iw0
    for (sh, sw, ph, pw) in _LAYER_CFGS:
        oh = (ih - 1) * sh - 2 * ph + _K
        ow = (iw - 1) * sw - 2 * pw + _K
        geoms.append((ih, iw, oh, ow, sh, sw, ph, pw))
        ih, iw = oh, ow
    return geoms


def _tap_table(ih, iw, oh, ow, sh, sw, ph, pw):
    """int32 (ih*iw, oh*ow): tap index kh*K+kw linking input q -> output p, or -1.

    For ConvTranspose2d each (q, p) pair has at most one contributing tap.
    Batch independent; tiny (<= 72 x 192)."""
    tab = np.full((ih * iw, oh * ow), -1, dtype=np.int32)
    for ihh in range(ih):
        for iww in range(iw):
            q = ihh * iw + iww
            for kh in range(_K):
                oh_ = ihh * sh - ph + kh
                if oh_ < 0 or oh_ >= oh:
                    continue
                for kw in range(_K):
                    ow_ = iww * sw - pw + kw
                    if ow_ < 0 or ow_ >= ow:
                        continue
                    tab[q, oh_ * ow + ow_] = kh * _K + kw
    return tab


def _conv_t_operator(w, tap):
    """Dense transposed-conv operator (cin*ih*iw, cout*oh*ow), bf16.

    w   : PyTorch ConvTranspose2d weight (cin, cout, K, K)
    tap : host tap table (ih*iw, oh*ow)
    Every entry of the result is a single weight value or 0 (no sums), so the
    bf16 cast is exactly "weights in bf16"."""
    cin, cout = w.shape[0], w.shape[1]
    ihw, ohw = tap.shape
    wr = w.reshape(cin, cout, _K * _K)
    idx = jnp.asarray(np.maximum(tap, 0).reshape(-1))
    g = jnp.take(wr, idx, axis=2).reshape(cin, cout, ihw, ohw)
    mask = jnp.asarray((tap >= 0).astype(np.float32)).reshape(1, 1, ihw, ohw)
    m = (g * mask).transpose((0, 2, 1, 3)).reshape(cin * ihw, cout * ohw)
    return m.astype(jnp.bfloat16)


def init_generator_params(key, ngf):
    """PyTorch-layout parameters: w_i (cin, cout, K, K); gamma/beta (cout,)."""
    chans = [100, ngf * 8, ngf * 4, ngf * 2, ngf, 1]
    params = {}
    keys = jax.random.split(key, len(_LAYER_CFGS))
    for i in range(len(_LAYER_CFGS)):
        cin, cout = chans[i], chans[i + 1]
        params[f"w{i}"] = 0.05 * jax.random.normal(
            keys[i], (cin, cout, _K, _K), jnp.float32)
        if i < len(_LAYER_CFGS) - 1:
            params[f"g{i}"] = jnp.ones((cout,), jnp.float32)
            params[f"b{i}"] = jnp.zeros((cout,), jnp.float32)
    return params


def generator_forward(params, x):
    N, c0, ih0, iw0 = x.shape
    geoms = _geometry(ih0, iw0)
    n_layers = len(_LAYER_CFGS)

    inputs = [x.reshape(N, c0 * ih0 * iw0)]           # (N, cin0*ih0*iw0)
    layer_meta = []
    for i, (ih, iw, oh, ow, sh, sw, ph, pw) in enumerate(geoms):
        w = params[f"w{i}"]
        cout = w.shape[1]
        ohw = oh * ow
        tap = _tap_table(ih, iw, oh, ow, sh, sw, ph, pw)
        inputs.append(_conv_t_operator(w, tap))        # (cin*ihw, cout*ohw)
        has_bn = i < n_layers - 1
        if has_bn:
            grp = np.kron(np.eye(cout, dtype=np.float32),
                          np.ones((ohw, 1), dtype=np.float32))   # (cout*ohw, cout)
            inputs.append(jnp.asarray(grp))
            inputs.append(jnp.asarray(np.ascontiguousarray(grp.T)))
            inputs.append(params[f"g{i}"].reshape(1, cout))
            inputs.append(params[f"b{i}"].reshape(1, cout))
        layer_meta.append((has_bn, 1.0 / float(N * ohw)))

    oh_last, ow_last = geoms[-1][2], geoms[-1][3]
    out = pl.pallas_call(
        functools.partial(_generator_kernel, layer_meta=tuple(layer_meta)),
        out_shape=jax.ShapeDtypeStruct((N, oh_last * ow_last), jnp.float32),
        in_specs=[_VMEM] * len(inputs),
        out_specs=_VMEM,
    )(*inputs)

    # Columns are (co=0, oh, ow) row-major == NCHW flat order for Cout == 1.
    return out.reshape(N, 1, oh_last, ow_last)


# --------------------- pure-JAX reference (for checking) --------------------

def generator_forward_ref(params, x):
    """XLA reference using lax.conv_general_dilated (transposed-conv identity)."""
    h = x
    n_layers = len(_LAYER_CFGS)
    for i, (sh, sw, ph, pw) in enumerate(_LAYER_CFGS):
        w = params[f"w{i}"]                               # (cin, cout, K, K)
        cout = w.shape[1]
        rhs = jnp.flip(w, (2, 3)).transpose(1, 0, 2, 3)   # (cout, cin, K, K)
        y = jax.lax.conv_general_dilated(
            h, rhs, window_strides=(1, 1),
            padding=((_K - 1 - ph, _K - 1 - ph), (_K - 1 - pw, _K - 1 - pw)),
            lhs_dilation=(sh, sw), rhs_dilation=(1, 1),
            dimension_numbers=("NCHW", "OIHW", "NCHW"),
            precision=jax.lax.Precision.HIGHEST)
        if i < n_layers - 1:
            mean = jnp.mean(y, axis=(0, 2, 3), keepdims=True)
            var = jnp.mean(jnp.square(y - mean), axis=(0, 2, 3), keepdims=True)
            yn = (y - mean) * jax.lax.rsqrt(var + 1e-5)
            yn = yn * params[f"g{i}"].reshape(1, cout, 1, 1) \
                 + params[f"b{i}"].reshape(1, cout, 1, 1)
            h = jnp.where(yn >= 0, yn, 0.2 * yn)
        else:
            h = jnp.tanh(y)
    return h


if __name__ == "__main__":
    ngf = 8
    key = jax.random.PRNGKey(0)
    pkey, xkey = jax.random.split(key)
    params = init_generator_params(pkey, ngf)
    # DCGAN latent input: N x 100 x 1 x 1
    x = jax.random.normal(xkey, (2, 100, 1, 1), jnp.float32)

    out = jax.block_until_ready(jax.jit(generator_forward)(params, x))

    # ConvTranspose chain on a 1x1 latent with these strides/pads -> (N, 1, 48, 4).
    assert out.shape == (2, 1, 48, 4), out.shape
    assert bool(jnp.all(jnp.isfinite(out)))
    assert bool(jnp.all(jnp.abs(out) <= 1.0))            # tanh range

    # Numerical check vs. f32 HIGHEST-precision XLA conv reference.  The kernel
    # uses native bf16 MXU matmuls (f32 accumulate) per the perf review, so the
    # tolerance is loosened slightly; real index / layout / BN bugs are O(0.1-1).
    ref = jax.block_until_ready(jax.jit(generator_forward_ref)(params, x))
    np.testing.assert_allclose(np.asarray(out), np.asarray(ref),
                               rtol=4e-2, atol=4e-2)

    print("KERNEL_OK")
</pallas_src>

<mosaic_0001>
module attributes {stable_mosaic.version = 11 : i64} {
  func.func @_generator_kernel(%arg0: memref<2x100xf32, #tpu.memory_space<vmem>>, %arg1: memref<100x1024xbf16, #tpu.memory_space<vmem>>, %arg2: memref<1024x64xf32, #tpu.memory_space<vmem>>, %arg3: memref<64x1024xf32, #tpu.memory_space<vmem>>, %arg4: memref<1x64xf32, #tpu.memory_space<vmem>>, %arg5: memref<1x64xf32, #tpu.memory_space<vmem>>, %arg6: memref<1024x576xbf16, #tpu.memory_space<vmem>>, %arg7: memref<576x32xf32, #tpu.memory_space<vmem>>, %arg8: memref<32x576xf32, #tpu.memory_space<vmem>>, %arg9: memref<1x32xf32, #tpu.memory_space<vmem>>, %arg10: memref<1x32xf32, #tpu.memory_space<vmem>>, %arg11: memref<576x384xbf16, #tpu.memory_space<vmem>>, %arg12: memref<384x16xf32, #tpu.memory_space<vmem>>, %arg13: memref<16x384xf32, #tpu.memory_space<vmem>>, %arg14: memref<1x16xf32, #tpu.memory_space<vmem>>, %arg15: memref<1x16xf32, #tpu.memory_space<vmem>>, %arg16: memref<384x576xbf16, #tpu.memory_space<vmem>>, %arg17: memref<576x8xf32, #tpu.memory_space<vmem>>, %arg18: memref<8x576xf32, #tpu.memory_space<vmem>>, %arg19: memref<1x8xf32, #tpu.memory_space<vmem>>, %arg20: memref<1x8xf32, #tpu.memory_space<vmem>>, %arg21: memref<576x192xbf16, #tpu.memory_space<vmem>>, %arg22: memref<2x192xf32, #tpu.memory_space<vmem>>) attributes {dimension_semantics = [], scalar_prefetch = 0 : i64, scratch_operands = 0 : i64, tpu.core_type = #tpu.core_type<tc>} {
    %c0 = arith.constant 0 : index
    %c0_0 = arith.constant 0 : index
    %0 = vector.load %arg0[%c0, %c0_0] : memref<2x100xf32, #tpu.memory_space<vmem>>, vector<2x100xf32>
    %1 = arith.truncf %0 : vector<2x100xf32> to vector<2x100xbf16>
    %c0_1 = arith.constant 0 : index
    %c0_2 = arith.constant 0 : index
    %2 = vector.load %arg1[%c0_1, %c0_2] : memref<100x1024xbf16, #tpu.memory_space<vmem>>, vector<100x1024xbf16>
    %cst = arith.constant dense<0.000000e+00> : vector<2x1024xf32>
    %3 = tpu.matmul %1, %2, %cst {dimension_numbers = #tpu.dot_dimension_numbers<[1], [0], [0], [1], [0, 0, 1, 1], [], []>} : vector<2x100xbf16>, vector<100x1024xbf16>, vector<2x1024xf32> -> vector<2x1024xf32>
    %c0_3 = arith.constant 0 : index
    %c0_4 = arith.constant 0 : index
    %4 = vector.load %arg2[%c0_3, %c0_4] : memref<1024x64xf32, #tpu.memory_space<vmem>>, vector<1024x64xf32>
    %cst_5 = arith.constant dense<0.000000e+00> : vector<2x64xf32>
    %5 = tpu.matmul %3, %4, %cst_5 {dimension_numbers = #tpu.dot_dimension_numbers<[1], [0], [0], [1], [0, 0, 1, 1], [], []>} : vector<2x1024xf32>, vector<1024x64xf32>, vector<2x64xf32> -> vector<2x64xf32>
    %cst_6 = arith.constant dense<0.000000e+00> : vector<64xf32>
    %6 = vector.multi_reduction <add>, %5, %cst_6 [0] : vector<2x64xf32> to vector<64xf32>
    %7 = vector.shape_cast %6 : vector<64xf32> to vector<1x64xf32>
    %8 = arith.mulf %3, %3 : vector<2x1024xf32>
    %cst_7 = arith.constant dense<0.000000e+00> : vector<2x64xf32>
    %9 = tpu.matmul %8, %4, %cst_7 {dimension_numbers = #tpu.dot_dimension_numbers<[1], [0], [0], [1], [0, 0, 1, 1], [], []>} : vector<2x1024xf32>, vector<1024x64xf32>, vector<2x64xf32> -> vector<2x64xf32>
    %cst_8 = arith.constant dense<0.000000e+00> : vector<64xf32>
    %10 = vector.multi_reduction <add>, %9, %cst_8 [0] : vector<2x64xf32> to vector<64xf32>
    %11 = vector.shape_cast %10 : vector<64xf32> to vector<1x64xf32>
    %cst_9 = arith.constant 3.125000e-02 : f32
    %12 = vector.broadcast %cst_9 : f32 to vector<1x64xf32>
    %13 = arith.mulf %7, %12 : vector<1x64xf32>
    %cst_10 = arith.constant 3.125000e-02 : f32
    %14 = vector.broadcast %cst_10 : f32 to vector<1x64xf32>
    %15 = arith.mulf %11, %14 : vector<1x64xf32>
    %16 = arith.mulf %13, %13 : vector<1x64xf32>
    %17 = arith.subf %15, %16 : vector<1x64xf32>
    %cst_11 = arith.constant 0.000000e+00 : f32
    %18 = vector.broadcast %cst_11 : f32 to vector<1x64xf32>
    %19 = arith.maximumf %17, %18 : vector<1x64xf32>
    %c0_12 = arith.constant 0 : index
    %c0_13 = arith.constant 0 : index
    %20 = vector.load %arg4[%c0_12, %c0_13] : memref<1x64xf32, #tpu.memory_space<vmem>>, vector<1x64xf32>
    %cst_14 = arith.constant 9.99999974E-6 : f32
    %21 = vector.broadcast %cst_14 : f32 to vector<1x64xf32>
    %22 = arith.addf %19, %21 : vector<1x64xf32>
    %23 = math.rsqrt %22 : vector<1x64xf32>
    %24 = arith.mulf %20, %23 : vector<1x64xf32>
    %c0_15 = arith.constant 0 : index
    %c0_16 = arith.constant 0 : index
    %25 = vector.load %arg5[%c0_15, %c0_16] : memref<1x64xf32, #tpu.memory_space<vmem>>, vector<1x64xf32>
    %26 = arith.mulf %13, %24 : vector<1x64xf32>
    %27 = arith.subf %25, %26 : vector<1x64xf32>
    %28 = tpu.concatenate %24, %27 in 0 : vector<1x64xf32>, vector<1x64xf32> -> vector<2x64xf32>
    %c0_17 = arith.constant 0 : index
    %c0_18 = arith.constant 0 : index
    %29 = vector.load %arg3[%c0_17, %c0_18] : memref<64x1024xf32, #tpu.memory_space<vmem>>, vector<64x1024xf32>
    %cst_19 = arith.constant dense<0.000000e+00> : vector<2x1024xf32>
    %30 = tpu.matmul %28, %29, %cst_19 {dimension_numbers = #tpu.dot_dimension_numbers<[1], [0], [0], [1], [0, 0, 1, 1], [], []>} : vector<2x64xf32>, vector<64x1024xf32>, vector<2x1024xf32> -> vector<2x1024xf32>
    %31 = vector.extract_strided_slice %30 {offsets = [0, 0], sizes = [1, 1024], strides = [1, 1]} : vector<2x1024xf32> to vector<1x1024xf32>
    %32 = vector.broadcast %31 : vector<1x1024xf32> to vector<2x1024xf32>
    %33 = arith.mulf %3, %32 : vector<2x1024xf32>
    %34 = vector.extract_strided_slice %30 {offsets = [1, 0], sizes = [1, 1024], strides = [1, 1]} : vector<2x1024xf32> to vector<1x1024xf32>
    %35 = vector.broadcast %34 : vector<1x1024xf32> to vector<2x1024xf32>
    %36 = arith.addf %33, %35 : vector<2x1024xf32>
    %cst_20 = arith.constant 2.000000e-01 : f32
    %37 = vector.broadcast %cst_20 : f32 to vector<2x1024xf32>
    %38 = arith.mulf %37, %36 : vector<2x1024xf32>
    %39 = arith.maximumf %36, %38 : vector<2x1024xf32>
    %40 = arith.truncf %39 : vector<2x1024xf32> to vector<2x1024xbf16>
    %c0_21 = arith.constant 0 : index
    %c0_22 = arith.constant 0 : index
    %41 = vector.load %arg6[%c0_21, %c0_22] : memref<1024x576xbf16, #tpu.memory_space<vmem>>, vector<1024x576xbf16>
    %cst_23 = arith.constant dense<0.000000e+00> : vector<2x576xf32>
    %42 = tpu.matmul %40, %41, %cst_23 {dimension_numbers = #tpu.dot_dimension_numbers<[1], [0], [0], [1], [0, 0, 1, 1], [], []>} : vector<2x1024xbf16>, vector<1024x576xbf16>, vector<2x576xf32> -> vector<2x576xf32>
    %c0_24 = arith.constant 0 : index
    %c0_25 = arith.constant 0 : index
    %43 = vector.load %arg7[%c0_24, %c0_25] : memref<576x32xf32, #tpu.memory_space<vmem>>, vector<576x32xf32>
    %cst_26 = arith.constant dense<0.000000e+00> : vector<2x32xf32>
    %44 = tpu.matmul %42, %43, %cst_26 {dimension_numbers = #tpu.dot_dimension_numbers<[1], [0], [0], [1], [0, 0, 1, 1], [], []>} : vector<2x576xf32>, vector<576x32xf32>, vector<2x32xf32> -> vector<2x32xf32>
    %cst_27 = arith.constant dense<0.000000e+00> : vector<32xf32>
    %45 = vector.multi_reduction <add>, %44, %cst_27 [0] : vector<2x32xf32> to vector<32xf32>
    %46 = vector.shape_cast %45 : vector<32xf32> to vector<1x32xf32>
    %47 = arith.mulf %42, %42 : vector<2x576xf32>
    %cst_28 = arith.constant dense<0.000000e+00> : vector<2x32xf32>
    %48 = tpu.matmul %47, %43, %cst_28 {dimension_numbers = #tpu.dot_dimension_numbers<[1], [0], [0], [1], [0, 0, 1, 1], [], []>} : vector<2x576xf32>, vector<576x32xf32>, vector<2x32xf32> -> vector<2x32xf32>
    %cst_29 = arith.constant dense<0.000000e+00> : vector<32xf32>
    %49 = vector.multi_reduction <add>, %48, %cst_29 [0] : vector<2x32xf32> to vector<32xf32>
    %50 = vector.shape_cast %49 : vector<32xf32> to vector<1x32xf32>
    %cst_30 = arith.constant 0.027777778 : f32
    %51 = vector.broadcast %cst_30 : f32 to vector<1x32xf32>
    %52 = arith.mulf %46, %51 : vector<1x32xf32>
    %cst_31 = arith.constant 0.027777778 : f32
    %53 = vector.broadcast %cst_31 : f32 to vector<1x32xf32>
    %54 = arith.mulf %50, %53 : vector<1x32xf32>
    %55 = arith.mulf %52, %52 : vector<1x32xf32>
    %56 = arith.subf %54, %55 : vector<1x32xf32>
    %cst_32 = arith.constant 0.000000e+00 : f32
    %57 = vector.broadcast %cst_32 : f32 to vector<1x32xf32>
    %58 = arith.maximumf %56, %57 : vector<1x32xf32>
    %c0_33 = arith.constant 0 : index
    %c0_34 = arith.constant 0 : index
    %59 = vector.load %arg9[%c0_33, %c0_34] : memref<1x32xf32, #tpu.memory_space<vmem>>, vector<1x32xf32>
    %cst_35 = arith.constant 9.99999974E-6 : f32
    %60 = vector.broadcast %cst_35 : f32 to vector<1x32xf32>
    %61 = arith.addf %58, %60 : vector<1x32xf32>
    %62 = math.rsqrt %61 : vector<1x32xf32>
    %63 = arith.mulf %59, %62 : vector<1x32xf32>
    %c0_36 = arith.constant 0 : index
    %c0_37 = arith.constant 0 : index
    %64 = vector.load %arg10[%c0_36, %c0_37] : memref<1x32xf32, #tpu.memory_space<vmem>>, vector<1x32xf32>
    %65 = arith.mulf %52, %63 : vector<1x32xf32>
    %66 = arith.subf %64, %65 : vector<1x32xf32>
    %67 = tpu.concatenate %63, %66 in 0 : vector<1x32xf32>, vector<1x32xf32> -> vector<2x32xf32>
    %c0_38 = arith.constant 0 : index
    %c0_39 = arith.constant 0 : index
    %68 = vector.load %arg8[%c0_38, %c0_39] : memref<32x576xf32, #tpu.memory_space<vmem>>, vector<32x576xf32>
    %cst_40 = arith.constant dense<0.000000e+00> : vector<2x576xf32>
    %69 = tpu.matmul %67, %68, %cst_40 {dimension_numbers = #tpu.dot_dimension_numbers<[1], [0], [0], [1], [0, 0, 1, 1], [], []>} : vector<2x32xf32>, vector<32x576xf32>, vector<2x576xf32> -> vector<2x576xf32>
    %70 = vector.extract_strided_slice %69 {offsets = [0, 0], sizes = [1, 576], strides = [1, 1]} : vector<2x576xf32> to vector<1x576xf32>
    %71 = vector.broadcast %70 : vector<1x576xf32> to vector<2x576xf32>
    %72 = arith.mulf %42, %71 : vector<2x576xf32>
    %73 = vector.extract_strided_slice %69 {offsets = [1, 0], sizes = [1, 576], strides = [1, 1]} : vector<2x576xf32> to vector<1x576xf32>
    %74 = vector.broadcast %73 : vector<1x576xf32> to vector<2x576xf32>
    %75 = arith.addf %72, %74 : vector<2x576xf32>
    %cst_41 = arith.constant 2.000000e-01 : f32
    %76 = vector.broadcast %cst_41 : f32 to vector<2x576xf32>
    %77 = arith.mulf %76, %75 : vector<2x576xf32>
    %78 = arith.maximumf %75, %77 : vector<2x576xf32>
    %79 = arith.truncf %78 : vector<2x576xf32> to vector<2x576xbf16>
    %c0_42 = arith.constant 0 : index
    %c0_43 = arith.constant 0 : index
    %80 = vector.load %arg11[%c0_42, %c0_43] : memref<576x384xbf16, #tpu.memory_space<vmem>>, vector<576x384xbf16>
    %cst_44 = arith.constant dense<0.000000e+00> : vector<2x384xf32>
    %81 = tpu.matmul %79, %80, %cst_44 {dimension_numbers = #tpu.dot_dimension_numbers<[1], [0], [0], [1], [0, 0, 1, 1], [], []>} : vector<2x576xbf16>, vector<576x384xbf16>, vector<2x384xf32> -> vector<2x384xf32>
    %c0_45 = arith.constant 0 : index
    %c0_46 = arith.constant 0 : index
    %82 = vector.load %arg12[%c0_45, %c0_46] : memref<384x16xf32, #tpu.memory_space<vmem>>, vector<384x16xf32>
    %cst_47 = arith.constant dense<0.000000e+00> : vector<2x16xf32>
    %83 = tpu.matmul %81, %82, %cst_47 {dimension_numbers = #tpu.dot_dimension_numbers<[1], [0], [0], [1], [0, 0, 1, 1], [], []>} : vector<2x384xf32>, vector<384x16xf32>, vector<2x16xf32> -> vector<2x16xf32>
    %cst_48 = arith.constant dense<0.000000e+00> : vector<16xf32>
    %84 = vector.multi_reduction <add>, %83, %cst_48 [0] : vector<2x16xf32> to vector<16xf32>
    %85 = vector.shape_cast %84 : vector<16xf32> to vector<1x16xf32>
    %86 = arith.mulf %81, %81 : vector<2x384xf32>
    %cst_49 = arith.constant dense<0.000000e+00> : vector<2x16xf32>
    %87 = tpu.matmul %86, %82, %cst_49 {dimension_numbers = #tpu.dot_dimension_numbers<[1], [0], [0], [1], [0, 0, 1, 1], [], []>} : vector<2x384xf32>, vector<384x16xf32>, vector<2x16xf32> -> vector<2x16xf32>
    %cst_50 = arith.constant dense<0.000000e+00> : vector<16xf32>
    %88 = vector.multi_reduction <add>, %87, %cst_50 [0] : vector<2x16xf32> to vector<16xf32>
    %89 = vector.shape_cast %88 : vector<16xf32> to vector<1x16xf32>
    %cst_51 = arith.constant 0.020833334 : f32
    %90 = vector.broadcast %cst_51 : f32 to vector<1x16xf32>
    %91 = arith.mulf %85, %90 : vector<1x16xf32>
    %cst_52 = arith.constant 0.020833334 : f32
    %92 = vector.broadcast %cst_52 : f32 to vector<1x16xf32>
    %93 = arith.mulf %89, %92 : vector<1x16xf32>
    %94 = arith.mulf %91, %91 : vector<1x16xf32>
    %95 = arith.subf %93, %94 : vector<1x16xf32>
    %cst_53 = arith.constant 0.000000e+00 : f32
    %96 = vector.broadcast %cst_53 : f32 to vector<1x16xf32>
    %97 = arith.maximumf %95, %96 : vector<1x16xf32>
    %c0_54 = arith.constant 0 : index
    %c0_55 = arith.constant 0 : index
    %98 = vector.load %arg14[%c0_54, %c0_55] : memref<1x16xf32, #tpu.memory_space<vmem>>, vector<1x16xf32>
    %cst_56 = arith.constant 9.99999974E-6 : f32
    %99 = vector.broadcast %cst_56 : f32 to vector<1x16xf32>
    %100 = arith.addf %97, %99 : vector<1x16xf32>
    %101 = math.rsqrt %100 : vector<1x16xf32>
    %102 = arith.mulf %98, %101 : vector<1x16xf32>
    %c0_57 = arith.constant 0 : index
    %c0_58 = arith.constant 0 : index
    %103 = vector.load %arg15[%c0_57, %c0_58] : memref<1x16xf32, #tpu.memory_space<vmem>>, vector<1x16xf32>
    %104 = arith.mulf %91, %102 : vector<1x16xf32>
    %105 = arith.subf %103, %104 : vector<1x16xf32>
    %106 = tpu.concatenate %102, %105 in 0 : vector<1x16xf32>, vector<1x16xf32> -> vector<2x16xf32>
    %c0_59 = arith.constant 0 : index
    %c0_60 = arith.constant 0 : index
    %107 = vector.load %arg13[%c0_59, %c0_60] : memref<16x384xf32, #tpu.memory_space<vmem>>, vector<16x384xf32>
    %cst_61 = arith.constant dense<0.000000e+00> : vector<2x384xf32>
    %108 = tpu.matmul %106, %107, %cst_61 {dimension_numbers = #tpu.dot_dimension_numbers<[1], [0], [0], [1], [0, 0, 1, 1], [], []>} : vector<2x16xf32>, vector<16x384xf32>, vector<2x384xf32> -> vector<2x384xf32>
    %109 = vector.extract_strided_slice %108 {offsets = [0, 0], sizes = [1, 384], strides = [1, 1]} : vector<2x384xf32> to vector<1x384xf32>
    %110 = vector.broadcast %109 : vector<1x384xf32> to vector<2x384xf32>
    %111 = arith.mulf %81, %110 : vector<2x384xf32>
    %112 = vector.extract_strided_slice %108 {offsets = [1, 0], sizes = [1, 384], strides = [1, 1]} : vector<2x384xf32> to vector<1x384xf32>
    %113 = vector.broadcast %112 : vector<1x384xf32> to vector<2x384xf32>
    %114 = arith.addf %111, %113 : vector<2x384xf32>
    %cst_62 = arith.constant 2.000000e-01 : f32
    %115 = vector.broadcast %cst_62 : f32 to vector<2x384xf32>
    %116 = arith.mulf %115, %114 : vector<2x384xf32>
    %117 = arith.maximumf %114, %116 : vector<2x384xf32>
    %118 = arith.truncf %117 : vector<2x384xf32> to vector<2x384xbf16>
    %c0_63 = arith.constant 0 : index
    %c0_64 = arith.constant 0 : index
    %119 = vector.load %arg16[%c0_63, %c0_64] : memref<384x576xbf16, #tpu.memory_space<vmem>>, vector<384x576xbf16>
    %cst_65 = arith.constant dense<0.000000e+00> : vector<2x576xf32>
    %120 = tpu.matmul %118, %119, %cst_65 {dimension_numbers = #tpu.dot_dimension_numbers<[1], [0], [0], [1], [0, 0, 1, 1], [], []>} : vector<2x384xbf16>, vector<384x576xbf16>, vector<2x576xf32> -> vector<2x576xf32>
    %c0_66 = arith.constant 0 : index
    %c0_67 = arith.constant 0 : index
    %121 = vector.load %arg17[%c0_66, %c0_67] : memref<576x8xf32, #tpu.memory_space<vmem>>, vector<576x8xf32>
    %cst_68 = arith.constant dense<0.000000e+00> : vector<2x8xf32>
    %122 = tpu.matmul %120, %121, %cst_68 {dimension_numbers = #tpu.dot_dimension_numbers<[1], [0], [0], [1], [0, 0, 1, 1], [], []>} : vector<2x576xf32>, vector<576x8xf32>, vector<2x8xf32> -> vector<2x8xf32>
    %cst_69 = arith.constant dense<0.000000e+00> : vector<8xf32>
    %123 = vector.multi_reduction <add>, %122, %cst_69 [0] : vector<2x8xf32> to vector<8xf32>
    %124 = vector.shape_cast %123 : vector<8xf32> to vector<1x8xf32>
    %125 = arith.mulf %120, %120 : vector<2x576xf32>
    %cst_70 = arith.constant dense<0.000000e+00> : vector<2x8xf32>
    %126 = tpu.matmul %125, %121, %cst_70 {dimension_numbers = #tpu.dot_dimension_numbers<[1], [0], [0], [1], [0, 0, 1, 1], [], []>} : vector<2x576xf32>, vector<576x8xf32>, vector<2x8xf32> -> vector<2x8xf32>
    %cst_71 = arith.constant dense<0.000000e+00> : vector<8xf32>
    %127 = vector.multi_reduction <add>, %126, %cst_71 [0] : vector<2x8xf32> to vector<8xf32>
    %128 = vector.shape_cast %127 : vector<8xf32> to vector<1x8xf32>
    %cst_72 = arith.constant 0.0069444445 : f32
    %129 = vector.broadcast %cst_72 : f32 to vector<1x8xf32>
    %130 = arith.mulf %124, %129 : vector<1x8xf32>
    %cst_73 = arith.constant 0.0069444445 : f32
    %131 = vector.broadcast %cst_73 : f32 to vector<1x8xf32>
    %132 = arith.mulf %128, %131 : vector<1x8xf32>
    %133 = arith.mulf %130, %130 : vector<1x8xf32>
    %134 = arith.subf %132, %133 : vector<1x8xf32>
    %cst_74 = arith.constant 0.000000e+00 : f32
    %135 = vector.broadcast %cst_74 : f32 to vector<1x8xf32>
    %136 = arith.maximumf %134, %135 : vector<1x8xf32>
    %c0_75 = arith.constant 0 : index
    %c0_76 = arith.constant 0 : index
    %137 = vector.load %arg19[%c0_75, %c0_76] : memref<1x8xf32, #tpu.memory_space<vmem>>, vector<1x8xf32>
    %cst_77 = arith.constant 9.99999974E-6 : f32
    %138 = vector.broadcast %cst_77 : f32 to vector<1x8xf32>
    %139 = arith.addf %136, %138 : vector<1x8xf32>
    %140 = math.rsqrt %139 : vector<1x8xf32>
    %141 = arith.mulf %137, %140 : vector<1x8xf32>
    %c0_78 = arith.constant 0 : index
    %c0_79 = arith.constant 0 : index
    %142 = vector.load %arg20[%c0_78, %c0_79] : memref<1x8xf32, #tpu.memory_space<vmem>>, vector<1x8xf32>
    %143 = arith.mulf %130, %141 : vector<1x8xf32>
    %144 = arith.subf %142, %143 : vector<1x8xf32>
    %145 = tpu.concatenate %141, %144 in 0 : vector<1x8xf32>, vector<1x8xf32> -> vector<2x8xf32>
    %c0_80 = arith.constant 0 : index
    %c0_81 = arith.constant 0 : index
    %146 = vector.load %arg18[%c0_80, %c0_81] : memref<8x576xf32, #tpu.memory_space<vmem>>, vector<8x576xf32>
    %cst_82 = arith.constant dense<0.000000e+00> : vector<2x576xf32>
    %147 = tpu.matmul %145, %146, %cst_82 {dimension_numbers = #tpu.dot_dimension_numbers<[1], [0], [0], [1], [0, 0, 1, 1], [], []>} : vector<2x8xf32>, vector<8x576xf32>, vector<2x576xf32> -> vector<2x576xf32>
    %148 = vector.extract_strided_slice %147 {offsets = [0, 0], sizes = [1, 576], strides = [1, 1]} : vector<2x576xf32> to vector<1x576xf32>
    %149 = vector.broadcast %148 : vector<1x576xf32> to vector<2x576xf32>
    %150 = arith.mulf %120, %149 : vector<2x576xf32>
    %151 = vector.extract_strided_slice %147 {offsets = [1, 0], sizes = [1, 576], strides = [1, 1]} : vector<2x576xf32> to vector<1x576xf32>
    %152 = vector.broadcast %151 : vector<1x576xf32> to vector<2x576xf32>
    %153 = arith.addf %150, %152 : vector<2x576xf32>
    %cst_83 = arith.constant 2.000000e-01 : f32
    %154 = vector.broadcast %cst_83 : f32 to vector<2x576xf32>
    %155 = arith.mulf %154, %153 : vector<2x576xf32>
    %156 = arith.maximumf %153, %155 : vector<2x576xf32>
    %157 = arith.truncf %156 : vector<2x576xf32> to vector<2x576xbf16>
    %c0_84 = arith.constant 0 : index
    %c0_85 = arith.constant 0 : index
    %158 = vector.load %arg21[%c0_84, %c0_85] : memref<576x192xbf16, #tpu.memory_space<vmem>>, vector<576x192xbf16>
    %cst_86 = arith.constant dense<0.000000e+00> : vector<2x192xf32>
    %159 = tpu.matmul %157, %158, %cst_86 {dimension_numbers = #tpu.dot_dimension_numbers<[1], [0], [0], [1], [0, 0, 1, 1], [], []>} : vector<2x576xbf16>, vector<576x192xbf16>, vector<2x192xf32> -> vector<2x192xf32>
    %160 = math.tanh %159 : vector<2x192xf32>
    %c0_87 = arith.constant 0 : index
    %c0_88 = arith.constant 0 : index
    %161 = vector.load %arg22[%c0_87, %c0_88] : memref<2x192xf32, #tpu.memory_space<vmem>>, vector<2x192xf32>
    tpu.vector_store %arg22[%c0_87, %c0_88], %160 {strides = array<i32>} : memref<2x192xf32, #tpu.memory_space<vmem>>, vector<2x192xf32>,
    return
  }
}

</mosaic_0001>

<bundles_post_ra>
// kernel: generator_forward.1
= control target key start
LH: loop header
LB: loop body
LE: loop exit
PB: predicated region body
PF: predicated region fallthrough
CT: control target
= control target key end

     0   :  { %vm390_vm0 = vcmask 1041408   ;;  %vm386_vm1 = vcmask 818176   ;;  %vm807_vm2 = vcmask 517120   ;;  %vm1014_vm6 = vcmask 1040384   ;;  %s17735_s1 = inlined_call_operand.vmem [shape: bf16[100,1024], index: 1, kind: input, shape index: {}]   ;;  %s17736_s0 = inlined_call_operand.vmem [shape: f32[2,100], index: 0, kind: input, shape index: {}]   ;;  %s17737_s2 = inlined_call_operand.vmem [shape: f32[1024,64], index: 2, kind: input, shape index: {}]   ;;  %s17738_s3 = inlined_call_operand.vmem [shape: f32[64,1024], index: 3, kind: input, shape index: {}]   ;;  %s17739_s4 = inlined_call_operand.vmem [shape: f32[1,64], index: 4, kind: input, shape index: {}]   ;;  %s17740_s5 = inlined_call_operand.vmem [shape: f32[1,64], index: 5, kind: input, shape index: {}]   ;;  %s17741_s6 = inlined_call_operand.vmem [shape: bf16[1024,576], index: 6, kind: input, shape index: {}]   ;;  %s17742_s7 = inlined_call_operand.vmem [shape: f32[576,32], index: 7, kind: input, shape index: {}]   ;;  %s17743_s8 = inlined_call_operand.vmem [shape: f32[32,576], index: 8, kind: input, shape index: {}]   ;;  %s17744_s11 = inlined_call_operand.vmem [shape: bf16[576,384], index: 11, kind: input, shape index: {}]   ;;  %s17745_s9 = inlined_call_operand.vmem [shape: f32[1,32], index: 9, kind: input, shape index: {}]   ;;  %s17746_s10 = inlined_call_operand.vmem [shape: f32[1,32], index: 10, kind: input, shape index: {}]   ;;  %s17747_s12 = inlined_call_operand.vmem [shape: f32[384,16], index: 12, kind: input, shape index: {}]   ;;  %s17748_s13 = inlined_call_operand.vmem [shape: f32[16,384], index: 13, kind: input, shape index: {}]   ;;  %s17749_s16 = inlined_call_operand.vmem [shape: bf16[384,576], index: 16, kind: input, shape index: {}]   ;;  %s17750_s14 = inlined_call_operand.vmem [shape: f32[1,16], index: 14, kind: input, shape index: {}]   ;;  %s17751_s15 = inlined_call_operand.vmem [shape: f32[1,16], index: 15, kind: input, shape index: {}]   ;;  %s17752_s17 = inlined_call_operand.vmem [shape: f32[576,8], index: 17, kind: input, shape index: {}]   ;;  %s17753_s18 = inlined_call_operand.vmem [shape: f32[8,576], index: 18, kind: input, shape index: {}]   ;;  %s17754_s21 = inlined_call_operand.vmem [shape: bf16[576,192], index: 21, kind: input, shape index: {}]   ;;  %s17755_s19 = inlined_call_operand.vmem [shape: f32[1,8], index: 19, kind: input, shape index: {}]   ;;  %s17756_s20 = inlined_call_operand.vmem [shape: f32[1,8], index: 20, kind: input, shape index: {}]   ;;  %s17757_s22 = inlined_call_operand.vmem [shape: f32[2,192], index: 22, kind: output, shape index: {}]  }
   0x1   :  { %17837 = sst [smem:[#allocation71_spill]] %s17735_s1  ;;  %vm1080_vm7 = vcmask 523264   ;;  %vm4043_vm8 = vcmask 254976   ;;  %vm4211_vm12 = vcmask 261120   ;;  %vm5376_vm13 = vcmask 123904  }
   0x2   :  { %17838 = sst [smem:[#allocation72_spill]] %s17736_s0 }
   0x3   :  { %17839 = sst [smem:[#allocation73_spill]] %s17737_s2 }
   0x4   :  { %17840 = sst [smem:[#allocation74_spill]] %s17738_s3 }
   0x5   :  { %17841 = sst [smem:[#allocation75_spill]] %s17739_s4 }
   0x6   :  { %17842 = sst [smem:[#allocation76_spill]] %s17740_s5 }
   0x7   :  { %17843 = sst [smem:[#allocation77_spill]] %s17741_s6 }
   0x8   :  { %s17844_s29 = sld [smem:[#allocation71_spill]] }
   0x9   :  { %s17845_s24 = sld [smem:[#allocation72_spill]] }
   0xa   :  { %s17846_s6 = sld [smem:[#allocation73_spill]] }
   0xb   :  { %s17985_s2 = sld [smem:[#allocation74_spill]] }
   0xc   :  { %s17986_s28 = sld [smem:[#allocation75_spill]] }
   0xd   :  { %s17987_s4 = sld [smem:[#allocation76_spill]] }
   0xe   :  { %v122_v0 = vld [vmem:[%s17844_s29 + $0x180] sm:$0x33]  ;;  %v123_v1 = vld [vmem:[%s17844_s29 + $0x188] sm:$0x33]  ;;  %v124_v63 = vld [vmem:[%s17844_s29 + $0x190] sm:$0x33] }
   0xf   :  { %v274_v2 = vunpack.c.l.b16 %v122_v0  ;;  %v275_v3 = vunpack.c.h.b16 %v122_v0  ;;  %v276_v4 = vunpack.c.l.b16 %v123_v1  ;;  %v277_v5 = vunpack.c.h.b16 %v123_v1  ;;  %v7741_v6 = vld [vmem:[%s17844_s29 + $0x140] sm:$0xf]  ;;  %v10329_v12 = vld [vmem:[%s17844_s29 + $0x144] sm:$0xf]  ;;  %v7749_v14 = vld [vmem:[%s17844_s29 + $0x148] sm:$0xf] }
  0x10   :  { %v10333_v7 = vld [vmem:[%s17844_s29 + $0x15c] sm:$0xf0]  ;;  %v7743_v13 = vld [vmem:[%s17844_s29 + $0x160] sm:$0xf0]  ;;  %v10334_v15 = vld [vmem:[%s17844_s29 + $0x164] sm:$0xf0] }
  0x11   :  { %v330_v8 = vpack.c.b16 %v274_v2, %v274_v2  ;;  %v331_v9 = vpack.c.b16 %v275_v3, %v275_v3  ;;  %v332_v10 = vpack.c.b16 %v276_v4, %v276_v4  ;;  %v333_v11 = vpack.c.b16 %v277_v5, %v277_v5  ;;  %v10330_v16 = vld [vmem:[%s17844_s29 + $0x14c] sm:$0xf]  ;;  %v7709_v24 = vld [vmem:[%s17844_s29 + $0x100] sm:$0xf]  ;;  %v10321_v28 = vld [vmem:[%s17844_s29 + $0x104] sm:$0xf] }
  0x12   :  { %v7751_v17 = vld [vmem:[%s17844_s29 + $0x168] sm:$0xf0]  ;;  %v7742_v22 = vor.u32 %v10333_v7, %v7741_v6  ;;  %v7746_v23 = vor.u32 %v10329_v12, %v7743_v13  ;;  %v10325_v25 = vld [vmem:[%s17844_s29 + $0x11c] sm:$0xf0]  ;;  %v7750_v26 = vor.u32 %v10334_v15, %v7749_v14  ;;  %v7711_v29 = vld [vmem:[%s17844_s29 + $0x120] sm:$0xf0] }
  0x13   :  { %v392_v18 = vsel %vm390_vm0, %v330_v8, 0  ;;  %v395_v19 = vsel %vm390_vm0, %v331_v9, 0  ;;  %v398_v20 = vsel %vm390_vm0, %v332_v10, 0  ;;  %v401_v21 = vsel %vm390_vm0, %v333_v11, 0  ;;  %v7717_v30 = vld [vmem:[%s17844_s29 + $0x108] sm:$0xf] }
  0x14   :  { %416 = vmatpush.bf16.msra.mxu0 %v392_v18  ;;  %429 = vmatpush.bf16.msra.mxu1 %v395_v19  ;;  %v7754_v27 = vor.u32 %v10330_v16, %v7751_v17  ;;  %v10326_v31 = vld [vmem:[%s17844_s29 + $0x124] sm:$0xf0]  ;;  %v10322_v32 = vld [vmem:[%s17844_s29 + $0x10c] sm:$0xf]  ;;  %v7710_v34 = vor.u32 %v10325_v25, %v7709_v24  ;;  %v7714_v35 = vor.u32 %v10321_v28, %v7711_v29  ;;  %v7677_v36 = vld [vmem:[%s17844_s29 + $0xc0] sm:$0xf]  ;;  %v278_v8 = vunpack.c.l.b16 %v124_v63 }
  0x15   :  { %442 = vmatpush.bf16.msra.mxu2 %v398_v20  ;;  %455 = vmatpush.bf16.msra.mxu3 %v401_v21  ;;  %v7719_v33 = vld [vmem:[%s17844_s29 + $0x128] sm:$0xf0]  ;;  %v10317_v37 = vld [vmem:[%s17844_s29 + $0xdc] sm:$0xf0]  ;;  %v7718_v38 = vor.u32 %v10326_v31, %v7717_v30  ;;  %v10313_v40 = vld [vmem:[%s17844_s29 + $0xc4] sm:$0xf]  ;;  %v279_v9 = vunpack.c.h.b16 %v124_v63 }
  0x16   :  { %v7722_v39 = vor.u32 %v10322_v32, %v7719_v33  ;;  %v7679_v41 = vld [vmem:[%s17844_s29 + $0xe0] sm:$0xf0]  ;;  %v7685_v42 = vld [vmem:[%s17844_s29 + $0xc8] sm:$0xf]  ;;  %v10314_v44 = vld [vmem:[%s17844_s29 + $0xcc] sm:$0xf]  ;;  %v7678_v46 = vor.u32 %v10317_v37, %v7677_v36  ;;  %v334_v25 = vpack.c.b16 %v278_v8, %v278_v8 }
  0x17   :  { %v10318_v43 = vld [vmem:[%s17844_s29 + $0xe4] sm:$0xf0]  ;;  %v7687_v45 = vld [vmem:[%s17844_s29 + $0xe8] sm:$0xf0]  ;;  %v7682_v47 = vor.u32 %v10313_v40, %v7679_v41  ;;  %v7645_v48 = vld [vmem:[%s17844_s29 + $0x80] sm:$0xf] }
  0x18   :  { %417 = vmatpush.bf16.msra.mxu0 %v7742_v22  ;;  %430 = vmatpush.bf16.msra.mxu1 %v7746_v23  ;;  %v10309_v49 = vld [vmem:[%s17844_s29 + $0x9c] sm:$0xf0]  ;;  %v7686_v50 = vor.u32 %v10318_v43, %v7685_v42  ;;  %v7690_v51 = vor.u32 %v10314_v44, %v7687_v45  ;;  %v10305_v52 = vld [vmem:[%s17844_s29 + $0x84] sm:$0xf]  ;;  %v7653_v54 = vld [vmem:[%s17844_s29 + $0x88] sm:$0xf] }
  0x19   :  { %443 = vmatpush.bf16.msra.mxu2 %v7750_v26  ;;  %456 = vmatpush.bf16.msra.mxu3 %v7754_v27  ;;  %v7647_v53 = vld [vmem:[%s17844_s29 + $0xa0] sm:$0xf0]  ;;  %v10310_v55 = vld [vmem:[%s17844_s29 + $0xa4] sm:$0xf0]  ;;  %v10306_v56 = vld [vmem:[%s17844_s29 + $0x8c] sm:$0xf]  ;;  %v7646_v59 = vor.u32 %v10309_v49, %v7645_v48  ;;  %v335_v26 = vpack.c.b16 %v279_v9, %v279_v9 }
  0x1a   :  { %v7655_v57 = vld [vmem:[%s17844_s29 + $0xa8] sm:$0xf0]  ;;  %v7613_v58 = vld [vmem:[%s17844_s29 + $0x40] sm:$0xf]  ;;  %v7650_v60 = vor.u32 %v10305_v52, %v7647_v53  ;;  %v10297_v62 = vld [vmem:[%s17844_s29 + $0x44] sm:$0xf]  ;;  %v7654_v0 = vor.u32 %v10310_v55, %v7653_v54 }
  0x1b   :  { %v10301_v61 = vld [vmem:[%s17844_s29 + $0x5c] sm:$0xf0]  ;;  %v7658_v1 = vor.u32 %v10306_v56, %v7655_v57  ;;  %v7615_v2 = vld [vmem:[%s17844_s29 + $0x60] sm:$0xf0]  ;;  %v7621_v3 = vld [vmem:[%s17844_s29 + $0x48] sm:$0xf] }
  0x1c   :  { %418 = vmatpush.bf16.msra.mxu0 %v7710_v34  ;;  %431 = vmatpush.bf16.msra.mxu1 %v7714_v35  ;;  %v125_v4 = vld [vmem:[%s17844_s29 + $0x198] sm:$0x33]  ;;  %v10302_v5 = vld [vmem:[%s17844_s29 + $0x64] sm:$0xf0]  ;;  %v10298_v6 = vld [vmem:[%s17844_s29 + $0x4c] sm:$0xf]  ;;  %v7614_v10 = vor.u32 %v10301_v61, %v7613_v58  ;;  %v7618_v11 = vor.u32 %v10297_v62, %v7615_v2 }
  0x1d   :  { %444 = vmatpush.bf16.msra.mxu2 %v7718_v38  ;;  %457 = vmatpush.bf16.msra.mxu3 %v7722_v39  ;;  %v7623_v7 = vld [vmem:[%s17844_s29 + $0x68] sm:$0xf0]  ;;  %v7581_v12 = vld [vmem:[%s17844_s29] sm:$0xf]  ;;  %v280_v14 = vunpack.c.l.b16 %v125_v4  ;;  %v281_v15 = vunpack.c.h.b16 %v125_v4  ;;  %v7622_v16 = vor.u32 %v10302_v5, %v7621_v3  ;;  %v10289_v18 = vld [vmem:[%s17844_s29 + $0x4] sm:$0xf] }
  0x1e   :  { %v10293_v13 = vld [vmem:[%s17844_s29 + $0x1c] sm:$0xf0]  ;;  %v7626_v17 = vor.u32 %v10298_v6, %v7623_v7  ;;  %v7583_v19 = vld [vmem:[%s17844_s29 + $0x20] sm:$0xf0]  ;;  %v7589_v20 = vld [vmem:[%s17844_s29 + $0x8] sm:$0xf] }
  0x1f   :  { %v10294_v21 = vld [vmem:[%s17844_s29 + $0x24] sm:$0xf0]  ;;  %v10290_v22 = vld [vmem:[%s17844_s29 + $0xc] sm:$0xf]  ;;  %v7582_v24 = vor.u32 %v10293_v13, %v7581_v12  ;;  %v7586_v27 = vor.u32 %v10289_v18, %v7583_v19  ;;  %v336_v28 = vpack.c.b16 %v280_v14, %v280_v14  ;;  %v337_v29 = vpack.c.b16 %v281_v15, %v281_v15  ;;  %v72_v32 = vld [vmem:[%s17845_s24] sm:$0x3] }
  0x20   :  { %419 = vmatpush.bf16.msra.mxu0 %v7678_v46  ;;  %432 = vmatpush.bf16.msra.mxu1 %v7682_v47  ;;  %v7591_v23 = vld [vmem:[%s17844_s29 + $0x28] sm:$0xf0]  ;;  %v7590_v30 = vor.u32 %v10294_v21, %v7589_v20  ;;  %v7757_v33 = vld [vmem:[%s17844_s29 + $0x150] sm:$0xf]  ;;  %v10331_v35 = vld [vmem:[%s17844_s29 + $0x154] sm:$0xf]  ;;  %v11269_v43 = vpack.c.bf16 %v72_v32, %v72_v32 }
  0x21   :  { %445 = vmatpush.bf16.msra.mxu2 %v7686_v50  ;;  %458 = vmatpush.bf16.msra.mxu3 %v7690_v51  ;;  %v7594_v31 = vor.u32 %v10290_v22, %v7591_v23  ;;  %v10335_v34 = vld [vmem:[%s17844_s29 + $0x16c] sm:$0xf0]  ;;  %v7759_v36 = vld [vmem:[%s17844_s29 + $0x170] sm:$0xf0]  ;;  %v404_v37 = vsel %vm390_vm0, %v334_v25, 0  ;;  %v407_v38 = vsel %vm390_vm0, %v335_v26, 0 }
  0x22   :  { %v7765_v39 = vld [vmem:[%s17844_s29 + $0x158] sm:$0xf]  ;;  %v410_v41 = vsel %vm390_vm0, %v336_v28, 0  ;;  %v413_v42 = vsel %vm390_vm0, %v337_v29, 0  ;;  %v10332_v44 = vld [vmem:[%s17844_s29 + $0x15c] sm:$0xf]  ;;  %v7758_v46 = vor.u32 %v10335_v34, %v7757_v33  ;;  %v7762_v47 = vor.u32 %v10331_v35, %v7759_v36 }
  0x23   :  { %v10336_v40 = vld [vmem:[%s17844_s29 + $0x174] sm:$0xf0]  ;;  %v7767_v45 = vld [vmem:[%s17844_s29 + $0x178] sm:$0xf0]  ;;  %v7725_v48 = vld [vmem:[%s17844_s29 + $0x110] sm:$0xf] }
  0x24   :  { %420 = vmatpush.bf16.msra.mxu0 %v7646_v59  ;;  %433 = vmatpush.bf16.msra.mxu1 %v7650_v60  ;;  %v10327_v49 = vld [vmem:[%s17844_s29 + $0x12c] sm:$0xf0]  ;;  %v7766_v50 = vor.u32 %v10336_v40, %v7765_v39  ;;  %v7770_v51 = vor.u32 %v10332_v44, %v7767_v45  ;;  %v10323_v52 = vld [vmem:[%s17844_s29 + $0x114] sm:$0xf]  ;;  %v7733_v54 = vld [vmem:[%s17844_s29 + $0x118] sm:$0xf] }
  0x25   :  { %446 = vmatpush.bf16.msra.mxu2 %v7654_v0  ;;  %459 = vmatpush.bf16.msra.mxu3 %v7658_v1  ;;  %v7727_v53 = vld [vmem:[%s17844_s29 + $0x130] sm:$0xf0]  ;;  %v10328_v55 = vld [vmem:[%s17844_s29 + $0x134] sm:$0xf0]  ;;  %v10324_v56 = vld [vmem:[%s17844_s29 + $0x11c] sm:$0xf]  ;;  %v7726_v58 = vor.u32 %v10327_v49, %v7725_v48 }
  0x26   :  { %v7735_v57 = vld [vmem:[%s17844_s29 + $0x138] sm:$0xf0]  ;;  %v7730_v59 = vor.u32 %v10323_v52, %v7727_v53  ;;  %v7693_v60 = vld [vmem:[%s17844_s29 + $0xd0] sm:$0xf]  ;;  %v7734_v62 = vor.u32 %v10328_v55, %v7733_v54  ;;  %v10315_v0 = vld [vmem:[%s17844_s29 + $0xd4] sm:$0xf] }
  0x27   :  { %v10319_v61 = vld [vmem:[%s17844_s29 + $0xec] sm:$0xf0]  ;;  %v7738_v63 = vor.u32 %v10324_v56, %v7735_v57  ;;  %v7695_v1 = vld [vmem:[%s17844_s29 + $0xf0] sm:$0xf0]  ;;  %v7701_v2 = vld [vmem:[%s17844_s29 + $0xd8] sm:$0xf] }
  0x28   :  { %421 = vmatpush.bf16.msra.mxu0 %v7614_v10  ;;  %434 = vmatpush.bf16.msra.mxu1 %v7618_v11  ;;  %v10320_v3 = vld [vmem:[%s17844_s29 + $0xf4] sm:$0xf0]  ;;  %v10316_v4 = vld [vmem:[%s17844_s29 + $0xdc] sm:$0xf]  ;;  %v7694_v6 = vor.u32 %v10319_v61, %v7693_v60  ;;  %v7698_v7 = vor.u32 %v10315_v0, %v7695_v1  ;;  %v7661_v8 = vld [vmem:[%s17844_s29 + $0x90] sm:$0xf] }
  0x29   :  { %447 = vmatpush.bf16.msra.mxu2 %v7622_v16  ;;  %460 = vmatpush.bf16.msra.mxu3 %v7626_v17  ;;  %v7703_v5 = vld [vmem:[%s17844_s29 + $0xf8] sm:$0xf0]  ;;  %v10311_v9 = vld [vmem:[%s17844_s29 + $0xac] sm:$0xf0]  ;;  %v7702_v10 = vor.u32 %v10320_v3, %v7701_v2  ;;  %v10307_v12 = vld [vmem:[%s17844_s29 + $0x94] sm:$0xf] }
  0x2a   :  { %v7706_v11 = vor.u32 %v10316_v4, %v7703_v5  ;;  %v7663_v13 = vld [vmem:[%s17844_s29 + $0xb0] sm:$0xf0]  ;;  %v7669_v14 = vld [vmem:[%s17844_s29 + $0x98] sm:$0xf]  ;;  %v10308_v16 = vld [vmem:[%s17844_s29 + $0x9c] sm:$0xf]  ;;  %v7662_v18 = vor.u32 %v10311_v9, %v7661_v8 }
  0x2b   :  { %v10312_v15 = vld [vmem:[%s17844_s29 + $0xb4] sm:$0xf0]  ;;  %v7671_v17 = vld [vmem:[%s17844_s29 + $0xb8] sm:$0xf0]  ;;  %v7666_v19 = vor.u32 %v10307_v12, %v7663_v13  ;;  %v7629_v20 = vld [vmem:[%s17844_s29 + $0x50] sm:$0xf] }
  0x2c   :  { %422 = vmatpush.bf16.msra.mxu0 %v7582_v24  ;;  %435 = vmatpush.bf16.msra.mxu1 %v7586_v27  ;;  %v10303_v21 = vld [vmem:[%s17844_s29 + $0x6c] sm:$0xf0]  ;;  %v7670_v22 = vor.u32 %v10312_v15, %v7669_v14  ;;  %v7674_v23 = vor.u32 %v10308_v16, %v7671_v17  ;;  %v10299_v24 = vld [vmem:[%s17844_s29 + $0x54] sm:$0xf]  ;;  %v7637_v26 = vld [vmem:[%s17844_s29 + $0x58] sm:$0xf] }
  0x2d   :  { %448 = vmatpush.bf16.msra.mxu2 %v7590_v30  ;;  %461 = vmatpush.bf16.msra.mxu3 %v7594_v31  ;;  %v7631_v25 = vld [vmem:[%s17844_s29 + $0x70] sm:$0xf0]  ;;  %v10304_v27 = vld [vmem:[%s17844_s29 + $0x74] sm:$0xf0]  ;;  %v10300_v28 = vld [vmem:[%s17844_s29 + $0x5c] sm:$0xf]  ;;  %v7630_v30 = vor.u32 %v10303_v21, %v7629_v20 }
  0x2e   :  { %v7639_v29 = vld [vmem:[%s17844_s29 + $0x78] sm:$0xf0]  ;;  %v7634_v31 = vor.u32 %v10299_v24, %v7631_v25  ;;  %v7597_v32 = vld [vmem:[%s17844_s29 + $0x10] sm:$0xf]  ;;  %v7638_v34 = vor.u32 %v10304_v27, %v7637_v26  ;;  %v10291_v36 = vld [vmem:[%s17844_s29 + $0x14] sm:$0xf] }
  0x2f   :  { %7771 = vmatmul.msk.bf16.vlgmr.msra.gmra.mxu0 %vm386_vm1, %v11269_v43  ;;  %7772 = vmatmul.msk.bf16.vlgmr.msra.gmra.mxu1 %vm386_vm1, %v11269_v43  ;;  %v10295_v33 = vld [vmem:[%s17844_s29 + $0x2c] sm:$0xf0]  ;;  %v7642_v35 = vor.u32 %v10300_v28, %v7639_v29  ;;  %v10296_v39 = vld [vmem:[%s17844_s29 + $0x34] sm:$0xf0]  ;;  %v10292_v40 = vld [vmem:[%s17844_s29 + $0x1c] sm:$0xf] }
  0x30   :  { %468 = vmatpush.bf16.msrb.mxu0 %v404_v37  ;;  %481 = vmatpush.bf16.msrb.mxu1 %v407_v38  ;;  %v7599_v37 = vld [vmem:[%s17844_s29 + $0x30] sm:$0xf0]  ;;  %v7605_v38 = vld [vmem:[%s17844_s29 + $0x18] sm:$0xf]  ;;  %v11448_v53 = vld [vmem:[%s17846_s6 + $0x68] sm:$0xff]  ;;  %s17988_s0 = sld [smem:[#allocation77_spill]] }
  0x31   :  { %494 = vmatpush.bf16.msrb.mxu2 %v410_v41  ;;  %507 = vmatpush.bf16.msrb.mxu3 %v413_v42  ;;  %v7607_v41 = vld [vmem:[%s17844_s29 + $0x38] sm:$0xf0]  ;;  %v7598_v42 = vor.u32 %v10295_v33, %v7597_v32  ;;  %v7602_v44 = vor.u32 %v10291_v36, %v7599_v37  ;;  %v7606_v45 = vor.u32 %v10296_v39, %v7605_v38  ;;  %v11420_v49 = vld [vmem:[%s17846_s6 + $0x70] sm:$0xff]  ;;  %v11453_v54 = vld [vmem:[%s17846_s6 + $0xe8] sm:$0xff] }
  0x32   :  { %7773 = vmatmul.msk.bf16.vlgmr.msra.gmra.mxu2 %vm386_vm1, %v11269_v43  ;;  %7774 = vmatmul.msk.bf16.vlgmr.msra.gmra.mxu3 %vm386_vm1, %v11269_v43  ;;  %v11413_v48 = vld [vmem:[%s17846_s6 + $0xf8] sm:$0xff]  ;;  %v11460_v55 = vld [vmem:[%s17846_s6 + $0x170] sm:$0xff]  ;;  %v11470_v56 = vld [vmem:[%s17846_s6 + $0x60] sm:$0xff] }
  0x33   :  { %v11439_v52 = vld [vmem:[%s17846_s6 + $0x1f8] sm:$0xff]  ;;  %v11475_v57 = vld [vmem:[%s17846_s6 + $0xe0] sm:$0xff]  ;;  %v11518_v0 = vld [vmem:[%s17846_s6 + $0x50] sm:$0xff] }
  0x34   :  { %469 = vmatpush.bf16.msrb.mxu0 %v7758_v46  ;;  %482 = vmatpush.bf16.msrb.mxu1 %v7762_v47  ;;  %v7610_v46 = vor.u32 %v10292_v40, %v7607_v41  ;;  %v11408_v47 = vld [vmem:[%s17846_s6 + $0x78] sm:$0xff]  ;;  %v11523_v1 = vld [vmem:[%s17846_s6 + $0xd0] sm:$0xff]  ;;  %v11542_v4 = vld [vmem:[%s17846_s6 + $0x48] sm:$0xff] }
  0x35   :  { %495 = vmatpush.bf16.msrb.mxu2 %v7766_v50  ;;  %508 = vmatpush.bf16.msrb.mxu3 %v7770_v51  ;;  %v11425_v50 = vld [vmem:[%s17846_s6 + $0xf0] sm:$0xff]  ;;  %v11434_v51 = vld [vmem:[%s17846_s6 + $0x178] sm:$0xff]  ;;  %v11547_v5 = vld [vmem:[%s17846_s6 + $0xc8] sm:$0xff] }
  0x36   :  { %v11494_v60 = vld [vmem:[%s17846_s6 + $0x58] sm:$0xff]  ;;  %v11566_v8 = vld [vmem:[%s17846_s6 + $0x40] sm:$0xff]  ;;  %v11614_v16 = vld [vmem:[%s17846_s6 + $0x30] sm:$0xff] }
  0x37   :  { %v11499_v61 = vld [vmem:[%s17846_s6 + $0xd8] sm:$0xff]  ;;  %v11571_v9 = vld [vmem:[%s17846_s6 + $0xc0] sm:$0xff]  ;;  %v11619_v17 = vld [vmem:[%s17846_s6 + $0xb0] sm:$0xff] }
  0x38   :  { %470 = vmatpush.bf16.msrb.mxu0 %v7726_v58  ;;  %483 = vmatpush.bf16.msrb.mxu1 %v7730_v59  ;;  %v11484_v58 = vld [vmem:[%s17846_s6 + $0x168] sm:$0xff]  ;;  %v11532_v2 = vld [vmem:[%s17846_s6 + $0x158] sm:$0xff]  ;;  %v11604_v14 = vld [vmem:[%s17846_s6 + $0x140] sm:$0xff] }
  0x39   :  { %496 = vmatpush.bf16.msrb.mxu2 %v7734_v62  ;;  %509 = vmatpush.bf16.msrb.mxu3 %v7738_v63  ;;  %v11489_v59 = vld [vmem:[%s17846_s6 + $0x1e8] sm:$0xff]  ;;  %v11508_v62 = vld [vmem:[%s17846_s6 + $0x160] sm:$0xff]  ;;  %v11537_v3 = vld [vmem:[%s17846_s6 + $0x1d8] sm:$0xff] }
  0x3a   :  { %v11513_v63 = vld [vmem:[%s17846_s6 + $0x1e0] sm:$0xff]  ;;  %v11590_v12 = vld [vmem:[%s17846_s6 + $0x38] sm:$0xff]  ;;  %v11638_v20 = vld [vmem:[%s17846_s6 + $0x28] sm:$0xff] }
  0x3b   :  { %v11595_v13 = vld [vmem:[%s17846_s6 + $0xb8] sm:$0xff]  ;;  %v11609_v15 = vld [vmem:[%s17846_s6 + $0x1c0] sm:$0xff]  ;;  %v11643_v21 = vld [vmem:[%s17846_s6 + $0xa8] sm:$0xff] }
  0x3c   :  { %471 = vmatpush.bf16.msrb.mxu0 %v7694_v6  ;;  %484 = vmatpush.bf16.msrb.mxu1 %v7698_v7  ;;  %v11556_v6 = vld [vmem:[%s17846_s6 + $0x150] sm:$0xff]  ;;  %v11662_v24 = vld [vmem:[%s17846_s6 + $0x20] sm:$0xff]  ;;  %v11676_v26 = vld [vmem:[%s17846_s6 + $0x128] sm:$0xff] }
  0x3d   :  { %497 = vmatpush.bf16.msrb.mxu2 %v7702_v10  ;;  %510 = vmatpush.bf16.msrb.mxu3 %v7706_v11  ;;  %v11561_v7 = vld [vmem:[%s17846_s6 + $0x1d0] sm:$0xff]  ;;  %v11580_v10 = vld [vmem:[%s17846_s6 + $0x148] sm:$0xff]  ;;  %v11667_v25 = vld [vmem:[%s17846_s6 + $0xa0] sm:$0xff] }
  0x3e   :  { %v11585_v11 = vld [vmem:[%s17846_s6 + $0x1c8] sm:$0xff]  ;;  %v11686_v28 = vld [vmem:[%s17846_s6 + $0x18] sm:$0xff]  ;;  %v11710_v32 = vld [vmem:[%s17846_s6 + $0x10] sm:$0xff] }
  0x3f   :  { %v11681_v27 = vld [vmem:[%s17846_s6 + $0x1a8] sm:$0xff]  ;;  %v11691_v29 = vld [vmem:[%s17846_s6 + $0x98] sm:$0xff]  ;;  %v11715_v33 = vld [vmem:[%s17846_s6 + $0x90] sm:$0xff] }
  0x40   :  { %472 = vmatpush.bf16.msrb.mxu0 %v7662_v18  ;;  %485 = vmatpush.bf16.msrb.mxu1 %v7666_v19  ;;  %v11628_v18 = vld [vmem:[%s17846_s6 + $0x138] sm:$0xff]  ;;  %v11734_v36 = vld [vmem:[%s17846_s6 + $0x8] sm:$0xff]  ;;  %v11748_v38 = vld [vmem:[%s17846_s6 + $0x110] sm:$0xff] }
  0x41   :  { %498 = vmatpush.bf16.msrb.mxu2 %v7670_v22  ;;  %511 = vmatpush.bf16.msrb.mxu3 %v7674_v23  ;;  %v11633_v19 = vld [vmem:[%s17846_s6 + $0x1b8] sm:$0xff]  ;;  %v11652_v22 = vld [vmem:[%s17846_s6 + $0x130] sm:$0xff]  ;;  %v11739_v37 = vld [vmem:[%s17846_s6 + $0x88] sm:$0xff]  ;;  %17849 = vst [vmem:[#allocation4_spill] sm:$0xff] %v11748_v38 }
  0x42   :  { %v11657_v23 = vld [vmem:[%s17846_s6 + $0x1b0] sm:$0xff]  ;;  %v11758_v40 = vld [vmem:[%s17846_s6] sm:$0xff] }
  0x43   :  { %v11753_v39 = vld [vmem:[%s17846_s6 + $0x190] sm:$0xff]  ;;  %v11763_v41 = vld [vmem:[%s17846_s6 + $0x80] sm:$0xff] }
  0x44   :  { %473 = vmatpush.bf16.msrb.mxu0 %v7630_v30  ;;  %486 = vmatpush.bf16.msrb.mxu1 %v7634_v31  ;;  %v11700_v30 = vld [vmem:[%s17846_s6 + $0x120] sm:$0xff]  ;;  %17850 = vst [vmem:[#allocation5_spill] sm:$0xff] %v11753_v39 }
  0x45   :  { %499 = vmatpush.bf16.msrb.mxu2 %v7638_v34  ;;  %512 = vmatpush.bf16.msrb.mxu3 %v7642_v35  ;;  %v11705_v31 = vld [vmem:[%s17846_s6 + $0x1a0] sm:$0xff]  ;;  %v11724_v34 = vld [vmem:[%s17846_s6 + $0x118] sm:$0xff] }
  0x46   :  { %17847 = vst [vmem:[#allocation2_spill] sm:$0xff] %v11724_v34  ;;  %v11729_v35 = vld [vmem:[%s17846_s6 + $0x198] sm:$0xff] }
  0x47   :  { %17848 = vst [vmem:[#allocation3_spill] sm:$0xff] %v11729_v35 }
  0x48   :  { %474 = vmatpush.bf16.msrb.mxu0 %v7598_v42  ;;  %487 = vmatpush.bf16.msrb.mxu1 %v7602_v44  ;;  %v11772_v42 = vld [vmem:[%s17846_s6 + $0x278] sm:$0xff] }
  0x49   :  { %500 = vmatpush.bf16.msrb.mxu2 %v7606_v45  ;;  %513 = vmatpush.bf16.msrb.mxu3 %v7610_v46  ;;  %17851 = vst [vmem:[#allocation6_spill] sm:$0xff] %v11772_v42  ;;  %v11777_v44 = vld [vmem:[%s17846_s6 + $0x2f8] sm:$0xff]  ;;  %v11784_v45 = vld [vmem:[%s17846_s6 + $0x108] sm:$0xff] }
  0x4a   :  { %17852 = vst [vmem:[#allocation7_spill] sm:$0xff] %v11777_v44  ;;  %v11789_v46 = vld [vmem:[%s17846_s6 + $0x188] sm:$0xff] }
  0x4b   :  { %7775 = vmatmul.msk.bf16.vlgmr.msrb.gmra.mxu0 %vm386_vm1, %v11269_v43  ;;  %7776 = vmatmul.msk.bf16.vlgmr.msrb.gmra.mxu1 %vm386_vm1, %v11269_v43  ;;  %17853 = vst [vmem:[#allocation8_spill] sm:$0xff] %v11784_v45 }
  0x4c   :  { %647 = vmatpush.msra.mxu0 %v11408_v47  ;;  %667 = vmatpush.msra.mxu1 %v11413_v48  ;;  %17854 = vst [vmem:[#allocation9_spill] sm:$0xff] %v11789_v46 }
  0x4d   :  { %7777 = vmatmul.msk.bf16.vlgmr.msrb.gmra.mxu2 %vm386_vm1, %v11269_v43  ;;  %7778 = vmatmul.msk.bf16.vlgmr.msrb.gmra.mxu3 %vm386_vm1, %v11269_v43  ;;  %v11465_v43 = vld [vmem:[%s17846_s6 + $0x1f0] sm:$0xff] }
  0x4e   :  { %648 = vmatpush.msra.mxu0 %v11420_v49  ;;  %668 = vmatpush.msra.mxu1 %v11425_v50 }
  0x4f   :  { %687 = vmatpush.msra.mxu2 %v11434_v51  ;;  %707 = vmatpush.msra.mxu3 %v11439_v52 }
  0x50   :  { %649 = vmatpush.msra.mxu0 %v11448_v53  ;;  %669 = vmatpush.msra.mxu1 %v11453_v54 }
  0x51   :  { %688 = vmatpush.msra.mxu2 %v11460_v55  ;;  %708 = vmatpush.msra.mxu3 %v11465_v43 }
  0x52   :  { %650 = vmatpush.msra.mxu0 %v11470_v56  ;;  %670 = vmatpush.msra.mxu1 %v11475_v57 }
  0x53   :  { %689 = vmatpush.msra.mxu2 %v11484_v58  ;;  %709 = vmatpush.msra.mxu3 %v11489_v59 }
  0x54   :  { %651 = vmatpush.msra.mxu0 %v11494_v60  ;;  %671 = vmatpush.msra.mxu1 %v11499_v61 }
  0x55   :  { %690 = vmatpush.msra.mxu2 %v11508_v62  ;;  %710 = vmatpush.msra.mxu3 %v11513_v63 }
  0x56   :  { %652 = vmatpush.msra.mxu0 %v11518_v0  ;;  %672 = vmatpush.msra.mxu1 %v11523_v1 }
  0x57   :  { %691 = vmatpush.msra.mxu2 %v11532_v2  ;;  %711 = vmatpush.msra.mxu3 %v11537_v3 }
  0x58   :  { %653 = vmatpush.msra.mxu0 %v11542_v4  ;;  %673 = vmatpush.msra.mxu1 %v11547_v5 }
  0x59   :  { %692 = vmatpush.msra.mxu2 %v11556_v6  ;;  %712 = vmatpush.msra.mxu3 %v11561_v7 }
  0x5a   :  { %654 = vmatpush.msra.mxu0 %v11566_v8  ;;  %674 = vmatpush.msra.mxu1 %v11571_v9 }
  0x5b   :  { %693 = vmatpush.msra.mxu2 %v11580_v10  ;;  %713 = vmatpush.msra.mxu3 %v11585_v11 }
  0x5c   :  { %655 = vmatpush.msra.mxu0 %v11590_v12  ;;  %675 = vmatpush.msra.mxu1 %v11595_v13 }
  0x5d   :  { %694 = vmatpush.msra.mxu2 %v11604_v14  ;;  %714 = vmatpush.msra.mxu3 %v11609_v15 }
  0x5e   :  { %656 = vmatpush.msra.mxu0 %v11614_v16  ;;  %676 = vmatpush.msra.mxu1 %v11619_v17 }
  0x5f   :  { %695 = vmatpush.msra.mxu2 %v11628_v18  ;;  %715 = vmatpush.msra.mxu3 %v11633_v19 }
  0x60   :  { %657 = vmatpush.msra.mxu0 %v11638_v20  ;;  %677 = vmatpush.msra.mxu1 %v11643_v21 }
  0x61   :  { %696 = vmatpush.msra.mxu2 %v11652_v22  ;;  %716 = vmatpush.msra.mxu3 %v11657_v23 }
  0x62   :  { %658 = vmatpush.msra.mxu0 %v11662_v24  ;;  %678 = vmatpush.msra.mxu1 %v11667_v25 }
  0x63   :  { %697 = vmatpush.msra.mxu2 %v11676_v26  ;;  %717 = vmatpush.msra.mxu3 %v11681_v27 }
  0x64   :  { %659 = vmatpush.msra.mxu0 %v11686_v28  ;;  %679 = vmatpush.msra.mxu1 %v11691_v29 }
  0x65   :  { %698 = vmatpush.msra.mxu2 %v11700_v30  ;;  %718 = vmatpush.msra.mxu3 %v11705_v31 }
  0x66   :  { %660 = vmatpush.msra.mxu0 %v11710_v32  ;;  %680 = vmatpush.msra.mxu1 %v11715_v33 }
  0x67   :  { %699 = vmatpush.msra.mxu2 %v11724_v34  ;;  %719 = vmatpush.msra.mxu3 %v11729_v35  ;;  %v11808_v35 = vld [vmem:[%s17846_s6 + $0x100] sm:$0xff] }
  0x68   :  { %661 = vmatpush.msra.mxu0 %v11734_v36  ;;  %681 = vmatpush.msra.mxu1 %v11739_v37  ;;  %17857 = vst [vmem:[#allocation12_spill] sm:$0xff] %v11808_v35  ;;  %v11813_v34 = vld [vmem:[%s17846_s6 + $0x180] sm:$0xff] }
  0x69   :  { %700 = vmatpush.msra.mxu2 %v11748_v38  ;;  %720 = vmatpush.msra.mxu3 %v11753_v39  ;;  %v11796_v38 = vld [vmem:[%s17846_s6 + $0x270] sm:$0xff]  ;;  %17858 = vst [vmem:[#allocation13_spill] sm:$0xff] %v11813_v34 }
  0x6a   :  { %662 = vmatpush.msra.mxu0 %v11758_v40  ;;  %682 = vmatpush.msra.mxu1 %v11763_v41  ;;  %17855 = vst [vmem:[#allocation10_spill] sm:$0xff] %v11796_v38  ;;  %v11801_v39 = vld [vmem:[%s17846_s6 + $0x2f0] sm:$0xff] }
  0x6b   :  { %17856 = vst [vmem:[#allocation11_spill] sm:$0xff] %v11801_v39  ;;  %701 = vmatpush.msra.mxu2 %v11784_v45  ;;  %721 = vmatpush.msra.mxu3 %v11789_v46  ;;  %v11832_v45 = vld [vmem:[%s17846_s6 + $0x378] sm:$0xff] }
  0x6c   :  { %727 = vmatpush.msrb.mxu0 %v11772_v42  ;;  %747 = vmatpush.msrb.mxu1 %v11777_v44  ;;  %v11820_v42 = vld [vmem:[%s17846_s6 + $0x268] sm:$0xff]  ;;  %17861 = vst [vmem:[#allocation16_spill] sm:$0xff] %v11832_v45  ;;  %v11837_v46 = vld [vmem:[%s17846_s6 + $0x3f8] sm:$0xff] }
  0x6d   :  { %17859 = vst [vmem:[#allocation14_spill] sm:$0xff] %v11820_v42  ;;  %v11825_v44 = vld [vmem:[%s17846_s6 + $0x2e8] sm:$0xff]  ;;  %702 = vmatpush.msra.mxu2 %v11808_v35  ;;  %722 = vmatpush.msra.mxu3 %v11813_v34  ;;  %v11856_v35 = vld [vmem:[%s17846_s6 + $0x370] sm:$0xff] }
  0x6e   :  { %17860 = vst [vmem:[#allocation15_spill] sm:$0xff] %v11825_v44  ;;  %728 = vmatpush.msrb.mxu0 %v11796_v38  ;;  %748 = vmatpush.msrb.mxu1 %v11801_v39  ;;  %v11844_v38 = vld [vmem:[%s17846_s6 + $0x260] sm:$0xff]  ;;  %v11861_v34 = vld [vmem:[%s17846_s6 + $0x3f0] sm:$0xff] }
  0x6f   :  { %17862 = vst [vmem:[#allocation17_spill] sm:$0xff] %v11837_v46  ;;  %v11849_v39 = vld [vmem:[%s17846_s6 + $0x2e0] sm:$0xff]  ;;  %767 = vmatpush.msrb.mxu2 %v11832_v45  ;;  %787 = vmatpush.msrb.mxu3 %v11837_v46  ;;  %v11880_v45 = vld [vmem:[%s17846_s6 + $0x368] sm:$0xff] }
  0x70   :  { %17863 = vst [vmem:[#allocation18_spill] sm:$0xff] %v11844_v38  ;;  %729 = vmatpush.msrb.mxu0 %v11820_v42  ;;  %749 = vmatpush.msrb.mxu1 %v11825_v44  ;;  %v11868_v42 = vld [vmem:[%s17846_s6 + $0x258] sm:$0xff]  ;;  %v11885_v46 = vld [vmem:[%s17846_s6 + $0x3e8] sm:$0xff] }
  0x71   :  { %17864 = vst [vmem:[#allocation19_spill] sm:$0xff] %v11849_v39  ;;  %v11873_v44 = vld [vmem:[%s17846_s6 + $0x2d8] sm:$0xff]  ;;  %768 = vmatpush.msrb.mxu2 %v11856_v35  ;;  %788 = vmatpush.msrb.mxu3 %v11861_v34 }
  0x72   :  { %17865 = vst [vmem:[#allocation20_spill] sm:$0xff] %v11856_v35  ;;  %730 = vmatpush.msrb.mxu0 %v11844_v38  ;;  %750 = vmatpush.msrb.mxu1 %v11849_v39  ;;  %v11892_v38 = vld [vmem:[%s17846_s6 + $0x250] sm:$0xff]  ;;  %v11904_v35 = vld [vmem:[%s17846_s6 + $0x360] sm:$0xff] }
  0x73   :  { %17866 = vst [vmem:[#allocation21_spill] sm:$0xff] %v11861_v34  ;;  %v11897_v39 = vld [vmem:[%s17846_s6 + $0x2d0] sm:$0xff]  ;;  %v11909_v34 = vld [vmem:[%s17846_s6 + $0x3e0] sm:$0xff]  ;;  %769 = vmatpush.msrb.mxu2 %v11880_v45  ;;  %789 = vmatpush.msrb.mxu3 %v11885_v46 }
  0x74   :  { %17867 = vst [vmem:[#allocation22_spill] sm:$0xff] %v11868_v42  ;;  %731 = vmatpush.msrb.mxu0 %v11868_v42  ;;  %751 = vmatpush.msrb.mxu1 %v11873_v44  ;;  %v11916_v42 = vld [vmem:[%s17846_s6 + $0x248] sm:$0xff] }
  0x75   :  { %17868 = vst [vmem:[#allocation23_spill] sm:$0xff] %v11873_v44  ;;  %v11921_v44 = vld [vmem:[%s17846_s6 + $0x2c8] sm:$0xff]  ;;  %770 = vmatpush.msrb.mxu2 %v11904_v35  ;;  %790 = vmatpush.msrb.mxu3 %v11909_v34 }
  0x76   :  { %17869 = vst [vmem:[#allocation24_spill] sm:$0xff] %v11880_v45  ;;  %732 = vmatpush.msrb.mxu0 %v11892_v38  ;;  %752 = vmatpush.msrb.mxu1 %v11897_v39  ;;  %v11928_v45 = vld [vmem:[%s17846_s6 + $0x358] sm:$0xff] }
  0x77   :  { %17870 = vst [vmem:[#allocation25_spill] sm:$0xff] %v11885_v46  ;;  %v11933_v46 = vld [vmem:[%s17846_s6 + $0x3d8] sm:$0xff]  ;;  %771 = vmatpush.msrb.mxu2 %v11928_v45 }
  0x78   :  { %17871 = vst [vmem:[#allocation26_spill] sm:$0xff] %v11892_v38  ;;  %v11940_v38 = vld [vmem:[%s17846_s6 + $0x240] sm:$0xff]  ;;  %733 = vmatpush.msrb.mxu0 %v11916_v42  ;;  %753 = vmatpush.msrb.mxu1 %v11921_v44 }
  0x79   :  { %17872 = vst [vmem:[#allocation27_spill] sm:$0xff] %v11897_v39  ;;  %v11945_v39 = vld [vmem:[%s17846_s6 + $0x2c0] sm:$0xff]  ;;  %791 = vmatpush.msrb.mxu3 %v11933_v46 }
  0x7a   :  { %17873 = vst [vmem:[#allocation28_spill] sm:$0xff] %v11904_v35  ;;  %v11952_v35 = vld [vmem:[%s17846_s6 + $0x350] sm:$0xff]  ;;  %734 = vmatpush.msrb.mxu0 %v11940_v38  ;;  %754 = vmatpush.msrb.mxu1 %v11945_v39 }
  0x7b   :  { %17874 = vst [vmem:[#allocation29_spill] sm:$0xff] %v11909_v34  ;;  %v11957_v34 = vld [vmem:[%s17846_s6 + $0x3d0] sm:$0xff]  ;;  %772 = vmatpush.msrb.mxu2 %v11952_v35 }
  0x7c   :  { %17875 = vst [vmem:[#allocation30_spill] sm:$0xff] %v11916_v42  ;;  %v11964_v42 = vld [vmem:[%s17846_s6 + $0x238] sm:$0xff]  ;;  %792 = vmatpush.msrb.mxu3 %v11957_v34 }
  0x7d   :  { %17876 = vst [vmem:[#allocation31_spill] sm:$0xff] %v11921_v44  ;;  %v11969_v44 = vld [vmem:[%s17846_s6 + $0x2b8] sm:$0xff]  ;;  %735 = vmatpush.msrb.mxu0 %v11964_v42 }
  0x7e   :  { %17877 = vst [vmem:[#allocation32_spill] sm:$0xff] %v11928_v45  ;;  %v11976_v45 = vld [vmem:[%s17846_s6 + $0x348] sm:$0xff]  ;;  %755 = vmatpush.msrb.mxu1 %v11969_v44 }
  0x7f   :  { %17878 = vst [vmem:[#allocation33_spill] sm:$0xff] %v11933_v46  ;;  %v11981_v46 = vld [vmem:[%s17846_s6 + $0x3c8] sm:$0xff]  ;;  %773 = vmatpush.msrb.mxu2 %v11976_v45 }
  0x80   :  { %17879 = vst [vmem:[#allocation34_spill] sm:$0xff] %v11940_v38  ;;  %v11988_v38 = vld [vmem:[%s17846_s6 + $0x230] sm:$0xff]  ;;  %793 = vmatpush.msrb.mxu3 %v11981_v46 }
  0x81   :  { %17880 = vst [vmem:[#allocation35_spill] sm:$0xff] %v11945_v39  ;;  %v11993_v39 = vld [vmem:[%s17846_s6 + $0x2b0] sm:$0xff]  ;;  %736 = vmatpush.msrb.mxu0 %v11988_v38 }
  0x82   :  { %17881 = vst [vmem:[#allocation36_spill] sm:$0xff] %v11952_v35  ;;  %v12000_v35 = vld [vmem:[%s17846_s6 + $0x340] sm:$0xff]  ;;  %756 = vmatpush.msrb.mxu1 %v11993_v39 }
  0x83   :  { %17882 = vst [vmem:[#allocation37_spill] sm:$0xff] %v11957_v34  ;;  %v12005_v34 = vld [vmem:[%s17846_s6 + $0x3c0] sm:$0xff]  ;;  %774 = vmatpush.msrb.mxu2 %v12000_v35 }
  0x84   :  { %17883 = vst [vmem:[#allocation38_spill] sm:$0xff] %v11964_v42  ;;  %v12012_v42 = vld [vmem:[%s17846_s6 + $0x228] sm:$0xff]  ;;  %794 = vmatpush.msrb.mxu3 %v12005_v34 }
  0x85   :  { %17884 = vst [vmem:[#allocation39_spill] sm:$0xff] %v11969_v44  ;;  %v12017_v44 = vld [vmem:[%s17846_s6 + $0x2a8] sm:$0xff]  ;;  %737 = vmatpush.msrb.mxu0 %v12012_v42 }
  0x86   :  { %17885 = vst [vmem:[#allocation40_spill] sm:$0xff] %v11976_v45  ;;  %v12024_v45 = vld [vmem:[%s17846_s6 + $0x338] sm:$0xff]  ;;  %757 = vmatpush.msrb.mxu1 %v12017_v44 }
  0x87   :  { %17886 = vst [vmem:[#allocation41_spill] sm:$0xff] %v11981_v46  ;;  %v12029_v46 = vld [vmem:[%s17846_s6 + $0x3b8] sm:$0xff]  ;;  %775 = vmatpush.msrb.mxu2 %v12024_v45 }
  0x88   :  { %17887 = vst [vmem:[#allocation42_spill] sm:$0xff] %v11988_v38  ;;  %v12036_v38 = vld [vmem:[%s17846_s6 + $0x220] sm:$0xff]  ;;  %795 = vmatpush.msrb.mxu3 %v12029_v46 }
  0x89   :  { %17888 = vst [vmem:[#allocation43_spill] sm:$0xff] %v11993_v39  ;;  %v12041_v39 = vld [vmem:[%s17846_s6 + $0x2a0] sm:$0xff]  ;;  %738 = vmatpush.msrb.mxu0 %v12036_v38 }
  0x8a   :  { %17889 = vst [vmem:[#allocation44_spill] sm:$0xff] %v12000_v35  ;;  %v12048_v35 = vld [vmem:[%s17846_s6 + $0x330] sm:$0xff]  ;;  %758 = vmatpush.msrb.mxu1 %v12041_v39 }
  0x8b   :  { %17890 = vst [vmem:[#allocation45_spill] sm:$0xff] %v12005_v34  ;;  %v12053_v34 = vld [vmem:[%s17846_s6 + $0x3b0] sm:$0xff]  ;;  %776 = vmatpush.msrb.mxu2 %v12048_v35 }
  0x8c   :  { %17891 = vst [vmem:[#allocation46_spill] sm:$0xff] %v12012_v42  ;;  %v12060_v42 = vld [vmem:[%s17846_s6 + $0x218] sm:$0xff]  ;;  %796 = vmatpush.msrb.mxu3 %v12053_v34 }
  0x8d   :  { %17892 = vst [vmem:[#allocation47_spill] sm:$0xff] %v12017_v44  ;;  %v12065_v44 = vld [vmem:[%s17846_s6 + $0x298] sm:$0xff]  ;;  %739 = vmatpush.msrb.mxu0 %v12060_v42 }
  0x8e   :  { %17893 = vst [vmem:[#allocation48_spill] sm:$0xff] %v12024_v45  ;;  %v12072_v45 = vld [vmem:[%s17846_s6 + $0x328] sm:$0xff]  ;;  %759 = vmatpush.msrb.mxu1 %v12065_v44 }
  0x8f   :  { %17894 = vst [vmem:[#allocation49_spill] sm:$0xff] %v12029_v46  ;;  %v12077_v46 = vld [vmem:[%s17846_s6 + $0x3a8] sm:$0xff]  ;;  %777 = vmatpush.msrb.mxu2 %v12072_v45 }
  0x90   :  { %17895 = vst [vmem:[#allocation50_spill] sm:$0xff] %v12036_v38  ;;  %v12084_v38 = vld [vmem:[%s17846_s6 + $0x210] sm:$0xff]  ;;  %797 = vmatpush.msrb.mxu3 %v12077_v46 }
  0x91   :  { %17896 = vst [vmem:[#allocation51_spill] sm:$0xff] %v12041_v39  ;;  %v12089_v39 = vld [vmem:[%s17846_s6 + $0x290] sm:$0xff]  ;;  %740 = vmatpush.msrb.mxu0 %v12084_v38 }
  0x92   :  { %17897 = vst [vmem:[#allocation52_spill] sm:$0xff] %v12048_v35  ;;  %v12096_v35 = vld [vmem:[%s17846_s6 + $0x320] sm:$0xff]  ;;  %760 = vmatpush.msrb.mxu1 %v12089_v39 }
  0x93   :  { %17898 = vst [vmem:[#allocation53_spill] sm:$0xff] %v12053_v34  ;;  %v12101_v34 = vld [vmem:[%s17846_s6 + $0x3a0] sm:$0xff]  ;;  %778 = vmatpush.msrb.mxu2 %v12096_v35 }
  0x94   :  { %17899 = vst [vmem:[#allocation54_spill] sm:$0xff] %v12060_v42  ;;  %v12108_v42 = vld [vmem:[%s17846_s6 + $0x208] sm:$0xff]  ;;  %798 = vmatpush.msrb.mxu3 %v12101_v34 }
  0x95   :  { %17900 = vst [vmem:[#allocation55_spill] sm:$0xff] %v12065_v44  ;;  %v12113_v44 = vld [vmem:[%s17846_s6 + $0x288] sm:$0xff]  ;;  %741 = vmatpush.msrb.mxu0 %v12108_v42 }
  0x96   :  { %17901 = vst [vmem:[#allocation56_spill] sm:$0xff] %v12072_v45  ;;  %761 = vmatpush.msrb.mxu1 %v12113_v44  ;;  %v12129_v45 = vld [vmem:[%s17846_s6 + $0x280] sm:$0xff] }
  0x97   :  { %17902 = vst [vmem:[#allocation57_spill] sm:$0xff] %v12077_v46  ;;  %v12124_v46 = vld [vmem:[%s17846_s6 + $0x200] sm:$0xff] }
  0x98   :  { %17903 = vst [vmem:[#allocation58_spill] sm:$0xff] %v12096_v35  ;;  %v12134_v35 = vld [vmem:[%s17846_s6 + $0x318] sm:$0xff]  ;;  %742 = vmatpush.msrb.mxu0 %v12124_v46  ;;  %762 = vmatpush.msrb.mxu1 %v12129_v45 }
  0x99   :  { %17904 = vst [vmem:[#allocation59_spill] sm:$0xff] %v12101_v34  ;;  %v12141_v34 = vld [vmem:[%s17846_s6 + $0x398] sm:$0xff]  ;;  %779 = vmatpush.msrb.mxu2 %v12134_v35 }
  0x9a   :  { %17905 = vst [vmem:[#allocation60_spill] sm:$0xff] %v12108_v42  ;;  %799 = vmatpush.msrb.mxu3 %v12141_v34 }
  0x9b   :  { %17906 = vst [vmem:[#allocation61_spill] sm:$0xff] %v12113_v44  ;;  %v12148_v44 = vld [vmem:[%s17846_s6 + $0x310] sm:$0xff] }
  0x9c   :  { %17907 = vst [vmem:[#allocation62_spill] sm:$0xff] %v12124_v46  ;;  %v12153_v46 = vld [vmem:[%s17846_s6 + $0x390] sm:$0xff]  ;;  %780 = vmatpush.msrb.mxu2 %v12148_v44 }
  0x9d   :  { %17908 = vst [vmem:[#allocation63_spill] sm:$0xff] %v12129_v45  ;;  %800 = vmatpush.msrb.mxu3 %v12153_v46 }
  0x9e   :  { %17909 = vst [vmem:[#allocation64_spill] sm:$0xff] %v12134_v35  ;;  %v12160_v35 = vld [vmem:[%s17846_s6 + $0x308] sm:$0xff] }
  0x9f   :  { %17910 = vst [vmem:[#allocation65_spill] sm:$0xff] %v12141_v34  ;;  %v12165_v34 = vld [vmem:[%s17846_s6 + $0x388] sm:$0xff]  ;;  %781 = vmatpush.msrb.mxu2 %v12160_v35 }
  0xa0   :  { %17911 = vst [vmem:[#allocation66_spill] sm:$0xff] %v12148_v44  ;;  %801 = vmatpush.msrb.mxu3 %v12165_v34  ;;  %v12172_v44 = vld [vmem:[%s17846_s6 + $0x300] sm:$0xff] }
  0xa1   :  { %17912 = vst [vmem:[#allocation67_spill] sm:$0xff] %v12153_v46  ;;  %v12177_v46 = vld [vmem:[%s17846_s6 + $0x380] sm:$0xff]  ;;  %782 = vmatpush.msrb.mxu2 %v12172_v44 }
  0xa2   :  { %17913 = vst [vmem:[#allocation68_spill] sm:$0xff] %v12165_v34  ;;  %802 = vmatpush.msrb.mxu3 %v12177_v46 }
  0xa3   :  { %17914 = vst [vmem:[#allocation69_spill] sm:$0xff] %v12172_v44 }
  0xa4   :  { %17915 = vst [vmem:[#allocation70_spill] sm:$0xff] %v12177_v46 }
  0xac   :  { %v12181_v45 = vpop.f32.mrf.mxu0  ;;  %v12183_v42 = vpop.f32.mrf.mxu1 }
  0xad   :  { %663 = vmatmul.f32.vlgmr.msra.gmra.mxu0 %v12181_v45  ;;  %683 = vmatmul.f32.vlgmr.msra.gmra.mxu1 %v12183_v42 }
  0xae   :  { %823 = vmatpush.msra.mxu0 %v11408_v47  ;;  %843 = vmatpush.msra.mxu1 %v11413_v48 }
  0xb0   :  { %824 = vmatpush.msra.mxu0 %v11420_v49  ;;  %844 = vmatpush.msra.mxu1 %v11425_v50 }
  0xb2   :  { %825 = vmatpush.msra.mxu0 %v11448_v53  ;;  %845 = vmatpush.msra.mxu1 %v11453_v54 }
  0xb4   :  { %v426_v34 = vpop.f32.mrf.mxu0  ;;  %v439_v47 = vpop.f32.mrf.mxu1  ;;  %826 = vmatpush.msra.mxu0 %v11470_v56  ;;  %846 = vmatpush.msra.mxu1 %v11475_v57  ;;  %v17917_v56 = vld [vmem:[#allocation3_spill] sm:$0xff]  ;;  %v815_v57 = vmul.f32 %v12181_v45, %v12181_v45 }
  0xb5   :  { %v12193_v46 = vpop.f32.mrf.mxu2  ;;  %v12195_v44 = vpop.f32.mrf.mxu3  ;;  %v17953_v34 = vld [vmem:[#allocation37_spill] sm:$0xff]  ;;  %v17958_v47 = vld [vmem:[#allocation46_spill] sm:$0xff] }
  0xb6   :  { %703 = vmatmul.f32.vlgmr.msra.gmra.mxu2 %v12193_v46  ;;  %723 = vmatmul.f32.vlgmr.msra.gmra.mxu3 %v12195_v44 }
  0xb7   :  { %863 = vmatpush.msra.mxu2 %v11434_v51  ;;  %883 = vmatpush.msra.mxu3 %v11439_v52 }
  0xb8   :  { %827 = vmatpush.msra.mxu0 %v11494_v60  ;;  %847 = vmatpush.msra.mxu1 %v11499_v61  ;;  %v17919_v60 = vld [vmem:[#allocation7_spill] sm:$0xff]  ;;  %v17920_v61 = vld [vmem:[#allocation4_spill] sm:$0xff] }
  0xb9   :  { %864 = vmatpush.msra.mxu2 %v11460_v55  ;;  %884 = vmatpush.msra.mxu3 %v11465_v43  ;;  %v17916_v43 = vld [vmem:[#allocation2_spill] sm:$0xff] }
  0xba   :  { %828 = vmatpush.msra.mxu0 %v11518_v0  ;;  %848 = vmatpush.msra.mxu1 %v11523_v1  ;;  %v17923_v0 = vld [vmem:[#allocation11_spill] sm:$0xff] }
  0xbb   :  { %865 = vmatpush.msra.mxu2 %v11484_v58  ;;  %885 = vmatpush.msra.mxu3 %v11489_v59  ;;  %v816_v58 = vmul.f32 %v12183_v42, %v12183_v42  ;;  %v17918_v59 = vld [vmem:[#allocation6_spill] sm:$0xff] }
  0xbc   :  { %829 = vmatpush.msra.mxu0 %v11542_v4  ;;  %849 = vmatpush.msra.mxu1 %v11547_v5  ;;  %v17925_v4 = vld [vmem:[#allocation9_spill] sm:$0xff]  ;;  %v17926_v5 = vld [vmem:[#allocation14_spill] sm:$0xff] }
  0xbd   :  { %v452_v48 = vpop.f32.mrf.mxu2  ;;  %v465_v49 = vpop.f32.mrf.mxu3  ;;  %866 = vmatpush.msra.mxu2 %v11508_v62  ;;  %886 = vmatpush.msra.mxu3 %v11513_v63  ;;  %v17921_v62 = vld [vmem:[#allocation5_spill] sm:$0xff]  ;;  %v17922_v63 = vld [vmem:[#allocation10_spill] sm:$0xff] }
  0xbe   :  { %830 = vmatpush.msra.mxu0 %v11566_v8  ;;  %850 = vmatpush.msra.mxu1 %v11571_v9  ;;  %v17929_v8 = vld [vmem:[#allocation13_spill] sm:$0xff]  ;;  %v817_v9 = vmul.f32 %v12193_v46, %v12193_v46  ;;  %v17959_v48 = vld [vmem:[#allocation47_spill] sm:$0xff]  ;;  %v17960_v49 = vld [vmem:[#allocation44_spill] sm:$0xff] }
  0xbf   :  { %867 = vmatpush.msra.mxu2 %v11532_v2  ;;  %887 = vmatpush.msra.mxu3 %v11537_v3  ;;  %v17924_v3 = vld [vmem:[#allocation8_spill] sm:$0xff] }
  0xc0   :  { %831 = vmatpush.msra.mxu0 %v11590_v12  ;;  %851 = vmatpush.msra.mxu1 %v11595_v13  ;;  %v17931_v12 = vld [vmem:[#allocation19_spill] sm:$0xff]  ;;  %v17932_v13 = vld [vmem:[#allocation16_spill] sm:$0xff] }
  0xc1   :  { %868 = vmatpush.msra.mxu2 %v11556_v6  ;;  %888 = vmatpush.msra.mxu3 %v11561_v7  ;;  %v17927_v6 = vld [vmem:[#allocation15_spill] sm:$0xff]  ;;  %v17928_v7 = vld [vmem:[#allocation12_spill] sm:$0xff] }
  0xc2   :  { %832 = vmatpush.msra.mxu0 %v11614_v16  ;;  %852 = vmatpush.msra.mxu1 %v11619_v17  ;;  %v17935_v16 = vld [vmem:[#allocation23_spill] sm:$0xff]  ;;  %v17936_v17 = vld [vmem:[#allocation20_spill] sm:$0xff] }
  0xc3   :  { %869 = vmatpush.msra.mxu2 %v11580_v10  ;;  %889 = vmatpush.msra.mxu3 %v11585_v11  ;;  %v818_v10 = vmul.f32 %v12195_v44, %v12195_v44  ;;  %v17930_v11 = vld [vmem:[#allocation18_spill] sm:$0xff] }
  0xc4   :  { %833 = vmatpush.msra.mxu0 %v11638_v20  ;;  %853 = vmatpush.msra.mxu1 %v11643_v21  ;;  %v17939_v20 = vld [vmem:[#allocation27_spill] sm:$0xff]  ;;  %v17940_v21 = vld [vmem:[#allocation24_spill] sm:$0xff] }
  0xc5   :  { %870 = vmatpush.msra.mxu2 %v11604_v14  ;;  %890 = vmatpush.msra.mxu3 %v11609_v15  ;;  %v17933_v14 = vld [vmem:[#allocation17_spill] sm:$0xff]  ;;  %v17934_v15 = vld [vmem:[#allocation22_spill] sm:$0xff] }
  0xc6   :  { %834 = vmatpush.msra.mxu0 %v11662_v24  ;;  %854 = vmatpush.msra.mxu1 %v11667_v25  ;;  %v17943_v24 = vld [vmem:[#allocation31_spill] sm:$0xff]  ;;  %v17944_v25 = vld [vmem:[#allocation28_spill] sm:$0xff] }
  0xc7   :  { %871 = vmatpush.msra.mxu2 %v11628_v18  ;;  %891 = vmatpush.msra.mxu3 %v11633_v19  ;;  %v17937_v18 = vld [vmem:[#allocation21_spill] sm:$0xff]  ;;  %v17938_v19 = vld [vmem:[#allocation26_spill] sm:$0xff] }
  0xc8   :  { %v12233_v50 = vpop.f32.mrf.mxu0  ;;  %v12235_v51 = vpop.f32.mrf.mxu1  ;;  %835 = vmatpush.msra.mxu0 %v11686_v28  ;;  %855 = vmatpush.msra.mxu1 %v11691_v29  ;;  %v17947_v28 = vld [vmem:[#allocation35_spill] sm:$0xff]  ;;  %v17948_v29 = vld [vmem:[#allocation32_spill] sm:$0xff] }
  0xc9   :  { %872 = vmatpush.msra.mxu2 %v11652_v22  ;;  %892 = vmatpush.msra.mxu3 %v11657_v23  ;;  %v17941_v22 = vld [vmem:[#allocation25_spill] sm:$0xff]  ;;  %v17942_v23 = vld [vmem:[#allocation30_spill] sm:$0xff] }
  0xca   :  { %743 = vmatmul.f32.vlgmr.msrb.gmra.mxu0 %v12233_v50  ;;  %763 = vmatmul.f32.vlgmr.msrb.gmra.mxu1 %v12235_v51 }
  0xcb   :  { %836 = vmatpush.msra.mxu0 %v11710_v32  ;;  %856 = vmatpush.msra.mxu1 %v11715_v33  ;;  %v17951_v32 = vld [vmem:[#allocation39_spill] sm:$0xff]  ;;  %v17952_v33 = vld [vmem:[#allocation36_spill] sm:$0xff] }
  0xcc   :  { %873 = vmatpush.msra.mxu2 %v11676_v26  ;;  %893 = vmatpush.msra.mxu3 %v11681_v27  ;;  %v17945_v26 = vld [vmem:[#allocation29_spill] sm:$0xff]  ;;  %v17946_v27 = vld [vmem:[#allocation34_spill] sm:$0xff] }
  0xcd   :  { %837 = vmatpush.msra.mxu0 %v11734_v36  ;;  %857 = vmatpush.msra.mxu1 %v11739_v37  ;;  %v17954_v36 = vld [vmem:[#allocation42_spill] sm:$0xff]  ;;  %v17955_v37 = vld [vmem:[#allocation43_spill] sm:$0xff] }
  0xce   :  { %874 = vmatpush.msra.mxu2 %v11700_v30  ;;  %894 = vmatpush.msra.mxu3 %v11705_v31  ;;  %v17949_v30 = vld [vmem:[#allocation33_spill] sm:$0xff]  ;;  %v17950_v31 = vld [vmem:[#allocation38_spill] sm:$0xff] }
  0xcf   :  { %838 = vmatpush.msra.mxu0 %v11758_v40  ;;  %858 = vmatpush.msra.mxu1 %v11763_v41  ;;  %v17956_v40 = vld [vmem:[#allocation40_spill] sm:$0xff]  ;;  %v17957_v41 = vld [vmem:[#allocation41_spill] sm:$0xff] }
  0xd0   :  { %v12251_v52 = vpop.f32.mrf.mxu2  ;;  %v12253_v53 = vpop.f32.mrf.mxu3  ;;  %875 = vmatpush.msra.mxu2 %v17916_v43  ;;  %895 = vmatpush.msra.mxu3 %v17917_v56  ;;  %v17963_v43 = vld [vmem:[#allocation51_spill] sm:$0xff]  ;;  %v17964_v56 = vld [vmem:[#allocation48_spill] sm:$0xff] }
  0xd1   :  { %v478_v54 = vpop.f32.mrf.mxu0  ;;  %v491_v55 = vpop.f32.mrf.mxu1  ;;  %783 = vmatmul.f32.vlgmr.msrb.gmra.mxu2 %v12251_v52  ;;  %803 = vmatmul.f32.vlgmr.msrb.gmra.mxu3 %v12253_v53 }
  0xd2   :  { %903 = vmatpush.msrb.mxu0 %v17918_v59  ;;  %923 = vmatpush.msrb.mxu1 %v17919_v60  ;;  %v17961_v54 = vld [vmem:[#allocation45_spill] sm:$0xff]  ;;  %v17962_v55 = vld [vmem:[#allocation50_spill] sm:$0xff]  ;;  %v17967_v59 = vld [vmem:[#allocation55_spill] sm:$0xff] }
  0xd3   :  { %876 = vmatpush.msra.mxu2 %v17920_v61  ;;  %896 = vmatpush.msra.mxu3 %v17921_v62  ;;  %v17968_v60 = vld [vmem:[#allocation52_spill] sm:$0xff]  ;;  %v17969_v61 = vld [vmem:[#allocation53_spill] sm:$0xff] }
  0xd4   :  { %839 = vmatmul.f32.vlgmr.msra.gmra.mxu0 %v815_v57  ;;  %859 = vmatmul.f32.vlgmr.msra.gmra.mxu1 %v816_v58  ;;  %v17965_v57 = vld [vmem:[#allocation49_spill] sm:$0xff]  ;;  %v17966_v58 = vld [vmem:[#allocation54_spill] sm:$0xff]  ;;  %v17970_v62 = vld [vmem:[#allocation56_spill] sm:$0xff] }
  0xd5   :  { %904 = vmatpush.msrb.mxu0 %v17922_v63  ;;  %924 = vmatpush.msrb.mxu1 %v17923_v0  ;;  %v17971_v63 = vld [vmem:[#allocation57_spill] sm:$0xff]  ;;  %v17972_v0 = vld [vmem:[#allocation60_spill] sm:$0xff] }
  0xd6   :  { %877 = vmatpush.msra.mxu2 %v17924_v3  ;;  %897 = vmatpush.msra.mxu3 %v17925_v4  ;;  %v17975_v3 = vld [vmem:[#allocation59_spill] sm:$0xff]  ;;  %v819_v4 = vmul.f32 %v12233_v50, %v12233_v50 }
  0xd7   :  { %905 = vmatpush.msrb.mxu0 %v17926_v5  ;;  %925 = vmatpush.msrb.mxu1 %v17927_v6  ;;  %v17976_v5 = vld [vmem:[#allocation62_spill] sm:$0xff]  ;;  %v17978_v6 = vld [vmem:[#allocation64_spill] sm:$0xff] }
  0xd8   :  { %v504_v1 = vpop.f32.mrf.mxu2  ;;  %v517_v2 = vpop.f32.mrf.mxu3  ;;  %878 = vmatpush.msra.mxu2 %v17928_v7  ;;  %898 = vmatpush.msra.mxu3 %v17929_v8  ;;  %v17979_v7 = vld [vmem:[#allocation65_spill] sm:$0xff]  ;;  %v17980_v8 = vld [vmem:[#allocation66_spill] sm:$0xff] }
  0xd9   :  { %906 = vmatpush.msrb.mxu0 %v17930_v11  ;;  %926 = vmatpush.msrb.mxu1 %v17931_v12  ;;  %v17973_v1 = vld [vmem:[#allocation61_spill] sm:$0xff]  ;;  %v17974_v2 = vld [vmem:[#allocation58_spill] sm:$0xff]  ;;  %v821_v11 = vmul.f32 %v12251_v52, %v12251_v52  ;;  %v822_v12 = vmul.f32 %v12253_v53, %v12253_v53 }
  0xda   :  { %943 = vmatpush.msrb.mxu2 %v17932_v13  ;;  %963 = vmatpush.msrb.mxu3 %v17933_v14  ;;  %v17983_v13 = vld [vmem:[#allocation69_spill] sm:$0xff]  ;;  %v17984_v14 = vld [vmem:[#allocation70_spill] sm:$0xff] }
  0xdb   :  { %879 = vmatmul.f32.vlgmr.msra.gmra.mxu2 %v817_v9  ;;  %899 = vmatmul.f32.vlgmr.msra.gmra.mxu3 %v818_v10  ;;  %v17981_v9 = vld [vmem:[#allocation67_spill] sm:$0xff]  ;;  %v17982_v10 = vld [vmem:[#allocation68_spill] sm:$0xff] }
  0xdc   :  { %907 = vmatpush.msrb.mxu0 %v17934_v15  ;;  %927 = vmatpush.msrb.mxu1 %v17935_v16 }
  0xdd   :  { %944 = vmatpush.msrb.mxu2 %v17936_v17  ;;  %964 = vmatpush.msrb.mxu3 %v17937_v18 }
  0xde   :  { %908 = vmatpush.msrb.mxu0 %v17938_v19  ;;  %928 = vmatpush.msrb.mxu1 %v17939_v20 }
  0xdf   :  { %945 = vmatpush.msrb.mxu2 %v17940_v21  ;;  %965 = vmatpush.msrb.mxu3 %v17941_v22 }
  0xe0   :  { %909 = vmatpush.msrb.mxu0 %v17942_v23  ;;  %929 = vmatpush.msrb.mxu1 %v17943_v24 }
  0xe1   :  { %946 = vmatpush.msrb.mxu2 %v17944_v25  ;;  %966 = vmatpush.msrb.mxu3 %v17945_v26 }
  0xe2   :  { %910 = vmatpush.msrb.mxu0 %v17946_v27  ;;  %930 = vmatpush.msrb.mxu1 %v17947_v28 }
  0xe3   :  { %947 = vmatpush.msrb.mxu2 %v17948_v29  ;;  %967 = vmatpush.msrb.mxu3 %v17949_v30 }
  0xe4   :  { %911 = vmatpush.msrb.mxu0 %v17950_v31  ;;  %931 = vmatpush.msrb.mxu1 %v17951_v32 }
  0xe5   :  { %948 = vmatpush.msrb.mxu2 %v17952_v33  ;;  %968 = vmatpush.msrb.mxu3 %v17953_v34 }
  0xe6   :  { %912 = vmatpush.msrb.mxu0 %v17954_v36  ;;  %932 = vmatpush.msrb.mxu1 %v17955_v37 }
  0xe7   :  { %949 = vmatpush.msrb.mxu2 %v17956_v40  ;;  %969 = vmatpush.msrb.mxu3 %v17957_v41 }
  0xe8   :  { %913 = vmatpush.msrb.mxu0 %v17958_v47  ;;  %933 = vmatpush.msrb.mxu1 %v17959_v48 }
  0xe9   :  { %950 = vmatpush.msrb.mxu2 %v17960_v49  ;;  %970 = vmatpush.msrb.mxu3 %v17961_v54 }
  0xea   :  { %914 = vmatpush.msrb.mxu0 %v17962_v55  ;;  %934 = vmatpush.msrb.mxu1 %v17963_v43  ;;  %v1072_v55 = vld [vmem:[%s17985_s2 + $0x1c0] sm:$0xff]  ;;  %v1073_v43 = vld [vmem:[%s17985_s2 + $0x1c8] sm:$0xff] }
  0xeb   :  { %951 = vmatpush.msrb.mxu2 %v17964_v56  ;;  %971 = vmatpush.msrb.mxu3 %v17965_v57  ;;  %v1074_v56 = vld [vmem:[%s17985_s2 + $0x1d0] sm:$0xff] }
  0xec   :  { %915 = vmatpush.msrb.mxu0 %v17966_v58  ;;  %935 = vmatpush.msrb.mxu1 %v17967_v59  ;;  %v1075_v58 = vld [vmem:[%s17985_s2 + $0x1d8] sm:$0xff] }
  0xed   :  { %952 = vmatpush.msrb.mxu2 %v17968_v60  ;;  %972 = vmatpush.msrb.mxu3 %v17969_v61  ;;  %v1064_v60 = vld [vmem:[%s17985_s2 + $0x180] sm:$0xff]  ;;  %v1065_v61 = vld [vmem:[%s17985_s2 + $0x188] sm:$0xff] }
  0xee   :  { %916 = vmatpush.msrb.mxu0 %v12084_v38  ;;  %936 = vmatpush.msrb.mxu1 %v12089_v39  ;;  %v820_v38 = vmul.f32 %v12235_v51, %v12235_v51  ;;  %v17977_v39 = vld [vmem:[#allocation63_spill] sm:$0xff] }
  0xef   :  { %953 = vmatpush.msrb.mxu2 %v17970_v62  ;;  %973 = vmatpush.msrb.mxu3 %v17971_v63  ;;  %v1066_v62 = vld [vmem:[%s17985_s2 + $0x190] sm:$0xff] }
  0xf0   :  { %917 = vmatpush.msrb.mxu0 %v17972_v0  ;;  %937 = vmatpush.msrb.mxu1 %v17973_v1  ;;  %v1067_v0 = vld [vmem:[%s17985_s2 + $0x198] sm:$0xff] }
  0xf1   :  { %954 = vmatpush.msrb.mxu2 %v17974_v2  ;;  %974 = vmatpush.msrb.mxu3 %v17975_v3  ;;  %v1056_v3 = vld [vmem:[%s17985_s2 + $0x140] sm:$0xff] }
  0xf2   :  { %918 = vmatpush.msrb.mxu0 %v17976_v5  ;;  %938 = vmatpush.msrb.mxu1 %v17977_v39  ;;  %v1059_v39 = vld [vmem:[%s17985_s2 + $0x158] sm:$0xff] }
  0xf3   :  { %955 = vmatpush.msrb.mxu2 %v17978_v6  ;;  %975 = vmatpush.msrb.mxu3 %v17979_v7  ;;  %v1048_v6 = vld [vmem:[%s17985_s2 + $0x100] sm:$0xff]  ;;  %v1049_v7 = vld [vmem:[%s17985_s2 + $0x108] sm:$0xff] }
  0xf4   :  { %919 = vmatmul.f32.vlgmr.msrb.gmra.mxu0 %v819_v4  ;;  %939 = vmatmul.f32.vlgmr.msrb.gmra.mxu1 %v820_v38  ;;  %v1057_v4 = vld [vmem:[%s17985_s2 + $0x148] sm:$0xff]  ;;  %v1058_v38 = vld [vmem:[%s17985_s2 + $0x150] sm:$0xff] }
  0xf5   :  { %956 = vmatpush.msrb.mxu2 %v17980_v8  ;;  %976 = vmatpush.msrb.mxu3 %v17981_v9  ;;  %v1050_v8 = vld [vmem:[%s17985_s2 + $0x110] sm:$0xff] }
  0xf6   :  { %1092 = vmatpush.msra.mxu0 %v1072_v55  ;;  %1112 = vmatpush.msra.mxu1 %v1073_v43  ;;  %v1060_v55 = vld [vmem:[%s17985_s2 + $0x160] sm:$0xff]  ;;  %v1061_v43 = vld [vmem:[%s17985_s2 + $0x168] sm:$0xff] }
  0xf7   :  { %957 = vmatpush.msrb.mxu2 %v12160_v35  ;;  %977 = vmatpush.msrb.mxu3 %v17982_v10  ;;  %v1051_v10 = vld [vmem:[%s17985_s2 + $0x118] sm:$0xff] }
  0xf8   :  { %1093 = vmatpush.msra.mxu0 %v1064_v60  ;;  %1113 = vmatpush.msra.mxu1 %v1065_v61  ;;  %v1052_v60 = vld [vmem:[%s17985_s2 + $0x120] sm:$0xff]  ;;  %v1053_v61 = vld [vmem:[%s17985_s2 + $0x128] sm:$0xff] }
  0xf9   :  { %958 = vmatpush.msrb.mxu2 %v17983_v13  ;;  %978 = vmatpush.msrb.mxu3 %v17984_v14  ;;  %v1040_v13 = vld [vmem:[%s17985_s2 + $0xc0] sm:$0xff]  ;;  %v1041_v14 = vld [vmem:[%s17985_s2 + $0xc8] sm:$0xff] }
  0xfa   :  { %959 = vmatmul.f32.vlgmr.msrb.gmra.mxu2 %v821_v11  ;;  %979 = vmatmul.f32.vlgmr.msrb.gmra.mxu3 %v822_v12 }
  0xfb   :  { %1132 = vmatpush.msra.mxu2 %v1074_v56  ;;  %1152 = vmatpush.msra.mxu3 %v1075_v58  ;;  %v1062_v56 = vld [vmem:[%s17985_s2 + $0x170] sm:$0xff] }
  0xfc   :  { %1094 = vmatpush.msra.mxu0 %v1056_v3  ;;  %1114 = vmatpush.msra.mxu1 %v1057_v4  ;;  %v1045_v3 = vld [vmem:[%s17985_s2 + $0xe8] sm:$0xff]  ;;  %v1046_v4 = vld [vmem:[%s17985_s2 + $0xf0] sm:$0xff] }
  0xfd   :  { %1133 = vmatpush.msra.mxu2 %v1066_v62  ;;  %1153 = vmatpush.msra.mxu3 %v1067_v0  ;;  %v1054_v62 = vld [vmem:[%s17985_s2 + $0x130] sm:$0xff] }
  0xfe   :  { %1095 = vmatpush.msra.mxu0 %v1048_v6  ;;  %1115 = vmatpush.msra.mxu1 %v1049_v7  ;;  %v1038_v7 = vld [vmem:[%s17985_s2 + $0xb0] sm:$0xff] }
  0xff   :  { %1134 = vmatpush.msra.mxu2 %v1058_v38  ;;  %1154 = vmatpush.msra.mxu3 %v1059_v39  ;;  %v1047_v38 = vld [vmem:[%s17985_s2 + $0xf8] sm:$0xff]  ;;  %v1037_v39 = vld [vmem:[%s17985_s2 + $0xa8] sm:$0xff] }
 0x100   :  { %1096 = vmatpush.msra.mxu0 %v1040_v13  ;;  %1116 = vmatpush.msra.mxu1 %v1041_v14  ;;  %v1020_v13 = vld [vmem:[%s17985_s2 + $0x20] sm:$0xff]  ;;  %v1021_v14 = vld [vmem:[%s17985_s2 + $0x28] sm:$0xff] }
 0x101   :  { %1135 = vmatpush.msra.mxu2 %v1050_v8  ;;  %1155 = vmatpush.msra.mxu3 %v1051_v10  ;;  %v1039_v8 = vld [vmem:[%s17985_s2 + $0xb8] sm:$0xff]  ;;  %v1029_v10 = vld [vmem:[%s17985_s2 + $0x68] sm:$0xff] }
 0x12a   :  { %v664_v15 = vpop.f32.mrf.mxu0  ;;  %v684_v16 = vpop.f32.mrf.mxu1 }
 0x12b   :  { %v685_v18 = vadd.f32 %v684_v16, %v664_v15  ;;  %v1042_v15 = vld [vmem:[%s17985_s2 + $0xd0] sm:$0xff]  ;;  %v1043_v16 = vld [vmem:[%s17985_s2 + $0xd8] sm:$0xff] }
 0x12c   :  { %1136 = vmatpush.msra.mxu2 %v1042_v15  ;;  %1156 = vmatpush.msra.mxu3 %v1043_v16  ;;  %v1022_v15 = vld [vmem:[%s17985_s2 + $0x30] sm:$0xff]  ;;  %v1023_v16 = vld [vmem:[%s17985_s2 + $0x38] sm:$0xff] }
 0x139   :  { %v704_v17 = vpop.f32.mrf.mxu2  ;;  %v724_v35 = vpop.f32.mrf.mxu3 }
 0x13a   :  { %v705_v19 = vadd.f32 %v704_v17, %v685_v18  ;;  %v1032_v18 = vld [vmem:[%s17985_s2 + $0x80] sm:$0xff] }
 0x13b   :  { %1097 = vmatpush.msra.mxu0 %v1032_v18 }
 0x13c   :  { %v725_v21 = vadd.f32 %v724_v35, %v705_v19  ;;  %v1033_v19 = vld [vmem:[%s17985_s2 + $0x88] sm:$0xff]  ;;  %v1034_v35 = vld [vmem:[%s17985_s2 + $0x90] sm:$0xff] }
 0x13d   :  { %1117 = vmatpush.msra.mxu1 %v1033_v19  ;;  %1137 = vmatpush.msra.mxu2 %v1034_v35 }
 0x147   :  { %v744_v20 = vpop.f32.mrf.mxu0  ;;  %v764_v23 = vpop.f32.mrf.mxu1 }
 0x148   :  { %v745_v22 = vadd.f32 %v744_v20, %v725_v21  ;;  %v1035_v20 = vld [vmem:[%s17985_s2 + $0x98] sm:$0xff] }
 0x149   :  { %1157 = vmatpush.msra.mxu3 %v1035_v20 }
 0x14a   :  { %v765_v25 = vadd.f32 %v764_v23, %v745_v22  ;;  %v1024_v23 = vld [vmem:[%s17985_s2 + $0x40] sm:$0xff] }
 0x14b   :  { %1098 = vmatpush.msra.mxu0 %v1024_v23 }
 0x151   :  { %v840_v29 = vpop.f32.mrf.mxu0  ;;  %v860_v30 = vpop.f32.mrf.mxu1 }
 0x152   :  { %v861_v32 = vadd.f32 %v860_v30, %v840_v29  ;;  %v1018_v30 = vld [vmem:[%s17985_s2 + $0x10] sm:$0xff] }
 0x154   :  { %v784_v24 = vpop.f32.mrf.mxu2  ;;  %v804_v27 = vpop.f32.mrf.mxu3 }
 0x155   :  { %v785_v26 = vadd.f32 %v784_v24, %v765_v25  ;;  %v1025_v24 = vld [vmem:[%s17985_s2 + $0x48] sm:$0xff]  ;;  %v1026_v25 = vld [vmem:[%s17985_s2 + $0x50] sm:$0xff] }
 0x156   :  { %1118 = vmatpush.msra.mxu1 %v1025_v24  ;;  %1138 = vmatpush.msra.mxu2 %v1026_v25  ;;  %v1008_v25 = vld [vmem:[%s17987_s4] sm:$0x1] }
 0x157   :  { %v805_v28 = vadd.f32 %v804_v27, %v785_v26  ;;  %v1027_v26 = vld [vmem:[%s17985_s2 + $0x58] sm:$0xff]  ;;  %v1016_v27 = vld [vmem:[%s17985_s2] sm:$0xff] }
 0x158   :  { %1158 = vmatpush.msra.mxu3 %v1027_v26  ;;  %1099 = vmatpush.msra.mxu0 %v1016_v27  ;;  %v7929_v27 = vld [vmem:[%s17988_s0 + $0x118] sm:$0xf] }
 0x159   :  { %v808_v33 = vsel %vm807_vm2, %v805_v28, 0.0  ;;  %v1017_v28 = vld [vmem:[%s17985_s2 + $0x8] sm:$0xff]  ;;  %1139 = vmatpush.msra.mxu2 %v1018_v30  ;;  %v8089_v30 = vld [vmem:[%s17988_s0 + $0x258] sm:$0xf] }
 0x15a   :  { %v809_v36 = vrot.slane %v808_v33, 4  ;;  %1119 = vmatpush.msra.mxu1 %v1017_v28  ;;  %v10374_v28 = vld [vmem:[%s17988_s0 + $0x128] sm:$0xf0] }
 0x15c   :  { %v810_v47 = vadd.f32 %v809_v36, %v808_v33  ;;  %v1077_v33 = vld [vmem:[%s17985_s2 + $0x1e8] sm:$0xff]  ;;  %v1079_v36 = vld [vmem:[%s17985_s2 + $0x1f8] sm:$0xff] }
 0x15d   :  { %1192 = vmatpush.msrb.mxu1 %v1077_v33  ;;  %v10454_v33 = vld [vmem:[%s17988_s0 + $0x3a8] sm:$0xf0] }
 0x15e   :  { %v880_v31 = vpop.f32.mrf.mxu2  ;;  %v900_v37 = vpop.f32.mrf.mxu3  ;;  %v811_v49 = vrot.slane %v810_v47, 2 }
 0x15f   :  { %v881_v34 = vadd.f32 %v880_v31, %v861_v32  ;;  %v1019_v31 = vld [vmem:[%s17985_s2 + $0x18] sm:$0xff]  ;;  %v1076_v32 = vld [vmem:[%s17985_s2 + $0x1e0] sm:$0xff] }
 0x160   :  { %v812_v1 = vadd.f32 %v811_v49, %v810_v47  ;;  %1159 = vmatpush.msra.mxu3 %v1019_v31  ;;  %v1069_v47 = vld [vmem:[%s17985_s2 + $0x1a8] sm:$0xff]  ;;  %1172 = vmatpush.msrb.mxu0 %v1076_v32  ;;  %v1071_v49 = vld [vmem:[%s17985_s2 + $0x1b8] sm:$0xff] }
 0x161   :  { %v901_v41 = vadd.f32 %v900_v37, %v881_v34  ;;  %v1078_v34 = vld [vmem:[%s17985_s2 + $0x1f0] sm:$0xff]  ;;  %1193 = vmatpush.msrb.mxu1 %v1069_v47  ;;  %v10414_v31 = vld [vmem:[%s17988_s0 + $0x268] sm:$0xf0]  ;;  %v8249_v32 = vld [vmem:[%s17988_s0 + $0x398] sm:$0xf] }
 0x162   :  { %v813_v11 = vrot.slane %v812_v1, 1  ;;  %1212 = vmatpush.msrb.mxu2 %v1078_v34  ;;  %1232 = vmatpush.msrb.mxu3 %v1079_v36  ;;  %v8409_v34 = vld [vmem:[%s17988_s0 + $0x4d8] sm:$0xf]  ;;  %v10494_v36 = vld [vmem:[%s17988_s0 + $0x4e8] sm:$0xf0] }
 0x163   :  { %1194 = vmatpush.msrb.mxu1 %v1061_v43  ;;  %v7909_v47 = vld [vmem:[%s17988_s0 + $0xf0] sm:$0xf]  ;;  %v8250_v43 = vor.u32 %v10454_v33, %v8249_v32  ;;  %v10349_v33 = vld [vmem:[%s17988_s0 + $0x60] sm:$0xf0] }
 0x164   :  { %v814_v21 = vadd.f32 %v813_v11, %v812_v1  ;;  %1233 = vmatpush.msrb.mxu3 %v1071_v49  ;;  %v1030_v11 = vld [vmem:[%s17985_s2 + $0x70] sm:$0xff] }
 0x165   :  { %1195 = vmatpush.msrb.mxu1 %v1053_v61  ;;  %v7829_v32 = vld [vmem:[%s17988_s0 + $0x50] sm:$0xf] }
 0x166   :  { %v12459_v37 = vmul.f32 0.03125, %v814_v21 }
 0x167   :  { %1196 = vmatpush.msrb.mxu1 %v1045_v3 }
 0x168   :  { %v992_v58 = vmul.f32 %v12459_v37, %v12459_v37 }
 0x169   :  { %1197 = vmatpush.msrb.mxu1 %v1037_v39  ;;  %v8369_v39 = vld [vmem:[%s17988_s0 + $0x488] sm:$0xf] }
 0x16b   :  { %1198 = vmatpush.msrb.mxu1 %v1029_v10  ;;  %v10359_v10 = vld [vmem:[%s17988_s0 + $0xb0] sm:$0xf0] }
 0x16d   :  { %1199 = vmatpush.msrb.mxu1 %v1021_v14 }
 0x171   :  { %v920_v40 = vpop.f32.mrf.mxu0  ;;  %v940_v54 = vpop.f32.mrf.mxu1 }
 0x172   :  { %v921_v48 = vadd.f32 %v920_v40, %v901_v41  ;;  %v1068_v41 = vld [vmem:[%s17985_s2 + $0x1a0] sm:$0xff] }
 0x173   :  { %1173 = vmatpush.msrb.mxu0 %v1068_v41  ;;  %v8090_v41 = vor.u32 %v10414_v31, %v8089_v30 }
 0x174   :  { %v941_v57 = vadd.f32 %v940_v54, %v921_v48  ;;  %v1070_v48 = vld [vmem:[%s17985_s2 + $0x1b0] sm:$0xff] }
 0x175   :  { %1213 = vmatpush.msrb.mxu2 %v1070_v48  ;;  %1174 = vmatpush.msrb.mxu0 %v1060_v55  ;;  %v10369_v48 = vld [vmem:[%s17988_s0 + $0x100] sm:$0xf0] }
 0x176   :  { %v10409_v55 = vld [vmem:[%s17988_s0 + $0x240] sm:$0xf0]  ;;  %v7910_v61 = vor.u32 %v10369_v48, %v7909_v47  ;;  %v8309_v48 = vld [vmem:[%s17988_s0 + $0x410] sm:$0xf] }
 0x177   :  { %1214 = vmatpush.msrb.mxu2 %v1062_v56  ;;  %1175 = vmatpush.msrb.mxu0 %v1052_v60  ;;  %v8410_v56 = vor.u32 %v10494_v36, %v8409_v34  ;;  %v10489_v60 = vld [vmem:[%s17988_s0 + $0x4c0] sm:$0xf0]  ;;  %v7989_v34 = vld [vmem:[%s17988_s0 + $0x190] sm:$0xf] }
 0x178   :  { %v10389_v36 = vld [vmem:[%s17988_s0 + $0x1a0] sm:$0xf0] }
 0x179   :  { %1215 = vmatpush.msrb.mxu2 %v1054_v62  ;;  %v10429_v47 = vld [vmem:[%s17988_s0 + $0x2e0] sm:$0xf0] }
 0x17b   :  { %1216 = vmatpush.msrb.mxu2 %v1046_v4 }
 0x17d   :  { %v960_v59 = vpop.f32.mrf.mxu2  ;;  %v980_v2 = vpop.f32.mrf.mxu3  ;;  %1217 = vmatpush.msrb.mxu2 %v1038_v7 }
 0x17e   :  { %v961_v63 = vadd.f32 %v960_v59, %v941_v57  ;;  %v1063_v57 = vld [vmem:[%s17985_s2 + $0x178] sm:$0xff] }
 0x17f   :  { %1234 = vmatpush.msrb.mxu3 %v1063_v57  ;;  %1218 = vmatpush.msrb.mxu2 %v1030_v11  ;;  %v8229_v57 = vld [vmem:[%s17988_s0 + $0x370] sm:$0xf]  ;;  %v8029_v11 = vld [vmem:[%s17988_s0 + $0x1e0] sm:$0xf] }
 0x180   :  { %v981_v5 = vadd.f32 %v980_v2, %v961_v63  ;;  %v1055_v63 = vld [vmem:[%s17985_s2 + $0x138] sm:$0xff]  ;;  %v1044_v2 = vld [vmem:[%s17985_s2 + $0xe0] sm:$0xff] }
 0x181   :  { %1235 = vmatpush.msrb.mxu3 %v1055_v63  ;;  %1176 = vmatpush.msrb.mxu0 %v1044_v2  ;;  %v7889_v63 = vld [vmem:[%s17988_s0 + $0xc8] sm:$0xf]  ;;  %v10404_v2 = vld [vmem:[%s17988_s0 + $0x218] sm:$0xf0] }
 0x182   :  { %v983_v9 = vsel %vm807_vm2, %v981_v5, 0.0  ;;  %v1036_v5 = vld [vmem:[%s17985_s2 + $0xa0] sm:$0xff]  ;;  %1219 = vmatpush.msrb.mxu2 %v1022_v15  ;;  %vm5485_vm2 = vcmask 130048  }
 0x183   :  { %v984_v12 = vrot.slane %v983_v9, 4  ;;  %1236 = vmatpush.msrb.mxu3 %v1047_v38  ;;  %1177 = vmatpush.msrb.mxu0 %v1036_v5  ;;  %v8209_v38 = vld [vmem:[%s17988_s0 + $0x348] sm:$0xf]  ;;  %v10444_v5 = vld [vmem:[%s17988_s0 + $0x358] sm:$0xf0] }
 0x184   :  { %v8189_v15 = vld [vmem:[%s17988_s0 + $0x320] sm:$0xf] }
 0x185   :  { %v985_v17 = vadd.f32 %v984_v12, %v983_v9  ;;  %v1028_v9 = vld [vmem:[%s17985_s2 + $0x60] sm:$0xff]  ;;  %v1031_v12 = vld [vmem:[%s17985_s2 + $0x78] sm:$0xff]  ;;  %1237 = vmatpush.msrb.mxu3 %v1039_v8 }
 0x186   :  { %1178 = vmatpush.msrb.mxu0 %v1028_v9  ;;  %v7869_v9 = vld [vmem:[%s17988_s0 + $0xa0] sm:$0xf] }
 0x187   :  { %v986_v22 = vrot.slane %v985_v17, 2  ;;  %1238 = vmatpush.msrb.mxu3 %v1031_v12  ;;  %v10399_v12 = vld [vmem:[%s17988_s0 + $0x1f0] sm:$0xf0] }
 0x188   :  { %1179 = vmatpush.msrb.mxu0 %v1020_v13  ;;  %v8210_v13 = vor.u32 %v10444_v5, %v8209_v38  ;;  %v7949_v38 = vld [vmem:[%s17988_s0 + $0x140] sm:$0xf]  ;;  %v10379_v5 = vld [vmem:[%s17988_s0 + $0x150] sm:$0xf0] }
 0x189   :  { %v987_v29 = vadd.f32 %v986_v22, %v985_v17  ;;  %1239 = vmatpush.msrb.mxu3 %v1023_v16  ;;  %v995_v22 = vld [vmem:[%s17986_s28] sm:$0x1]  ;;  %v10439_v16 = vld [vmem:[%s17988_s0 + $0x330] sm:$0xf0] }
 0x18b   :  { %v988_v40 = vrot.slane %v987_v29, 1 }
 0x18d   :  { %v989_v54 = vadd.f32 %v988_v40, %v987_v29  ;;  %v7930_v40 = vor.u32 %v10374_v28, %v7929_v27  ;;  %v10434_v27 = vld [vmem:[%s17988_s0 + $0x308] sm:$0xf0]  ;;  %v8329_v28 = vld [vmem:[%s17988_s0 + $0x438] sm:$0xf] }
 0x18f   :  { %v991_v59 = vmul.f32 0.03125, %v989_v54  ;;  %v8069_v54 = vld [vmem:[%s17988_s0 + $0x230] sm:$0xf] }
 0x190   :  { %v8070_v62 = vor.u32 %v10409_v55, %v8069_v54  ;;  %v7830_v54 = vor.u32 %v10349_v33, %v7829_v32  ;;  %v7990_v55 = vor.u32 %v10389_v36, %v7989_v34  ;;  %v9029_v32 = vld [vmem:[%s17988_s0 + $0x9b0] sm:$0xf]  ;;  %v10649_v33 = vld [vmem:[%s17988_s0 + $0x9c0] sm:$0xf0] }
 0x191   :  { %v993_v0 = vsub.f32 %v991_v59, %v992_v58  ;;  %v10449_v58 = vld [vmem:[%s17988_s0 + $0x380] sm:$0xf0]  ;;  %v8389_v59 = vld [vmem:[%s17988_s0 + $0x4b0] sm:$0xf] }
 0x192   :  { %v8230_v3 = vor.u32 %v10449_v58, %v8229_v57  ;;  %v8390_v4 = vor.u32 %v10489_v60, %v8389_v59  ;;  %v7969_v57 = vld [vmem:[%s17988_s0 + $0x168] sm:$0xf]  ;;  %v10384_v58 = vld [vmem:[%s17988_s0 + $0x178] sm:$0xf0] }
 0x193   :  { %v994_v1 = vmax.f32 %v993_v0, 0.0  ;;  %v10364_v0 = vld [vmem:[%s17988_s0 + $0xd8] sm:$0xf0] }
 0x194   :  { %v7890_v7 = vor.u32 %v10364_v0, %v7889_v63  ;;  %v8289_v63 = vld [vmem:[%s17988_s0 + $0x3e8] sm:$0xf]  ;;  %v10464_v0 = vld [vmem:[%s17988_s0 + $0x3f8] sm:$0xf0] }
 0x195   :  { %v996_v6 = vadd.f32 1e-05, %v994_v1  ;;  %v8049_v1 = vld [vmem:[%s17988_s0 + $0x208] sm:$0xf] }
 0x196   :  { %v8050_v8 = vor.u32 %v10404_v2, %v8049_v1  ;;  %v7789_v1 = vld [vmem:[%s17988_s0] sm:$0xf] }
 0x197   :  { %10957 = vrsqrt.f32 %v996_v6  ;;  %vm1003_vm4 = vweird.f32 %v996_v6 }
 0x19d   :  { %v10958_v17 = vpop.eup %10957 }
 0x19e   :  { %v998_v18 = vmul.f32 %v10958_v17, %v996_v6  ;;  %vm1004_vm3 = vweird.f32 %v10958_v17  ;;  %v10484_v6 = vld [vmem:[%s17988_s0 + $0x498] sm:$0xf0] }
 0x19f   :  { %vm1005_vm5 = vmor %vm1003_vm4, %vm1004_vm3  ;;  %v8370_v14 = vor.u32 %v10484_v6, %v8369_v39  ;;  %v8569_v39 = vld [vmem:[%s17988_s0 + $0x618] sm:$0xf]  ;;  %v10534_v6 = vld [vmem:[%s17988_s0 + $0x628] sm:$0xf0]  ;;  %vm6708_vm3 = vcmask 58368  }
 0x1a0   :  { %v999_v19 = vmul.f32 %v10958_v17, %v998_v18  ;;  %v10479_v18 = vld [vmem:[%s17988_s0 + $0x470] sm:$0xf0] }
 0x1a2   :  { %v1000_v35 = vmul.f32 0.5, %v999_v19  ;;  %v7870_v19 = vor.u32 %v10359_v10, %v7869_v9  ;;  %v8290_v9 = vor.u32 %v10464_v0, %v8289_v63  ;;  %v10574_v10 = vld [vmem:[%s17988_s0 + $0x768] sm:$0xf0] }
 0x1a4   :  { %v1001_v20 = vsub.f32 1.5, %v1000_v35  ;;  %v8030_v35 = vor.u32 %v10399_v12, %v8029_v11  ;;  %v8109_v11 = vld [vmem:[%s17988_s0 + $0x280] sm:$0xf]  ;;  %v10419_v12 = vld [vmem:[%s17988_s0 + $0x290] sm:$0xf0] }
 0x1a6   :  { %v1002_v21 = vmul.f32 %v10958_v17, %v1001_v20  ;;  %v7849_v20 = vld [vmem:[%s17988_s0 + $0x78] sm:$0xf] }
 0x1a8   :  { %v1006_v23 = vsel %vm1005_vm5, %v10958_v17, %v1002_v21  ;;  %v8349_v17 = vld [vmem:[%s17988_s0 + $0x460] sm:$0xf]  ;;  %v10354_v21 = vld [vmem:[%s17988_s0 + $0x88] sm:$0xf0] }
 0x1a9   :  { %v1007_v24 = vmul.f32 %v1006_v23, %v995_v22  ;;  %v8009_v22 = vld [vmem:[%s17988_s0 + $0x1b8] sm:$0xf]  ;;  %v10394_v23 = vld [vmem:[%s17988_s0 + $0x1c8] sm:$0xf0]  ;;  %v7850_v30 = vor.u32 %v10354_v21, %v7849_v20  ;;  %v8570_v20 = vor.u32 %v10534_v6, %v8569_v39 }
 0x1aa   :  { %v8010_v31 = vor.u32 %v10394_v23, %v8009_v22  ;;  %v8549_v22 = vld [vmem:[%s17988_s0 + $0x5f0] sm:$0xf]  ;;  %v10529_v23 = vld [vmem:[%s17988_s0 + $0x600] sm:$0xf0]  ;;  %v10554_v39 = vld [vmem:[%s17988_s0 + $0x6c8] sm:$0xf0] }
 0x1ab   :  { %v1009_v26 = vmul.f32 %v1007_v24, %v12459_v37  ;;  %v8550_v34 = vor.u32 %v10529_v23, %v8549_v22  ;;  %v10634_v22 = vld [vmem:[%s17988_s0 + $0x948] sm:$0xf0] }
 0x1ad   :  { %v1010_v29 = vsub.f32 %v1008_v25, %v1009_v26  ;;  %v8350_v25 = vor.u32 %v10479_v18, %v8349_v17  ;;  %v8169_v26 = vld [vmem:[%s17988_s0 + $0x2f8] sm:$0xf]  ;;  %v7950_v17 = vor.u32 %v10379_v5, %v7949_v38  ;;  %v10614_v18 = vld [vmem:[%s17988_s0 + $0x8a8] sm:$0xf0] }
 0x1ae   :  { %v8649_v38 = vld [vmem:[%s17988_s0 + $0x6b8] sm:$0xf] }
 0x1af   :  { %v1012_v37 = vperm.slane %v1010_v29, 0  ;;  %v10474_v29 = vld [vmem:[%s17988_s0 + $0x448] sm:$0xf0]  ;;  %v8650_v6 = vor.u32 %v10554_v39, %v8649_v38 }
 0x1b1   :  { %v1015_v49 = vsel %vm1014_vm6, %v1007_v24, %v1012_v37  ;;  %v8190_v24 = vor.u32 %v10439_v16, %v8189_v15  ;;  %v8170_v37 = vor.u32 %v10434_v27, %v8169_v26  ;;  %v8889_v15 = vld [vmem:[%s17988_s0 + $0x898] sm:$0xf]  ;;  %v8110_v26 = vor.u32 %v10419_v12, %v8109_v11  ;;  %v10639_v11 = vld [vmem:[%s17988_s0 + $0x970] sm:$0xf0] }
 0x1b2   :  { %7779 = vmatmul.msk.f32.vlgmr.msra.gmra.mxu0 %vm1080_vm7, %v1015_v49  ;;  %7780 = vmatmul.msk.f32.vlgmr.msra.gmra.mxu1 %vm1080_vm7, %v1015_v49 }
 0x1b3   :  { %7781 = vmatmul.msk.f32.vlgmr.msra.gmra.mxu2 %vm1080_vm7, %v1015_v49  ;;  %7782 = vmatmul.msk.f32.vlgmr.msra.gmra.mxu3 %vm1080_vm7, %v1015_v49 }
 0x1b4   :  { %3348 = vmatpush.bf16.msra.mxu0 %v7930_v40  ;;  %3361 = vmatpush.bf16.msra.mxu1 %v8090_v41  ;;  %v8330_v40 = vor.u32 %v10474_v29, %v8329_v28  ;;  %v8149_v41 = vld [vmem:[%s17988_s0 + $0x2d0] sm:$0xf]  ;;  %v8890_v28 = vor.u32 %v10614_v18, %v8889_v15 }
 0x1b5   :  { %3374 = vmatpush.bf16.msra.mxu2 %v8250_v43  ;;  %3387 = vmatpush.bf16.msra.mxu3 %v8410_v56  ;;  %v7809_v43 = vld [vmem:[%s17988_s0 + $0x28] sm:$0xf]  ;;  %v10344_v56 = vld [vmem:[%s17988_s0 + $0x38] sm:$0xf0]  ;;  %v8150_v59 = vor.u32 %v10429_v47, %v8149_v41  ;;  %v8629_v15 = vld [vmem:[%s17988_s0 + $0x690] sm:$0xf] }
 0x1b6   :  { %v7810_v2 = vor.u32 %v10344_v56, %v7809_v43  ;;  %v8689_v41 = vld [vmem:[%s17988_s0 + $0x708] sm:$0xf]  ;;  %v10564_v47 = vld [vmem:[%s17988_s0 + $0x718] sm:$0xf0] }
 0x1b7   :  { %v9009_v43 = vld [vmem:[%s17988_s0 + $0x988] sm:$0xf]  ;;  %v10644_v56 = vld [vmem:[%s17988_s0 + $0x998] sm:$0xf0] }
 0x1b8   :  { %3349 = vmatpush.bf16.msra.mxu0 %v7910_v61  ;;  %3362 = vmatpush.bf16.msra.mxu1 %v8070_v62  ;;  %v8129_v61 = vld [vmem:[%s17988_s0 + $0x2a8] sm:$0xf]  ;;  %v10424_v62 = vld [vmem:[%s17988_s0 + $0x2b8] sm:$0xf0]  ;;  %v9010_v0 = vor.u32 %v10644_v56, %v9009_v43 }
 0x1b9   :  { %3375 = vmatpush.bf16.msra.mxu2 %v8230_v3  ;;  %3388 = vmatpush.bf16.msra.mxu3 %v8390_v4  ;;  %v7970_v3 = vor.u32 %v10384_v58, %v7969_v57  ;;  %v10339_v4 = vld [vmem:[%s17988_s0 + $0x10] sm:$0xf0]  ;;  %v8690_v58 = vor.u32 %v10564_v47, %v8689_v41  ;;  %v8589_v41 = vld [vmem:[%s17988_s0 + $0x640] sm:$0xf]  ;;  %v8929_v43 = vld [vmem:[%s17988_s0 + $0x8e8] sm:$0xf] }
 0x1ba   :  { %7783 = vmatmul.msk.f32.vlgmr.msrb.gmra.mxu0 %vm1080_vm7, %v1015_v49  ;;  %7784 = vmatmul.msk.f32.vlgmr.msrb.gmra.mxu1 %vm1080_vm7, %v1015_v49  ;;  %v7790_v16 = vor.u32 %v10339_v4, %v7789_v1  ;;  %v10514_v4 = vld [vmem:[%s17988_s0 + $0x588] sm:$0xf0] }
 0x1bb   :  { %7785 = vmatmul.msk.f32.vlgmr.msrb.gmra.mxu2 %vm1080_vm7, %v1015_v49  ;;  %7786 = vmatmul.msk.f32.vlgmr.msrb.gmra.mxu3 %vm1080_vm7, %v1015_v49  ;;  %v10469_v49 = vld [vmem:[%s17988_s0 + $0x420] sm:$0xf0] }
 0x1bc   :  { %3350 = vmatpush.bf16.msra.mxu0 %v7890_v7  ;;  %3363 = vmatpush.bf16.msra.mxu1 %v8050_v8  ;;  %v8310_v60 = vor.u32 %v10469_v49, %v8309_v48  ;;  %v8729_v7 = vld [vmem:[%s17988_s0 + $0x758] sm:$0xf]  ;;  %v8130_v8 = vor.u32 %v10424_v62, %v8129_v61  ;;  %v9030_v49 = vor.u32 %v10649_v33, %v9029_v32  ;;  %v8669_v61 = vld [vmem:[%s17988_s0 + $0x6e0] sm:$0xf]  ;;  %v10559_v62 = vld [vmem:[%s17988_s0 + $0x6f0] sm:$0xf0] }
 0x1bd   :  { %3376 = vmatpush.bf16.msra.mxu2 %v8210_v13  ;;  %3389 = vmatpush.bf16.msra.mxu3 %v8370_v14  ;;  %v8269_v13 = vld [vmem:[%s17988_s0 + $0x3c0] sm:$0xf]  ;;  %v10459_v14 = vld [vmem:[%s17988_s0 + $0x3d0] sm:$0xf0]  ;;  %v8730_v21 = vor.u32 %v10574_v10, %v8729_v7  ;;  %v8949_v32 = vld [vmem:[%s17988_s0 + $0x910] sm:$0xf] }
 0x1be   :  { %v8270_v27 = vor.u32 %v10459_v14, %v8269_v13  ;;  %v8829_v7 = vld [vmem:[%s17988_s0 + $0x820] sm:$0xf]  ;;  %v8469_v13 = vld [vmem:[%s17988_s0 + $0x550] sm:$0xf]  ;;  %v10509_v14 = vld [vmem:[%s17988_s0 + $0x560] sm:$0xf0] }
 0x1c0   :  { %3351 = vmatpush.bf16.msra.mxu0 %v7870_v19  ;;  %3364 = vmatpush.bf16.msra.mxu1 %v8030_v35  ;;  %v9049_v19 = vld [vmem:[%s17988_s0 + $0x9d8] sm:$0xf]  ;;  %v10654_v35 = vld [vmem:[%s17988_s0 + $0x9e8] sm:$0xf0] }
 0x1c1   :  { %3377 = vmatpush.bf16.msra.mxu2 %v8190_v24  ;;  %3390 = vmatpush.bf16.msra.mxu3 %v8350_v25  ;;  %v8709_v24 = vld [vmem:[%s17988_s0 + $0x730] sm:$0xf]  ;;  %v10569_v25 = vld [vmem:[%s17988_s0 + $0x740] sm:$0xf0]  ;;  %v9050_v29 = vor.u32 %v10654_v35, %v9049_v19  ;;  %v8809_v19 = vld [vmem:[%s17988_s0 + $0x7f8] sm:$0xf] }
 0x1c2   :  { %v8710_v36 = vor.u32 %v10569_v25, %v8709_v24  ;;  %v10594_v35 = vld [vmem:[%s17988_s0 + $0x808] sm:$0xf0]  ;;  %v8449_v24 = vld [vmem:[%s17988_s0 + $0x528] sm:$0xf]  ;;  %v10504_v25 = vld [vmem:[%s17988_s0 + $0x538] sm:$0xf0] }
 0x1c4   :  { %3352 = vmatpush.bf16.msra.mxu0 %v7850_v30  ;;  %3365 = vmatpush.bf16.msra.mxu1 %v8010_v31  ;;  %v8869_v30 = vld [vmem:[%s17988_s0 + $0x870] sm:$0xf]  ;;  %v10609_v31 = vld [vmem:[%s17988_s0 + $0x880] sm:$0xf0] }
 0x1c5   :  { %3378 = vmatpush.bf16.msra.mxu2 %v8170_v37  ;;  %3391 = vmatpush.bf16.msra.mxu3 %v8330_v40  ;;  %v8529_v37 = vld [vmem:[%s17988_s0 + $0x5c8] sm:$0xf]  ;;  %v10524_v40 = vld [vmem:[%s17988_s0 + $0x5d8] sm:$0xf0]  ;;  %v8870_v48 = vor.u32 %v10609_v31, %v8869_v30  ;;  %v8789_v30 = vld [vmem:[%s17988_s0 + $0x7d0] sm:$0xf] }
 0x1c6   :  { %v8530_v57 = vor.u32 %v10524_v40, %v8529_v37  ;;  %v10589_v31 = vld [vmem:[%s17988_s0 + $0x7e0] sm:$0xf0]  ;;  %v8429_v37 = vld [vmem:[%s17988_s0 + $0x500] sm:$0xf]  ;;  %v10499_v40 = vld [vmem:[%s17988_s0 + $0x510] sm:$0xf0] }
 0x1c7   :  { %v8790_v33 = vor.u32 %v10589_v31, %v8789_v30  ;;  %v8430_v47 = vor.u32 %v10499_v40, %v8429_v37  ;;  %v10367_v31 = vld [vmem:[%s17988_s0 + $0xf4] sm:$0xf]  ;;  %v8251_v37 = vld [vmem:[%s17988_s0 + $0x3ac] sm:$0xf0] }
 0x1c8   :  { %3353 = vmatpush.bf16.msra.mxu0 %v7830_v54  ;;  %3366 = vmatpush.bf16.msra.mxu1 %v7990_v55  ;;  %v8849_v54 = vld [vmem:[%s17988_s0 + $0x848] sm:$0xf]  ;;  %v10604_v55 = vld [vmem:[%s17988_s0 + $0x858] sm:$0xf0] }
 0x1c9   :  { %3379 = vmatpush.bf16.msra.mxu2 %v8150_v59  ;;  %3392 = vmatpush.bf16.msra.mxu3 %v8310_v60  ;;  %v8509_v59 = vld [vmem:[%s17988_s0 + $0x5a0] sm:$0xf]  ;;  %v10519_v60 = vld [vmem:[%s17988_s0 + $0x5b0] sm:$0xf0]  ;;  %v8850_v63 = vor.u32 %v10604_v55, %v8849_v54  ;;  %v8769_v54 = vld [vmem:[%s17988_s0 + $0x7a8] sm:$0xf] }
 0x1ca   :  { %v8510_v1 = vor.u32 %v10519_v60, %v8509_v59  ;;  %v10584_v55 = vld [vmem:[%s17988_s0 + $0x7b8] sm:$0xf0]  ;;  %v8749_v59 = vld [vmem:[%s17988_s0 + $0x780] sm:$0xf]  ;;  %v10579_v60 = vld [vmem:[%s17988_s0 + $0x790] sm:$0xf0] }
 0x1cb   :  { %v8770_v56 = vor.u32 %v10584_v55, %v8769_v54 }
 0x1cc   :  { %3354 = vmatpush.bf16.msra.mxu0 %v7810_v2  ;;  %3367 = vmatpush.bf16.msra.mxu1 %v7970_v3  ;;  %v8670_v2 = vor.u32 %v10559_v62, %v8669_v61  ;;  %v8489_v3 = vld [vmem:[%s17988_s0 + $0x578] sm:$0xf]  ;;  %v8750_v61 = vor.u32 %v10579_v60, %v8749_v59  ;;  %v8909_v62 = vld [vmem:[%s17988_s0 + $0x8c0] sm:$0xf] }
 0x1cd   :  { %3380 = vmatpush.bf16.msra.mxu2 %v8130_v8  ;;  %3393 = vmatpush.bf16.msra.mxu3 %v8290_v9  ;;  %v8490_v5 = vor.u32 %v10514_v4, %v8489_v3  ;;  %v10599_v8 = vld [vmem:[%s17988_s0 + $0x830] sm:$0xf0]  ;;  %v8989_v9 = vld [vmem:[%s17988_s0 + $0x960] sm:$0xf] }
 0x1ce   :  { %v8830_v10 = vor.u32 %v10599_v8, %v8829_v7  ;;  %v8990_v12 = vor.u32 %v10639_v11, %v8989_v9  ;;  %v10372_v7 = vld [vmem:[%s17988_s0 + $0x11c] sm:$0xf]  ;;  %v7891_v59 = vld [vmem:[%s17988_s0 + $0xdc] sm:$0xf0] }
 0x1cf   :  { %v10412_v11 = vld [vmem:[%s17988_s0 + $0x25c] sm:$0xf] }
 0x1d0   :  { %3355 = vmatpush.bf16.msra.mxu0 %v7790_v16  ;;  %3368 = vmatpush.bf16.msra.mxu1 %v7950_v17  ;;  %v8470_v16 = vor.u32 %v10509_v14, %v8469_v13  ;;  %v10549_v17 = vld [vmem:[%s17988_s0 + $0x6a0] sm:$0xf0] }
 0x1d1   :  { %3381 = vmatpush.bf16.msra.mxu2 %v8110_v26  ;;  %3394 = vmatpush.bf16.msra.mxu3 %v8270_v27  ;;  %v8630_v18 = vor.u32 %v10549_v17, %v8629_v15  ;;  %v8609_v26 = vld [vmem:[%s17988_s0 + $0x668] sm:$0xf]  ;;  %v8450_v27 = vor.u32 %v10504_v25, %v8449_v24 }
 0x1d4   :  { %3400 = vmatpush.bf16.msrb.mxu0 %v8570_v20  ;;  %3413 = vmatpush.bf16.msrb.mxu1 %v8730_v21  ;;  %v8969_v20 = vld [vmem:[%s17988_s0 + $0x938] sm:$0xf]  ;;  %v8810_v21 = vor.u32 %v10594_v35, %v8809_v19 }
 0x1d5   :  { %3426 = vmatpush.bf16.msrb.mxu2 %v8890_v28  ;;  %3439 = vmatpush.bf16.msrb.mxu3 %v9050_v29  ;;  %v8970_v23 = vor.u32 %v10634_v22, %v8969_v20  ;;  %v10544_v28 = vld [vmem:[%s17988_s0 + $0x678] sm:$0xf0] }
 0x1d6   :  { %v8610_v29 = vor.u32 %v10544_v28, %v8609_v26 }
 0x1d8   :  { %3401 = vmatpush.bf16.msrb.mxu0 %v8550_v34  ;;  %3414 = vmatpush.bf16.msrb.mxu1 %v8710_v36  ;;  %v10629_v34 = vld [vmem:[%s17988_s0 + $0x920] sm:$0xf0] }
 0x1d9   :  { %3427 = vmatpush.bf16.msrb.mxu2 %v8870_v48  ;;  %3440 = vmatpush.bf16.msrb.mxu3 %v9030_v49  ;;  %v8950_v36 = vor.u32 %v10629_v34, %v8949_v32  ;;  %v10539_v48 = vld [vmem:[%s17988_s0 + $0x650] sm:$0xf0]  ;;  %v7911_v32 = vld [vmem:[%s17988_s0 + $0x104] sm:$0xf0] }
 0x1da   :  { %v8590_v49 = vor.u32 %v10539_v48, %v8589_v41  ;;  %v8411_v41 = vld [vmem:[%s17988_s0 + $0x4ec] sm:$0xf0]  ;;  %v7914_v54 = vor.u32 %v10367_v31, %v7911_v32  ;;  %v10392_v32 = vld [vmem:[%s17988_s0 + $0x1bc] sm:$0xf] }
 0x1db   :  { %v7851_v31 = vld [vmem:[%s17988_s0 + $0x8c] sm:$0xf0] }
 0x1dc   :  { %3402 = vmatpush.bf16.msrb.mxu0 %v8530_v57  ;;  %3415 = vmatpush.bf16.msrb.mxu1 %v8690_v58  ;;  %v10624_v57 = vld [vmem:[%s17988_s0 + $0x8f8] sm:$0xf0] }
 0x1dd   :  { %3428 = vmatpush.bf16.msrb.mxu2 %v8850_v63  ;;  %3441 = vmatpush.bf16.msrb.mxu3 %v9010_v0  ;;  %v8930_v58 = vor.u32 %v10624_v57, %v8929_v43  ;;  %v10619_v63 = vld [vmem:[%s17988_s0 + $0x8d0] sm:$0xf0] }
 0x1de   :  { %v8910_v0 = vor.u32 %v10619_v63, %v8909_v62 }
 0x1e0   :  { %3403 = vmatpush.bf16.msrb.mxu0 %v8510_v1  ;;  %3416 = vmatpush.bf16.msrb.mxu1 %v8670_v2 }
 0x1e1   :  { %3429 = vmatpush.bf16.msrb.mxu2 %v8830_v10  ;;  %3442 = vmatpush.bf16.msrb.mxu3 %v8990_v12  ;;  %v7931_v10 = vld [vmem:[%s17988_s0 + $0x12c] sm:$0xf0] }
 0x1e2   :  { %v7934_v19 = vor.u32 %v10372_v7, %v7931_v10  ;;  %v8391_v10 = vld [vmem:[%s17988_s0 + $0x4c4] sm:$0xf0] }
 0x1e4   :  { %3404 = vmatpush.bf16.msrb.mxu0 %v8490_v5  ;;  %3417 = vmatpush.bf16.msrb.mxu1 %v8650_v6 }
 0x1e5   :  { %3430 = vmatpush.bf16.msrb.mxu2 %v8810_v21  ;;  %3443 = vmatpush.bf16.msrb.mxu3 %v8970_v23 }
 0x1e8   :  { %3405 = vmatpush.bf16.msrb.mxu0 %v8470_v16  ;;  %3418 = vmatpush.bf16.msrb.mxu1 %v8630_v18 }
 0x1e9   :  { %3431 = vmatpush.bf16.msrb.mxu2 %v8790_v33  ;;  %3444 = vmatpush.bf16.msrb.mxu3 %v8950_v36  ;;  %v10452_v36 = vld [vmem:[%s17988_s0 + $0x39c] sm:$0xf] }
 0x1ec   :  { %3406 = vmatpush.bf16.msrb.mxu0 %v8450_v27  ;;  %3419 = vmatpush.bf16.msrb.mxu1 %v8610_v29 }
 0x1ed   :  { %3432 = vmatpush.bf16.msrb.mxu2 %v8770_v56  ;;  %3445 = vmatpush.bf16.msrb.mxu3 %v8930_v58  ;;  %v10362_v58 = vld [vmem:[%s17988_s0 + $0xcc] sm:$0xf] }
 0x1f0   :  { %3407 = vmatpush.bf16.msrb.mxu0 %v8430_v47  ;;  %3420 = vmatpush.bf16.msrb.mxu1 %v8590_v49 }
 0x1f1   :  { %3433 = vmatpush.bf16.msrb.mxu2 %v8750_v61  ;;  %3446 = vmatpush.bf16.msrb.mxu3 %v8910_v0  ;;  %v10402_v0 = vld [vmem:[%s17988_s0 + $0x20c] sm:$0xf] }
 0x22f   :  { %v1101_v1 = vpop.f32.mrf.mxu0  ;;  %v1121_v2 = vpop.f32.mrf.mxu1 }
 0x230   :  { %v1244_v3 = vperm.slane %v1101_v1, 0  ;;  %v1245_v4 = vperm.slane %v1121_v2, 0  ;;  %v1260_v5 = vperm.slane %v1101_v1, 1  ;;  %v1261_v6 = vperm.slane %v1121_v2, 1  ;;  %v8051_v1 = vld [vmem:[%s17988_s0 + $0x21c] sm:$0xf0] }
 0x232   :  { %v1252_v38 = vmul.f32 %v1244_v3, %v12181_v45  ;;  %v1253_v39 = vmul.f32 %v1245_v4, %v12183_v42  ;;  %v8091_v45 = vld [vmem:[%s17988_s0 + $0x26c] sm:$0xf0]  ;;  %v8254_v3 = vor.u32 %v10452_v36, %v8251_v37  ;;  %v10477_v36 = vld [vmem:[%s17988_s0 + $0x464] sm:$0xf] }
 0x233   :  { %v8094_v35 = vor.u32 %v10412_v11, %v8091_v45  ;;  %v10357_v11 = vld [vmem:[%s17988_s0 + $0xa4] sm:$0xf] }
 0x234   :  { %v1268_v8 = vadd.f32 %v1260_v5, %v1252_v38  ;;  %v1269_v9 = vadd.f32 %v1261_v6, %v1253_v39  ;;  %v10447_v38 = vld [vmem:[%s17988_s0 + $0x374] sm:$0xf]  ;;  %v8231_v5 = vld [vmem:[%s17988_s0 + $0x384] sm:$0xf0] }
 0x236   :  { %v1276_v42 = vmul.f32 0.2, %v1268_v8  ;;  %v1277_v12 = vmul.f32 0.2, %v1269_v9  ;;  %v1141_v13 = vpop.f32.mrf.mxu2  ;;  %v1161_v14 = vpop.f32.mrf.mxu3 }
 0x237   :  { %v1246_v15 = vperm.slane %v1141_v13, 0  ;;  %v1247_v16 = vperm.slane %v1161_v14, 0  ;;  %v1181_v17 = vpop.f32.mrf.mxu0  ;;  %v1201_v18 = vpop.f32.mrf.mxu1  ;;  %v1262_v22 = vperm.slane %v1141_v13, 1  ;;  %v1263_v26 = vperm.slane %v1161_v14, 1  ;;  %v8031_v13 = vld [vmem:[%s17988_s0 + $0x1f4] sm:$0xf0] }
 0x238   :  { %v1284_v20 = vmax.f32 %v1268_v8, %v1276_v42  ;;  %v1285_v21 = vmax.f32 %v1269_v9, %v1277_v12  ;;  %v1248_v23 = vperm.slane %v1181_v17, 0  ;;  %v1249_v27 = vperm.slane %v1201_v18, 0  ;;  %v10487_v9 = vld [vmem:[%s17988_s0 + $0x4b4] sm:$0xf]  ;;  %v10397_v12 = vld [vmem:[%s17988_s0 + $0x1e4] sm:$0xf] }
 0x239   :  { %v1254_v24 = vmul.f32 %v1246_v15, %v12193_v46  ;;  %v1255_v25 = vmul.f32 %v1247_v16, %v12195_v44  ;;  %v10407_v44 = vld [vmem:[%s17988_s0 + $0x234] sm:$0xf]  ;;  %v1264_v40 = vperm.slane %v1181_v17, 1  ;;  %v1265_v49 = vperm.slane %v1201_v18, 1 }
 0x23a   :  { %v12963_v28 = vpack.c.bf16 %v1284_v20, %v1284_v20  ;;  %v12965_v29 = vpack.c.bf16 %v1285_v21, %v1285_v21  ;;  %v1256_v30 = vmul.f32 %v1248_v23, %v12233_v50  ;;  %v1257_v34 = vmul.f32 %v1249_v27, %v12235_v51  ;;  %v8071_v50 = vld [vmem:[%s17988_s0 + $0x244] sm:$0xf0]  ;;  %v10492_v51 = vld [vmem:[%s17988_s0 + $0x4dc] sm:$0xf]  ;;  %v10482_v23 = vld [vmem:[%s17988_s0 + $0x48c] sm:$0xf] }
 0x23b   :  { %v1270_v46 = vadd.f32 %v1262_v22, %v1254_v24  ;;  %v1271_v33 = vadd.f32 %v1263_v26, %v1255_v25  ;;  %v8074_v57 = vor.u32 %v10407_v44, %v8071_v50  ;;  %v8414_v4 = vor.u32 %v10492_v51, %v8411_v41  ;;  %v8211_v22 = vld [vmem:[%s17988_s0 + $0x35c] sm:$0xf0]  ;;  %v10352_v26 = vld [vmem:[%s17988_s0 + $0x7c] sm:$0xf]  ;;  %v8011_v44 = vld [vmem:[%s17988_s0 + $0x1cc] sm:$0xf0] }
 0x23c   :  { %3356 = vmatmul.bf16.vlgmr.msra.gmra.mxu0 %v12963_v28  ;;  %3369 = vmatmul.bf16.vlgmr.msra.gmra.mxu1 %v12965_v29  ;;  %v1272_v55 = vadd.f32 %v1264_v40, %v1256_v30  ;;  %v1273_v62 = vadd.f32 %v1265_v49, %v1257_v34  ;;  %v7894_v8 = vor.u32 %v10362_v58, %v7891_v59  ;;  %v8371_v24 = vld [vmem:[%s17988_s0 + $0x49c] sm:$0xf0]  ;;  %v10437_v34 = vld [vmem:[%s17988_s0 + $0x324] sm:$0xf]  ;;  %v8191_v50 = vld [vmem:[%s17988_s0 + $0x334] sm:$0xf0] }
 0x23d   :  { %v1278_v47 = vmul.f32 0.2, %v1270_v46  ;;  %v1279_v48 = vmul.f32 0.2, %v1271_v33  ;;  %3452 = vmatpush.bf16.msra.mxu0 %v7934_v19  ;;  %3465 = vmatpush.bf16.msra.mxu1 %v8094_v35  ;;  %v8054_v42 = vor.u32 %v10402_v0, %v8051_v1  ;;  %v8394_v18 = vor.u32 %v10487_v9, %v8391_v10  ;;  %v10442_v19 = vld [vmem:[%s17988_s0 + $0x34c] sm:$0xf] }
 0x23e   :  { %v1221_v43 = vpop.f32.mrf.mxu2  ;;  %v1241_v56 = vpop.f32.mrf.mxu3  ;;  %v1280_v14 = vmul.f32 0.2, %v1272_v55  ;;  %v1281_v15 = vmul.f32 0.2, %v1273_v62  ;;  %v8034_v25 = vor.u32 %v10397_v12, %v8031_v13  ;;  %v8351_v51 = vld [vmem:[%s17988_s0 + $0x474] sm:$0xf0]  ;;  %v7854_v41 = vor.u32 %v10352_v26, %v7851_v31 }
 0x23f   :  { %v1286_v60 = vmax.f32 %v1270_v46, %v1278_v47  ;;  %v1287_v61 = vmax.f32 %v1271_v33, %v1279_v48  ;;  %v1250_v63 = vperm.slane %v1221_v43, 0  ;;  %v1251_v2 = vperm.slane %v1241_v56, 0  ;;  %v10347_v48 = vld [vmem:[%s17988_s0 + $0x54] sm:$0xf]  ;;  %v10432_v59 = vld [vmem:[%s17988_s0 + $0x2fc] sm:$0xf] }
 0x240   :  { %v1266_v16 = vperm.slane %v1221_v43, 1  ;;  %v1267_v17 = vperm.slane %v1241_v56, 1  ;;  %v1288_v27 = vmax.f32 %v1272_v55, %v1280_v14  ;;  %v1289_v30 = vmax.f32 %v1273_v62, %v1281_v15  ;;  %v7831_v55 = vld [vmem:[%s17988_s0 + $0x64] sm:$0xf0]  ;;  %v10387_v43 = vld [vmem:[%s17988_s0 + $0x194] sm:$0xf] }
 0x241   :  { %v13013_v39 = vpack.c.bf16 %v1286_v60, %v1286_v60  ;;  %v13015_v6 = vpack.c.bf16 %v1287_v61, %v1287_v61  ;;  %v1258_v7 = vmul.f32 %v1250_v63, %v12251_v52  ;;  %3453 = vmatpush.bf16.msra.mxu0 %v7914_v54  ;;  %v1259_v45 = vmul.f32 %v1251_v2, %v12253_v53  ;;  %v7871_v52 = vld [vmem:[%s17988_s0 + $0xb4] sm:$0xf0]  ;;  %v7991_v56 = vld [vmem:[%s17988_s0 + $0x1a4] sm:$0xf0]  ;;  %v8171_v62 = vld [vmem:[%s17988_s0 + $0x30c] sm:$0xf0] }
 0x242   :  { %3466 = vmatpush.bf16.msra.mxu1 %v8074_v57  ;;  %v8234_v53 = vor.u32 %v10447_v38, %v8231_v5  ;;  %v7874_v21 = vor.u32 %v10357_v11, %v7871_v52  ;;  %v8214_v46 = vor.u32 %v10442_v19, %v8211_v22  ;;  %v8374_v33 = vor.u32 %v10482_v23, %v8371_v24  ;;  %v10472_v63 = vld [vmem:[%s17988_s0 + $0x43c] sm:$0xf]  ;;  %v8331_v0 = vld [vmem:[%s17988_s0 + $0x44c] sm:$0xf0]  ;;  %v10382_v38 = vld [vmem:[%s17988_s0 + $0x16c] sm:$0xf] }
 0x243   :  { %3382 = vmatmul.bf16.vlgmr.msra.gmra.mxu2 %v13013_v39  ;;  %3395 = vmatmul.bf16.vlgmr.msra.gmra.mxu3 %v13015_v6  ;;  %v1274_v35 = vadd.f32 %v1266_v16, %v1258_v7  ;;  %v1275_v20 = vadd.f32 %v1267_v17, %v1259_v45  ;;  %v8014_v47 = vor.u32 %v10392_v32, %v8011_v44  ;;  %v7971_v5 = vld [vmem:[%s17988_s0 + $0x17c] sm:$0xf0]  ;;  %v10427_v9 = vld [vmem:[%s17988_s0 + $0x2d4] sm:$0xf]  ;;  %v8151_v45 = vld [vmem:[%s17988_s0 + $0x2e4] sm:$0xf0] }
 0x244   :  { %3478 = vmatpush.bf16.msra.mxu2 %v8254_v3  ;;  %3491 = vmatpush.bf16.msra.mxu3 %v8414_v4  ;;  %v13078_v49 = vpack.c.bf16 %v1288_v27, %v1288_v27  ;;  %v13080_v54 = vpack.c.bf16 %v1289_v30, %v1289_v30  ;;  %v8194_v57 = vor.u32 %v10437_v34, %v8191_v50  ;;  %v10342_v3 = vld [vmem:[%s17988_s0 + $0x2c] sm:$0xf]  ;;  %v7811_v4 = vld [vmem:[%s17988_s0 + $0x3c] sm:$0xf0]  ;;  %v8311_v52 = vld [vmem:[%s17988_s0 + $0x424] sm:$0xf0] }
 0x245   :  { %3454 = vmatpush.bf16.msra.mxu0 %v7894_v8  ;;  %v1282_v37 = vmul.f32 0.2, %v1274_v35  ;;  %v1283_v40 = vmul.f32 0.2, %v1275_v20  ;;  %v8354_v58 = vor.u32 %v10477_v36, %v8351_v51  ;;  %v7834_v1 = vor.u32 %v10347_v48, %v7831_v55  ;;  %v10337_v14 = vld [vmem:[%s17988_s0 + $0x4] sm:$0xf] }
 0x246   :  { %3467 = vmatpush.bf16.msra.mxu1 %v8054_v42  ;;  %v7994_v2 = vor.u32 %v10387_v43, %v7991_v56  ;;  %v8174_v7 = vor.u32 %v10432_v59, %v8171_v62  ;;  %v8334_v8 = vor.u32 %v10472_v63, %v8331_v0  ;;  %v10467_v42 = vld [vmem:[%s17988_s0 + $0x414] sm:$0xf]  ;;  %v7814_v12 = vor.u32 %v10342_v3, %v7811_v4  ;;  %v7791_v15 = vld [vmem:[%s17988_s0 + $0x14] sm:$0xf0]  ;;  %v10377_v16 = vld [vmem:[%s17988_s0 + $0x144] sm:$0xf] }
 0x247   :  { %v1290_v60 = vmax.f32 %v1274_v35, %v1282_v37  ;;  %v1291_v61 = vmax.f32 %v1275_v20, %v1283_v40  ;;  %v7974_v13 = vor.u32 %v10382_v38, %v7971_v5  ;;  %v7951_v17 = vld [vmem:[%s17988_s0 + $0x154] sm:$0xf0]  ;;  %v8154_v19 = vor.u32 %v10427_v9, %v8151_v45  ;;  %v10572_v20 = vld [vmem:[%s17988_s0 + $0x75c] sm:$0xf]  ;;  %v10422_v22 = vld [vmem:[%s17988_s0 + $0x2ac] sm:$0xf] }
 0x248   :  { %3479 = vmatpush.bf16.msra.mxu2 %v8234_v53  ;;  %3492 = vmatpush.bf16.msra.mxu3 %v8394_v18  ;;  %v10532_v53 = vld [vmem:[%s17988_s0 + $0x61c] sm:$0xf]  ;;  %v8571_v18 = vld [vmem:[%s17988_s0 + $0x62c] sm:$0xf0]  ;;  %v8314_v35 = vor.u32 %v10467_v42, %v8311_v52  ;;  %v8131_v23 = vld [vmem:[%s17988_s0 + $0x2bc] sm:$0xf0]  ;;  %v7794_v26 = vor.u32 %v10337_v14, %v7791_v15  ;;  %v7954_v27 = vor.u32 %v10377_v16, %v7951_v17 }
 0x249   :  { %3455 = vmatpush.bf16.msra.mxu0 %v7874_v21  ;;  %v13120_v10 = vpack.c.bf16 %v1290_v60, %v1290_v60  ;;  %v13122_v11 = vpack.c.bf16 %v1291_v61, %v1291_v61  ;;  %v8731_v21 = vld [vmem:[%s17988_s0 + $0x76c] sm:$0xf0]  ;;  %v10462_v24 = vld [vmem:[%s17988_s0 + $0x3ec] sm:$0xf]  ;;  %v8574_v30 = vor.u32 %v10532_v53, %v8571_v18  ;;  %v10527_v32 = vld [vmem:[%s17988_s0 + $0x5f4] sm:$0xf] }
 0x24a   :  { %3468 = vmatpush.bf16.msra.mxu1 %v8034_v25  ;;  %v8291_v25 = vld [vmem:[%s17988_s0 + $0x3fc] sm:$0xf0]  ;;  %v8734_v31 = vor.u32 %v10572_v20, %v8731_v21  ;;  %v8551_v44 = vld [vmem:[%s17988_s0 + $0x604] sm:$0xf0]  ;;  %v10417_v36 = vld [vmem:[%s17988_s0 + $0x284] sm:$0xf] }
 0x24b   :  { %v8294_v34 = vor.u32 %v10462_v24, %v8291_v25  ;;  %v8711_v50 = vld [vmem:[%s17988_s0 + $0x744] sm:$0xf0]  ;;  %v8111_v37 = vld [vmem:[%s17988_s0 + $0x294] sm:$0xf0]  ;;  %v10457_v40 = vld [vmem:[%s17988_s0 + $0x3c4] sm:$0xf]  ;;  %v8554_v43 = vor.u32 %v10527_v32, %v8551_v44 }
 0x24c   :  { %3480 = vmatpush.bf16.msra.mxu2 %v8214_v46  ;;  %3493 = vmatpush.bf16.msra.mxu3 %v8374_v33  ;;  %v10567_v46 = vld [vmem:[%s17988_s0 + $0x734] sm:$0xf]  ;;  %v8134_v33 = vor.u32 %v10422_v22, %v8131_v23  ;;  %v8271_v51 = vld [vmem:[%s17988_s0 + $0x3d4] sm:$0xf0]  ;;  %v10652_v48 = vld [vmem:[%s17988_s0 + $0x9dc] sm:$0xf] }
 0x24d   :  { %3408 = vmatmul.bf16.vlgmr.msrb.gmra.mxu0 %v13078_v49  ;;  %3421 = vmatmul.bf16.vlgmr.msrb.gmra.mxu1 %v13080_v54  ;;  %v9051_v55 = vld [vmem:[%s17988_s0 + $0x9ec] sm:$0xf0]  ;;  %v8714_v56 = vor.u32 %v10567_v46, %v8711_v50  ;;  %v8274_v59 = vor.u32 %v10457_v40, %v8271_v51  ;;  %v8531_v60 = vld [vmem:[%s17988_s0 + $0x5dc] sm:$0xf0]  ;;  %v10562_v61 = vld [vmem:[%s17988_s0 + $0x70c] sm:$0xf] }
 0x24e   :  { %3456 = vmatpush.bf16.msra.mxu0 %v7854_v41  ;;  %3469 = vmatpush.bf16.msra.mxu1 %v8014_v47  ;;  %v10612_v41 = vld [vmem:[%s17988_s0 + $0x89c] sm:$0xf]  ;;  %v8891_v47 = vld [vmem:[%s17988_s0 + $0x8ac] sm:$0xf0]  ;;  %v8691_v62 = vld [vmem:[%s17988_s0 + $0x71c] sm:$0xf0]  ;;  %v9054_v0 = vor.u32 %v10652_v48, %v9051_v55 }
 0x24f   :  { %v8894_v63 = vor.u32 %v10612_v41, %v8891_v47  ;;  %v10647_v3 = vld [vmem:[%s17988_s0 + $0x9b4] sm:$0xf]  ;;  %v9031_v4 = vld [vmem:[%s17988_s0 + $0x9c4] sm:$0xf0]  ;;  %v8694_v5 = vor.u32 %v10562_v61, %v8691_v62  ;;  %v10557_v9 = vld [vmem:[%s17988_s0 + $0x6e4] sm:$0xf] }
 0x250   :  { %3481 = vmatpush.bf16.msra.mxu2 %v8194_v57  ;;  %3494 = vmatpush.bf16.msra.mxu3 %v8354_v58  ;;  %v10522_v57 = vld [vmem:[%s17988_s0 + $0x5cc] sm:$0xf]  ;;  %v8114_v58 = vor.u32 %v10417_v36, %v8111_v37  ;;  %v8671_v45 = vld [vmem:[%s17988_s0 + $0x6f4] sm:$0xf0]  ;;  %v9034_v52 = vor.u32 %v10647_v3, %v9031_v4  ;;  %v9011_v15 = vld [vmem:[%s17988_s0 + $0x99c] sm:$0xf0] }
 0x251   :  { %v8534_v38 = vor.u32 %v10522_v57, %v8531_v60  ;;  %v10642_v14 = vld [vmem:[%s17988_s0 + $0x98c] sm:$0xf]  ;;  %v8674_v17 = vor.u32 %v10557_v9, %v8671_v45  ;;  %v10512_v53 = vld [vmem:[%s17988_s0 + $0x57c] sm:$0xf]  ;;  %v8491_v18 = vld [vmem:[%s17988_s0 + $0x58c] sm:$0xf0] }
 0x252   :  { %3457 = vmatpush.bf16.msra.mxu0 %v7834_v1  ;;  %3470 = vmatpush.bf16.msra.mxu1 %v7994_v2  ;;  %v10607_v1 = vld [vmem:[%s17988_s0 + $0x874] sm:$0xf]  ;;  %v8871_v2 = vld [vmem:[%s17988_s0 + $0x884] sm:$0xf0]  ;;  %v9014_v21 = vor.u32 %v10642_v14, %v9011_v15  ;;  %v10597_v22 = vld [vmem:[%s17988_s0 + $0x824] sm:$0xf] }
 0x253   :  { %3434 = vmatmul.bf16.vlgmr.msrb.gmra.mxu2 %v13120_v10  ;;  %3447 = vmatmul.bf16.vlgmr.msrb.gmra.mxu3 %v13122_v11  ;;  %v8874_v42 = vor.u32 %v10607_v1, %v8871_v2  ;;  %v8831_v23 = vld [vmem:[%s17988_s0 + $0x834] sm:$0xf0]  ;;  %v10637_v24 = vld [vmem:[%s17988_s0 + $0x964] sm:$0xf]  ;;  %v10547_v32 = vld [vmem:[%s17988_s0 + $0x694] sm:$0xf] }
 0x254   :  { %3482 = vmatpush.bf16.msra.mxu2 %v8174_v7  ;;  %3495 = vmatpush.bf16.msra.mxu3 %v8334_v8  ;;  %v10517_v7 = vld [vmem:[%s17988_s0 + $0x5a4] sm:$0xf]  ;;  %v8511_v8 = vld [vmem:[%s17988_s0 + $0x5b4] sm:$0xf0]  ;;  %v8631_v44 = vld [vmem:[%s17988_s0 + $0x6a4] sm:$0xf0]  ;;  %v8834_v46 = vor.u32 %v10597_v22, %v8831_v23 }
 0x255   :  { %v8514_v16 = vor.u32 %v10517_v7, %v8511_v8  ;;  %v8991_v25 = vld [vmem:[%s17988_s0 + $0x974] sm:$0xf0]  ;;  %v8811_v50 = vld [vmem:[%s17988_s0 + $0x80c] sm:$0xf0]  ;;  %v10632_v36 = vld [vmem:[%s17988_s0 + $0x93c] sm:$0xf]  ;;  %v8634_v51 = vor.u32 %v10547_v32, %v8631_v44 }
 0x256   :  { %3458 = vmatpush.bf16.msra.mxu0 %v7814_v12  ;;  %3471 = vmatpush.bf16.msra.mxu1 %v7974_v13  ;;  %v10602_v12 = vld [vmem:[%s17988_s0 + $0x84c] sm:$0xf]  ;;  %v8851_v13 = vld [vmem:[%s17988_s0 + $0x85c] sm:$0xf0]  ;;  %v8971_v37 = vld [vmem:[%s17988_s0 + $0x94c] sm:$0xf0] }
 0x257   :  { %v8854_v20 = vor.u32 %v10602_v12, %v8851_v13  ;;  %v10502_v41 = vld [vmem:[%s17988_s0 + $0x52c] sm:$0xf]  ;;  %v8451_v47 = vld [vmem:[%s17988_s0 + $0x53c] sm:$0xf0]  ;;  %v10587_v57 = vld [vmem:[%s17988_s0 + $0x7d4] sm:$0xf] }
 0x258   :  { %3483 = vmatpush.bf16.msra.mxu2 %v8154_v19  ;;  %3496 = vmatpush.bf16.msra.mxu3 %v8314_v35  ;;  %v10552_v19 = vld [vmem:[%s17988_s0 + $0x6bc] sm:$0xf]  ;;  %v8651_v35 = vld [vmem:[%s17988_s0 + $0x6cc] sm:$0xf0]  ;;  %v10542_v48 = vld [vmem:[%s17988_s0 + $0x66c] sm:$0xf]  ;;  %v8454_v61 = vor.u32 %v10502_v41, %v8451_v47 }
 0x259   :  { %v8611_v55 = vld [vmem:[%s17988_s0 + $0x67c] sm:$0xf0]  ;;  %v8951_v60 = vld [vmem:[%s17988_s0 + $0x924] sm:$0xf0]  ;;  %v10537_v1 = vld [vmem:[%s17988_s0 + $0x644] sm:$0xf] }
 0x25a   :  { %3459 = vmatpush.bf16.msra.mxu0 %v7794_v26  ;;  %3472 = vmatpush.bf16.msra.mxu1 %v7954_v27  ;;  %v8494_v26 = vor.u32 %v10512_v53, %v8491_v18  ;;  %v8654_v27 = vor.u32 %v10552_v19, %v8651_v35  ;;  %v8614_v62 = vor.u32 %v10542_v48, %v8611_v55  ;;  %v8591_v2 = vld [vmem:[%s17988_s0 + $0x654] sm:$0xf0]  ;;  %v7937_v3 = vld [vmem:[%s17988_s0 + $0x120] sm:$0xf]  ;;  %v10375_v4 = vld [vmem:[%s17988_s0 + $0x130] sm:$0xf0] }
 0x25b   :  { %v8097_v7 = vld [vmem:[%s17988_s0 + $0x260] sm:$0xf]  ;;  %v10415_v8 = vld [vmem:[%s17988_s0 + $0x270] sm:$0xf0]  ;;  %v10582_v9 = vld [vmem:[%s17988_s0 + $0x7ac] sm:$0xf]  ;;  %v8594_v13 = vor.u32 %v10537_v1, %v8591_v2  ;;  %v7938_v14 = vor.u32 %v10375_v4, %v7937_v3 }
 0x25c   :  { %3484 = vmatpush.bf16.msra.mxu2 %v8134_v33  ;;  %3497 = vmatpush.bf16.msra.mxu3 %v8294_v34  ;;  %v8994_v33 = vor.u32 %v10637_v24, %v8991_v25  ;;  %v10592_v34 = vld [vmem:[%s17988_s0 + $0x7fc] sm:$0xf]  ;;  %v8771_v45 = vld [vmem:[%s17988_s0 + $0x7bc] sm:$0xf0]  ;;  %v8098_v15 = vor.u32 %v10415_v8, %v8097_v7  ;;  %v8077_v53 = vld [vmem:[%s17988_s0 + $0x238] sm:$0xf] }
 0x25d   :  { %3460 = vmatmul.bf16.vlgmr.msra.gmra.mxu0 %v12963_v28  ;;  %3473 = vmatmul.bf16.vlgmr.msra.gmra.mxu1 %v12965_v29  ;;  %v8774_v18 = vor.u32 %v10582_v9, %v8771_v45  ;;  %v10410_v35 = vld [vmem:[%s17988_s0 + $0x248] sm:$0xf0]  ;;  %v10617_v22 = vld [vmem:[%s17988_s0 + $0x8c4] sm:$0xf]  ;;  %v8911_v23 = vld [vmem:[%s17988_s0 + $0x8d4] sm:$0xf0] }
 0x25e   :  { %3504 = vmatpush.bf16.msrb.mxu0 %v8574_v30  ;;  %3517 = vmatpush.bf16.msrb.mxu1 %v8734_v31  ;;  %v10507_v30 = vld [vmem:[%s17988_s0 + $0x554] sm:$0xf]  ;;  %v8471_v31 = vld [vmem:[%s17988_s0 + $0x564] sm:$0xf0]  ;;  %v8257_v24 = vld [vmem:[%s17988_s0 + $0x3a0] sm:$0xf]  ;;  %v8914_v44 = vor.u32 %v10617_v22, %v8911_v23 }
 0x25f   :  { %v8474_v40 = vor.u32 %v10507_v30, %v8471_v31  ;;  %v10455_v25 = vld [vmem:[%s17988_s0 + $0x3b0] sm:$0xf0]  ;;  %v8078_v31 = vor.u32 %v10410_v35, %v8077_v53  ;;  %v8397_v41 = vld [vmem:[%s17988_s0 + $0x4b8] sm:$0xf]  ;;  %v10490_v47 = vld [vmem:[%s17988_s0 + $0x4c8] sm:$0xf0] }
 0x260   :  { %3485 = vmatpush.bf16.msra.mxu2 %v8114_v58  ;;  %3498 = vmatpush.bf16.msra.mxu3 %v8274_v59  ;;  %v8791_v58 = vld [vmem:[%s17988_s0 + $0x7e4] sm:$0xf0]  ;;  %v10627_v59 = vld [vmem:[%s17988_s0 + $0x914] sm:$0xf]  ;;  %v7857_v3 = vld [vmem:[%s17988_s0 + $0x80] sm:$0xf] }
 0x261   :  { %v10355_v4 = vld [vmem:[%s17988_s0 + $0x90] sm:$0xf0]  ;;  %v8017_v7 = vld [vmem:[%s17988_s0 + $0x1c0] sm:$0xf]  ;;  %v8197_v9 = vld [vmem:[%s17988_s0 + $0x328] sm:$0xf] }
 0x262   :  { %3505 = vmatpush.bf16.msrb.mxu0 %v8554_v43  ;;  %3518 = vmatpush.bf16.msrb.mxu1 %v8714_v56  ;;  %v8814_v43 = vor.u32 %v10592_v34, %v8811_v50  ;;  %v8974_v56 = vor.u32 %v10632_v36, %v8971_v37  ;;  %v8258_v34 = vor.u32 %v10455_v25, %v8257_v24  ;;  %v8057_v36 = vld [vmem:[%s17988_s0 + $0x210] sm:$0xf]  ;;  %v10405_v37 = vld [vmem:[%s17988_s0 + $0x220] sm:$0xf0]  ;;  %v10395_v8 = vld [vmem:[%s17988_s0 + $0x1d0] sm:$0xf0] }
 0x263   :  { %3486 = vmatmul.bf16.vlgmr.msra.gmra.mxu2 %v13013_v39  ;;  %3499 = vmatmul.bf16.vlgmr.msra.gmra.mxu3 %v13015_v6  ;;  %v8058_v55 = vor.u32 %v10405_v37, %v8057_v36  ;;  %v10440_v45 = vld [vmem:[%s17988_s0 + $0x338] sm:$0xf0]  ;;  %v7997_v53 = vld [vmem:[%s17988_s0 + $0x198] sm:$0xf]  ;;  %v10435_v35 = vld [vmem:[%s17988_s0 + $0x310] sm:$0xf0] }
 0x264   :  { %3530 = vmatpush.bf16.msrb.mxu2 %v8894_v63  ;;  %3543 = vmatpush.bf16.msrb.mxu3 %v9054_v0  ;;  %v10497_v63 = vld [vmem:[%s17988_s0 + $0x504] sm:$0xf]  ;;  %v8431_v0 = vld [vmem:[%s17988_s0 + $0x514] sm:$0xf0]  ;;  %v7817_v24 = vld [vmem:[%s17988_s0 + $0x30] sm:$0xf] }
 0x265   :  { %v8434_v12 = vor.u32 %v10497_v63, %v8431_v0  ;;  %v8377_v63 = vld [vmem:[%s17988_s0 + $0x490] sm:$0xf]  ;;  %v10485_v0 = vld [vmem:[%s17988_s0 + $0x4a0] sm:$0xf0]  ;;  %v7797_v36 = vld [vmem:[%s17988_s0 + $0x8] sm:$0xf] }
 0x266   :  { %3506 = vmatpush.bf16.msrb.mxu0 %v8534_v38  ;;  %3519 = vmatpush.bf16.msrb.mxu1 %v8694_v5  ;;  %v8794_v38 = vor.u32 %v10587_v57, %v8791_v58  ;;  %v8954_v5 = vor.u32 %v10627_v59, %v8951_v60  ;;  %v8398_v58 = vor.u32 %v10490_v47, %v8397_v41  ;;  %v8037_v59 = vld [vmem:[%s17988_s0 + $0x1e8] sm:$0xf]  ;;  %v10400_v60 = vld [vmem:[%s17988_s0 + $0x1f8] sm:$0xf0]  ;;  %v10345_v25 = vld [vmem:[%s17988_s0 + $0x40] sm:$0xf0] }
 0x267   :  { %v8038_v2 = vor.u32 %v10400_v60, %v8037_v59  ;;  %v10340_v37 = vld [vmem:[%s17988_s0 + $0x18] sm:$0xf0]  ;;  %v8297_v59 = vld [vmem:[%s17988_s0 + $0x3f0] sm:$0xf]  ;;  %v10465_v60 = vld [vmem:[%s17988_s0 + $0x400] sm:$0xf0] }
 0x268   :  { %3531 = vmatpush.bf16.msrb.mxu2 %v8874_v42  ;;  %3544 = vmatpush.bf16.msrb.mxu3 %v9034_v52  ;;  %v10622_v42 = vld [vmem:[%s17988_s0 + $0x8ec] sm:$0xf]  ;;  %v8931_v52 = vld [vmem:[%s17988_s0 + $0x8fc] sm:$0xf0]  ;;  %v10380_v47 = vld [vmem:[%s17988_s0 + $0x158] sm:$0xf0] }
 0x269   :  { %v8934_v19 = vor.u32 %v10622_v42, %v8931_v52  ;;  %v8357_v42 = vld [vmem:[%s17988_s0 + $0x468] sm:$0xf]  ;;  %v10480_v52 = vld [vmem:[%s17988_s0 + $0x478] sm:$0xf0] }
 0x26a   :  { %3507 = vmatpush.bf16.msrb.mxu0 %v8514_v16  ;;  %3520 = vmatpush.bf16.msrb.mxu1 %v8674_v17  ;;  %v7917_v16 = vld [vmem:[%s17988_s0 + $0xf8] sm:$0xf]  ;;  %v10370_v17 = vld [vmem:[%s17988_s0 + $0x108] sm:$0xf0] }
 0x26b   :  { %v7918_v30 = vor.u32 %v10370_v17, %v7917_v16  ;;  %v8198_v16 = vor.u32 %v10440_v45, %v8197_v9  ;;  %v8358_v17 = vor.u32 %v10480_v52, %v8357_v42  ;;  %v8277_v9 = vld [vmem:[%s17988_s0 + $0x3c8] sm:$0xf]  ;;  %v10460_v45 = vld [vmem:[%s17988_s0 + $0x3d8] sm:$0xf0]  ;;  %v8897_v42 = vld [vmem:[%s17988_s0 + $0x8a0] sm:$0xf] }
 0x26c   :  { %3532 = vmatpush.bf16.msrb.mxu2 %v8854_v20  ;;  %3545 = vmatpush.bf16.msrb.mxu3 %v9014_v21  ;;  %v10577_v20 = vld [vmem:[%s17988_s0 + $0x784] sm:$0xf]  ;;  %v8751_v21 = vld [vmem:[%s17988_s0 + $0x794] sm:$0xf0]  ;;  %v10615_v52 = vld [vmem:[%s17988_s0 + $0x8b0] sm:$0xf0] }
 0x26d   :  { %v8754_v32 = vor.u32 %v10577_v20, %v8751_v21  ;;  %v8337_v20 = vld [vmem:[%s17988_s0 + $0x440] sm:$0xf]  ;;  %v10475_v21 = vld [vmem:[%s17988_s0 + $0x450] sm:$0xf0] }
 0x26e   :  { %3508 = vmatpush.bf16.msrb.mxu0 %v8494_v26  ;;  %3521 = vmatpush.bf16.msrb.mxu1 %v8654_v27  ;;  %v8417_v26 = vld [vmem:[%s17988_s0 + $0x4e0] sm:$0xf]  ;;  %v10495_v27 = vld [vmem:[%s17988_s0 + $0x4f0] sm:$0xf0] }
 0x26f   :  { %v8418_v50 = vor.u32 %v10495_v27, %v8417_v26  ;;  %v8338_v27 = vor.u32 %v10475_v21, %v8337_v20  ;;  %v8697_v20 = vld [vmem:[%s17988_s0 + $0x710] sm:$0xf]  ;;  %v10565_v21 = vld [vmem:[%s17988_s0 + $0x720] sm:$0xf0] }
 0x270   :  { %3533 = vmatpush.bf16.msrb.mxu2 %v8834_v46  ;;  %3546 = vmatpush.bf16.msrb.mxu3 %v8994_v33  ;;  %v7897_v46 = vld [vmem:[%s17988_s0 + $0xd0] sm:$0xf]  ;;  %v10365_v33 = vld [vmem:[%s17988_s0 + $0xe0] sm:$0xf0] }
 0x271   :  { %v7898_v48 = vor.u32 %v10365_v33, %v7897_v46  ;;  %v8317_v46 = vld [vmem:[%s17988_s0 + $0x418] sm:$0xf]  ;;  %v10470_v33 = vld [vmem:[%s17988_s0 + $0x428] sm:$0xf0] }
 0x272   :  { %3509 = vmatpush.bf16.msrb.mxu0 %v8474_v40  ;;  %3522 = vmatpush.bf16.msrb.mxu1 %v8634_v51  ;;  %v8237_v40 = vld [vmem:[%s17988_s0 + $0x378] sm:$0xf]  ;;  %v10450_v51 = vld [vmem:[%s17988_s0 + $0x388] sm:$0xf0]  ;;  %v8318_v41 = vor.u32 %v10470_v33, %v8317_v46  ;;  %v8677_v46 = vld [vmem:[%s17988_s0 + $0x6e8] sm:$0xf] }
 0x273   :  { %v8238_v57 = vor.u32 %v10450_v51, %v8237_v40  ;;  %v7957_v40 = vld [vmem:[%s17988_s0 + $0x148] sm:$0xf]  ;;  %v10560_v33 = vld [vmem:[%s17988_s0 + $0x6f8] sm:$0xf0] }
 0x274   :  { %3534 = vmatpush.bf16.msrb.mxu2 %v8814_v43  ;;  %3547 = vmatpush.bf16.msrb.mxu3 %v8974_v56  ;;  %v7877_v43 = vld [vmem:[%s17988_s0 + $0xa8] sm:$0xf]  ;;  %v10360_v56 = vld [vmem:[%s17988_s0 + $0xb8] sm:$0xf0] }
 0x275   :  { %v7878_v1 = vor.u32 %v10360_v56, %v7877_v43  ;;  %v8737_v43 = vld [vmem:[%s17988_s0 + $0x760] sm:$0xf]  ;;  %v10575_v56 = vld [vmem:[%s17988_s0 + $0x770] sm:$0xf0] }
 0x276   :  { %3510 = vmatpush.bf16.msrb.mxu0 %v8454_v61  ;;  %3523 = vmatpush.bf16.msrb.mxu1 %v8614_v62  ;;  %v8217_v61 = vld [vmem:[%s17988_s0 + $0x350] sm:$0xf]  ;;  %v10445_v62 = vld [vmem:[%s17988_s0 + $0x360] sm:$0xf0] }
 0x278   :  { %3535 = vmatpush.bf16.msrb.mxu2 %v8794_v38  ;;  %3548 = vmatpush.bf16.msrb.mxu3 %v8954_v5  ;;  %v8218_v38 = vor.u32 %v10445_v62, %v8217_v61  ;;  %v8378_v5 = vor.u32 %v10485_v0, %v8377_v63  ;;  %v7798_v61 = vor.u32 %v10340_v37, %v7797_v36  ;;  %v9017_v36 = vld [vmem:[%s17988_s0 + $0x990] sm:$0xf]  ;;  %v10645_v37 = vld [vmem:[%s17988_s0 + $0x9a0] sm:$0xf0] }
 0x279   :  { %v7958_v62 = vor.u32 %v10380_v47, %v7957_v40  ;;  %v8738_v0 = vor.u32 %v10575_v56, %v8737_v43  ;;  %v10515_v47 = vld [vmem:[%s17988_s0 + $0x590] sm:$0xf0]  ;;  %v8657_v43 = vld [vmem:[%s17988_s0 + $0x6c0] sm:$0xf] }
 0x27a   :  { %3511 = vmatpush.bf16.msrb.mxu0 %v8434_v12  ;;  %3524 = vmatpush.bf16.msrb.mxu1 %v8594_v13  ;;  %v7858_v12 = vor.u32 %v10355_v4, %v7857_v3  ;;  %v8018_v13 = vor.u32 %v10395_v8, %v8017_v7  ;;  %v8717_v3 = vld [vmem:[%s17988_s0 + $0x738] sm:$0xf]  ;;  %v8117_v7 = vld [vmem:[%s17988_s0 + $0x288] sm:$0xf]  ;;  %v10420_v8 = vld [vmem:[%s17988_s0 + $0x298] sm:$0xf0] }
 0x27b   :  { %v10555_v56 = vld [vmem:[%s17988_s0 + $0x6d0] sm:$0xf0] }
 0x27c   :  { %3536 = vmatpush.bf16.msrb.mxu2 %v8774_v18  ;;  %3549 = vmatpush.bf16.msrb.mxu3 %v8934_v19  ;;  %v10390_v18 = vld [vmem:[%s17988_s0 + $0x1a8] sm:$0xf0]  ;;  %v8177_v19 = vld [vmem:[%s17988_s0 + $0x300] sm:$0xf] }
 0x27d   :  { %3512 = vmatmul.bf16.vlgmr.msrb.gmra.mxu0 %v13078_v49  ;;  %3525 = vmatmul.bf16.vlgmr.msrb.gmra.mxu1 %v13080_v54  ;;  %v7998_v23 = vor.u32 %v10390_v18, %v7997_v53  ;;  %v8178_v26 = vor.u32 %v10435_v35, %v8177_v19  ;;  %v8537_v53 = vld [vmem:[%s17988_s0 + $0x5d0] sm:$0xf]  ;;  %v10525_v18 = vld [vmem:[%s17988_s0 + $0x5e0] sm:$0xf0]  ;;  %v8898_v19 = vor.u32 %v10615_v52, %v8897_v42 }
 0x27e   :  { %3556 = vmatpush.bf16.msra.mxu0 %v7938_v14  ;;  %3569 = vmatpush.bf16.msra.mxu1 %v8098_v15  ;;  %v7837_v14 = vld [vmem:[%s17988_s0 + $0x58] sm:$0xf]  ;;  %v10350_v15 = vld [vmem:[%s17988_s0 + $0x68] sm:$0xf0]  ;;  %v8457_v42 = vld [vmem:[%s17988_s0 + $0x530] sm:$0xf] }
 0x27f   :  { %v7838_v22 = vor.u32 %v10350_v15, %v7837_v14  ;;  %v10505_v52 = vld [vmem:[%s17988_s0 + $0x540] sm:$0xf0] }
 0x280   :  { %3537 = vmatpush.bf16.msrb.mxu2 %v8754_v32  ;;  %3550 = vmatpush.bf16.msrb.mxu3 %v8914_v44  ;;  %v8157_v32 = vld [vmem:[%s17988_s0 + $0x2d8] sm:$0xf]  ;;  %v10430_v44 = vld [vmem:[%s17988_s0 + $0x2e8] sm:$0xf0] }
 0x281   :  { %v8158_v51 = vor.u32 %v10430_v44, %v8157_v32 }
 0x282   :  { %3557 = vmatpush.bf16.msra.mxu0 %v7918_v30  ;;  %3570 = vmatpush.bf16.msra.mxu1 %v8078_v31  ;;  %v7977_v30 = vld [vmem:[%s17988_s0 + $0x170] sm:$0xf]  ;;  %v10385_v31 = vld [vmem:[%s17988_s0 + $0x180] sm:$0xf0] }
 0x283   :  { %3538 = vmatmul.bf16.vlgmr.msrb.gmra.mxu2 %v13120_v10  ;;  %3551 = vmatmul.bf16.vlgmr.msrb.gmra.mxu3 %v13122_v11 }
 0x284   :  { %3582 = vmatpush.bf16.msra.mxu2 %v8258_v34  ;;  %3595 = vmatpush.bf16.msra.mxu3 %v8418_v50  ;;  %v7818_v34 = vor.u32 %v10345_v25, %v7817_v24  ;;  %v7978_v50 = vor.u32 %v10385_v31, %v7977_v30  ;;  %v9037_v24 = vld [vmem:[%s17988_s0 + $0x9b8] sm:$0xf]  ;;  %v10650_v25 = vld [vmem:[%s17988_s0 + $0x9c8] sm:$0xf0]  ;;  %v8517_v30 = vld [vmem:[%s17988_s0 + $0x5a8] sm:$0xf] }
 0x285   :  { %v10520_v31 = vld [vmem:[%s17988_s0 + $0x5b8] sm:$0xf0]  ;;  %v9038_v44 = vor.u32 %v10650_v25, %v9037_v24 }
 0x286   :  { %3558 = vmatpush.bf16.msra.mxu0 %v7898_v48  ;;  %3571 = vmatpush.bf16.msra.mxu1 %v8058_v55  ;;  %v8577_v48 = vld [vmem:[%s17988_s0 + $0x620] sm:$0xf]  ;;  %v10535_v55 = vld [vmem:[%s17988_s0 + $0x630] sm:$0xf0]  ;;  %v8518_v40 = vor.u32 %v10520_v31, %v8517_v30  ;;  %v10540_v25 = vld [vmem:[%s17988_s0 + $0x658] sm:$0xf0] }
 0x287   :  { %v8578_v63 = vor.u32 %v10535_v55, %v8577_v48  ;;  %v9018_v55 = vor.u32 %v10645_v37, %v9017_v36  ;;  %v10413_v30 = vld [vmem:[%s17988_s0 + $0x264] sm:$0xf]  ;;  %v8099_v31 = vld [vmem:[%s17988_s0 + $0x274] sm:$0xf0] }
 0x288   :  { %3583 = vmatpush.bf16.msra.mxu2 %v8238_v57  ;;  %3596 = vmatpush.bf16.msra.mxu3 %v8398_v58  ;;  %v8137_v57 = vld [vmem:[%s17988_s0 + $0x2b0] sm:$0xf]  ;;  %v10425_v58 = vld [vmem:[%s17988_s0 + $0x2c0] sm:$0xf0]  ;;  %v8102_v37 = vor.u32 %v10413_v30, %v8099_v31 }
 0x289   :  { %v8138_v4 = vor.u32 %v10425_v58, %v8137_v57  ;;  %v8837_v57 = vld [vmem:[%s17988_s0 + $0x828] sm:$0xf]  ;;  %v10600_v58 = vld [vmem:[%s17988_s0 + $0x838] sm:$0xf0] }
 0x28a   :  { %3559 = vmatpush.bf16.msra.mxu0 %v7878_v1  ;;  %3572 = vmatpush.bf16.msra.mxu1 %v8038_v2  ;;  %v8557_v1 = vld [vmem:[%s17988_s0 + $0x5f8] sm:$0xf]  ;;  %v10530_v2 = vld [vmem:[%s17988_s0 + $0x608] sm:$0xf0] }
 0x28b   :  { %v8558_v14 = vor.u32 %v10530_v2, %v8557_v1  ;;  %v8838_v1 = vor.u32 %v10600_v58, %v8837_v57  ;;  %v8917_v57 = vld [vmem:[%s17988_s0 + $0x8c8] sm:$0xf]  ;;  %v10620_v58 = vld [vmem:[%s17988_s0 + $0x8d8] sm:$0xf0] }
 0x28c   :  { %3584 = vmatpush.bf16.msra.mxu2 %v8218_v38  ;;  %3597 = vmatpush.bf16.msra.mxu3 %v8378_v5  ;;  %v8298_v38 = vor.u32 %v10465_v60, %v8297_v59  ;;  %v10570_v5 = vld [vmem:[%s17988_s0 + $0x748] sm:$0xf0]  ;;  %v8997_v59 = vld [vmem:[%s17988_s0 + $0x968] sm:$0xf]  ;;  %v10640_v60 = vld [vmem:[%s17988_s0 + $0x978] sm:$0xf0] }
 0x28d   :  { %v8718_v15 = vor.u32 %v10570_v5, %v8717_v3  ;;  %v8998_v2 = vor.u32 %v10640_v60, %v8997_v59  ;;  %v8637_v3 = vld [vmem:[%s17988_s0 + $0x698] sm:$0xf]  ;;  %v10595_v5 = vld [vmem:[%s17988_s0 + $0x810] sm:$0xf0]  ;;  %v10453_v59 = vld [vmem:[%s17988_s0 + $0x3a4] sm:$0xf] }
 0x28e   :  { %3560 = vmatpush.bf16.msra.mxu0 %v7858_v12  ;;  %3573 = vmatpush.bf16.msra.mxu1 %v8018_v13  ;;  %v9057_v12 = vld [vmem:[%s17988_s0 + $0x9e0] sm:$0xf]  ;;  %v10655_v13 = vld [vmem:[%s17988_s0 + $0x9f0] sm:$0xf0]  ;;  %v8259_v60 = vld [vmem:[%s17988_s0 + $0x3b4] sm:$0xf0] }
 0x28f   :  { %v9058_v35 = vor.u32 %v10655_v13, %v9057_v12 }
 0x290   :  { %3585 = vmatpush.bf16.msra.mxu2 %v8198_v16  ;;  %3598 = vmatpush.bf16.msra.mxu3 %v8358_v17  ;;  %v8118_v16 = vor.u32 %v10420_v8, %v8117_v7  ;;  %v8278_v17 = vor.u32 %v10460_v45, %v8277_v9  ;;  %v8977_v7 = vld [vmem:[%s17988_s0 + $0x940] sm:$0xf]  ;;  %v10635_v8 = vld [vmem:[%s17988_s0 + $0x950] sm:$0xf0] }
 0x291   :  { %v8978_v13 = vor.u32 %v10635_v8, %v8977_v7  ;;  %v10403_v7 = vld [vmem:[%s17988_s0 + $0x214] sm:$0xf]  ;;  %v8059_v8 = vld [vmem:[%s17988_s0 + $0x224] sm:$0xf0] }
 0x292   :  { %3561 = vmatpush.bf16.msra.mxu0 %v7838_v22  ;;  %3574 = vmatpush.bf16.msra.mxu1 %v7998_v23  ;;  %v8877_v22 = vld [vmem:[%s17988_s0 + $0x878] sm:$0xf]  ;;  %v10610_v23 = vld [vmem:[%s17988_s0 + $0x888] sm:$0xf0] }
 0x293   :  { %v8878_v32 = vor.u32 %v10610_v23, %v8877_v22  ;;  %v8597_v22 = vld [vmem:[%s17988_s0 + $0x648] sm:$0xf] }
 0x294   :  { %3586 = vmatpush.bf16.msra.mxu2 %v8178_v26  ;;  %3599 = vmatpush.bf16.msra.mxu3 %v8338_v27  ;;  %v8538_v26 = vor.u32 %v10525_v18, %v8537_v53  ;;  %v8698_v27 = vor.u32 %v10565_v21, %v8697_v20  ;;  %v8957_v53 = vld [vmem:[%s17988_s0 + $0x918] sm:$0xf]  ;;  %v10630_v18 = vld [vmem:[%s17988_s0 + $0x928] sm:$0xf0]  ;;  %v8437_v20 = vld [vmem:[%s17988_s0 + $0x508] sm:$0xf] }
 0x295   :  { %v10500_v21 = vld [vmem:[%s17988_s0 + $0x518] sm:$0xf0]  ;;  %v8958_v24 = vor.u32 %v10630_v18, %v8957_v53 }
 0x296   :  { %3562 = vmatpush.bf16.msra.mxu0 %v7818_v34  ;;  %3575 = vmatpush.bf16.msra.mxu1 %v7978_v50  ;;  %v8857_v34 = vld [vmem:[%s17988_s0 + $0x850] sm:$0xf]  ;;  %v10605_v50 = vld [vmem:[%s17988_s0 + $0x860] sm:$0xf0] }
 0x297   :  { %v8858_v48 = vor.u32 %v10605_v50, %v8857_v34  ;;  %v8438_v34 = vor.u32 %v10500_v21, %v8437_v20  ;;  %v8598_v50 = vor.u32 %v10540_v25, %v8597_v22  ;;  %v10443_v20 = vld [vmem:[%s17988_s0 + $0x354] sm:$0xf]  ;;  %v8219_v21 = vld [vmem:[%s17988_s0 + $0x364] sm:$0xf0] }
 0x298   :  { %3587 = vmatpush.bf16.msra.mxu2 %v8158_v51  ;;  %3600 = vmatpush.bf16.msra.mxu3 %v8318_v41  ;;  %v8678_v51 = vor.u32 %v10560_v33, %v8677_v46  ;;  %v8497_v41 = vld [vmem:[%s17988_s0 + $0x580] sm:$0xf]  ;;  %v8937_v46 = vld [vmem:[%s17988_s0 + $0x8f0] sm:$0xf]  ;;  %v10625_v33 = vld [vmem:[%s17988_s0 + $0x900] sm:$0xf0]  ;;  %v8222_v30 = vor.u32 %v10443_v20, %v8219_v21 }
 0x299   :  { %v10483_v22 = vld [vmem:[%s17988_s0 + $0x494] sm:$0xf]  ;;  %v7959_v20 = vld [vmem:[%s17988_s0 + $0x15c] sm:$0xf0]  ;;  %v10533_v21 = vld [vmem:[%s17988_s0 + $0x624] sm:$0xf] }
 0x29a   :  { %3563 = vmatpush.bf16.msra.mxu0 %v7798_v61  ;;  %3576 = vmatpush.bf16.msra.mxu1 %v7958_v62  ;;  %v8498_v61 = vor.u32 %v10515_v47, %v8497_v41  ;;  %v8658_v62 = vor.u32 %v10555_v56, %v8657_v43  ;;  %v10408_v41 = vld [vmem:[%s17988_s0 + $0x23c] sm:$0xf]  ;;  %v8757_v43 = vld [vmem:[%s17988_s0 + $0x788] sm:$0xf] }
 0x29b   :  { %v10580_v56 = vld [vmem:[%s17988_s0 + $0x798] sm:$0xf0] }
 0x29c   :  { %3588 = vmatpush.bf16.msra.mxu2 %v8138_v4  ;;  %3601 = vmatpush.bf16.msra.mxu3 %v8298_v38  ;;  %v10550_v4 = vld [vmem:[%s17988_s0 + $0x6a8] sm:$0xf0]  ;;  %v8817_v38 = vld [vmem:[%s17988_s0 + $0x800] sm:$0xf] }
 0x29d   :  { %3564 = vmatmul.bf16.vlgmr.msra.gmra.mxu0 %v12963_v28  ;;  %3577 = vmatmul.bf16.vlgmr.msra.gmra.mxu1 %v12965_v29  ;;  %v8638_v45 = vor.u32 %v10550_v4, %v8637_v3  ;;  %v8818_v12 = vor.u32 %v10595_v5, %v8817_v38  ;;  %v10363_v3 = vld [vmem:[%s17988_s0 + $0xd4] sm:$0xf]  ;;  %v7899_v4 = vld [vmem:[%s17988_s0 + $0xe4] sm:$0xf0]  ;;  %v8262_v38 = vor.u32 %v10453_v59, %v8259_v60  ;;  %v10473_v59 = vld [vmem:[%s17988_s0 + $0x444] sm:$0xf] }
 0x29e   :  { %3608 = vmatpush.bf16.msrb.mxu0 %v8578_v63  ;;  %3621 = vmatpush.bf16.msrb.mxu1 %v8738_v0  ;;  %v8477_v63 = vld [vmem:[%s17988_s0 + $0x558] sm:$0xf]  ;;  %v10510_v0 = vld [vmem:[%s17988_s0 + $0x568] sm:$0xf0] }
 0x29f   :  { %v8478_v9 = vor.u32 %v10510_v0, %v8477_v63  ;;  %v8339_v60 = vld [vmem:[%s17988_s0 + $0x454] sm:$0xf0] }
 0x2a0   :  { %3589 = vmatpush.bf16.msra.mxu2 %v8118_v16  ;;  %3602 = vmatpush.bf16.msra.mxu3 %v8278_v17  ;;  %v8797_v16 = vld [vmem:[%s17988_s0 + $0x7d8] sm:$0xf]  ;;  %v10590_v17 = vld [vmem:[%s17988_s0 + $0x7e8] sm:$0xf0] }
 0x2a1   :  { %v8798_v23 = vor.u32 %v10590_v17, %v8797_v16  ;;  %v10358_v16 = vld [vmem:[%s17988_s0 + $0xac] sm:$0xf]  ;;  %v7879_v17 = vld [vmem:[%s17988_s0 + $0xbc] sm:$0xf0] }
 0x2a2   :  { %3609 = vmatpush.bf16.msrb.mxu0 %v8558_v14  ;;  %3622 = vmatpush.bf16.msrb.mxu1 %v8718_v15  ;;  %v8617_v14 = vld [vmem:[%s17988_s0 + $0x670] sm:$0xf]  ;;  %v10545_v15 = vld [vmem:[%s17988_s0 + $0x680] sm:$0xf0] }
 0x2a3   :  { %3590 = vmatmul.bf16.vlgmr.msra.gmra.mxu2 %v13013_v39  ;;  %3603 = vmatmul.bf16.vlgmr.msra.gmra.mxu3 %v13015_v6 }
 0x2a4   :  { %3634 = vmatpush.bf16.msrb.mxu2 %v8898_v19  ;;  %3647 = vmatpush.bf16.msrb.mxu3 %v9058_v35  ;;  %v8458_v19 = vor.u32 %v10505_v52, %v8457_v42  ;;  %v8618_v35 = vor.u32 %v10545_v15, %v8617_v14  ;;  %v10488_v42 = vld [vmem:[%s17988_s0 + $0x4bc] sm:$0xf]  ;;  %v8399_v52 = vld [vmem:[%s17988_s0 + $0x4cc] sm:$0xf0] }
 0x2a5   :  { %v8402_v18 = vor.u32 %v10488_v42, %v8399_v52  ;;  %v10468_v42 = vld [vmem:[%s17988_s0 + $0x41c] sm:$0xf]  ;;  %v8319_v52 = vld [vmem:[%s17988_s0 + $0x42c] sm:$0xf0] }
 0x2a6   :  { %3610 = vmatpush.bf16.msrb.mxu0 %v8538_v26  ;;  %3623 = vmatpush.bf16.msrb.mxu1 %v8698_v27  ;;  %v10373_v26 = vld [vmem:[%s17988_s0 + $0x124] sm:$0xf]  ;;  %v7939_v27 = vld [vmem:[%s17988_s0 + $0x134] sm:$0xf0] }
 0x2a7   :  { %v7942_v36 = vor.u32 %v10373_v26, %v7939_v27  ;;  %v10353_v26 = vld [vmem:[%s17988_s0 + $0x84] sm:$0xf]  ;;  %v7859_v27 = vld [vmem:[%s17988_s0 + $0x94] sm:$0xf0] }
 0x2a8   :  { %3635 = vmatpush.bf16.msrb.mxu2 %v8878_v32  ;;  %3648 = vmatpush.bf16.msrb.mxu3 %v9038_v44  ;;  %v8777_v32 = vld [vmem:[%s17988_s0 + $0x7b0] sm:$0xf]  ;;  %v10585_v44 = vld [vmem:[%s17988_s0 + $0x7c0] sm:$0xf0] }
 0x2a9   :  { %v8778_v47 = vor.u32 %v10585_v44, %v8777_v32  ;;  %v10393_v32 = vld [vmem:[%s17988_s0 + $0x1c4] sm:$0xf]  ;;  %v8019_v44 = vld [vmem:[%s17988_s0 + $0x1d4] sm:$0xf0] }
 0x2aa   :  { %3611 = vmatpush.bf16.msrb.mxu0 %v8518_v40  ;;  %3624 = vmatpush.bf16.msrb.mxu1 %v8678_v51  ;;  %v10368_v40 = vld [vmem:[%s17988_s0 + $0xfc] sm:$0xf]  ;;  %v7919_v51 = vld [vmem:[%s17988_s0 + $0x10c] sm:$0xf0] }
 0x2ab   :  { %v7922_v63 = vor.u32 %v10368_v40, %v7919_v51 }
 0x2ac   :  { %3636 = vmatpush.bf16.msrb.mxu2 %v8858_v48  ;;  %3649 = vmatpush.bf16.msrb.mxu3 %v9018_v55  ;;  %v8938_v48 = vor.u32 %v10625_v33, %v8937_v46  ;;  %v8079_v55 = vld [vmem:[%s17988_s0 + $0x24c] sm:$0xf0]  ;;  %v10438_v46 = vld [vmem:[%s17988_s0 + $0x32c] sm:$0xf]  ;;  %v8199_v33 = vld [vmem:[%s17988_s0 + $0x33c] sm:$0xf0] }
 0x2ad   :  { %v8082_v0 = vor.u32 %v10408_v41, %v8079_v55  ;;  %v10348_v41 = vld [vmem:[%s17988_s0 + $0x5c] sm:$0xf] }
 0x2ae   :  { %3612 = vmatpush.bf16.msrb.mxu0 %v8498_v61  ;;  %3625 = vmatpush.bf16.msrb.mxu1 %v8658_v62  ;;  %v10493_v61 = vld [vmem:[%s17988_s0 + $0x4e4] sm:$0xf]  ;;  %v8419_v62 = vld [vmem:[%s17988_s0 + $0x4f4] sm:$0xf0] }
 0x2af   :  { %v8422_v5 = vor.u32 %v10493_v61, %v8419_v62 }
 0x2b0   :  { %3637 = vmatpush.bf16.msrb.mxu2 %v8838_v1  ;;  %3650 = vmatpush.bf16.msrb.mxu3 %v8998_v2  ;;  %v8758_v1 = vor.u32 %v10580_v56, %v8757_v43  ;;  %v8918_v2 = vor.u32 %v10620_v58, %v8917_v57  ;;  %v10388_v43 = vld [vmem:[%s17988_s0 + $0x19c] sm:$0xf]  ;;  %v7999_v56 = vld [vmem:[%s17988_s0 + $0x1ac] sm:$0xf0]  ;;  %v10433_v57 = vld [vmem:[%s17988_s0 + $0x304] sm:$0xf] }
 0x2b1   :  { %v8179_v58 = vld [vmem:[%s17988_s0 + $0x314] sm:$0xf0] }
 0x2b2   :  { %3613 = vmatpush.bf16.msrb.mxu0 %v8478_v9  ;;  %3626 = vmatpush.bf16.msrb.mxu1 %v8638_v45  ;;  %v10448_v9 = vld [vmem:[%s17988_s0 + $0x37c] sm:$0xf]  ;;  %v8239_v45 = vld [vmem:[%s17988_s0 + $0x38c] sm:$0xf0] }
 0x2b3   :  { %v8242_v53 = vor.u32 %v10448_v9, %v8239_v45  ;;  %v8159_v45 = vld [vmem:[%s17988_s0 + $0x2ec] sm:$0xf0] }
 0x2b4   :  { %3638 = vmatpush.bf16.msrb.mxu2 %v8818_v12  ;;  %3651 = vmatpush.bf16.msrb.mxu3 %v8978_v13  ;;  %v7902_v12 = vor.u32 %v10363_v3, %v7899_v4  ;;  %v8062_v13 = vor.u32 %v10403_v7, %v8059_v8  ;;  %v8182_v4 = vor.u32 %v10433_v57, %v8179_v58  ;;  %v7979_v7 = vld [vmem:[%s17988_s0 + $0x184] sm:$0xf0]  ;;  %v10428_v8 = vld [vmem:[%s17988_s0 + $0x2dc] sm:$0xf]  ;;  %v8279_v57 = vld [vmem:[%s17988_s0 + $0x3dc] sm:$0xf0] }
 0x2b5   :  { %v10613_v58 = vld [vmem:[%s17988_s0 + $0x8a4] sm:$0xf] }
 0x2b6   :  { %3614 = vmatpush.bf16.msrb.mxu0 %v8458_v19  ;;  %3627 = vmatpush.bf16.msrb.mxu1 %v8618_v35  ;;  %v10398_v19 = vld [vmem:[%s17988_s0 + $0x1ec] sm:$0xf]  ;;  %v8039_v35 = vld [vmem:[%s17988_s0 + $0x1fc] sm:$0xf0] }
 0x2b7   :  { %v8042_v25 = vor.u32 %v10398_v19, %v8039_v35  ;;  %v8162_v19 = vor.u32 %v10428_v8, %v8159_v45  ;;  %v8322_v35 = vor.u32 %v10468_v42, %v8319_v52  ;;  %v10563_v8 = vld [vmem:[%s17988_s0 + $0x714] sm:$0xf]  ;;  %v10608_v45 = vld [vmem:[%s17988_s0 + $0x87c] sm:$0xf]  ;;  %v8879_v42 = vld [vmem:[%s17988_s0 + $0x88c] sm:$0xf0] }
 0x2b8   :  { %3639 = vmatpush.bf16.msrb.mxu2 %v8798_v23  ;;  %3652 = vmatpush.bf16.msrb.mxu3 %v8958_v24  ;;  %v8379_v23 = vld [vmem:[%s17988_s0 + $0x4a4] sm:$0xf0]  ;;  %v7882_v24 = vor.u32 %v10358_v16, %v7879_v17  ;;  %v7799_v16 = vld [vmem:[%s17988_s0 + $0x1c] sm:$0xf0]  ;;  %v10378_v17 = vld [vmem:[%s17988_s0 + $0x14c] sm:$0xf] }
 0x2b9   :  { %v3357_v14 = vpop.f32.mrf.mxu0  ;;  %v3370_v15 = vpop.f32.mrf.mxu1  ;;  %v8382_v31 = vor.u32 %v10483_v22, %v8379_v23  ;;  %v8579_v22 = vld [vmem:[%s17988_s0 + $0x634] sm:$0xf0]  ;;  %v10648_v52 = vld [vmem:[%s17988_s0 + $0x9bc] sm:$0xf] }
 0x2ba   :  { %3615 = vmatpush.bf16.msrb.mxu0 %v8438_v34  ;;  %3628 = vmatpush.bf16.msrb.mxu1 %v8598_v50  ;;  %v10478_v34 = vld [vmem:[%s17988_s0 + $0x46c] sm:$0xf]  ;;  %v8359_v50 = vld [vmem:[%s17988_s0 + $0x47c] sm:$0xf0]  ;;  %v3371_v61 = vadd.f32 %v3370_v15, %v3357_v14 }
 0x2bb   :  { %v8362_v55 = vor.u32 %v10478_v34, %v8359_v50  ;;  %v10338_v15 = vld [vmem:[%s17988_s0 + $0xc] sm:$0xf]  ;;  %v8582_v50 = vor.u32 %v10533_v21, %v8579_v22  ;;  %v8679_v21 = vld [vmem:[%s17988_s0 + $0x6fc] sm:$0xf0]  ;;  %v10603_v22 = vld [vmem:[%s17988_s0 + $0x854] sm:$0xf] }
 0x2bc   :  { %3640 = vmatpush.bf16.msrb.mxu2 %v8778_v47  ;;  %3653 = vmatpush.bf16.msrb.mxu3 %v8938_v48  ;;  %v7839_v47 = vld [vmem:[%s17988_s0 + $0x6c] sm:$0xf0]  ;;  %v8202_v48 = vor.u32 %v10438_v46, %v8199_v33  ;;  %v7962_v46 = vor.u32 %v10378_v17, %v7959_v20  ;;  %v10558_v20 = vld [vmem:[%s17988_s0 + $0x6ec] sm:$0xf] }
 0x2bd   :  { %3616 = vmatmul.bf16.vlgmr.msrb.gmra.mxu0 %v13078_v49  ;;  %3629 = vmatmul.bf16.vlgmr.msrb.gmra.mxu1 %v13080_v54  ;;  %v7842_v62 = vor.u32 %v10348_v41, %v7839_v47 }
 0x2be   :  { %3660 = vmatpush.bf16.msra.mxu0 %v7942_v36  ;;  %3673 = vmatpush.bf16.msra.mxu1 %v8102_v37  ;;  %v7862_v36 = vor.u32 %v10353_v26, %v7859_v27  ;;  %v8022_v37 = vor.u32 %v10393_v32, %v8019_v44  ;;  %v10423_v26 = vld [vmem:[%s17988_s0 + $0x2b4] sm:$0xf]  ;;  %v8139_v27 = vld [vmem:[%s17988_s0 + $0x2c4] sm:$0xf0]  ;;  %v7802_v44 = vor.u32 %v10338_v15, %v7799_v16 }
 0x2bf   :  { %v8142_v41 = vor.u32 %v10423_v26, %v8139_v27  ;;  %v9019_v26 = vld [vmem:[%s17988_s0 + $0x9a4] sm:$0xf0] }
 0x2c0   :  { %3641 = vmatpush.bf16.msrb.mxu2 %v8758_v1  ;;  %3654 = vmatpush.bf16.msrb.mxu3 %v8918_v2  ;;  %v7819_v1 = vld [vmem:[%s17988_s0 + $0x44] sm:$0xf0] }
 0x2c1   :  { %v3359_v40 = vpop.f32.mrf.mxu0  ;;  %v3372_v51 = vpop.f32.mrf.mxu1 }
 0x2c2   :  { %3661 = vmatpush.bf16.msra.mxu0 %v7922_v63  ;;  %3674 = vmatpush.bf16.msra.mxu1 %v8082_v0  ;;  %v8002_v63 = vor.u32 %v10388_v43, %v7999_v56  ;;  %v10343_v0 = vld [vmem:[%s17988_s0 + $0x34] sm:$0xf]  ;;  %v8559_v40 = vld [vmem:[%s17988_s0 + $0x60c] sm:$0xf0]  ;;  %v10568_v51 = vld [vmem:[%s17988_s0 + $0x73c] sm:$0xf] }
 0x2c3   :  { %3642 = vmatmul.bf16.vlgmr.msrb.gmra.mxu2 %v13120_v10  ;;  %3655 = vmatmul.bf16.vlgmr.msrb.gmra.mxu3 %v13122_v11  ;;  %v8119_v43 = vld [vmem:[%s17988_s0 + $0x29c] sm:$0xf0]  ;;  %v10458_v56 = vld [vmem:[%s17988_s0 + $0x3cc] sm:$0xf] }
 0x2c4   :  { %3686 = vmatpush.bf16.msra.mxu2 %v8262_v38  ;;  %3699 = vmatpush.bf16.msra.mxu3 %v8422_v5  ;;  %v8342_v38 = vor.u32 %v10473_v59, %v8339_v60  ;;  %v10383_v5 = vld [vmem:[%s17988_s0 + $0x174] sm:$0xf]  ;;  %v8899_v59 = vld [vmem:[%s17988_s0 + $0x8b4] sm:$0xf0]  ;;  %v10653_v60 = vld [vmem:[%s17988_s0 + $0x9e4] sm:$0xf] }
 0x2c5   :  { %v7982_v14 = vor.u32 %v10383_v5, %v7979_v7  ;;  %v8902_v5 = vor.u32 %v10613_v58, %v8899_v59 }
 0x2c6   :  { %3662 = vmatpush.bf16.msra.mxu0 %v7902_v12  ;;  %3675 = vmatpush.bf16.msra.mxu1 %v8062_v13  ;;  %v3383_v2 = vpop.f32.mrf.mxu2  ;;  %v3396_v3 = vpop.f32.mrf.mxu3  ;;  %v7822_v13 = vor.u32 %v10343_v0, %v7819_v1 }
 0x2c7   :  { %v3384_v9 = vadd.f32 %v3383_v2, %v3371_v61  ;;  %v9059_v61 = vld [vmem:[%s17988_s0 + $0x9f4] sm:$0xf0] }
 0x2c8   :  { %3687 = vmatpush.bf16.msra.mxu2 %v8242_v53  ;;  %3700 = vmatpush.bf16.msra.mxu3 %v8402_v18  ;;  %v9062_v7 = vor.u32 %v10653_v60, %v9059_v61  ;;  %v10548_v60 = vld [vmem:[%s17988_s0 + $0x69c] sm:$0xf]  ;;  %v8639_v61 = vld [vmem:[%s17988_s0 + $0x6ac] sm:$0xf0] }
 0x2c9   :  { %v3397_v12 = vadd.f32 %v3396_v3, %v3384_v9  ;;  %v8282_v3 = vor.u32 %v10458_v56, %v8279_v57  ;;  %v8699_v9 = vld [vmem:[%s17988_s0 + $0x724] sm:$0xf0]  ;;  %v10508_v56 = vld [vmem:[%s17988_s0 + $0x55c] sm:$0xf]  ;;  %v8479_v57 = vld [vmem:[%s17988_s0 + $0x56c] sm:$0xf0] }
 0x2ca   :  { %3663 = vmatpush.bf16.msra.mxu0 %v7882_v24  ;;  %3676 = vmatpush.bf16.msra.mxu1 %v8042_v25  ;;  %v3409_v53 = vpop.f32.mrf.mxu0  ;;  %v3422_v18 = vpop.f32.mrf.mxu1  ;;  %v10573_v24 = vld [vmem:[%s17988_s0 + $0x764] sm:$0xf]  ;;  %v8739_v25 = vld [vmem:[%s17988_s0 + $0x774] sm:$0xf0]  ;;  %v8702_v17 = vor.u32 %v10563_v8, %v8699_v9 }
 0x2cb   :  { %v3410_v23 = vadd.f32 %v3409_v53, %v3397_v12  ;;  %v9039_v12 = vld [vmem:[%s17988_s0 + $0x9cc] sm:$0xf0]  ;;  %v10518_v53 = vld [vmem:[%s17988_s0 + $0x5ac] sm:$0xf] }
 0x2cc   :  { %3688 = vmatpush.bf16.msra.mxu2 %v8222_v30  ;;  %3701 = vmatpush.bf16.msra.mxu3 %v8382_v31  ;;  %v10463_v30 = vld [vmem:[%s17988_s0 + $0x3f4] sm:$0xf]  ;;  %v8299_v31 = vld [vmem:[%s17988_s0 + $0x404] sm:$0xf0] }
 0x2cd   :  { %v3423_v32 = vadd.f32 %v3422_v18, %v3410_v23  ;;  %v8302_v47 = vor.u32 %v10463_v30, %v8299_v31  ;;  %v8519_v18 = vld [vmem:[%s17988_s0 + $0x5bc] sm:$0xf0] }
 0x2ce   :  { %3664 = vmatpush.bf16.msra.mxu0 %v7862_v36  ;;  %3677 = vmatpush.bf16.msra.mxu1 %v8022_v37  ;;  %v3385_v33 = vpop.f32.mrf.mxu2  ;;  %v3398_v34 = vpop.f32.mrf.mxu3  ;;  %v8742_v36 = vor.u32 %v10573_v24, %v8739_v25  ;;  %v10528_v37 = vld [vmem:[%s17988_s0 + $0x5fc] sm:$0xf]  ;;  %v8859_v24 = vld [vmem:[%s17988_s0 + $0x864] sm:$0xf0]  ;;  %v10643_v25 = vld [vmem:[%s17988_s0 + $0x994] sm:$0xf]  ;;  %v8522_v31 = vor.u32 %v10518_v53, %v8519_v18 }
 0x2cf   :  { %v8562_v0 = vor.u32 %v10528_v37, %v8559_v40  ;;  %v8862_v33 = vor.u32 %v10603_v22, %v8859_v24  ;;  %v9022_v34 = vor.u32 %v10643_v25, %v9019_v26  ;;  %v10598_v37 = vld [vmem:[%s17988_s0 + $0x82c] sm:$0xf]  ;;  %v8839_v40 = vld [vmem:[%s17988_s0 + $0x83c] sm:$0xf0]  ;;  %v7945_v26 = vld [vmem:[%s17988_s0 + $0x128] sm:$0xf] }
 0x2d0   :  { %3689 = vmatpush.bf16.msra.mxu2 %v8202_v48  ;;  %3702 = vmatpush.bf16.msra.mxu3 %v8362_v55  ;;  %v8719_v48 = vld [vmem:[%s17988_s0 + $0x74c] sm:$0xf0]  ;;  %v10418_v55 = vld [vmem:[%s17988_s0 + $0x28c] sm:$0xf]  ;;  %v8842_v58 = vor.u32 %v10598_v37, %v8839_v40  ;;  %v8599_v25 = vld [vmem:[%s17988_s0 + $0x65c] sm:$0xf0] }
 0x2d1   :  { %v8722_v1 = vor.u32 %v10568_v51, %v8719_v48  ;;  %v8122_v2 = vor.u32 %v10418_v55, %v8119_v43  ;;  %v10638_v51 = vld [vmem:[%s17988_s0 + $0x96c] sm:$0xf] }
 0x2d2   :  { %3665 = vmatpush.bf16.msra.mxu0 %v7842_v62  ;;  %3678 = vmatpush.bf16.msra.mxu1 %v8002_v63  ;;  %v3411_v62 = vpop.f32.mrf.mxu0  ;;  %v3424_v63 = vpop.f32.mrf.mxu1 }
 0x2d3   :  { %v10593_v62 = vld [vmem:[%s17988_s0 + $0x804] sm:$0xf]  ;;  %v8819_v63 = vld [vmem:[%s17988_s0 + $0x814] sm:$0xf0] }
 0x2d4   :  { %3690 = vmatpush.bf16.msra.mxu2 %v8182_v4  ;;  %3703 = vmatpush.bf16.msra.mxu3 %v8342_v38  ;;  %v10523_v4 = vld [vmem:[%s17988_s0 + $0x5d4] sm:$0xf]  ;;  %v8539_v38 = vld [vmem:[%s17988_s0 + $0x5e4] sm:$0xf0]  ;;  %v8822_v8 = vor.u32 %v10593_v62, %v8819_v63  ;;  %v10456_v63 = vld [vmem:[%s17988_s0 + $0x3b8] sm:$0xf0] }
 0x2d5   :  { %v8542_v16 = vor.u32 %v10523_v4, %v8539_v38  ;;  %v8482_v4 = vor.u32 %v10508_v56, %v8479_v57  ;;  %v8642_v38 = vor.u32 %v10548_v60, %v8639_v61  ;;  %v10578_v56 = vld [vmem:[%s17988_s0 + $0x78c] sm:$0xf]  ;;  %v8759_v57 = vld [vmem:[%s17988_s0 + $0x79c] sm:$0xf0]  ;;  %v8265_v60 = vld [vmem:[%s17988_s0 + $0x3a8] sm:$0xf] }
 0x2d6   :  { %3666 = vmatpush.bf16.msra.mxu0 %v7822_v13  ;;  %3679 = vmatpush.bf16.msra.mxu1 %v7982_v14  ;;  %v3435_v13 = vpop.f32.mrf.mxu2  ;;  %v3448_v14 = vpop.f32.mrf.mxu3 }
 0x2d7   :  { %v3436_v15 = vadd.f32 %v3435_v13, %v3423_v32  ;;  %v8682_v32 = vor.u32 %v10558_v20, %v8679_v21  ;;  %v10628_v13 = vld [vmem:[%s17988_s0 + $0x91c] sm:$0xf]  ;;  %v10538_v20 = vld [vmem:[%s17988_s0 + $0x64c] sm:$0xf] }
 0x2d8   :  { %3691 = vmatpush.bf16.msra.mxu2 %v8162_v19  ;;  %3704 = vmatpush.bf16.msra.mxu3 %v8322_v35  ;;  %v8882_v19 = vor.u32 %v10608_v45, %v8879_v42  ;;  %v9042_v35 = vor.u32 %v10648_v52, %v9039_v12  ;;  %v10543_v45 = vld [vmem:[%s17988_s0 + $0x674] sm:$0xf]  ;;  %v8619_v42 = vld [vmem:[%s17988_s0 + $0x684] sm:$0xf0]  ;;  %v10588_v52 = vld [vmem:[%s17988_s0 + $0x7dc] sm:$0xf] }
 0x2d9   :  { %v14032_v23 = vadd.f32 %v3448_v14, %v3436_v15  ;;  %v8799_v12 = vld [vmem:[%s17988_s0 + $0x7ec] sm:$0xf0]  ;;  %v8622_v18 = vor.u32 %v10543_v45, %v8619_v42  ;;  %v8065_v45 = vld [vmem:[%s17988_s0 + $0x218] sm:$0xf]  ;;  %v10406_v42 = vld [vmem:[%s17988_s0 + $0x228] sm:$0xf0] }
 0x2da   :  { %3667 = vmatpush.bf16.msra.mxu0 %v7802_v44  ;;  %3680 = vmatpush.bf16.msra.mxu1 %v7962_v46  ;;  %v3461_v27 = vpop.f32.mrf.mxu0  ;;  %v3474_v30 = vpop.f32.mrf.mxu1  ;;  %v10513_v44 = vld [vmem:[%s17988_s0 + $0x584] sm:$0xf]  ;;  %v8499_v46 = vld [vmem:[%s17988_s0 + $0x594] sm:$0xf0]  ;;  %v8959_v14 = vld [vmem:[%s17988_s0 + $0x92c] sm:$0xf0]  ;;  %v8802_v22 = vor.u32 %v10588_v52, %v8799_v12 }
 0x2db   :  { %v8502_v55 = vor.u32 %v10513_v44, %v8499_v46  ;;  %v3475_v15 = vadd.f32 %v3474_v30, %v3461_v27  ;;  %v8962_v24 = vor.u32 %v10628_v13, %v8959_v14  ;;  %v10376_v27 = vld [vmem:[%s17988_s0 + $0x138] sm:$0xf0]  ;;  %v8105_v30 = vld [vmem:[%s17988_s0 + $0x268] sm:$0xf]  ;;  %v8245_v52 = vld [vmem:[%s17988_s0 + $0x380] sm:$0xf] }
 0x2dc   :  { %3692 = vmatpush.bf16.msra.mxu2 %v8142_v41  ;;  %3705 = vmatpush.bf16.msra.mxu3 %v8302_v47  ;;  %v8999_v41 = vld [vmem:[%s17988_s0 + $0x97c] sm:$0xf0]  ;;  %v8779_v46 = vld [vmem:[%s17988_s0 + $0x7c4] sm:$0xf0]  ;;  %v7946_v37 = vor.u32 %v10376_v27, %v7945_v26  ;;  %v10451_v12 = vld [vmem:[%s17988_s0 + $0x390] sm:$0xf0] }
 0x2dd   :  { %3668 = vmatmul.bf16.vlgmr.msra.gmra.mxu0 %v12963_v28  ;;  %3681 = vmatmul.bf16.vlgmr.msra.gmra.mxu1 %v12965_v29  ;;  %v9002_v59 = vor.u32 %v10638_v51, %v8999_v41  ;;  %v7925_v51 = vld [vmem:[%s17988_s0 + $0x100] sm:$0xf]  ;;  %v10371_v41 = vld [vmem:[%s17988_s0 + $0x110] sm:$0xf0]  ;;  %v8385_v26 = vld [vmem:[%s17988_s0 + $0x498] sm:$0xf] }
 0x2de   :  { %3712 = vmatpush.bf16.msrb.mxu0 %v8582_v50  ;;  %3725 = vmatpush.bf16.msrb.mxu1 %v8742_v36  ;;  %v10553_v50 = vld [vmem:[%s17988_s0 + $0x6c4] sm:$0xf]  ;;  %v8659_v36 = vld [vmem:[%s17988_s0 + $0x6d4] sm:$0xf0]  ;;  %v3437_v47 = vpop.f32.mrf.mxu2  ;;  %v3450_v48 = vpop.f32.mrf.mxu3  ;;  %v8405_v13 = vld [vmem:[%s17988_s0 + $0x4c0] sm:$0xf] }
 0x2df   :  { %v8662_v43 = vor.u32 %v10553_v50, %v8659_v36  ;;  %v8602_v36 = vor.u32 %v10538_v20, %v8599_v25  ;;  %v8085_v47 = vld [vmem:[%s17988_s0 + $0x240] sm:$0xf]  ;;  %v10491_v14 = vld [vmem:[%s17988_s0 + $0x4d0] sm:$0xf0]  ;;  %v10401_v20 = vld [vmem:[%s17988_s0 + $0x200] sm:$0xf0] }
 0x2e0   :  { %3693 = vmatpush.bf16.msra.mxu2 %v8122_v2  ;;  %3706 = vmatpush.bf16.msra.mxu3 %v8282_v3  ;;  %v10446_v25 = vld [vmem:[%s17988_s0 + $0x368] sm:$0xf0] }
 0x2e1   :  { %v10486_v27 = vld [vmem:[%s17988_s0 + $0x4a8] sm:$0xf0] }
 0x2e2   :  { %3713 = vmatpush.bf16.msrb.mxu0 %v8562_v0  ;;  %3726 = vmatpush.bf16.msrb.mxu1 %v8722_v1  ;;  %v10633_v0 = vld [vmem:[%s17988_s0 + $0x944] sm:$0xf]  ;;  %v8979_v1 = vld [vmem:[%s17988_s0 + $0x954] sm:$0xf0]  ;;  %v3463_v2 = vpop.f32.mrf.mxu0  ;;  %v3476_v3 = vpop.f32.mrf.mxu1 }
 0x2e3   :  { %3694 = vmatmul.bf16.vlgmr.msra.gmra.mxu2 %v13013_v39  ;;  %3707 = vmatmul.bf16.vlgmr.msra.gmra.mxu3 %v13015_v6  ;;  %v8982_v9 = vor.u32 %v10633_v0, %v8979_v1  ;;  %v8425_v0 = vld [vmem:[%s17988_s0 + $0x4e8] sm:$0xf]  ;;  %v10496_v1 = vld [vmem:[%s17988_s0 + $0x4f8] sm:$0xf0]  ;;  %v7926_v2 = vor.u32 %v10371_v41, %v7925_v51  ;;  %v10441_v51 = vld [vmem:[%s17988_s0 + $0x340] sm:$0xf0] }
 0x2e4   :  { %3738 = vmatpush.bf16.msrb.mxu2 %v8902_v5  ;;  %3751 = vmatpush.bf16.msrb.mxu3 %v9062_v7  ;;  %v10503_v5 = vld [vmem:[%s17988_s0 + $0x534] sm:$0xf]  ;;  %v8459_v7 = vld [vmem:[%s17988_s0 + $0x544] sm:$0xf0]  ;;  %v8365_v41 = vld [vmem:[%s17988_s0 + $0x470] sm:$0xf] }
 0x2e5   :  { %v8462_v53 = vor.u32 %v10503_v5, %v8459_v7  ;;  %v7905_v5 = vld [vmem:[%s17988_s0 + $0xd8] sm:$0xf]  ;;  %v10366_v7 = vld [vmem:[%s17988_s0 + $0xe8] sm:$0xf0] }
 0x2e6   :  { %3714 = vmatpush.bf16.msrb.mxu0 %v8542_v16  ;;  %3727 = vmatpush.bf16.msrb.mxu1 %v8702_v17  ;;  %v3487_v16 = vpop.f32.mrf.mxu2  ;;  %v3500_v17 = vpop.f32.mrf.mxu3 }
 0x2e7   :  { %v3488_v21 = vadd.f32 %v3487_v16, %v3475_v15  ;;  %v7906_v15 = vor.u32 %v10366_v7, %v7905_v5  ;;  %v8066_v16 = vor.u32 %v10406_v42, %v8065_v45  ;;  %v10346_v5 = vld [vmem:[%s17988_s0 + $0x48] sm:$0xf0]  ;;  %v8165_v42 = vld [vmem:[%s17988_s0 + $0x2e0] sm:$0xf] }
 0x2e8   :  { %3739 = vmatpush.bf16.msrb.mxu2 %v8882_v19  ;;  %3752 = vmatpush.bf16.msrb.mxu3 %v9042_v35  ;;  %v10498_v19 = vld [vmem:[%s17988_s0 + $0x50c] sm:$0xf]  ;;  %v8439_v35 = vld [vmem:[%s17988_s0 + $0x51c] sm:$0xf0] }
 0x2e9   :  { %v14144_v44 = vadd.f32 %v3500_v17, %v3488_v21  ;;  %v8442_v50 = vor.u32 %v10498_v19, %v8439_v35  ;;  %v7885_v17 = vld [vmem:[%s17988_s0 + $0xb0] sm:$0xf]  ;;  %v8406_v19 = vor.u32 %v10491_v14, %v8405_v13  ;;  %v8225_v21 = vld [vmem:[%s17988_s0 + $0x358] sm:$0xf]  ;;  %v10386_v45 = vld [vmem:[%s17988_s0 + $0x188] sm:$0xf0] }
 0x2ea   :  { %3715 = vmatpush.bf16.msrb.mxu0 %v8522_v31  ;;  %3728 = vmatpush.bf16.msrb.mxu1 %v8682_v32  ;;  %v10416_v31 = vld [vmem:[%s17988_s0 + $0x278] sm:$0xf0]  ;;  %v10583_v32 = vld [vmem:[%s17988_s0 + $0x7b4] sm:$0xf]  ;;  %v8045_v35 = vld [vmem:[%s17988_s0 + $0x1f0] sm:$0xf] }
 0x2eb   :  { %v8106_v40 = vor.u32 %v10416_v31, %v8105_v30  ;;  %v8782_v48 = vor.u32 %v10583_v32, %v8779_v46  ;;  %v8046_v32 = vor.u32 %v10401_v20, %v8045_v35  ;;  %v7865_v46 = vld [vmem:[%s17988_s0 + $0x88] sm:$0xf]  ;;  %v10431_v13 = vld [vmem:[%s17988_s0 + $0x2f0] sm:$0xf0]  ;;  %v8325_v14 = vld [vmem:[%s17988_s0 + $0x420] sm:$0xf] }
 0x2ec   :  { %3740 = vmatpush.bf16.msrb.mxu2 %v8862_v33  ;;  %3753 = vmatpush.bf16.msrb.mxu3 %v9022_v34  ;;  %v10623_v33 = vld [vmem:[%s17988_s0 + $0x8f4] sm:$0xf]  ;;  %v8939_v34 = vld [vmem:[%s17988_s0 + $0x904] sm:$0xf0]  ;;  %v7965_v35 = vld [vmem:[%s17988_s0 + $0x150] sm:$0xf] }
 0x2ee   :  { %3716 = vmatpush.bf16.msrb.mxu0 %v8502_v55  ;;  %3729 = vmatpush.bf16.msrb.mxu1 %v8662_v43  ;;  %v8942_v55 = vor.u32 %v10623_v33, %v8939_v34  ;;  %v10411_v43 = vld [vmem:[%s17988_s0 + $0x250] sm:$0xf0]  ;;  %v3489_v61 = vpop.f32.mrf.mxu2  ;;  %v3502_v62 = vpop.f32.mrf.mxu3  ;;  %v10356_v33 = vld [vmem:[%s17988_s0 + $0x98] sm:$0xf0] }
 0x2ef   :  { %v8086_v3 = vor.u32 %v10411_v43, %v8085_v47  ;;  %v10481_v47 = vld [vmem:[%s17988_s0 + $0x480] sm:$0xf0]  ;;  %v7845_v43 = vld [vmem:[%s17988_s0 + $0x60] sm:$0xf]  ;;  %v8185_v61 = vld [vmem:[%s17988_s0 + $0x308] sm:$0xf] }
 0x2f0   :  { %3741 = vmatpush.bf16.msrb.mxu2 %v8842_v58  ;;  %3754 = vmatpush.bf16.msrb.mxu3 %v9002_v59  ;;  %v10618_v58 = vld [vmem:[%s17988_s0 + $0x8cc] sm:$0xf]  ;;  %v8919_v59 = vld [vmem:[%s17988_s0 + $0x8dc] sm:$0xf0] }
 0x2f2   :  { %3717 = vmatpush.bf16.msrb.mxu0 %v8482_v4  ;;  %3730 = vmatpush.bf16.msrb.mxu1 %v8642_v38  ;;  %v8762_v4 = vor.u32 %v10578_v56, %v8759_v57  ;;  %v8922_v38 = vor.u32 %v10618_v58, %v8919_v59  ;;  %v10351_v56 = vld [vmem:[%s17988_s0 + $0x70] sm:$0xf0]  ;;  %v8366_v58 = vor.u32 %v10481_v47, %v8365_v41  ;;  %v8005_v59 = vld [vmem:[%s17988_s0 + $0x1a0] sm:$0xf] }
 0x2f4   :  { %3742 = vmatpush.bf16.msrb.mxu2 %v8822_v8  ;;  %3755 = vmatpush.bf16.msrb.mxu3 %v8982_v9  ;;  %v8266_v8 = vor.u32 %v10456_v63, %v8265_v60  ;;  %v8426_v9 = vor.u32 %v10496_v1, %v8425_v0  ;;  %v10391_v60 = vld [vmem:[%s17988_s0 + $0x1b0] sm:$0xf0]  ;;  %v10436_v0 = vld [vmem:[%s17988_s0 + $0x318] sm:$0xf0]  ;;  %v8345_v1 = vld [vmem:[%s17988_s0 + $0x448] sm:$0xf] }
 0x2f5   :  { %v8186_v7 = vor.u32 %v10436_v0, %v8185_v61  ;;  %v10616_v61 = vld [vmem:[%s17988_s0 + $0x8b8] sm:$0xf0] }
 0x2f6   :  { %3718 = vmatpush.bf16.msrb.mxu0 %v8462_v53  ;;  %3731 = vmatpush.bf16.msrb.mxu1 %v8622_v18  ;;  %v10361_v53 = vld [vmem:[%s17988_s0 + $0xc0] sm:$0xf0]  ;;  %v8246_v18 = vor.u32 %v10451_v12, %v8245_v52 }
 0x2f7   :  { %v7886_v31 = vor.u32 %v10361_v53, %v7885_v17 }
 0x2f8   :  { %3743 = vmatpush.bf16.msrb.mxu2 %v8802_v22  ;;  %3756 = vmatpush.bf16.msrb.mxu3 %v8962_v24 }
 0x2fa   :  { %3719 = vmatpush.bf16.msrb.mxu0 %v8442_v50  ;;  %3732 = vmatpush.bf16.msrb.mxu1 %v8602_v36  ;;  %v3513_v22 = vpop.f32.mrf.mxu0  ;;  %v3526_v24 = vpop.f32.mrf.mxu1  ;;  %v8226_v50 = vor.u32 %v10446_v25, %v8225_v21  ;;  %v8386_v36 = vor.u32 %v10486_v27, %v8385_v26  ;;  %v8166_v21 = vor.u32 %v10431_v13, %v8165_v42  ;;  %v8585_v25 = vld [vmem:[%s17988_s0 + $0x628] sm:$0xf]  ;;  %v10536_v26 = vld [vmem:[%s17988_s0 + $0x638] sm:$0xf0]  ;;  %v10651_v42 = vld [vmem:[%s17988_s0 + $0x9d0] sm:$0xf0] }
 0x2fb   :  { %v3514_v30 = vadd.f32 %v3513_v22, %v14144_v44  ;;  %v8025_v44 = vld [vmem:[%s17988_s0 + $0x1c8] sm:$0xf]  ;;  %v8525_v13 = vld [vmem:[%s17988_s0 + $0x5b0] sm:$0xf] }
 0x2fc   :  { %3744 = vmatpush.bf16.msrb.mxu2 %v8782_v48  ;;  %3757 = vmatpush.bf16.msrb.mxu3 %v8942_v55  ;;  %v7866_v48 = vor.u32 %v10356_v33, %v7865_v46  ;;  %v8745_v27 = vld [vmem:[%s17988_s0 + $0x768] sm:$0xf]  ;;  %v8305_v46 = vld [vmem:[%s17988_s0 + $0x3f8] sm:$0xf]  ;;  %v10466_v33 = vld [vmem:[%s17988_s0 + $0x408] sm:$0xf0] }
 0x2fd   :  { %3720 = vmatmul.bf16.vlgmr.msrb.gmra.mxu0 %v13078_v49  ;;  %3733 = vmatmul.bf16.vlgmr.msrb.gmra.mxu1 %v13080_v54  ;;  %v3527_v34 = vadd.f32 %v3526_v24, %v3514_v30  ;;  %v10381_v24 = vld [vmem:[%s17988_s0 + $0x160] sm:$0xf0]  ;;  %v10576_v30 = vld [vmem:[%s17988_s0 + $0x778] sm:$0xf0]  ;;  %v8306_v47 = vor.u32 %v10466_v33, %v8305_v46  ;;  %v8845_v46 = vld [vmem:[%s17988_s0 + $0x830] sm:$0xf] }
 0x2fe   :  { %3764 = vmatpush.bf16.msra.mxu0 %v7946_v37  ;;  %3777 = vmatpush.bf16.msra.mxu1 %v8106_v40  ;;  %v10396_v37 = vld [vmem:[%s17988_s0 + $0x1d8] sm:$0xf0]  ;;  %v8205_v40 = vld [vmem:[%s17988_s0 + $0x330] sm:$0xf]  ;;  %v10601_v33 = vld [vmem:[%s17988_s0 + $0x840] sm:$0xf0] }
 0x2ff   :  { %v8026_v55 = vor.u32 %v10396_v37, %v8025_v44  ;;  %v8206_v57 = vor.u32 %v10441_v51, %v8205_v40  ;;  %v8746_v44 = vor.u32 %v10576_v30, %v8745_v27  ;;  %v8565_v37 = vld [vmem:[%s17988_s0 + $0x600] sm:$0xf]  ;;  %v10531_v40 = vld [vmem:[%s17988_s0 + $0x610] sm:$0xf0]  ;;  %v8505_v27 = vld [vmem:[%s17988_s0 + $0x588] sm:$0xf] }
 0x300   :  { %3745 = vmatpush.bf16.msrb.mxu2 %v8762_v4  ;;  %3758 = vmatpush.bf16.msrb.mxu3 %v8922_v38  ;;  %v8006_v4 = vor.u32 %v10391_v60, %v8005_v59  ;;  %v7825_v38 = vld [vmem:[%s17988_s0 + $0x38] sm:$0xf]  ;;  %v8725_v51 = vld [vmem:[%s17988_s0 + $0x740] sm:$0xf]  ;;  %v10461_v59 = vld [vmem:[%s17988_s0 + $0x3e0] sm:$0xf0]  ;;  %v8566_v0 = vor.u32 %v10531_v40, %v8565_v37 }
 0x301   :  { %v7826_v17 = vor.u32 %v10346_v5, %v7825_v38  ;;  %v8905_v60 = vld [vmem:[%s17988_s0 + $0x8a8] sm:$0xf]  ;;  %v10526_v38 = vld [vmem:[%s17988_s0 + $0x5e8] sm:$0xf0]  ;;  %v10516_v30 = vld [vmem:[%s17988_s0 + $0x598] sm:$0xf0] }
 0x302   :  { %3765 = vmatpush.bf16.msra.mxu0 %v7926_v2  ;;  %3778 = vmatpush.bf16.msra.mxu1 %v8086_v3  ;;  %v3515_v62 = vpop.f32.mrf.mxu0  ;;  %v3528_v63 = vpop.f32.mrf.mxu1  ;;  %v10476_v2 = vld [vmem:[%s17988_s0 + $0x458] sm:$0xf0]  ;;  %v7846_v3 = vor.u32 %v10351_v56, %v7845_v43  ;;  %v10571_v43 = vld [vmem:[%s17988_s0 + $0x750] sm:$0xf0]  ;;  %v8125_v56 = vld [vmem:[%s17988_s0 + $0x290] sm:$0xf]  ;;  %v8906_v5 = vor.u32 %v10616_v61, %v8905_v60 }
 0x303   :  { %3746 = vmatmul.bf16.vlgmr.msrb.gmra.mxu2 %v13120_v10  ;;  %3759 = vmatmul.bf16.vlgmr.msrb.gmra.mxu3 %v13122_v11  ;;  %v9065_v62 = vld [vmem:[%s17988_s0 + $0x9e8] sm:$0xf]  ;;  %v10656_v63 = vld [vmem:[%s17988_s0 + $0x9f8] sm:$0xf0]  ;;  %v8485_v37 = vld [vmem:[%s17988_s0 + $0x560] sm:$0xf] }
 0x304   :  { %3790 = vmatpush.bf16.msra.mxu2 %v8266_v8  ;;  %3803 = vmatpush.bf16.msra.mxu3 %v8426_v9  ;;  %v8346_v8 = vor.u32 %v10476_v2, %v8345_v1  ;;  %v7985_v9 = vld [vmem:[%s17988_s0 + $0x178] sm:$0xf]  ;;  %v8726_v1 = vor.u32 %v10571_v43, %v8725_v51  ;;  %v10511_v40 = vld [vmem:[%s17988_s0 + $0x570] sm:$0xf0]  ;;  %v8846_v51 = vor.u32 %v10601_v33, %v8845_v46 }
 0x305   :  { %v7986_v53 = vor.u32 %v10386_v45, %v7985_v9  ;;  %v10566_v9 = vld [vmem:[%s17988_s0 + $0x728] sm:$0xf0]  ;;  %v8885_v45 = vld [vmem:[%s17988_s0 + $0x880] sm:$0xf]  ;;  %v8486_v60 = vor.u32 %v10511_v40, %v8485_v37  ;;  %v14573_v46 = vld [vmem:[%s17742_s7 + $0x70] sm:$0xff] }
 0x306   :  { %3766 = vmatpush.bf16.msra.mxu0 %v7906_v15  ;;  %3779 = vmatpush.bf16.msra.mxu1 %v8066_v16  ;;  %v3539_v52 = vpop.f32.mrf.mxu2  ;;  %v3552_v12 = vpop.f32.mrf.mxu3  ;;  %v10471_v15 = vld [vmem:[%s17988_s0 + $0x430] sm:$0xf0]  ;;  %v14609_v37 = vld [vmem:[%s17742_s7 + $0x178] sm:$0xff] }
 0x307   :  { %v3540_v16 = vadd.f32 %v3539_v52, %v3527_v34  ;;  %v8326_v22 = vor.u32 %v10471_v15, %v8325_v14  ;;  %v10521_v14 = vld [vmem:[%s17988_s0 + $0x5c0] sm:$0xf0]  ;;  %v14578_v33 = vld [vmem:[%s17742_s7 + $0xf0] sm:$0xff]  ;;  %v14614_v40 = vld [vmem:[%s17742_s7 + $0x1f8] sm:$0xff] }
 0x308   :  { %3791 = vmatpush.bf16.msra.mxu2 %v8246_v18  ;;  %3804 = vmatpush.bf16.msra.mxu3 %v8406_v19  ;;  %v7805_v18 = vld [vmem:[%s17988_s0 + $0x10] sm:$0xf]  ;;  %v10341_v19 = vld [vmem:[%s17988_s0 + $0x20] sm:$0xf0] }
 0x309   :  { %v14325_v20 = vadd.f32 %v3552_v12, %v3540_v16  ;;  %v7806_v34 = vor.u32 %v10341_v19, %v7805_v18  ;;  %v8865_v18 = vld [vmem:[%s17988_s0 + $0x858] sm:$0xf] }
 0x30a   :  { %3767 = vmatpush.bf16.msra.mxu0 %v7886_v31  ;;  %3780 = vmatpush.bf16.msra.mxu1 %v8046_v32  ;;  %v8145_v31 = vld [vmem:[%s17988_s0 + $0x2b8] sm:$0xf]  ;;  %v10426_v32 = vld [vmem:[%s17988_s0 + $0x2c8] sm:$0xf0] }
 0x30b   :  { %v8146_v41 = vor.u32 %v10426_v32, %v8145_v31 }
 0x30c   :  { %3792 = vmatpush.bf16.msra.mxu2 %v8226_v50  ;;  %3805 = vmatpush.bf16.msra.mxu3 %v8386_v36  ;;  %v7966_v50 = vor.u32 %v10381_v24, %v7965_v35  ;;  %v8586_v36 = vor.u32 %v10536_v26, %v8585_v25  ;;  %v10646_v24 = vld [vmem:[%s17988_s0 + $0x9a8] sm:$0xf0]  ;;  %v8526_v25 = vor.u32 %v10521_v14, %v8525_v13  ;;  %v8605_v13 = vld [vmem:[%s17988_s0 + $0x650] sm:$0xf]  ;;  %v10541_v14 = vld [vmem:[%s17988_s0 + $0x660] sm:$0xf0] }
 0x30e   :  { %3768 = vmatpush.bf16.msra.mxu0 %v7866_v48  ;;  %3781 = vmatpush.bf16.msra.mxu1 %v8026_v55  ;;  %v3541_v48 = vpop.f32.mrf.mxu2  ;;  %v3554_v55 = vpop.f32.mrf.mxu3 }
 0x30f   :  { %v10551_v48 = vld [vmem:[%s17988_s0 + $0x6b0] sm:$0xf0]  ;;  %v8825_v55 = vld [vmem:[%s17988_s0 + $0x808] sm:$0xf] }
 0x310   :  { %3793 = vmatpush.bf16.msra.mxu2 %v8206_v57  ;;  %3806 = vmatpush.bf16.msra.mxu3 %v8366_v58  ;;  %v10421_v57 = vld [vmem:[%s17988_s0 + $0x2a0] sm:$0xf0]  ;;  %v8285_v58 = vld [vmem:[%s17988_s0 + $0x3d0] sm:$0xf] }
 0x311   :  { %v8126_v2 = vor.u32 %v10421_v57, %v8125_v56  ;;  %v10596_v57 = vld [vmem:[%s17988_s0 + $0x818] sm:$0xf0] }
 0x312   :  { %3769 = vmatpush.bf16.msra.mxu0 %v7846_v3  ;;  %3782 = vmatpush.bf16.msra.mxu1 %v8006_v4  ;;  %v8286_v3 = vor.u32 %v10461_v59, %v8285_v58  ;;  %v8545_v4 = vld [vmem:[%s17988_s0 + $0x5d8] sm:$0xf]  ;;  %v8985_v58 = vld [vmem:[%s17988_s0 + $0x948] sm:$0xf]  ;;  %v10636_v59 = vld [vmem:[%s17988_s0 + $0x958] sm:$0xf0] }
 0x313   :  { %v8546_v52 = vor.u32 %v10526_v38, %v8545_v4  ;;  %v8805_v4 = vld [vmem:[%s17988_s0 + $0x7e0] sm:$0xf] }
 0x314   :  { %3794 = vmatpush.bf16.msra.mxu2 %v8186_v7  ;;  %3807 = vmatpush.bf16.msra.mxu3 %v8346_v8  ;;  %v9066_v7 = vor.u32 %v10656_v63, %v9065_v62  ;;  %v8705_v8 = vld [vmem:[%s17988_s0 + $0x718] sm:$0xf]  ;;  %v10506_v63 = vld [vmem:[%s17988_s0 + $0x548] sm:$0xf0] }
 0x315   :  { %v8706_v12 = vor.u32 %v10566_v9, %v8705_v8  ;;  %v8465_v62 = vld [vmem:[%s17988_s0 + $0x538] sm:$0xf]  ;;  %v8965_v8 = vld [vmem:[%s17988_s0 + $0x920] sm:$0xf]  ;;  %v10631_v9 = vld [vmem:[%s17988_s0 + $0x930] sm:$0xf0] }
 0x316   :  { %3770 = vmatpush.bf16.msra.mxu0 %v7826_v17  ;;  %3783 = vmatpush.bf16.msra.mxu1 %v7986_v53  ;;  %v8685_v17 = vld [vmem:[%s17988_s0 + $0x6f0] sm:$0xf]  ;;  %v10561_v53 = vld [vmem:[%s17988_s0 + $0x700] sm:$0xf0] }
 0x317   :  { %v8686_v26 = vor.u32 %v10561_v53, %v8685_v17  ;;  %v8945_v17 = vld [vmem:[%s17988_s0 + $0x8f8] sm:$0xf]  ;;  %v10626_v53 = vld [vmem:[%s17988_s0 + $0x908] sm:$0xf0] }
 0x318   :  { %3795 = vmatpush.bf16.msra.mxu2 %v8166_v21  ;;  %3808 = vmatpush.bf16.msra.mxu3 %v8326_v22  ;;  %v10606_v21 = vld [vmem:[%s17988_s0 + $0x868] sm:$0xf0]  ;;  %v9025_v22 = vld [vmem:[%s17988_s0 + $0x998] sm:$0xf] }
 0x319   :  { %v8866_v31 = vor.u32 %v10606_v21, %v8865_v18  ;;  %v9026_v32 = vor.u32 %v10646_v24, %v9025_v22  ;;  %v8606_v21 = vor.u32 %v10541_v14, %v8605_v13  ;;  %v14549_v22 = vld [vmem:[%s17742_s7 + $0x78] sm:$0xff] }
 0x31a   :  { %3771 = vmatpush.bf16.msra.mxu0 %v7806_v34  ;;  %3784 = vmatpush.bf16.msra.mxu1 %v7966_v50  ;;  %v14431_v19 = vpop.f32.mrf.mxu0  ;;  %v14433_v35 = vpop.f32.mrf.mxu1  ;;  %v9005_v34 = vld [vmem:[%s17988_s0 + $0x970] sm:$0xf]  ;;  %v10641_v50 = vld [vmem:[%s17988_s0 + $0x980] sm:$0xf0]  ;;  %v14554_v24 = vld [vmem:[%s17742_s7 + $0xf8] sm:$0xff] }
 0x31c   :  { %3796 = vmatpush.bf16.msra.mxu2 %v8146_v41  ;;  %3809 = vmatpush.bf16.msra.mxu3 %v8306_v47  ;;  %v9006_v41 = vor.u32 %v10641_v50, %v9005_v34  ;;  %v8645_v47 = vld [vmem:[%s17988_s0 + $0x6a0] sm:$0xf]  ;;  %v14585_v34 = vld [vmem:[%s17742_s7 + $0x68] sm:$0xff] }
 0x31d   :  { %3772 = vmatmul.bf16.vlgmr.msra.gmra.mxu0 %v12963_v28  ;;  %3785 = vmatmul.bf16.vlgmr.msra.gmra.mxu1 %v12965_v29  ;;  %v10611_v28 = vld [vmem:[%s17988_s0 + $0x890] sm:$0xf0]  ;;  %v9045_v29 = vld [vmem:[%s17988_s0 + $0x9c0] sm:$0xf]  ;;  %v8646_v61 = vor.u32 %v10551_v48, %v8645_v47  ;;  %v14590_v50 = vld [vmem:[%s17742_s7 + $0xe8] sm:$0xff] }
 0x31e   :  { %3816 = vmatpush.bf16.msrb.mxu0 %v8586_v36  ;;  %3829 = vmatpush.bf16.msrb.mxu1 %v8746_v44  ;;  %v8886_v15 = vor.u32 %v10611_v28, %v8885_v45  ;;  %v9046_v16 = vor.u32 %v10651_v42, %v9045_v29  ;;  %v8506_v36 = vor.u32 %v10516_v30, %v8505_v27  ;;  %v8445_v29 = vld [vmem:[%s17988_s0 + $0x510] sm:$0xf] }
 0x31f   :  { %v8466_v45 = vor.u32 %v10506_v63, %v8465_v62  ;;  %v14696_v62 = vld [vmem:[%s17742_s7 + $0x40] sm:$0xff] }
 0x320   :  { %3797 = vmatpush.bf16.msra.mxu2 %v8126_v2  ;;  %3810 = vmatpush.bf16.msra.mxu3 %v8286_v3  ;;  %v8625_v2 = vld [vmem:[%s17988_s0 + $0x678] sm:$0xf]  ;;  %v10546_v3 = vld [vmem:[%s17988_s0 + $0x688] sm:$0xf0]  ;;  %v14701_v63 = vld [vmem:[%s17742_s7 + $0xc0] sm:$0xff] }
 0x321   :  { %v8626_v28 = vor.u32 %v10546_v3, %v8625_v2  ;;  %v14720_v2 = vld [vmem:[%s17742_s7 + $0x38] sm:$0xff] }
 0x322   :  { %3817 = vmatpush.bf16.msrb.mxu0 %v8566_v0  ;;  %3830 = vmatpush.bf16.msrb.mxu1 %v8726_v1  ;;  %v3567_v43 = vpop.f32.mrf.mxu0  ;;  %v3580_v56 = vpop.f32.mrf.mxu1  ;;  %v8826_v0 = vor.u32 %v10596_v57, %v8825_v55  ;;  %v8986_v1 = vor.u32 %v10636_v59, %v8985_v58  ;;  %v14636_v55 = vld [vmem:[%s17742_s7 + $0x170] sm:$0xff]  ;;  %v14672_v58 = vld [vmem:[%s17742_s7 + $0x48] sm:$0xff]  ;;  %v14725_v3 = vld [vmem:[%s17742_s7 + $0xb8] sm:$0xff] }
 0x323   :  { %3798 = vmatmul.bf16.vlgmr.msra.gmra.mxu2 %v13013_v39  ;;  %3811 = vmatmul.bf16.vlgmr.msra.gmra.mxu3 %v13015_v6  ;;  %v8665_v39 = vld [vmem:[%s17988_s0 + $0x6c8] sm:$0xf]  ;;  %v10556_v6 = vld [vmem:[%s17988_s0 + $0x6d8] sm:$0xf0]  ;;  %v14642_v43 = vld [vmem:[%s17742_s7 + $0x1f0] sm:$0xff] }
 0x324   :  { %3842 = vmatpush.bf16.msrb.mxu2 %v8906_v5  ;;  %3855 = vmatpush.bf16.msrb.mxu3 %v9066_v7  ;;  %v8666_v44 = vor.u32 %v10556_v6, %v8665_v39  ;;  %v10591_v7 = vld [vmem:[%s17988_s0 + $0x7f0] sm:$0xf0]  ;;  %v8925_v39 = vld [vmem:[%s17988_s0 + $0x8d0] sm:$0xf]  ;;  %v10621_v6 = vld [vmem:[%s17988_s0 + $0x8e0] sm:$0xf0] }
 0x325   :  { %v8806_v42 = vor.u32 %v10591_v7, %v8805_v4  ;;  %v14649_v56 = vld [vmem:[%s17742_s7 + $0x50] sm:$0xff]  ;;  %v14677_v59 = vld [vmem:[%s17742_s7 + $0xc8] sm:$0xff] }
 0x326   :  { %3818 = vmatpush.bf16.msrb.mxu0 %v8546_v52  ;;  %3831 = vmatpush.bf16.msrb.mxu1 %v8706_v12  ;;  %v14509_v38 = vpop.f32.mrf.mxu2  ;;  %v14511_v5 = vpop.f32.mrf.mxu3  ;;  %v8966_v52 = vor.u32 %v10631_v9, %v8965_v8  ;;  %v10501_v12 = vld [vmem:[%s17988_s0 + $0x520] sm:$0xf0]  ;;  %v14654_v57 = vld [vmem:[%s17742_s7 + $0xd0] sm:$0xff] }
 0x327   :  { %v8446_v18 = vor.u32 %v10501_v12, %v8445_v29  ;;  %v14733_v8 = vld [vmem:[%s17742_s7 + $0x150] sm:$0xff]  ;;  %v14757_v29 = vld [vmem:[%s17742_s7 + $0x148] sm:$0xff] }
 0x328   :  { %3843 = vmatpush.bf16.msrb.mxu2 %v8886_v15  ;;  %3856 = vmatpush.bf16.msrb.mxu3 %v9046_v16  ;;  %v8785_v15 = vld [vmem:[%s17988_s0 + $0x7b8] sm:$0xf]  ;;  %v10586_v16 = vld [vmem:[%s17988_s0 + $0x7c8] sm:$0xf0]  ;;  %v14738_v9 = vld [vmem:[%s17742_s7 + $0x1d0] sm:$0xff] }
 0x329   :  { %v14773_v12 = vld [vmem:[%s17742_s7 + $0xa8] sm:$0xff] }
 0x32a   :  { %3819 = vmatpush.bf16.msrb.mxu0 %v8526_v25  ;;  %3832 = vmatpush.bf16.msrb.mxu1 %v8686_v26  ;;  %v8786_v25 = vor.u32 %v10586_v16, %v8785_v15  ;;  %v8946_v26 = vor.u32 %v10626_v53, %v8945_v17  ;;  %v3579_v15 = vadd.f32 %v14433_v35, %v14431_v19  ;;  %v14785_v16 = vld [vmem:[%s17742_s7 + $0x140] sm:$0xff] }
 0x32b   :  { %v14790_v17 = vld [vmem:[%s17742_s7 + $0x1c0] sm:$0xff] }
 0x32c   :  { %3844 = vmatpush.bf16.msrb.mxu2 %v8866_v31  ;;  %3857 = vmatpush.bf16.msrb.mxu3 %v9026_v32  ;;  %v8765_v31 = vld [vmem:[%s17988_s0 + $0x790] sm:$0xf]  ;;  %v10581_v32 = vld [vmem:[%s17988_s0 + $0x7a0] sm:$0xf0]  ;;  %17989 = vst [vmem:[#allocation2_spill] sm:$0xff] %v14790_v17  ;;  %v3592_v53 = vadd.f32 %v14509_v38, %v3579_v15  ;;  %v14821_v38 = vld [vmem:[%s17742_s7 + $0x18] sm:$0xff] }
 0x32d   :  { %v14796_v19 = vld [vmem:[%s17742_s7 + $0x20] sm:$0xff] }
 0x32e   :  { %3820 = vmatpush.bf16.msrb.mxu0 %v8506_v36  ;;  %3833 = vmatpush.bf16.msrb.mxu1 %v8666_v44  ;;  %v3593_v27 = vpop.f32.mrf.mxu2  ;;  %v3606_v30 = vpop.f32.mrf.mxu3  ;;  %v8766_v36 = vor.u32 %v10581_v32, %v8765_v31  ;;  %v8926_v44 = vor.u32 %v10621_v6, %v8925_v39  ;;  %v14801_v35 = vld [vmem:[%s17742_s7 + $0xa0] sm:$0xff]  ;;  %v14850_v31 = vld [vmem:[%s17742_s7 + $0x90] sm:$0xff]  ;;  %v3605_v32 = vadd.f32 %v14511_v5, %v3592_v53  ;;  %v14859_v39 = vld [vmem:[%s17742_s7 + $0x128] sm:$0xff] }
 0x32f   :  { %v14839_v27 = vld [vmem:[%s17742_s7 + $0x1b0] sm:$0xff]  ;;  %v14864_v6 = vld [vmem:[%s17742_s7 + $0x1a8] sm:$0xff]  ;;  %v14884_v15 = vld [vmem:[%s17742_s7 + $0x120] sm:$0xff] }
 0x330   :  { %3845 = vmatpush.bf16.msrb.mxu2 %v8846_v51  ;;  %3858 = vmatpush.bf16.msrb.mxu3 %v9006_v41  ;;  %v14621_v51 = vld [vmem:[%s17742_s7 + $0x58] sm:$0xff]  ;;  %17991 = vst [vmem:[#allocation6_spill] sm:$0xff] %v14839_v27  ;;  %v14845_v30 = vld [vmem:[%s17742_s7 + $0x10] sm:$0xff]  ;;  %v14870_v5 = vld [vmem:[%s17742_s7 + $0x8] sm:$0xff] }
 0x331   :  { %v14626_v41 = vld [vmem:[%s17742_s7 + $0xd8] sm:$0xff]  ;;  %17992 = vst [vmem:[#allocation7_spill] sm:$0xff] %v14864_v6  ;;  %v14889_v53 = vld [vmem:[%s17742_s7 + $0x1a0] sm:$0xff] }
 0x332   :  { %3821 = vmatpush.bf16.msrb.mxu0 %v8486_v60  ;;  %3834 = vmatpush.bf16.msrb.mxu1 %v8646_v61  ;;  %v14685_v60 = vld [vmem:[%s17742_s7 + $0x160] sm:$0xff]  ;;  %17993 = vst [vmem:[#allocation4_spill] sm:$0xff] %v14889_v53 }
 0x333   :  { %v14690_v61 = vld [vmem:[%s17742_s7 + $0x1e0] sm:$0xff] }
 0x334   :  { %3846 = vmatpush.bf16.msrb.mxu2 %v8826_v0  ;;  %3859 = vmatpush.bf16.msrb.mxu3 %v8986_v1  ;;  %v14709_v0 = vld [vmem:[%s17742_s7 + $0x158] sm:$0xff] }
 0x335   :  { %v14714_v1 = vld [vmem:[%s17742_s7 + $0x1d8] sm:$0xff] }
 0x336   :  { %3822 = vmatpush.bf16.msrb.mxu0 %v8466_v45  ;;  %3835 = vmatpush.bf16.msrb.mxu1 %v8626_v28  ;;  %v14744_v45 = vld [vmem:[%s17742_s7 + $0x30] sm:$0xff] }
 0x337   :  { %v14749_v28 = vld [vmem:[%s17742_s7 + $0xb0] sm:$0xff] }
 0x338   :  { %3847 = vmatpush.bf16.msrb.mxu2 %v8806_v42  ;;  %3860 = vmatpush.bf16.msrb.mxu3 %v8966_v52  ;;  %v14762_v42 = vld [vmem:[%s17742_s7 + $0x1c8] sm:$0xff] }
 0x339   :  { %v14768_v52 = vld [vmem:[%s17742_s7 + $0x28] sm:$0xff] }
 0x33a   :  { %3823 = vmatpush.bf16.msrb.mxu0 %v8446_v18  ;;  %3836 = vmatpush.bf16.msrb.mxu1 %v8606_v21  ;;  %v14628_v47 = vpop.f32.mrf.mxu0  ;;  %v14630_v48 = vpop.f32.mrf.mxu1  ;;  %v14810_v18 = vld [vmem:[%s17742_s7 + $0x138] sm:$0xff] }
 0x33b   :  { %v14815_v21 = vld [vmem:[%s17742_s7 + $0x1b8] sm:$0xff] }
 0x33c   :  { %3848 = vmatpush.bf16.msrb.mxu2 %v8786_v25  ;;  %3861 = vmatpush.bf16.msrb.mxu3 %v8946_v26  ;;  %17990 = vst [vmem:[#allocation3_spill] sm:$0xff] %v14815_v21  ;;  %v14826_v25 = vld [vmem:[%s17742_s7 + $0x98] sm:$0xff]  ;;  %v14834_v26 = vld [vmem:[%s17742_s7 + $0x130] sm:$0xff] }
 0x33d   :  { %3824 = vmatmul.bf16.vlgmr.msrb.gmra.mxu0 %v13078_v49  ;;  %3837 = vmatmul.bf16.vlgmr.msrb.gmra.mxu1 %v13080_v54  ;;  %v14597_v49 = vld [vmem:[%s17742_s7 + $0x60] sm:$0xff] }
 0x33e   :  { %3943 = vmatpush.msra.mxu0 %v14549_v22  ;;  %3963 = vmatpush.msra.mxu1 %v14554_v24  ;;  %v14602_v54 = vld [vmem:[%s17742_s7 + $0xe0] sm:$0xff] }
 0x340   :  { %3944 = vmatpush.msra.mxu0 %v14573_v46  ;;  %3964 = vmatpush.msra.mxu1 %v14578_v33 }
 0x341   :  { %3849 = vmatpush.bf16.msrb.mxu2 %v8766_v36  ;;  %3862 = vmatpush.bf16.msrb.mxu3 %v8926_v44  ;;  %v14875_v36 = vld [vmem:[%s17742_s7 + $0x88] sm:$0xff] }
 0x342   :  { %3945 = vmatpush.msra.mxu0 %v14585_v34  ;;  %3965 = vmatpush.msra.mxu1 %v14590_v50  ;;  %v3619_v4 = vpop.f32.mrf.mxu0  ;;  %v3632_v7 = vpop.f32.mrf.mxu1 }
 0x343   :  { %v3618_v7 = vadd.f32 %v14628_v47, %v3605_v32  ;;  %v14895_v47 = vld [vmem:[%s17742_s7] sm:$0xff] }
 0x344   :  { %3946 = vmatpush.msra.mxu0 %v14597_v49  ;;  %3966 = vmatpush.msra.mxu1 %v14602_v54  ;;  %v14900_v32 = vld [vmem:[%s17742_s7 + $0x80] sm:$0xff] }
 0x345   :  { %3983 = vmatpush.msra.mxu2 %v14609_v37  ;;  %4003 = vmatpush.msra.mxu3 %v14614_v40 }
 0x346   :  { %3850 = vmatmul.bf16.vlgmr.msrb.gmra.mxu2 %v13120_v10  ;;  %3863 = vmatmul.bf16.vlgmr.msrb.gmra.mxu3 %v13122_v11  ;;  %v14661_v10 = vld [vmem:[%s17742_s7 + $0x168] sm:$0xff]  ;;  %v3643_v13 = vpop.f32.mrf.mxu2  ;;  %v14775_v14 = vpop.f32.mrf.mxu3 }
 0x347   :  { %3947 = vmatpush.msra.mxu0 %v14621_v51  ;;  %3967 = vmatpush.msra.mxu1 %v14626_v41  ;;  %v14666_v11 = vld [vmem:[%s17742_s7 + $0x1e8] sm:$0xff] }
 0x348   :  { %3984 = vmatpush.msra.mxu2 %v14636_v55  ;;  %4004 = vmatpush.msra.mxu3 %v14642_v43 }
 0x349   :  { %3948 = vmatpush.msra.mxu0 %v14649_v56  ;;  %3968 = vmatpush.msra.mxu1 %v14654_v57 }
 0x34a   :  { %3985 = vmatpush.msra.mxu2 %v14661_v10  ;;  %4005 = vmatpush.msra.mxu3 %v14666_v11 }
 0x34b   :  { %3949 = vmatpush.msra.mxu0 %v14672_v58  ;;  %3969 = vmatpush.msra.mxu1 %v14677_v59 }
 0x34c   :  { %3986 = vmatpush.msra.mxu2 %v14685_v60  ;;  %4006 = vmatpush.msra.mxu3 %v14690_v61 }
 0x34d   :  { %3950 = vmatpush.msra.mxu0 %v14696_v62  ;;  %3970 = vmatpush.msra.mxu1 %v14701_v63 }
 0x34e   :  { %3987 = vmatpush.msra.mxu2 %v14709_v0  ;;  %4007 = vmatpush.msra.mxu3 %v14714_v1  ;;  %v3645_v44 = vpop.f32.mrf.mxu2  ;;  %v3658_v4 = vpop.f32.mrf.mxu3 }
 0x34f   :  { %3951 = vmatpush.msra.mxu0 %v14720_v2  ;;  %3971 = vmatpush.msra.mxu1 %v14725_v3  ;;  %v14908_v44 = vld [vmem:[%s17742_s7 + $0x118] sm:$0xff] }
 0x350   :  { %3988 = vmatpush.msra.mxu2 %v14733_v8  ;;  %4008 = vmatpush.msra.mxu3 %v14738_v9  ;;  %v14915_v4 = vld [vmem:[%s17742_s7 + $0x198] sm:$0xff] }
 0x351   :  { %3952 = vmatpush.msra.mxu0 %v14744_v45  ;;  %3972 = vmatpush.msra.mxu1 %v14749_v28  ;;  %17994 = vst [vmem:[#allocation5_spill] sm:$0xff] %v14915_v4 }
 0x352   :  { %3989 = vmatpush.msra.mxu2 %v14757_v29  ;;  %4009 = vmatpush.msra.mxu3 %v14762_v42 }
 0x353   :  { %3953 = vmatpush.msra.mxu0 %v14768_v52  ;;  %3973 = vmatpush.msra.mxu1 %v14773_v12 }
 0x354   :  { %3990 = vmatpush.msra.mxu2 %v14785_v16  ;;  %4010 = vmatpush.msra.mxu3 %v14790_v17 }
 0x355   :  { %3954 = vmatpush.msra.mxu0 %v14796_v19  ;;  %3974 = vmatpush.msra.mxu1 %v14801_v35 }
 0x356   :  { %3991 = vmatpush.msra.mxu2 %v14810_v18  ;;  %4011 = vmatpush.msra.mxu3 %v14815_v21 }
 0x357   :  { %3955 = vmatpush.msra.mxu0 %v14821_v38  ;;  %3975 = vmatpush.msra.mxu1 %v14826_v25 }
 0x358   :  { %3992 = vmatpush.msra.mxu2 %v14834_v26  ;;  %4012 = vmatpush.msra.mxu3 %v14839_v27  ;;  %v14923_v27 = vld [vmem:[%s17742_s7 + $0x110] sm:$0xff] }
 0x359   :  { %3956 = vmatpush.msra.mxu0 %v14845_v30  ;;  %3976 = vmatpush.msra.mxu1 %v14850_v31 }
 0x35a   :  { %3993 = vmatpush.msra.mxu2 %v14859_v39  ;;  %4013 = vmatpush.msra.mxu3 %v14864_v6  ;;  %v3631_v6 = vadd.f32 %v14630_v48, %v3618_v7  ;;  %v14936_v48 = vld [vmem:[%s17742_s7 + $0x108] sm:$0xff] }
 0x35b   :  { %3957 = vmatpush.msra.mxu0 %v14870_v5  ;;  %3977 = vmatpush.msra.mxu1 %v14875_v36  ;;  %v14944_v7 = vld [vmem:[%s17742_s7 + $0x188] sm:$0xff] }
 0x35c   :  { %3994 = vmatpush.msra.mxu2 %v14884_v15  ;;  %4014 = vmatpush.msra.mxu3 %v14889_v53  ;;  %v14930_v53 = vld [vmem:[%s17742_s7 + $0x190] sm:$0xff]  ;;  %v3644_v21 = vadd.f32 %v3643_v13, %v3631_v6  ;;  %v14949_v13 = vld [vmem:[%s17742_s7 + $0x100] sm:$0xff]  ;;  %v3669_v6 = vpop.f32.mrf.mxu0 }
 0x35d   :  { %3958 = vmatpush.msra.mxu0 %v14895_v47  ;;  %3978 = vmatpush.msra.mxu1 %v14900_v32 }
 0x35e   :  { %3995 = vmatpush.msra.mxu2 %v14908_v44  ;;  %3959 = vmatmul.f32.vlgmr.msra.gmra.mxu0 %v14032_v23  ;;  %v14960_v17 = vadd.f32 %v14775_v14, %v3644_v21 }
 0x35f   :  { %3979 = vmatmul.f32.vlgmr.msra.gmra.mxu1 %v14325_v20  ;;  %4015 = vmatpush.msra.mxu3 %v14915_v4  ;;  %v14957_v4 = vld [vmem:[%s17742_s7 + $0x180] sm:$0xff] }
 0x360   :  { %4059 = vmatpush.msrb.mxu1 %v14549_v22  ;;  %3996 = vmatpush.msra.mxu2 %v14923_v27  ;;  %v3682_v22 = vpop.f32.mrf.mxu1 }
 0x361   :  { %4016 = vmatpush.msra.mxu3 %v14930_v53 }
 0x362   :  { %4060 = vmatpush.msrb.mxu1 %v14573_v46  ;;  %3997 = vmatpush.msra.mxu2 %v14936_v48 }
 0x363   :  { %4017 = vmatpush.msra.mxu3 %v14944_v7 }
 0x364   :  { %4061 = vmatpush.msrb.mxu1 %v14585_v34  ;;  %3998 = vmatpush.msra.mxu2 %v14949_v13  ;;  %v3671_v46 = vpop.f32.mrf.mxu0 }
 0x365   :  { %3999 = vmatmul.f32.vlgmr.msra.gmra.mxu2 %v14960_v17  ;;  %4018 = vmatpush.msra.mxu3 %v14957_v4 }
 0x366   :  { %4062 = vmatpush.msrb.mxu1 %v14597_v49  ;;  %4079 = vmatpush.msrb.mxu2 %v14554_v24  ;;  %v3695_v24 = vpop.f32.mrf.mxu2 }
 0x367   :  { %4099 = vmatpush.msrb.mxu3 %v14609_v37  ;;  %v3683_v37 = vadd.f32 %v3682_v22, %v3669_v6 }
 0x368   :  { %4063 = vmatpush.msrb.mxu1 %v14621_v51  ;;  %4080 = vmatpush.msrb.mxu2 %v14578_v33  ;;  %v3684_v34 = vpop.f32.mrf.mxu1  ;;  %v3708_v33 = vpop.f32.mrf.mxu3 }
 0x369   :  { %4100 = vmatpush.msrb.mxu3 %v14636_v55  ;;  %v3696_v55 = vadd.f32 %v3695_v24, %v3683_v37 }
 0x36a   :  { %4064 = vmatpush.msrb.mxu1 %v14649_v56  ;;  %4081 = vmatpush.msrb.mxu2 %v14590_v50  ;;  %v4052_v56 = vmul.f32 %v14325_v20, %v14325_v20 }
 0x36b   :  { %4101 = vmatpush.msrb.mxu3 %v14661_v10  ;;  %v3939_v10 = vld [vmem:[%s17742_s7 + $0x238] sm:$0xff] }
 0x36c   :  { %4065 = vmatpush.msrb.mxu1 %v14672_v58  ;;  %4082 = vmatpush.msrb.mxu2 %v14602_v54  ;;  %v4051_v54 = vmul.f32 %v14032_v23, %v14032_v23  ;;  %v3938_v58 = vld [vmem:[%s17742_s7 + $0x230] sm:$0xff] }
 0x36d   :  { %4102 = vmatpush.msrb.mxu3 %v14685_v60  ;;  %4031 = vmatpush.msrb.mxu0 %v3939_v10 }
 0x36e   :  { %4066 = vmatpush.msrb.mxu1 %v14696_v62  ;;  %4083 = vmatpush.msrb.mxu2 %v14626_v41  ;;  %v3697_v50 = vpop.f32.mrf.mxu2 }
 0x36f   :  { %4103 = vmatpush.msrb.mxu3 %v14709_v0  ;;  %4032 = vmatpush.msrb.mxu0 %v3938_v58 }
 0x370   :  { %4067 = vmatpush.msrb.mxu1 %v14720_v2  ;;  %4084 = vmatpush.msrb.mxu2 %v14654_v57  ;;  %v3710_v49 = vpop.f32.mrf.mxu3  ;;  %v3709_v57 = vadd.f32 %v3708_v33, %v3696_v55 }
 0x371   :  { %4104 = vmatpush.msrb.mxu3 %v14733_v8  ;;  %v3937_v8 = vld [vmem:[%s17742_s7 + $0x228] sm:$0xff] }
 0x372   :  { %4068 = vmatpush.msrb.mxu1 %v14744_v45  ;;  %4085 = vmatpush.msrb.mxu2 %v14677_v59  ;;  %v3936_v45 = vld [vmem:[%s17742_s7 + $0x220] sm:$0xff] }
 0x373   :  { %4105 = vmatpush.msrb.mxu3 %v14757_v29  ;;  %4033 = vmatpush.msrb.mxu0 %v3937_v8  ;;  %v3935_v29 = vld [vmem:[%s17742_s7 + $0x218] sm:$0xff] }
 0x374   :  { %4069 = vmatpush.msrb.mxu1 %v14768_v52  ;;  %4086 = vmatpush.msrb.mxu2 %v14701_v63  ;;  %v3934_v52 = vld [vmem:[%s17742_s7 + $0x210] sm:$0xff] }
 0x375   :  { %4106 = vmatpush.msrb.mxu3 %v14785_v16  ;;  %4034 = vmatpush.msrb.mxu0 %v3936_v45 }
 0x376   :  { %4070 = vmatpush.msrb.mxu1 %v14796_v19  ;;  %4087 = vmatpush.msrb.mxu2 %v14725_v3  ;;  %v3932_v19 = vld [vmem:[%s17742_s7 + $0x200] sm:$0xff] }
 0x377   :  { %4107 = vmatpush.msrb.mxu3 %v14810_v18  ;;  %4035 = vmatpush.msrb.mxu0 %v3935_v29 }
 0x378   :  { %4071 = vmatpush.msrb.mxu1 %v14821_v38  ;;  %4088 = vmatpush.msrb.mxu2 %v14749_v28 }
 0x379   :  { %4108 = vmatpush.msrb.mxu3 %v14834_v26  ;;  %4036 = vmatpush.msrb.mxu0 %v3934_v52  ;;  %v17995_v26 = vld [vmem:[#allocation2_spill] sm:$0xff] }
 0x37a   :  { %4072 = vmatpush.msrb.mxu1 %v14845_v30  ;;  %4089 = vmatpush.msrb.mxu2 %v14773_v12  ;;  %v3721_v51 = vpop.f32.mrf.mxu0  ;;  %v3734_v41 = vpop.f32.mrf.mxu1  ;;  %v3933_v12 = vld [vmem:[%s17742_s7 + $0x208] sm:$0xff]  ;;  %v17997_v30 = vld [vmem:[#allocation6_spill] sm:$0xff] }
 0x37b   :  { %4109 = vmatpush.msrb.mxu3 %v14859_v39  ;;  %v3722_v59 = vadd.f32 %v3721_v51, %v3709_v57  ;;  %4037 = vmatpush.msrb.mxu0 %v3933_v12 }
 0x37c   :  { %4073 = vmatpush.msrb.mxu1 %v14870_v5  ;;  %4090 = vmatpush.msrb.mxu2 %v14801_v35  ;;  %v4053_v35 = vmul.f32 %v14960_v17, %v14960_v17 }
 0x37d   :  { %4110 = vmatpush.msrb.mxu3 %v14884_v15  ;;  %v3735_v63 = vadd.f32 %v3734_v41, %v3722_v59  ;;  %4038 = vmatpush.msrb.mxu0 %v3932_v19 }
 0x37e   :  { %4074 = vmatpush.msrb.mxu1 %v14895_v47  ;;  %4091 = vmatpush.msrb.mxu2 %v14826_v25 }
 0x37f   :  { %4075 = vmatmul.f32.vlgmr.msrb.gmra.mxu1 %v4051_v54  ;;  %4111 = vmatpush.msrb.mxu3 %v14908_v44 }
 0x380   :  { %4092 = vmatpush.msrb.mxu2 %v14850_v31  ;;  %4147 = vmatpush.msra.mxu1 %v3939_v10  ;;  %v17999_v31 = vld [vmem:[#allocation4_spill] sm:$0xff] }
 0x381   :  { %4112 = vmatpush.msrb.mxu3 %v14923_v27  ;;  %4119 = vmatpush.msra.mxu0 %v14614_v40  ;;  %v17996_v27 = vld [vmem:[#allocation3_spill] sm:$0xff] }
 0x382   :  { %4093 = vmatpush.msrb.mxu2 %v14875_v36  ;;  %v3723_v60 = vpop.f32.mrf.mxu0  ;;  %v3736_v62 = vpop.f32.mrf.mxu1  ;;  %4148 = vmatpush.msra.mxu1 %v3938_v58 }
 0x383   :  { %4113 = vmatpush.msrb.mxu3 %v14936_v48  ;;  %4120 = vmatpush.msra.mxu0 %v14642_v43 }
 0x384   :  { %4094 = vmatpush.msrb.mxu2 %v14900_v32  ;;  %4149 = vmatpush.msra.mxu1 %v3937_v8 }
 0x385   :  { %4095 = vmatmul.f32.vlgmr.msrb.gmra.mxu2 %v4052_v56  ;;  %4114 = vmatpush.msrb.mxu3 %v14949_v13 }
 0x386   :  { %v3747_v0 = vpop.f32.mrf.mxu2  ;;  %v3760_v2 = vpop.f32.mrf.mxu3  ;;  %4150 = vmatpush.msra.mxu1 %v3936_v45  ;;  %4121 = vmatpush.msra.mxu0 %v14666_v11  ;;  %v17998_v11 = vld [vmem:[#allocation7_spill] sm:$0xff] }
 0x387   :  { %v3748_v3 = vadd.f32 %v3747_v0, %v3735_v63 }
 0x388   :  { %4151 = vmatpush.msra.mxu1 %v3935_v29  ;;  %4122 = vmatpush.msra.mxu0 %v14690_v61  ;;  %v18000_v61 = vld [vmem:[#allocation5_spill] sm:$0xff] }
 0x389   :  { %v15028_v28 = vadd.f32 %v3760_v2, %v3748_v3 }
 0x38a   :  { %4152 = vmatpush.msra.mxu1 %v3934_v52  ;;  %4123 = vmatpush.msra.mxu0 %v14714_v1 }
 0x38b   :  { %4019 = vmatmul.f32.vlgmr.msra.gmra.mxu3 %v15028_v28  ;;  %v4054_v34 = vmul.f32 %v15028_v28, %v15028_v28 }
 0x38c   :  { %4153 = vmatpush.msra.mxu1 %v3933_v12  ;;  %4124 = vmatpush.msra.mxu0 %v14738_v9  ;;  %v4206_v12 = vld [vmem:[%s17743_s8 + $0x78] sm:$0xff] }
 0x38d   :  { %4227 = vmatpush.msra.mxu2 %v4206_v12 }
 0x38e   :  { %v3749_v14 = vpop.f32.mrf.mxu2  ;;  %v3762_v16 = vpop.f32.mrf.mxu3  ;;  %4154 = vmatpush.msra.mxu1 %v3932_v19  ;;  %4125 = vmatpush.msra.mxu0 %v14762_v42 }
 0x38f   :  { %v4207_v14 = vld [vmem:[%s17743_s8 + $0x80] sm:$0xff]  ;;  %v4210_v16 = vld [vmem:[%s17743_s8 + $0x98] sm:$0xff] }
 0x390   :  { %4126 = vmatpush.msra.mxu0 %v17995_v26  ;;  %4247 = vmatpush.msra.mxu3 %v4207_v14  ;;  %v4197_v26 = vld [vmem:[%s17743_s8 + $0x30] sm:$0xff] }
 0x391   :  { %4307 = vmatpush.msrb.mxu1 %v4210_v16 }
 0x392   :  { %4127 = vmatpush.msra.mxu0 %v17996_v27 }
 0x393   :  { %4115 = vmatmul.f32.vlgmr.msrb.gmra.mxu3 %v4053_v35 }
 0x394   :  { %4128 = vmatpush.msra.mxu0 %v17997_v30  ;;  %v4192_v30 = vld [vmem:[%s17743_s8 + $0x8] sm:$0xff] }
 0x396   :  { %4129 = vmatpush.msra.mxu0 %v17998_v11 }
 0x398   :  { %4130 = vmatpush.msra.mxu0 %v17999_v31 }
 0x39a   :  { %v3773_v18 = vpop.f32.mrf.mxu0  ;;  %v3786_v21 = vpop.f32.mrf.mxu1  ;;  %4131 = vmatpush.msra.mxu0 %v18000_v61  ;;  %v4195_v61 = vld [vmem:[%s17743_s8 + $0x20] sm:$0xff] }
 0x39b   :  { %v3787_v42 = vadd.f32 %v3786_v21, %v3773_v18  ;;  %v4201_v18 = vld [vmem:[%s17743_s8 + $0x50] sm:$0xff]  ;;  %v4202_v21 = vld [vmem:[%s17743_s8 + $0x58] sm:$0xff] }
 0x39c   :  { %4132 = vmatpush.msra.mxu0 %v14930_v53  ;;  %4228 = vmatpush.msra.mxu2 %v4201_v18  ;;  %v10739_v18 = vld [vmem:[%s17744_s11 + $0x290] sm:$0xf0] }
 0x39d   :  { %4248 = vmatpush.msra.mxu3 %v4202_v21  ;;  %v9124_v21 = vld [vmem:[%s17744_s11 + $0x60] sm:$0xf] }
 0x39e   :  { %4133 = vmatpush.msra.mxu0 %v14944_v7 }
 0x39f   :  { %4249 = vmatpush.msra.mxu3 %v4197_v26  ;;  %v4184_v26 = vld [vmem:[%s17746_s10] sm:$0x1] }
 0x3a0   :  { %4134 = vmatpush.msra.mxu0 %v14957_v4 }
 0x3a1   :  { %4250 = vmatpush.msra.mxu3 %v4192_v30  ;;  %v9256_v30 = vld [vmem:[%s17744_s11 + $0x168] sm:$0xf] }
 0x3a2   :  { %v3775_v38 = vpop.f32.mrf.mxu0  ;;  %v3788_v25 = vpop.f32.mrf.mxu1 }
 0x3a3   :  { %v4205_v38 = vld [vmem:[%s17743_s8 + $0x70] sm:$0xff]  ;;  %v4196_v25 = vld [vmem:[%s17743_s8 + $0x28] sm:$0xff] }
 0x3a4   :  { %4308 = vmatpush.msrb.mxu1 %v4205_v38  ;;  %4229 = vmatpush.msra.mxu2 %v4196_v25  ;;  %v10670_v38 = vld [vmem:[%s17744_s11 + $0x68] sm:$0xf0] }
 0x3a6   :  { %v3799_v40 = vpop.f32.mrf.mxu2  ;;  %v3812_v43 = vpop.f32.mrf.mxu3 }
 0x3a7   :  { %v3800_v36 = vadd.f32 %v3799_v40, %v3787_v42  ;;  %v4200_v40 = vld [vmem:[%s17743_s8 + $0x48] sm:$0xff] }
 0x3a8   :  { %4309 = vmatpush.msrb.mxu1 %v4200_v40 }
 0x3a9   :  { %v3813_v15 = vadd.f32 %v3812_v43, %v3800_v36  ;;  %v4191_v43 = vld [vmem:[%s17743_s8] sm:$0xff] }
 0x3aa   :  { %4230 = vmatpush.msra.mxu2 %v4191_v43  ;;  %4310 = vmatpush.msrb.mxu1 %v4195_v61 }
 0x3ae   :  { %v3801_v1 = vpop.f32.mrf.mxu2  ;;  %v3814_v9 = vpop.f32.mrf.mxu3 }
 0x3ba   :  { %v3825_v39 = vpop.f32.mrf.mxu0  ;;  %v3838_v5 = vpop.f32.mrf.mxu1 }
 0x3bb   :  { %v3826_v47 = vadd.f32 %v3825_v39, %v3813_v15 }
 0x3bd   :  { %v3839_v48 = vadd.f32 %v3838_v5, %v3826_v47 }
 0x3c2   :  { %v3827_v32 = vpop.f32.mrf.mxu0  ;;  %v3840_v44 = vpop.f32.mrf.mxu1 }
 0x3c3   :  { %v4208_v32 = vld [vmem:[%s17743_s8 + $0x88] sm:$0xff]  ;;  %v4209_v44 = vld [vmem:[%s17743_s8 + $0x90] sm:$0xff] }
 0x3c4   :  { %4267 = vmatpush.msrb.mxu2 %v4208_v32  ;;  %4287 = vmatpush.msrb.mxu3 %v4209_v44  ;;  %v10700_v32 = vld [vmem:[%s17744_s11 + $0x158] sm:$0xf0] }
 0x3c9   :  { %v3851_v13 = vpop.f32.mrf.mxu2  ;;  %v3864_v6 = vpop.f32.mrf.mxu3 }
 0x3ca   :  { %v3852_v22 = vadd.f32 %v3851_v13, %v3839_v48  ;;  %v4203_v48 = vld [vmem:[%s17743_s8 + $0x60] sm:$0xff]  ;;  %v4204_v13 = vld [vmem:[%s17743_s8 + $0x68] sm:$0xff] }
 0x3cb   :  { %4268 = vmatpush.msrb.mxu2 %v4203_v48  ;;  %4288 = vmatpush.msrb.mxu3 %v4204_v13  ;;  %v9340_v48 = vld [vmem:[%s17744_s11 + $0x210] sm:$0xf] }
 0x3cc   :  { %v15061_v46 = vadd.f32 %v3864_v6, %v3852_v22  ;;  %v4198_v22 = vld [vmem:[%s17743_s8 + $0x38] sm:$0xff] }
 0x3cd   :  { %4269 = vmatpush.msrb.mxu2 %v4198_v22  ;;  %v10724_v22 = vld [vmem:[%s17744_s11 + $0x218] sm:$0xf0] }
 0x3ce   :  { %v4055_v53 = vmul.f32 %v15061_v46, %v15061_v46  ;;  %9067 = vmatmul.msk.f32.vlgmr.msrb.gmra.mxu0 %vm1080_vm7, %v15061_v46 }
 0x3d0   :  { %9068 = vmatmul.msk.f32.vlgmr.msra.gmra.mxu1 %vm1080_vm7, %v4055_v53  ;;  %v4199_v53 = vld [vmem:[%s17743_s8 + $0x40] sm:$0xff] }
 0x3d1   :  { %v3853_v4 = vpop.f32.mrf.mxu2  ;;  %v3866_v7 = vpop.f32.mrf.mxu3  ;;  %4289 = vmatpush.msrb.mxu3 %v4199_v53 }
 0x3d2   :  { %v4193_v4 = vld [vmem:[%s17743_s8 + $0x10] sm:$0xff]  ;;  %v4194_v7 = vld [vmem:[%s17743_s8 + $0x18] sm:$0xff] }
 0x3d3   :  { %4270 = vmatpush.msrb.mxu2 %v4193_v4  ;;  %4290 = vmatpush.msrb.mxu3 %v4194_v7  ;;  %v9376_v4 = vld [vmem:[%s17744_s11 + $0x258] sm:$0xf]  ;;  %v10733_v7 = vld [vmem:[%s17744_s11 + $0x260] sm:$0xf0] }
 0x3d6   :  { %4135 = vmatmul.f32.vlgmr.msra.gmra.mxu0 %v4054_v34  ;;  %v9448_v34 = vld [vmem:[%s17744_s11 + $0x2e8] sm:$0xf] }
 0x3db   :  { %v3960_v24 = vpop.f32.mrf.mxu0 }
 0x3dc   :  { %v3980_v33 = vpop.f32.mrf.mxu1 }
 0x3dd   :  { %v3981_v54 = vadd.f32 %v3980_v33, %v3960_v24  ;;  %v10751_v24 = vld [vmem:[%s17744_s11 + $0x2f0] sm:$0xf0] }
 0x3e8   :  { %v4000_v50 = vpop.f32.mrf.mxu2 }
 0x3e9   :  { %v4001_v37 = vadd.f32 %v4000_v50, %v3981_v54  ;;  %v9449_v50 = vor.u32 %v10751_v24, %v9448_v34  ;;  %v9436_v54 = vld [vmem:[%s17744_s11 + $0x2d0] sm:$0xf]  ;;  %v10664_v24 = vld [vmem:[%s17744_s11 + $0x38] sm:$0xf0] }
 0x3ea   :  { %v9100_v34 = vld [vmem:[%s17744_s11 + $0x30] sm:$0xf] }
 0x3eb   :  { %5112 = vmatpush.bf16.msrb.mxu0 %v9449_v50  ;;  %v9232_v50 = vld [vmem:[%s17744_s11 + $0x138] sm:$0xf] }
 0x3fc   :  { %v4076_v56 = vpop.f32.mrf.mxu1 }
 0x408   :  { %v4096_v57 = vpop.f32.mrf.mxu2 }
 0x409   :  { %v4097_v60 = vadd.f32 %v4096_v57, %v4076_v56 }
 0x40e   :  { %v4020_v49 = vpop.f32.mrf.mxu3 }
 0x40f   :  { %v4021_v51 = vadd.f32 %v4020_v49, %v4001_v37  ;;  %v10748_v37 = vld [vmem:[%s17744_s11 + $0x2d8] sm:$0xf0] }
 0x416   :  { %v4116_v58 = vpop.f32.mrf.mxu3 }
 0x417   :  { %v4117_v63 = vadd.f32 %v4116_v58, %v4097_v60  ;;  %v10745_v58 = vld [vmem:[%s17744_s11 + $0x2c0] sm:$0xf0] }
 0x44b   :  { %v4040_v41 = vpop.f32.mrf.mxu0 }
 0x44c   :  { %v4041_v55 = vadd.f32 %v4040_v41, %v4021_v51  ;;  %v9160_v51 = vld [vmem:[%s17744_s11 + $0xa8] sm:$0xf]  ;;  %v9437_v41 = vor.u32 %v10748_v37, %v9436_v54  ;;  %v9341_v54 = vor.u32 %v10724_v22, %v9340_v48  ;;  %v9328_v37 = vld [vmem:[%s17744_s11 + $0x1f8] sm:$0xf] }
 0x44d   :  { %v4156_v45 = vpop.f32.mrf.mxu1 }
 0x44e   :  { %v4044_v10 = vsel %vm4043_vm8, %v4041_v55, 0.0  ;;  %v10679_v55 = vld [vmem:[%s17744_s11 + $0xb0] sm:$0xf0]  ;;  %5113 = vmatpush.bf16.msrb.mxu0 %v9437_v41  ;;  %v10721_v41 = vld [vmem:[%s17744_s11 + $0x200] sm:$0xf0] }
 0x44f   :  { %v4045_v59 = vrot.slane %v4044_v10, 4  ;;  %v9161_v57 = vor.u32 %v10679_v55, %v9160_v51  ;;  %v9377_v51 = vor.u32 %v10733_v7, %v9376_v4  ;;  %v9101_v55 = vor.u32 %v10664_v24, %v9100_v34  ;;  %v9088_v4 = vld [vmem:[%s17744_s11 + $0x18] sm:$0xf]  ;;  %v10661_v7 = vld [vmem:[%s17744_s11 + $0x20] sm:$0xf0] }
 0x450   :  { %v9089_v34 = vor.u32 %v10661_v7, %v9088_v4  ;;  %v10672_v24 = vld [vmem:[%s17744_s11 + $0x7c] sm:$0xf]  ;;  %v10711_v7 = vld [vmem:[%s17744_s11 + $0x1b4] sm:$0xf] }
 0x451   :  { %v4046_v62 = vadd.f32 %v4045_v59, %v4044_v10  ;;  %v9424_v10 = vld [vmem:[%s17744_s11 + $0x2b8] sm:$0xf]  ;;  %v9148_v59 = vld [vmem:[%s17744_s11 + $0x90] sm:$0xf]  ;;  %5073 = vmatpush.bf16.msra.mxu1 %v9161_v57  ;;  %v10730_v57 = vld [vmem:[%s17744_s11 + $0x248] sm:$0xf0] }
 0x453   :  { %v4047_v0 = vrot.slane %v4046_v62, 2  ;;  %v4136_v2 = vpop.f32.mrf.mxu0 }
 0x454   :  { %v4137_v3 = vadd.f32 %v4136_v2, %v4117_v63  ;;  %v9425_v63 = vor.u32 %v10745_v58, %v9424_v10  ;;  %v10726_v10 = vld [vmem:[%s17744_s11 + $0x22c] sm:$0xf]  ;;  %v9354_v58 = vld [vmem:[%s17744_s11 + $0x234] sm:$0xf0] }
 0x455   :  { %v4048_v8 = vadd.f32 %v4047_v0, %v4046_v62  ;;  %v10676_v62 = vld [vmem:[%s17744_s11 + $0x98] sm:$0xf0] }
 0x456   :  { %v4157_v29 = vadd.f32 %v4156_v45, %v4137_v3  ;;  %v9149_v0 = vor.u32 %v10676_v62, %v9148_v59  ;;  %v9412_v3 = vld [vmem:[%s17744_s11 + $0x2a0] sm:$0xf]  ;;  %v9136_v45 = vld [vmem:[%s17744_s11 + $0x78] sm:$0xf]  ;;  %5114 = vmatpush.bf16.msrb.mxu0 %v9425_v63  ;;  %v10694_v62 = vld [vmem:[%s17744_s11 + $0x128] sm:$0xf0]  ;;  %v9329_v63 = vor.u32 %v10721_v41, %v9328_v37 }
 0x457   :  { %v4049_v19 = vrot.slane %v4048_v8, 1  ;;  %v10723_v37 = vld [vmem:[%s17744_s11 + $0x214] sm:$0xf]  ;;  %v9342_v41 = vld [vmem:[%s17744_s11 + $0x21c] sm:$0xf0] }
 0x458   :  { %v4159_v52 = vsel %vm4043_vm8, %v4157_v29, 0.0  ;;  %v10673_v29 = vld [vmem:[%s17744_s11 + $0x80] sm:$0xf0]  ;;  %5074 = vmatpush.bf16.msra.mxu1 %v9149_v0 }
 0x459   :  { %v4160_v35 = vrot.slane %v4159_v52, 4  ;;  %v4050_v11 = vadd.f32 %v4049_v19, %v4048_v8  ;;  %v10742_v8 = vld [vmem:[%s17744_s11 + $0x2a8] sm:$0xf0]  ;;  %v9137_v14 = vor.u32 %v10673_v29, %v9136_v45  ;;  %v9400_v19 = vld [vmem:[%s17744_s11 + $0x288] sm:$0xf] }
 0x45a   :  { %v9413_v16 = vor.u32 %v10742_v8, %v9412_v3  ;;  %v9401_v43 = vor.u32 %v10739_v18, %v9400_v19  ;;  %v10718_v3 = vld [vmem:[%s17744_s11 + $0x1e8] sm:$0xf0]  ;;  %v9357_v8 = vor.u32 %v10726_v10, %v9354_v58  ;;  %v9208_v29 = vld [vmem:[%s17744_s11 + $0x108] sm:$0xf]  ;;  %v10688_v18 = vld [vmem:[%s17744_s11 + $0xf8] sm:$0xf0] }
 0x45b   :  { %v4161_v27 = vadd.f32 %v4160_v35, %v4159_v52  ;;  %v15108_v9 = vmul.f32 0.027777778, %v4050_v11  ;;  %v4171_v52 = vld [vmem:[%s17745_s9] sm:$0x1]  ;;  %v10703_v11 = vld [vmem:[%s17744_s11 + $0x170] sm:$0xf0] }
 0x45c   :  { %5075 = vmatpush.bf16.msra.mxu1 %v9137_v14  ;;  %5115 = vmatpush.bf16.msrb.mxu0 %v9413_v16  ;;  %v9304_v14 = vld [vmem:[%s17744_s11 + $0x1c8] sm:$0xf]  ;;  %v10715_v16 = vld [vmem:[%s17744_s11 + $0x1d0] sm:$0xf0] }
 0x45d   :  { %v4162_v31 = vrot.slane %v4161_v27, 2  ;;  %v4168_v5 = vmul.f32 %v15108_v9, %v15108_v9  ;;  %v9496_v58 = vld [vmem:[%s17744_s11 + $0x348] sm:$0xf] }
 0x45f   :  { %v4163_v1 = vadd.f32 %v4162_v31, %v4161_v27  ;;  %v9125_v27 = vor.u32 %v10670_v38, %v9124_v21  ;;  %v9352_v31 = vld [vmem:[%s17744_s11 + $0x228] sm:$0xf]  ;;  %v9305_v21 = vor.u32 %v10715_v16, %v9304_v14  ;;  %v9292_v38 = vld [vmem:[%s17744_s11 + $0x1b0] sm:$0xf]  ;;  %v10760_v14 = vld [vmem:[%s17744_s11 + $0x338] sm:$0xf0] }
 0x460   :  { %5116 = vmatpush.bf16.msrb.mxu0 %v9401_v43  ;;  %v10666_v16 = vld [vmem:[%s17744_s11 + $0x4c] sm:$0xf] }
 0x461   :  { %v4164_v42 = vrot.slane %v4163_v1, 1  ;;  %5076 = vmatpush.bf16.msra.mxu1 %v9125_v27  ;;  %v9184_v27 = vld [vmem:[%s17744_s11 + $0xd8] sm:$0xf] }
 0x463   :  { %v4165_v39 = vadd.f32 %v4164_v42, %v4163_v1  ;;  %v10727_v1 = vld [vmem:[%s17744_s11 + $0x230] sm:$0xf0]  ;;  %v10736_v42 = vld [vmem:[%s17744_s11 + $0x278] sm:$0xf0] }
 0x464   :  { %v9353_v44 = vor.u32 %v10727_v1, %v9352_v31  ;;  %v10682_v1 = vld [vmem:[%s17744_s11 + $0xc8] sm:$0xf0] }
 0x465   :  { %v4167_v36 = vmul.f32 0.027777778, %v4165_v39  ;;  %v9112_v39 = vld [vmem:[%s17744_s11 + $0x48] sm:$0xf] }
 0x467   :  { %v4169_v15 = vsub.f32 %v4167_v36, %v4168_v5  ;;  %v10667_v5 = vld [vmem:[%s17744_s11 + $0x50] sm:$0xf0] }
 0x468   :  { %v9113_v53 = vor.u32 %v10667_v5, %v9112_v39  ;;  %v9162_v39 = vld [vmem:[%s17744_s11 + $0xb4] sm:$0xf0]  ;;  %v9268_v5 = vld [vmem:[%s17744_s11 + $0x180] sm:$0xf] }
 0x469   :  { %v4170_v47 = vmax.f32 %v4169_v15, 0.0  ;;  %v9257_v15 = vor.u32 %v10703_v11, %v9256_v30  ;;  %v9280_v30 = vld [vmem:[%s17744_s11 + $0x198] sm:$0xf]  ;;  %v10709_v11 = vld [vmem:[%s17744_s11 + $0x1a0] sm:$0xf0] }
 0x46a   :  { %5077 = vmatpush.bf16.msra.mxu1 %v9113_v53 }
 0x46b   :  { %v4172_v6 = vadd.f32 1e-05, %v4170_v47  ;;  %v9244_v47 = vld [vmem:[%s17744_s11 + $0x150] sm:$0xf] }
 0x46d   :  { %10959 = vrsqrt.f32 %v4172_v6  ;;  %vm4179_vm10 = vweird.f32 %v4172_v6 }
 0x46e   :  { %5078 = vmatpush.bf16.msra.mxu1 %v9101_v55  ;;  %v9345_v55 = vor.u32 %v10723_v37, %v9342_v41  ;;  %v9186_v37 = vld [vmem:[%s17744_s11 + $0xe4] sm:$0xf0] }
 0x472   :  { %5079 = vmatpush.bf16.msra.mxu1 %v9089_v34  ;;  %v9294_v34 = vld [vmem:[%s17744_s11 + $0x1bc] sm:$0xf0] }
 0x473   :  { %v10960_v33 = vpop.eup %10959 }
 0x474   :  { %v4174_v49 = vmul.f32 %v10960_v33, %v4172_v6  ;;  %vm4180_vm9 = vweird.f32 %v10960_v33 }
 0x475   :  { %vm4181_vm11 = vmor %vm4179_vm10, %vm4180_vm9  ;;  %vm6861_vm9 = vcmask 64512  }
 0x476   :  { %v4175_v56 = vmul.f32 %v10960_v33, %v4174_v49  ;;  %v10697_v49 = vld [vmem:[%s17744_s11 + $0x140] sm:$0xf0] }
 0x477   :  { %v9233_v59 = vor.u32 %v10697_v49, %v9232_v50  ;;  %v10699_v49 = vld [vmem:[%s17744_s11 + $0x154] sm:$0xf] }
 0x478   :  { %v4176_v60 = vmul.f32 0.5, %v4175_v56  ;;  %v9364_v56 = vld [vmem:[%s17744_s11 + $0x240] sm:$0xf] }
 0x479   :  { %v9365_v0 = vor.u32 %v10730_v57, %v9364_v56  ;;  %v9076_v56 = vld [vmem:[%s17744_s11] sm:$0xf]  ;;  %v10658_v57 = vld [vmem:[%s17744_s11 + $0x8] sm:$0xf0] }
 0x47a   :  { %v4177_v2 = vsub.f32 1.5, %v4176_v60  ;;  %v9220_v60 = vld [vmem:[%s17744_s11 + $0x120] sm:$0xf]  ;;  %v9077_v10 = vor.u32 %v10658_v57, %v9076_v56  ;;  %v10681_v57 = vld [vmem:[%s17744_s11 + $0xc4] sm:$0xf] }
 0x47b   :  { %v9221_v45 = vor.u32 %v10694_v62, %v9220_v60  ;;  %v10669_v60 = vld [vmem:[%s17744_s11 + $0x64] sm:$0xf] }
 0x47c   :  { %v4178_v12 = vmul.f32 %v10960_v33, %v4177_v2  ;;  %v9316_v2 = vld [vmem:[%s17744_s11 + $0x1e0] sm:$0xf]  ;;  %5080 = vmatpush.bf16.msra.mxu1 %v9077_v10  ;;  %v9174_v10 = vld [vmem:[%s17744_s11 + $0xcc] sm:$0xf0] }
 0x47e   :  { %v4182_v35 = vsel %vm4181_vm11, %v10960_v33, %v4178_v12  ;;  %v9245_v33 = vor.u32 %v10700_v32, %v9244_v47  ;;  %v9317_v12 = vor.u32 %v10718_v3, %v9316_v2  ;;  %v9258_v47 = vld [vmem:[%s17744_s11 + $0x174] sm:$0xf0]  ;;  %v9234_v2 = vld [vmem:[%s17744_s11 + $0x144] sm:$0xf0] }
 0x47f   :  { %v4183_v25 = vmul.f32 %v4182_v35, %v4171_v52  ;;  %v10691_v52 = vld [vmem:[%s17744_s11 + $0x110] sm:$0xf0]  ;;  %v9196_v35 = vld [vmem:[%s17744_s11 + $0xf0] sm:$0xf] }
 0x480   :  { %v9209_v19 = vor.u32 %v10691_v52, %v9208_v29  ;;  %v9330_v29 = vld [vmem:[%s17744_s11 + $0x204] sm:$0xf0] }
 0x481   :  { %v4185_v40 = vmul.f32 %v4183_v25, %v15108_v9  ;;  %v9388_v9 = vld [vmem:[%s17744_s11 + $0x270] sm:$0xf] }
 0x482   :  { %v9389_v13 = vor.u32 %v10736_v42, %v9388_v9  ;;  %v9281_v9 = vor.u32 %v10709_v11, %v9280_v30  ;;  %v10678_v42 = vld [vmem:[%s17744_s11 + $0xac] sm:$0xf]  ;;  %v10757_v30 = vld [vmem:[%s17744_s11 + $0x320] sm:$0xf0]  ;;  %v10663_v11 = vld [vmem:[%s17744_s11 + $0x34] sm:$0xf] }
 0x483   :  { %v4186_v61 = vsub.f32 %v4184_v26, %v4185_v40  ;;  %v9197_v26 = vor.u32 %v10688_v18, %v9196_v35  ;;  %v10685_v40 = vld [vmem:[%s17744_s11 + $0xe0] sm:$0xf0]  ;;  %v9114_v35 = vld [vmem:[%s17744_s11 + $0x54] sm:$0xf0] }
 0x484   :  { %5117 = vmatpush.bf16.msrb.mxu0 %v9389_v13  ;;  %v9185_v31 = vor.u32 %v10685_v40, %v9184_v27  ;;  %v10675_v13 = vld [vmem:[%s17744_s11 + $0x94] sm:$0xf]  ;;  %v10693_v18 = vld [vmem:[%s17744_s11 + $0x124] sm:$0xf]  ;;  %v9318_v27 = vld [vmem:[%s17744_s11 + $0x1ec] sm:$0xf0] }
 0x485   :  { %v4188_v36 = vperm.slane %v4186_v61, 0  ;;  %v9172_v61 = vld [vmem:[%s17744_s11 + $0xc0] sm:$0xf] }
 0x486   :  { %v9173_v32 = vor.u32 %v10682_v1, %v9172_v61  ;;  %v9102_v61 = vld [vmem:[%s17744_s11 + $0x3c] sm:$0xf0]  ;;  %v10690_v1 = vld [vmem:[%s17744_s11 + $0x10c] sm:$0xf] }
 0x487   :  { %v4190_v6 = vsel %vm1014_vm6, %v4183_v25, %v4188_v36  ;;  %v10712_v25 = vld [vmem:[%s17744_s11 + $0x1b8] sm:$0xf0]  ;;  %v10706_v36 = vld [vmem:[%s17744_s11 + $0x188] sm:$0xf0] }
 0x488   :  { %9069 = vmatmul.msk.f32.vlgmr.msra.gmra.mxu2 %vm4211_vm12, %v4190_v6  ;;  %9070 = vmatmul.msk.f32.vlgmr.msra.gmra.mxu3 %vm4211_vm12, %v4190_v6  ;;  %v9293_v43 = vor.u32 %v10712_v25, %v9292_v38  ;;  %v9269_v48 = vor.u32 %v10706_v36, %v9268_v5  ;;  %v9117_v38 = vor.u32 %v10666_v16, %v9114_v35  ;;  %v10714_v5 = vld [vmem:[%s17744_s11 + $0x1cc] sm:$0xf]  ;;  %v9306_v36 = vld [vmem:[%s17744_s11 + $0x1d4] sm:$0xf0] }
 0x489   :  { %9073 = vmatmul.msk.f32.vlgmr.msrb.gmra.mxu1 %vm4211_vm12, %v4190_v6  ;;  %5086 = vmatpush.bf16.msra.mxu2 %v9257_v15  ;;  %v10702_v15 = vld [vmem:[%s17744_s11 + $0x16c] sm:$0xf] }
 0x48a   :  { %5099 = vmatpush.bf16.msra.mxu3 %v9353_v44  ;;  %5118 = vmatpush.bf16.msrb.mxu0 %v9377_v51  ;;  %v9165_v44 = vor.u32 %v10678_v42, %v9162_v39  ;;  %v9261_v22 = vor.u32 %v10702_v15, %v9258_v47  ;;  %v9105_v42 = vor.u32 %v10663_v11, %v9102_v61  ;;  %v9460_v47 = vld [vmem:[%s17744_s11 + $0x300] sm:$0xf]  ;;  %v10747_v61 = vld [vmem:[%s17744_s11 + $0x2d4] sm:$0xf] }
 0x48b   :  { %v9309_v15 = vor.u32 %v10714_v5, %v9306_v36 }
 0x48d   :  { %5087 = vmatpush.bf16.msra.mxu2 %v9245_v33  ;;  %v9138_v33 = vld [vmem:[%s17744_s11 + $0x84] sm:$0xf0] }
 0x48e   :  { %5100 = vmatpush.bf16.msra.mxu3 %v9341_v54  ;;  %5119 = vmatpush.bf16.msrb.mxu0 %v9365_v0  ;;  %v9141_v50 = vor.u32 %v10672_v24, %v9138_v33  ;;  %v9246_v54 = vld [vmem:[%s17744_s11 + $0x15c] sm:$0xf0]  ;;  %v10696_v0 = vld [vmem:[%s17744_s11 + $0x13c] sm:$0xf]  ;;  %v9297_v24 = vor.u32 %v10711_v7, %v9294_v34  ;;  %v10657_v33 = vld [vmem:[%s17744_s11 + $0x4] sm:$0xf] }
 0x48f   :  { %v9249_v51 = vor.u32 %v10699_v49, %v9246_v54  ;;  %v10684_v54 = vld [vmem:[%s17744_s11 + $0xdc] sm:$0xf]  ;;  %v9168_v7 = vld [vmem:[%s17744_s11 + $0xb0] sm:$0xf] }
 0x490   :  { %9071 = vmatmul.msk.f32.vlgmr.msrb.gmra.mxu2 %vm4211_vm12, %v4190_v6  ;;  %9072 = vmatmul.msk.f32.vlgmr.msrb.gmra.mxu3 %vm4211_vm12, %v4190_v6  ;;  %v9150_v6 = vld [vmem:[%s17744_s11 + $0x9c] sm:$0xf0]  ;;  %v9189_v41 = vor.u32 %v10684_v54, %v9186_v37  ;;  %v10680_v34 = vld [vmem:[%s17744_s11 + $0xb8] sm:$0xf0]  ;;  %v9474_v37 = vld [vmem:[%s17744_s11 + $0x324] sm:$0xf0] }
 0x491   :  { %5088 = vmatpush.bf16.msra.mxu2 %v9233_v59  ;;  %v9153_v53 = vor.u32 %v10675_v13, %v9150_v6  ;;  %v10763_v59 = vld [vmem:[%s17744_s11 + $0x350] sm:$0xf0]  ;;  %v9090_v13 = vld [vmem:[%s17744_s11 + $0x24] sm:$0xf0]  ;;  %v10756_v54 = vld [vmem:[%s17744_s11 + $0x31c] sm:$0xf] }
 0x492   :  { %5101 = vmatpush.bf16.msra.mxu3 %v9329_v63  ;;  %5164 = vmatpush.bf16.msra.mxu0 %v9357_v8  ;;  %v9497_v62 = vor.u32 %v10763_v59, %v9496_v58  ;;  %v9126_v63 = vld [vmem:[%s17744_s11 + $0x6c] sm:$0xf0]  ;;  %v9237_v8 = vor.u32 %v10696_v0, %v9234_v2  ;;  %v10687_v6 = vld [vmem:[%s17744_s11 + $0xf4] sm:$0xf]  ;;  %v10705_v58 = vld [vmem:[%s17744_s11 + $0x184] sm:$0xf]  ;;  %v9177_v59 = vor.u32 %v10681_v57, %v9174_v10 }
 0x493   :  { %v9129_v3 = vor.u32 %v10669_v60, %v9126_v63  ;;  %v9270_v60 = vld [vmem:[%s17744_s11 + $0x18c] sm:$0xf0]  ;;  %v9169_v10 = vor.u32 %v10680_v34, %v9168_v7  ;;  %v10729_v34 = vld [vmem:[%s17744_s11 + $0x244] sm:$0xf] }
 0x494   :  { %5129 = vmatpush.bf16.msrb.mxu1 %v9497_v62  ;;  %v9273_v62 = vor.u32 %v10705_v58, %v9270_v60  ;;  %v9156_v60 = vld [vmem:[%s17744_s11 + $0x98] sm:$0xf] }
 0x495   :  { %5089 = vmatpush.bf16.msra.mxu2 %v9221_v45  ;;  %v10720_v45 = vld [vmem:[%s17744_s11 + $0x1fc] sm:$0xf] }
 0x496   :  { %5102 = vmatpush.bf16.msra.mxu3 %v9317_v12  ;;  %5165 = vmatpush.bf16.msra.mxu0 %v9345_v55  ;;  %v9333_v52 = vor.u32 %v10720_v45, %v9330_v29  ;;  %v9484_v12 = vld [vmem:[%s17744_s11 + $0x330] sm:$0xf]  ;;  %v9282_v55 = vld [vmem:[%s17744_s11 + $0x1a4] sm:$0xf0] }
 0x499   :  { %5090 = vmatpush.bf16.msra.mxu2 %v9209_v19  ;;  %v9485_v19 = vor.u32 %v10760_v14, %v9484_v12 }
 0x49a   :  { %5103 = vmatpush.bf16.msra.mxu3 %v9305_v21  ;;  %5166 = vmatpush.bf16.msra.mxu0 %v9333_v52  ;;  %v9222_v21 = vld [vmem:[%s17744_s11 + $0x12c] sm:$0xf0] }
 0x49b   :  { %v9225_v25 = vor.u32 %v10693_v18, %v9222_v21  ;;  %5130 = vmatpush.bf16.msrb.mxu1 %v9485_v19  ;;  %v10750_v19 = vld [vmem:[%s17744_s11 + $0x2ec] sm:$0xf]  ;;  %v9450_v18 = vld [vmem:[%s17744_s11 + $0x2f4] sm:$0xf0] }
 0x49c   :  { %v10762_v21 = vld [vmem:[%s17744_s11 + $0x34c] sm:$0xf] }
 0x49d   :  { %5091 = vmatpush.bf16.msra.mxu2 %v9197_v26  ;;  %v10717_v26 = vld [vmem:[%s17744_s11 + $0x1e4] sm:$0xf] }
 0x49e   :  { %5104 = vmatpush.bf16.msra.mxu3 %v9293_v43  ;;  %v9321_v40 = vor.u32 %v10717_v26, %v9318_v27  ;;  %v9472_v43 = vld [vmem:[%s17744_s11 + $0x318] sm:$0xf] }
 0x4a0   :  { %5167 = vmatpush.bf16.msra.mxu0 %v9321_v40 }
 0x4a1   :  { %5092 = vmatpush.bf16.msra.mxu2 %v9185_v31  ;;  %v9473_v31 = vor.u32 %v10757_v30, %v9472_v43 }
 0x4a2   :  { %5105 = vmatpush.bf16.msra.mxu3 %v9281_v9  ;;  %v9210_v9 = vld [vmem:[%s17744_s11 + $0x114] sm:$0xf0] }
 0x4a3   :  { %v9213_v39 = vor.u32 %v10690_v1, %v9210_v9  ;;  %5131 = vmatpush.bf16.msrb.mxu1 %v9473_v31  ;;  %v9453_v31 = vor.u32 %v10750_v19, %v9450_v18  ;;  %v9438_v1 = vld [vmem:[%s17744_s11 + $0x2dc] sm:$0xf0]  ;;  %v9456_v18 = vld [vmem:[%s17744_s11 + $0x2f0] sm:$0xf] }
 0x4a4   :  { %5168 = vmatpush.bf16.msra.mxu0 %v9309_v15  ;;  %v9486_v15 = vld [vmem:[%s17744_s11 + $0x33c] sm:$0xf0] }
 0x4a5   :  { %5093 = vmatpush.bf16.msra.mxu2 %v9173_v32  ;;  %v10754_v32 = vld [vmem:[%s17744_s11 + $0x308] sm:$0xf0] }
 0x4a6   :  { %5106 = vmatpush.bf16.msra.mxu3 %v9269_v48  ;;  %v9461_v48 = vor.u32 %v10754_v32, %v9460_v47 }
 0x4a8   :  { %5132 = vmatpush.bf16.msrb.mxu1 %v9461_v48  ;;  %5169 = vmatpush.bf16.msra.mxu0 %v9297_v24 }
 0x4a9   :  { %5138 = vmatpush.bf16.msrb.mxu2 %v9165_v44  ;;  %v10660_v44 = vld [vmem:[%s17744_s11 + $0x1c] sm:$0xf] }
 0x4aa   :  { %5151 = vmatpush.bf16.msrb.mxu3 %v9261_v22  ;;  %v9198_v22 = vld [vmem:[%s17744_s11 + $0xfc] sm:$0xf0] }
 0x4ab   :  { %v9201_v4 = vor.u32 %v10687_v6, %v9198_v22  ;;  %v10744_v6 = vld [vmem:[%s17744_s11 + $0x2bc] sm:$0xf]  ;;  %v9426_v22 = vld [vmem:[%s17744_s11 + $0x2c4] sm:$0xf0] }
 0x4ad   :  { %5139 = vmatpush.bf16.msrb.mxu2 %v9153_v53  ;;  %v9093_v53 = vor.u32 %v10660_v44, %v9090_v13 }
 0x4ae   :  { %5152 = vmatpush.bf16.msrb.mxu3 %v9249_v51  ;;  %v10708_v51 = vld [vmem:[%s17744_s11 + $0x19c] sm:$0xf] }
 0x4af   :  { %v9285_v56 = vor.u32 %v10708_v51, %v9282_v55  ;;  %v10741_v55 = vld [vmem:[%s17744_s11 + $0x2a4] sm:$0xf] }
 0x4b1   :  { %5140 = vmatpush.bf16.msrb.mxu2 %v9141_v50  ;;  %v9078_v50 = vld [vmem:[%s17744_s11 + $0xc] sm:$0xf0]  ;;  %5170 = vmatpush.bf16.msra.mxu0 %v9285_v56 }
 0x4b2   :  { %5153 = vmatpush.bf16.msrb.mxu3 %v9237_v8  ;;  %v9081_v49 = vor.u32 %v10657_v33, %v9078_v50  ;;  %v9264_v33 = vld [vmem:[%s17744_s11 + $0x170] sm:$0xf]  ;;  %v10704_v50 = vld [vmem:[%s17744_s11 + $0x178] sm:$0xf0] }
 0x4b3   :  { %v9265_v58 = vor.u32 %v10704_v50, %v9264_v33  ;;  %v9366_v50 = vld [vmem:[%s17744_s11 + $0x24c] sm:$0xf0] }
 0x4b5   :  { %5141 = vmatpush.bf16.msrb.mxu2 %v9129_v3  ;;  %5171 = vmatpush.bf16.msra.mxu0 %v9273_v62 }
 0x4b6   :  { %5154 = vmatpush.bf16.msrb.mxu3 %v9225_v25 }
 0x4b9   :  { %5142 = vmatpush.bf16.msrb.mxu2 %v9117_v38 }
 0x4ba   :  { %5155 = vmatpush.bf16.msrb.mxu3 %v9213_v39 }
 0x4bd   :  { %5143 = vmatpush.bf16.msrb.mxu2 %v9105_v42 }
 0x4be   :  { %5156 = vmatpush.bf16.msrb.mxu3 %v9201_v4 }
 0x4c1   :  { %5144 = vmatpush.bf16.msrb.mxu2 %v9093_v53 }
 0x4c2   :  { %5157 = vmatpush.bf16.msrb.mxu3 %v9189_v41  ;;  %v9429_v41 = vor.u32 %v10744_v6, %v9426_v22  ;;  %v10668_v6 = vld [vmem:[%s17744_s11 + $0x58] sm:$0xf0]  ;;  %v9216_v22 = vld [vmem:[%s17744_s11 + $0x110] sm:$0xf] }
 0x4c5   :  { %5145 = vmatpush.bf16.msrb.mxu2 %v9081_v49 }
 0x4c6   :  { %5158 = vmatpush.bf16.msrb.mxu3 %v9177_v59  ;;  %v9414_v59 = vld [vmem:[%s17744_s11 + $0x2ac] sm:$0xf0] }
 0x506   :  { %v4312_v8 = vpop.f32.mrf.mxu1 }
 0x507   :  { %v4319_v35 = vperm.slane %v4312_v8, 0  ;;  %v4329_v44 = vperm.slane %v4312_v8, 1  ;;  %v10753_v8 = vld [vmem:[%s17744_s11 + $0x304] sm:$0xf] }
 0x509   :  { %v4324_v30 = vmul.f32 %v4319_v35, %v15061_v46  ;;  %v10759_v46 = vld [vmem:[%s17744_s11 + $0x334] sm:$0xf]  ;;  %v9144_v35 = vld [vmem:[%s17744_s11 + $0x80] sm:$0xf] }
 0x50b   :  { %v4232_v63 = vpop.f32.mrf.mxu2  ;;  %v4252_v0 = vpop.f32.mrf.mxu3  ;;  %v4334_v53 = vadd.f32 %v4329_v44, %v4324_v30 }
 0x50c   :  { %v4315_v2 = vperm.slane %v4232_v63, 0  ;;  %v4316_v3 = vperm.slane %v4252_v0, 0  ;;  %v4325_v29 = vperm.slane %v4232_v63, 1  ;;  %v4326_v12 = vperm.slane %v4252_v0, 1  ;;  %v10677_v0 = vld [vmem:[%s17744_s11 + $0xa0] sm:$0xf0] }
 0x50d   :  { %v4339_v56 = vmul.f32 0.2, %v4334_v53  ;;  %v9477_v63 = vor.u32 %v10756_v54, %v9474_v37  ;;  %v10665_v54 = vld [vmem:[%s17744_s11 + $0x40] sm:$0xf0] }
 0x50e   :  { %v4320_v45 = vmul.f32 %v4315_v2, %v14032_v23  ;;  %v4321_v52 = vmul.f32 %v4316_v3, %v14325_v20  ;;  %v9498_v20 = vld [vmem:[%s17744_s11 + $0x354] sm:$0xf0]  ;;  %v10701_v3 = vld [vmem:[%s17744_s11 + $0x160] sm:$0xf0] }
 0x50f   :  { %v9501_v9 = vor.u32 %v10762_v21, %v9498_v20  ;;  %v9252_v2 = vld [vmem:[%s17744_s11 + $0x158] sm:$0xf]  ;;  %v10752_v21 = vld [vmem:[%s17744_s11 + $0x2f8] sm:$0xf0]  ;;  %v9240_v20 = vld [vmem:[%s17744_s11 + $0x140] sm:$0xf] }
 0x510   :  { %v4330_v14 = vadd.f32 %v4325_v29, %v4320_v45  ;;  %v4331_v16 = vadd.f32 %v4326_v12, %v4321_v52  ;;  %v9462_v45 = vld [vmem:[%s17744_s11 + $0x30c] sm:$0xf0]  ;;  %v9417_v29 = vor.u32 %v10741_v55, %v9414_v59  ;;  %v10738_v52 = vld [vmem:[%s17744_s11 + $0x28c] sm:$0xf]  ;;  %v9402_v12 = vld [vmem:[%s17744_s11 + $0x294] sm:$0xf0]  ;;  %v9253_v19 = vor.u32 %v10701_v3, %v9252_v2 }
 0x511   :  { %v9360_v55 = vld [vmem:[%s17744_s11 + $0x230] sm:$0xf]  ;;  %v9369_v59 = vor.u32 %v10729_v34, %v9366_v50  ;;  %v10662_v2 = vld [vmem:[%s17744_s11 + $0x28] sm:$0xf0] }
 0x512   :  { %v4335_v23 = vmul.f32 0.2, %v4330_v14  ;;  %v4336_v38 = vmul.f32 0.2, %v4331_v16  ;;  %v5281_v50 = vld [vmem:[%s17747_s12 + $0x68] sm:$0xff] }
 0x513   :  { %v4272_v25 = vpop.f32.mrf.mxu2  ;;  %v4292_v26 = vpop.f32.mrf.mxu3 }
 0x514   :  { %v4340_v27 = vmax.f32 %v4330_v14, %v4335_v23  ;;  %v4341_v40 = vmax.f32 %v4331_v16, %v4336_v38  ;;  %v4317_v43 = vperm.slane %v4272_v25, 0  ;;  %v4318_v11 = vperm.slane %v4292_v26, 0  ;;  %v10674_v38 = vld [vmem:[%s17744_s11 + $0x88] sm:$0xf0] }
 0x515   :  { %v4327_v36 = vperm.slane %v4272_v25, 1  ;;  %v4328_v32 = vperm.slane %v4292_v26, 1  ;;  %v4344_v14 = vmax.f32 %v4334_v53, %v4339_v56  ;;  %v9157_v16 = vor.u32 %v10677_v0, %v9156_v60  ;;  %v10698_v25 = vld [vmem:[%s17744_s11 + $0x148] sm:$0xf0]  ;;  %v9432_v53 = vld [vmem:[%s17744_s11 + $0x2c0] sm:$0xf] }
 0x516   :  { %v15530_v42 = vpack.c.bf16 %v4340_v27, %v4340_v27  ;;  %v15532_v39 = vpack.c.bf16 %v4341_v40, %v4341_v40  ;;  %v4322_v5 = vmul.f32 %v4317_v43, %v14960_v17  ;;  %v4323_v47 = vmul.f32 %v4318_v11, %v15028_v28  ;;  %v10735_v40 = vld [vmem:[%s17744_s11 + $0x274] sm:$0xf]  ;;  %v9390_v43 = vld [vmem:[%s17744_s11 + $0x27c] sm:$0xf0]  ;;  %v10728_v56 = vld [vmem:[%s17744_s11 + $0x238] sm:$0xf0] }
 0x517   :  { %v9441_v17 = vor.u32 %v10747_v61, %v9438_v1  ;;  %v9489_v28 = vor.u32 %v10759_v46, %v9486_v15  ;;  %v9465_v23 = vor.u32 %v10753_v8, %v9462_v45  ;;  %v9405_v26 = vor.u32 %v10738_v52, %v9402_v12  ;;  %v9132_v61 = vld [vmem:[%s17744_s11 + $0x68] sm:$0xf]  ;;  %v9444_v1 = vld [vmem:[%s17744_s11 + $0x2d8] sm:$0xf]  ;;  %v10695_v46 = vld [vmem:[%s17744_s11 + $0x130] sm:$0xf0] }
 0x518   :  { %v4332_v48 = vadd.f32 %v4327_v36, %v4322_v5  ;;  %5081 = vmatmul.bf16.vlgmr.msra.gmra.mxu1 %v15530_v42  ;;  %5094 = vmatmul.bf16.vlgmr.msra.gmra.mxu2 %v15532_v39  ;;  %v4333_v13 = vadd.f32 %v4328_v32, %v4323_v47  ;;  %v9457_v27 = vor.u32 %v10752_v21, %v9456_v18  ;;  %v10671_v5 = vld [vmem:[%s17744_s11 + $0x70] sm:$0xf0]  ;;  %v9228_v36 = vld [vmem:[%s17744_s11 + $0x128] sm:$0xf]  ;;  %v9096_v0 = vld [vmem:[%s17744_s11 + $0x20] sm:$0xf] }
 0x519   :  { %5177 = vmatpush.bf16.msra.mxu1 %v9453_v31  ;;  %5194 = vmatpush.bf16.msra.mxu2 %v9501_v9  ;;  %v15628_v30 = vpack.c.bf16 %v4344_v14, %v4344_v14  ;;  %v9145_v11 = vor.u32 %v10674_v38, %v9144_v35  ;;  %v9241_v31 = vor.u32 %v10698_v25, %v9240_v20  ;;  %v10749_v9 = vld [vmem:[%s17744_s11 + $0x2e0] sm:$0xf0]  ;;  %v9192_v45 = vld [vmem:[%s17744_s11 + $0xe0] sm:$0xf]  ;;  %v9348_v52 = vld [vmem:[%s17744_s11 + $0x218] sm:$0xf] }
 0x51a   :  { %v4337_v4 = vmul.f32 0.2, %v4332_v48  ;;  %v4338_v24 = vmul.f32 0.2, %v4333_v13  ;;  %v9393_v15 = vor.u32 %v10735_v40, %v9390_v43  ;;  %v9445_v47 = vor.u32 %v10749_v9, %v9444_v1  ;;  %v10725_v12 = vld [vmem:[%s17744_s11 + $0x220] sm:$0xf0] }
 0x51b   :  { %v9133_v32 = vor.u32 %v10671_v5, %v9132_v61  ;;  %v9229_v44 = vor.u32 %v10695_v46, %v9228_v36  ;;  %v9361_v3 = vor.u32 %v10728_v56, %v9360_v55  ;;  %v9408_v14 = vld [vmem:[%s17744_s11 + $0x290] sm:$0xf]  ;;  %v9084_v18 = vld [vmem:[%s17744_s11 + $0x8] sm:$0xf]  ;;  %v10659_v21 = vld [vmem:[%s17744_s11 + $0x10] sm:$0xf0] }
 0x51c   :  { %v4342_v49 = vmax.f32 %v4332_v48, %v4337_v4  ;;  %v4343_v51 = vmax.f32 %v4333_v13, %v4338_v24  ;;  %v10732_v48 = vld [vmem:[%s17744_s11 + $0x25c] sm:$0xf]  ;;  %v9378_v13 = vld [vmem:[%s17744_s11 + $0x264] sm:$0xf0]  ;;  %v10746_v4 = vld [vmem:[%s17744_s11 + $0x2c8] sm:$0xf0]  ;;  %v9085_v61 = vor.u32 %v10659_v21, %v9084_v18 }
 0x51d   :  { %5178 = vmatpush.bf16.msra.mxu1 %v9441_v17  ;;  %5195 = vmatpush.bf16.msra.mxu2 %v9489_v28  ;;  %v9120_v17 = vld [vmem:[%s17744_s11 + $0x50] sm:$0xf]  ;;  %v10692_v28 = vld [vmem:[%s17744_s11 + $0x118] sm:$0xf0]  ;;  %v9381_v7 = vor.u32 %v10732_v48, %v9378_v13  ;;  %v9433_v37 = vor.u32 %v10746_v4, %v9432_v53  ;;  %v9180_v20 = vld [vmem:[%s17744_s11 + $0xc8] sm:$0xf] }
 0x51e   :  { %v15571_v57 = vpack.c.bf16 %v4342_v49, %v4342_v49  ;;  %v15579_v62 = vpack.c.bf16 %v4343_v51, %v4343_v51  ;;  %v9121_v24 = vor.u32 %v10668_v6, %v9120_v17  ;;  %v9217_v33 = vor.u32 %v10692_v28, %v9216_v22  ;;  %v9108_v49 = vld [vmem:[%s17744_s11 + $0x38] sm:$0xf]  ;;  %v10683_v25 = vld [vmem:[%s17744_s11 + $0xd0] sm:$0xf0]  ;;  %v10737_v43 = vld [vmem:[%s17744_s11 + $0x280] sm:$0xf0] }
 0x51f   :  { %v9204_v51 = vld [vmem:[%s17744_s11 + $0xf8] sm:$0xf]  ;;  %v9109_v60 = vor.u32 %v10665_v54, %v9108_v49  ;;  %v9181_v1 = vor.u32 %v10683_v25, %v9180_v20  ;;  %v9324_v36 = vld [vmem:[%s17744_s11 + $0x1e8] sm:$0xf]  ;;  %v10719_v46 = vld [vmem:[%s17744_s11 + $0x1f0] sm:$0xf0] }
 0x520   :  { %5107 = vmatmul.bf16.vlgmr.msra.gmra.mxu3 %v15571_v57  ;;  %5120 = vmatmul.bf16.vlgmr.msrb.gmra.mxu0 %v15579_v62  ;;  %v9396_v40 = vld [vmem:[%s17744_s11 + $0x278] sm:$0xf]  ;;  %v10761_v48 = vld [vmem:[%s17744_s11 + $0x340] sm:$0xf0]  ;;  %v9325_v17 = vor.u32 %v10719_v46, %v9324_v36  ;;  %v9312_v22 = vld [vmem:[%s17744_s11 + $0x1d0] sm:$0xf] }
 0x521   :  { %5179 = vmatpush.bf16.msra.mxu1 %v9429_v41  ;;  %5203 = vmatpush.bf16.msra.mxu3 %v9169_v10  ;;  %v10689_v41 = vld [vmem:[%s17744_s11 + $0x100] sm:$0xf0]  ;;  %v9420_v10 = vld [vmem:[%s17744_s11 + $0x2a8] sm:$0xf]  ;;  %v9397_v5 = vor.u32 %v10737_v43, %v9396_v40  ;;  %v5283_v13 = vld [vmem:[%s17747_s12 + $0x78] sm:$0xff] }
 0x522   :  { %5216 = vmatpush.bf16.msrb.mxu0 %v9265_v58  ;;  %5196 = vmatpush.bf16.msra.mxu2 %v9477_v63  ;;  %v10743_v58 = vld [vmem:[%s17744_s11 + $0x2b0] sm:$0xf0]  ;;  %v9205_v63 = vor.u32 %v10689_v41, %v9204_v51  ;;  %v10716_v53 = vld [vmem:[%s17744_s11 + $0x1d8] sm:$0xf0]  ;;  %v9372_v4 = vld [vmem:[%s17744_s11 + $0x248] sm:$0xf] }
 0x523   :  { %v9421_v8 = vor.u32 %v10743_v58, %v9420_v10  ;;  %v5282_v28 = vld [vmem:[%s17747_s12 + $0x70] sm:$0xff]  ;;  %v9313_v49 = vor.u32 %v10716_v53, %v9312_v22  ;;  %v9468_v41 = vld [vmem:[%s17744_s11 + $0x308] sm:$0xf]  ;;  %v5279_v56 = vld [vmem:[%s17747_s12 + $0x58] sm:$0xff] }
 0x524   :  { %v10755_v55 = vld [vmem:[%s17744_s11 + $0x310] sm:$0xf0]  ;;  %v5268_v18 = vld [vmem:[%s17747_s12] sm:$0xff]  ;;  %v5297_v21 = vld [vmem:[%s17747_s12 + $0xe8] sm:$0xff] }
 0x525   :  { %5180 = vmatpush.bf16.msra.mxu1 %v9417_v29  ;;  %5204 = vmatpush.bf16.msra.mxu3 %v9157_v16  ;;  %v10686_v29 = vld [vmem:[%s17744_s11 + $0xe8] sm:$0xf0]  ;;  %v10740_v16 = vld [vmem:[%s17744_s11 + $0x298] sm:$0xf0]  ;;  %v5278_v58 = vld [vmem:[%s17747_s12 + $0x50] sm:$0xff] }
 0x526   :  { %5217 = vmatpush.bf16.msrb.mxu0 %v9253_v19  ;;  %5197 = vmatpush.bf16.msra.mxu2 %v9465_v23  ;;  %v9097_v19 = vor.u32 %v10662_v2, %v9096_v0  ;;  %v9193_v35 = vor.u32 %v10686_v29, %v9192_v45  ;;  %v9349_v23 = vor.u32 %v10725_v12, %v9348_v52  ;;  %v5277_v0 = vld [vmem:[%s17747_s12 + $0x48] sm:$0xff]  ;;  %v10707_v45 = vld [vmem:[%s17744_s11 + $0x190] sm:$0xf0]  ;;  %v5284_v36 = vld [vmem:[%s17747_s12 + $0x80] sm:$0xff] }
 0x527   :  { %v9409_v38 = vor.u32 %v10740_v16, %v9408_v14  ;;  %v5274_v52 = vld [vmem:[%s17747_s12 + $0x30] sm:$0xff]  ;;  %v5273_v12 = vld [vmem:[%s17747_s12 + $0x28] sm:$0xff]  ;;  %v5299_v16 = vld [vmem:[%s17747_s12 + $0xf8] sm:$0xff] }
 0x528   :  { %9506 = vmatmul.msk.bf16.vlgmr.msrb.gmra.mxu1 %vm1080_vm7, %v15628_v30  ;;  %5146 = vmatmul.bf16.vlgmr.msrb.gmra.mxu2 %v15530_v42  ;;  %v5270_v14 = vld [vmem:[%s17747_s12 + $0x10] sm:$0xff]  ;;  %v5293_v25 = vld [vmem:[%s17747_s12 + $0xc8] sm:$0xff] }
 0x529   :  { %5181 = vmatpush.bf16.msra.mxu1 %v9405_v26  ;;  %5205 = vmatpush.bf16.msra.mxu3 %v9145_v11  ;;  %v9336_v26 = vld [vmem:[%s17744_s11 + $0x200] sm:$0xf]  ;;  %v9504_v11 = vld [vmem:[%s17744_s11 + $0x350] sm:$0xf]  ;;  %v5289_v43 = vld [vmem:[%s17747_s12 + $0xa8] sm:$0xff] }
 0x52a   :  { %5242 = vmatpush.bf16.msrb.mxu2 %v9457_v27  ;;  %5218 = vmatpush.bf16.msrb.mxu0 %v9241_v31  ;;  %v10722_v27 = vld [vmem:[%s17744_s11 + $0x208] sm:$0xf0]  ;;  %v10764_v31 = vld [vmem:[%s17744_s11 + $0x358] sm:$0xf0]  ;;  %v5294_v20 = vld [vmem:[%s17747_s12 + $0xd0] sm:$0xff] }
 0x52b   :  { %v9337_v9 = vor.u32 %v10722_v27, %v9336_v26  ;;  %v5292_v26 = vld [vmem:[%s17747_s12 + $0xc0] sm:$0xff]  ;;  %v5291_v27 = vld [vmem:[%s17747_s12 + $0xb8] sm:$0xff]  ;;  %v5290_v40 = vld [vmem:[%s17747_s12 + $0xb0] sm:$0xff] }
 0x52d   :  { %5182 = vmatpush.bf16.msra.mxu1 %v9393_v15  ;;  %5206 = vmatpush.bf16.msra.mxu3 %v9133_v32  ;;  %v9384_v15 = vld [vmem:[%s17744_s11 + $0x260] sm:$0xf]  ;;  %v9505_v32 = vor.u32 %v10764_v31, %v9504_v11  ;;  %v5287_v31 = vld [vmem:[%s17747_s12 + $0x98] sm:$0xff] }
 0x52e   :  { %5243 = vmatpush.bf16.msrb.mxu2 %v9445_v47  ;;  %5219 = vmatpush.bf16.msrb.mxu0 %v9229_v44  ;;  %v10734_v47 = vld [vmem:[%s17744_s11 + $0x268] sm:$0xf0]  ;;  %v9492_v44 = vld [vmem:[%s17744_s11 + $0x338] sm:$0xf]  ;;  %v5288_v11 = vld [vmem:[%s17747_s12 + $0xa0] sm:$0xff] }
 0x52f   :  { %v9385_v6 = vor.u32 %v10734_v47, %v9384_v15  ;;  %v9493_v34 = vor.u32 %v10761_v48, %v9492_v44  ;;  %v5314_v47 = vld [vmem:[%s17747_s12 + $0x170] sm:$0xff]  ;;  %v5313_v44 = vld [vmem:[%s17747_s12 + $0x168] sm:$0xff]  ;;  %v5312_v48 = vld [vmem:[%s17747_s12 + $0x160] sm:$0xff] }
 0x530   :  { %5159 = vmatmul.bf16.vlgmr.msrb.gmra.mxu3 %v15532_v39  ;;  %5172 = vmatmul.bf16.vlgmr.msra.gmra.mxu0 %v15571_v57 }
 0x531   :  { %5183 = vmatpush.bf16.msra.mxu1 %v9381_v7  ;;  %5207 = vmatpush.bf16.msra.mxu3 %v9121_v24  ;;  %v10731_v7 = vld [vmem:[%s17744_s11 + $0x250] sm:$0xf0]  ;;  %v9480_v24 = vld [vmem:[%s17744_s11 + $0x320] sm:$0xf] }
 0x532   :  { %5220 = vmatpush.bf16.msrb.mxu0 %v9217_v33  ;;  %5244 = vmatpush.bf16.msrb.mxu2 %v9433_v37  ;;  %v10758_v33 = vld [vmem:[%s17744_s11 + $0x328] sm:$0xf0]  ;;  %v9373_v54 = vor.u32 %v10731_v7, %v9372_v4  ;;  %v10713_v37 = vld [vmem:[%s17744_s11 + $0x1c0] sm:$0xf0]  ;;  %v5310_v4 = vld [vmem:[%s17747_s12 + $0x150] sm:$0xff] }
 0x533   :  { %v9481_v51 = vor.u32 %v10758_v33, %v9480_v24  ;;  %v5309_v24 = vld [vmem:[%s17747_s12 + $0x148] sm:$0xff]  ;;  %v5308_v33 = vld [vmem:[%s17747_s12 + $0x140] sm:$0xff] }
 0x535   :  { %5184 = vmatpush.bf16.msra.mxu1 %v9369_v59  ;;  %5208 = vmatpush.bf16.msra.mxu3 %v9109_v60  ;;  %v9288_v59 = vld [vmem:[%s17744_s11 + $0x1a0] sm:$0xf]  ;;  %v10710_v60 = vld [vmem:[%s17744_s11 + $0x1a8] sm:$0xf0] }
 0x536   :  { %5221 = vmatpush.bf16.msrb.mxu0 %v9205_v63  ;;  %5245 = vmatpush.bf16.msrb.mxu2 %v9421_v8  ;;  %v9469_v63 = vor.u32 %v10755_v55, %v9468_v41  ;;  %v9289_v2 = vor.u32 %v10710_v60, %v9288_v59  ;;  %v9276_v8 = vld [vmem:[%s17744_s11 + $0x188] sm:$0xf]  ;;  %v5303_v59 = vld [vmem:[%s17747_s12 + $0x118] sm:$0xff] }
 0x537   :  { %v9277_v29 = vor.u32 %v10707_v45, %v9276_v8  ;;  %v5305_v41 = vld [vmem:[%s17747_s12 + $0x128] sm:$0xff]  ;;  %v5300_v45 = vld [vmem:[%s17747_s12 + $0x100] sm:$0xff] }
 0x538   :  { %5185 = vmatmul.bf16.vlgmr.msra.gmra.mxu1 %v15579_v62  ;;  %9507 = vmatmul.msk.bf16.vlgmr.msra.gmra.mxu2 %vm1080_vm7, %v15628_v30  ;;  %v5301_v8 = vld [vmem:[%s17747_s12 + $0x108] sm:$0xff] }
 0x539   :  { %5229 = vmatpush.bf16.msrb.mxu1 %v9361_v3  ;;  %5209 = vmatpush.bf16.msra.mxu3 %v9097_v19  ;;  %v5276_v3 = vld [vmem:[%s17747_s12 + $0x40] sm:$0xff]  ;;  %v5269_v19 = vld [vmem:[%s17747_s12 + $0x8] sm:$0xff] }
 0x53a   :  { %5222 = vmatpush.bf16.msrb.mxu0 %v9193_v35  ;;  %5246 = vmatpush.bf16.msrb.mxu2 %v9409_v38  ;;  %v5298_v35 = vld [vmem:[%s17747_s12 + $0xf0] sm:$0xff]  ;;  %v5295_v38 = vld [vmem:[%s17747_s12 + $0xd8] sm:$0xff] }
 0x53d   :  { %5230 = vmatpush.bf16.msrb.mxu1 %v9349_v23  ;;  %5210 = vmatpush.bf16.msra.mxu3 %v9085_v61  ;;  %v5296_v23 = vld [vmem:[%s17747_s12 + $0xe0] sm:$0xff] }
 0x53e   :  { %5223 = vmatpush.bf16.msrb.mxu0 %v9181_v1  ;;  %5247 = vmatpush.bf16.msrb.mxu2 %v9397_v5  ;;  %v5286_v1 = vld [vmem:[%s17747_s12 + $0x90] sm:$0xff]  ;;  %v5315_v5 = vld [vmem:[%s17747_s12 + $0x178] sm:$0xff] }
 0x540   :  { %5211 = vmatmul.bf16.vlgmr.msra.gmra.mxu3 %v15530_v42  ;;  %v5280_v42 = vld [vmem:[%s17747_s12 + $0x60] sm:$0xff] }
 0x541   :  { %5231 = vmatpush.bf16.msrb.mxu1 %v9337_v9  ;;  %5259 = vmatpush.bf16.msrb.mxu3 %v9505_v32  ;;  %v5285_v9 = vld [vmem:[%s17747_s12 + $0x88] sm:$0xff] }
 0x542   :  { %5316 = vmatpush.msra.mxu0 %v5283_v13  ;;  %5248 = vmatpush.bf16.msrb.mxu2 %v9385_v6 }
 0x543   :  { %5224 = vmatmul.bf16.vlgmr.msrb.gmra.mxu0 %v15532_v39  ;;  %v9300_v39 = vld [vmem:[%s17744_s11 + $0x1b8] sm:$0xf] }
 0x544   :  { %5317 = vmatpush.msra.mxu0 %v5282_v28  ;;  %v9301_v10 = vor.u32 %v10713_v37, %v9300_v39 }
 0x545   :  { %5232 = vmatpush.bf16.msrb.mxu1 %v9325_v17  ;;  %5260 = vmatpush.bf16.msrb.mxu3 %v9493_v34 }
 0x546   :  { %5318 = vmatpush.msra.mxu0 %v5281_v50  ;;  %5249 = vmatpush.bf16.msrb.mxu2 %v9373_v54 }
 0x548   :  { %5319 = vmatpush.msra.mxu0 %v5280_v42 }
 0x549   :  { %5233 = vmatpush.bf16.msrb.mxu1 %v9313_v49  ;;  %5261 = vmatpush.bf16.msrb.mxu3 %v9481_v51  ;;  %v5307_v49 = vld [vmem:[%s17747_s12 + $0x138] sm:$0xff]  ;;  %v5306_v51 = vld [vmem:[%s17747_s12 + $0x130] sm:$0xff] }
 0x54a   :  { %5320 = vmatpush.msra.mxu0 %v5279_v56  ;;  %5250 = vmatmul.bf16.vlgmr.msrb.gmra.mxu2 %v15579_v62  ;;  %v5275_v62 = vld [vmem:[%s17747_s12 + $0x38] sm:$0xff] }
 0x54b   :  { %5356 = vmatpush.msra.mxu2 %v5315_v5 }
 0x54c   :  { %5321 = vmatpush.msra.mxu0 %v5278_v58 }
 0x54d   :  { %5234 = vmatpush.bf16.msrb.mxu1 %v9301_v10  ;;  %5262 = vmatpush.bf16.msrb.mxu3 %v9469_v63 }
 0x54e   :  { %5322 = vmatpush.msra.mxu0 %v5277_v0  ;;  %5357 = vmatpush.msra.mxu2 %v5314_v47 }
 0x550   :  { %5323 = vmatpush.msra.mxu0 %v5276_v3  ;;  %9508 = vmatmul.msk.bf16.vlgmr.msrb.gmra.mxu3 %vm1080_vm7, %v15628_v30  ;;  %v5272_v30 = vld [vmem:[%s17747_s12 + $0x20] sm:$0xff] }
 0x551   :  { %5387 = vmatpush.msra.mxu3 %v5283_v13  ;;  %5235 = vmatpush.bf16.msrb.mxu1 %v9289_v2  ;;  %v5311_v13 = vld [vmem:[%s17747_s12 + $0x158] sm:$0xff] }
 0x552   :  { %5324 = vmatpush.msra.mxu0 %v5275_v62  ;;  %5358 = vmatpush.msra.mxu2 %v5313_v44 }
 0x553   :  { %5388 = vmatpush.msra.mxu3 %v5282_v28 }
 0x554   :  { %5325 = vmatpush.msra.mxu0 %v5274_v52  ;;  %5359 = vmatpush.msra.mxu2 %v5312_v48 }
 0x555   :  { %5389 = vmatpush.msra.mxu3 %v5281_v50  ;;  %5236 = vmatpush.bf16.msrb.mxu1 %v9277_v29 }
 0x556   :  { %5326 = vmatpush.msra.mxu0 %v5273_v12  ;;  %5360 = vmatpush.msra.mxu2 %v5311_v13 }
 0x557   :  { %5390 = vmatpush.msra.mxu3 %v5280_v42 }
 0x558   :  { %5237 = vmatmul.bf16.vlgmr.msrb.gmra.mxu1 %v15571_v57  ;;  %v5271_v57 = vld [vmem:[%s17747_s12 + $0x18] sm:$0xff]  ;;  %5327 = vmatpush.msra.mxu0 %v5272_v30 }
 0x559   :  { %5391 = vmatpush.msra.mxu3 %v5279_v56  ;;  %5336 = vmatpush.msra.mxu1 %v5299_v16  ;;  %v5304_v56 = vld [vmem:[%s17747_s12 + $0x120] sm:$0xff] }
 0x55a   :  { %5328 = vmatpush.msra.mxu0 %v5271_v57  ;;  %5361 = vmatpush.msra.mxu2 %v5310_v4 }
 0x55b   :  { %5392 = vmatpush.msra.mxu3 %v5278_v58  ;;  %5337 = vmatpush.msra.mxu1 %v5298_v35 }
 0x55c   :  { %5329 = vmatpush.msra.mxu0 %v5270_v14  ;;  %5362 = vmatpush.msra.mxu2 %v5309_v24 }
 0x55d   :  { %5393 = vmatpush.msra.mxu3 %v5277_v0  ;;  %5338 = vmatpush.msra.mxu1 %v5297_v21  ;;  %v5302_v0 = vld [vmem:[%s17747_s12 + $0x110] sm:$0xff] }
 0x55e   :  { %5330 = vmatpush.msra.mxu0 %v5269_v19  ;;  %5363 = vmatpush.msra.mxu2 %v5308_v33 }
 0x55f   :  { %5394 = vmatpush.msra.mxu3 %v5276_v3  ;;  %5339 = vmatpush.msra.mxu1 %v5296_v23 }
 0x560   :  { %5331 = vmatpush.msra.mxu0 %v5268_v18  ;;  %5364 = vmatpush.msra.mxu2 %v5307_v49 }
 0x561   :  { %5395 = vmatpush.msra.mxu3 %v5275_v62  ;;  %5340 = vmatpush.msra.mxu1 %v5295_v38 }
 0x562   :  { %5407 = vmatpush.msrb.mxu0 %v5299_v16  ;;  %5365 = vmatpush.msra.mxu2 %v5306_v51 }
 0x563   :  { %5396 = vmatpush.msra.mxu3 %v5274_v52  ;;  %5341 = vmatpush.msra.mxu1 %v5294_v20 }
 0x564   :  { %5408 = vmatpush.msrb.mxu0 %v5298_v35  ;;  %5366 = vmatpush.msra.mxu2 %v5305_v41 }
 0x565   :  { %5397 = vmatpush.msra.mxu3 %v5273_v12  ;;  %5342 = vmatpush.msra.mxu1 %v5293_v25 }
 0x566   :  { %5409 = vmatpush.msrb.mxu0 %v5297_v21  ;;  %5367 = vmatpush.msra.mxu2 %v5304_v56 }
 0x567   :  { %5398 = vmatpush.msra.mxu3 %v5272_v30  ;;  %5343 = vmatpush.msra.mxu1 %v5292_v26 }
 0x568   :  { %5410 = vmatpush.msrb.mxu0 %v5296_v23  ;;  %5368 = vmatpush.msra.mxu2 %v5303_v59 }
 0x569   :  { %5399 = vmatpush.msra.mxu3 %v5271_v57  ;;  %5344 = vmatpush.msra.mxu1 %v5291_v27 }
 0x56a   :  { %5411 = vmatpush.msrb.mxu0 %v5295_v38  ;;  %5369 = vmatpush.msra.mxu2 %v5302_v0 }
 0x56b   :  { %5400 = vmatpush.msra.mxu3 %v5270_v14  ;;  %5345 = vmatpush.msra.mxu1 %v5290_v40 }
 0x56c   :  { %5412 = vmatpush.msrb.mxu0 %v5294_v20  ;;  %5370 = vmatpush.msra.mxu2 %v5301_v8 }
 0x56d   :  { %5401 = vmatpush.msra.mxu3 %v5269_v19  ;;  %5346 = vmatpush.msra.mxu1 %v5289_v43 }
 0x56e   :  { %5413 = vmatpush.msrb.mxu0 %v5293_v25  ;;  %5371 = vmatpush.msra.mxu2 %v5300_v45 }
 0x56f   :  { %5402 = vmatpush.msra.mxu3 %v5268_v18  ;;  %5347 = vmatpush.msra.mxu1 %v5288_v11 }
 0x570   :  { %5414 = vmatpush.msrb.mxu0 %v5292_v26 }
 0x571   :  { %5348 = vmatpush.msra.mxu1 %v5287_v31 }
 0x572   :  { %5415 = vmatpush.msrb.mxu0 %v5291_v27 }
 0x573   :  { %5349 = vmatpush.msra.mxu1 %v5286_v1 }
 0x574   :  { %5416 = vmatpush.msrb.mxu0 %v5290_v40 }
 0x575   :  { %5350 = vmatpush.msra.mxu1 %v5285_v9 }
 0x576   :  { %5417 = vmatpush.msrb.mxu0 %v5289_v43 }
 0x577   :  { %5351 = vmatpush.msra.mxu1 %v5284_v36 }
 0x578   :  { %5418 = vmatpush.msrb.mxu0 %v5288_v11 }
 0x579   :  { %5427 = vmatpush.msrb.mxu1 %v5315_v5 }
 0x57a   :  { %5419 = vmatpush.msrb.mxu0 %v5287_v31 }
 0x57b   :  { %5428 = vmatpush.msrb.mxu1 %v5314_v47 }
 0x57c   :  { %5420 = vmatpush.msrb.mxu0 %v5286_v1 }
 0x57d   :  { %5429 = vmatpush.msrb.mxu1 %v5313_v44 }
 0x57e   :  { %5421 = vmatpush.msrb.mxu0 %v5285_v9 }
 0x57f   :  { %5430 = vmatpush.msrb.mxu1 %v5312_v48 }
 0x580   :  { %5422 = vmatpush.msrb.mxu0 %v5284_v36 }
 0x581   :  { %5431 = vmatpush.msrb.mxu1 %v5311_v13 }
 0x583   :  { %5432 = vmatpush.msrb.mxu1 %v5310_v4 }
 0x585   :  { %5433 = vmatpush.msrb.mxu1 %v5309_v24 }
 0x587   :  { %5434 = vmatpush.msrb.mxu1 %v5308_v33 }
 0x589   :  { %5435 = vmatpush.msrb.mxu1 %v5307_v49 }
 0x58b   :  { %5436 = vmatpush.msrb.mxu1 %v5306_v51  ;;  %v5482_v51 = vld [vmem:[%s17748_s13 + $0x18] sm:$0xff] }
 0x58c   :  { %5503 = vmatpush.msrb.mxu2 %v5482_v51  ;;  %v9554_v51 = vld [vmem:[%s17749_s16 + $0x50] sm:$0xf] }
 0x58d   :  { %5437 = vmatpush.msrb.mxu1 %v5305_v41  ;;  %v5483_v41 = vld [vmem:[%s17748_s13 + $0x20] sm:$0xff] }
 0x58e   :  { %5523 = vmatpush.msrb.mxu3 %v5483_v41  ;;  %v10777_v41 = vld [vmem:[%s17749_s16 + $0x60] sm:$0xf0] }
 0x58f   :  { %5438 = vmatpush.msrb.mxu1 %v5304_v56  ;;  %v5480_v56 = vld [vmem:[%s17748_s13 + $0x8] sm:$0xff] }
 0x590   :  { %5524 = vmatpush.msrb.mxu3 %v5480_v56  ;;  %v9814_v56 = vld [vmem:[%s17749_s16 + $0x258] sm:$0xf] }
 0x591   :  { %5439 = vmatpush.msrb.mxu1 %v5303_v59  ;;  %v5481_v59 = vld [vmem:[%s17748_s13 + $0x10] sm:$0xff] }
 0x593   :  { %5440 = vmatpush.msrb.mxu1 %v5302_v0  ;;  %v9654_v0 = vld [vmem:[%s17749_s16 + $0x118] sm:$0xf] }
 0x595   :  { %v5082_v61 = vpop.f32.mrf.mxu1  ;;  %5441 = vmatpush.msrb.mxu1 %v5301_v8  ;;  %v10800_v8 = vld [vmem:[%s17749_s16 + $0x11c] sm:$0xf] }
 0x597   :  { %5442 = vmatpush.msrb.mxu1 %v5300_v45  ;;  %v9656_v45 = vld [vmem:[%s17749_s16 + $0x12c] sm:$0xf0] }
 0x59b   :  { %v5095_v46 = vpop.f32.mrf.mxu2 }
 0x59c   :  { %v5096_v17 = vadd.f32 %v5095_v46, %v5082_v61 }
 0x59d   :  { %v5084_v15 = vpop.f32.mrf.mxu1  ;;  %v5121_v32 = vpop.f32.mrf.mxu0 }
 0x5a3   :  { %v5097_v6 = vpop.f32.mrf.mxu2  ;;  %v5108_v22 = vpop.f32.mrf.mxu3 }
 0x5a4   :  { %v5109_v28 = vadd.f32 %v5108_v22, %v5096_v17 }
 0x5a5   :  { %v5134_v53 = vpop.f32.mrf.mxu1  ;;  %v5123_v7 = vpop.f32.mrf.mxu0 }
 0x5a6   :  { %v5122_v34 = vadd.f32 %v5121_v32, %v5109_v28 }
 0x5a8   :  { %v15950_v50 = vadd.f32 %v5134_v53, %v5122_v34 }
 0x5aa   :  { %v5384_v54 = vmul.f32 %v15950_v50, %v15950_v50  ;;  %5332 = vmatmul.f32.vlgmr.msra.gmra.mxu0 %v15950_v50 }
 0x5ab   :  { %v5110_v42 = vpop.f32.mrf.mxu3  ;;  %v5147_v39 = vpop.f32.mrf.mxu2 }
 0x5ac   :  { %5403 = vmatmul.f32.vlgmr.msra.gmra.mxu3 %v5384_v54 }
 0x5ad   :  { %v5136_v37 = vpop.f32.mrf.mxu1  ;;  %v5173_v55 = vpop.f32.mrf.mxu0 }
 0x5b3   :  { %v5149_v10 = vpop.f32.mrf.mxu2  ;;  %v5160_v58 = vpop.f32.mrf.mxu3 }
 0x5b4   :  { %v5161_v60 = vadd.f32 %v5160_v58, %v5147_v39  ;;  %v5484_v58 = vld [vmem:[%s17748_s13 + $0x28] sm:$0xff] }
 0x5b5   :  { %v5186_v63 = vpop.f32.mrf.mxu1  ;;  %v5175_v2 = vpop.f32.mrf.mxu0 }
 0x5b6   :  { %v5174_v3 = vadd.f32 %v5173_v55, %v5161_v60  ;;  %v5479_v55 = vld [vmem:[%s17748_s13] sm:$0xff]  ;;  %v10802_v2 = vld [vmem:[%s17749_s16 + $0x128] sm:$0xf0] }
 0x5b7   :  { %5504 = vmatpush.msrb.mxu2 %v5479_v55 }
 0x5b8   :  { %v5187_v62 = vadd.f32 %v5186_v63, %v5174_v3  ;;  %v9655_v3 = vor.u32 %v10802_v2, %v9654_v0  ;;  %v9894_v0 = vld [vmem:[%s17749_s16 + $0x2f8] sm:$0xf]  ;;  %v10862_v2 = vld [vmem:[%s17749_s16 + $0x308] sm:$0xf0] }
 0x5ba   :  { %6338 = vmatpush.bf16.msra.mxu3 %v9655_v3  ;;  %v9534_v3 = vld [vmem:[%s17749_s16 + $0x28] sm:$0xf] }
 0x5bb   :  { %v5162_v29 = vpop.f32.mrf.mxu3  ;;  %v5199_v52 = vpop.f32.mrf.mxu2 }
 0x5bc   :  { %v15979_v12 = vadd.f32 %v5199_v52, %v5187_v62  ;;  %v9659_v62 = vor.u32 %v10800_v8, %v9656_v45  ;;  %v9634_v29 = vld [vmem:[%s17749_s16 + $0xf0] sm:$0xf]  ;;  %v10797_v52 = vld [vmem:[%s17749_s16 + $0x100] sm:$0xf0]  ;;  %v10772_v8 = vld [vmem:[%s17749_s16 + $0x38] sm:$0xf0] }
 0x5bd   :  { %v5188_v30 = vpop.f32.mrf.mxu1 }
 0x5be   :  { %v5385_v57 = vmul.f32 %v15979_v12, %v15979_v12  ;;  %5352 = vmatmul.f32.vlgmr.msra.gmra.mxu1 %v15979_v12 }
 0x5bf   :  { %6377 = vmatpush.bf16.msra.mxu1 %v9659_v62 }
 0x5c0   :  { %v5225_v14 = vpop.f32.mrf.mxu0  ;;  %5423 = vmatmul.f32.vlgmr.msrb.gmra.mxu0 %v5385_v57  ;;  %v9635_v57 = vor.u32 %v10797_v52, %v9634_v29  ;;  %v9794_v29 = vld [vmem:[%s17749_s16 + $0x230] sm:$0xf] }
 0x5c2   :  { %6339 = vmatpush.bf16.msra.mxu3 %v9635_v57  ;;  %v9895_v57 = vor.u32 %v10862_v2, %v9894_v0  ;;  %v10825_v2 = vld [vmem:[%s17749_s16 + $0x1e4] sm:$0xf] }
 0x5c3   :  { %v5201_v16 = vpop.f32.mrf.mxu2  ;;  %v5212_v19 = vpop.f32.mrf.mxu3 }
 0x5c4   :  { %v5226_v23 = vadd.f32 %v5225_v14, %v5212_v19  ;;  %v10795_v14 = vld [vmem:[%s17749_s16 + $0xf4] sm:$0xf]  ;;  %v9636_v16 = vld [vmem:[%s17749_s16 + $0x104] sm:$0xf0] }
 0x5c8   :  { %v5227_v35 = vpop.f32.mrf.mxu0 }
 0x5c9   :  { %v9639_v35 = vor.u32 %v10795_v14, %v9636_v16  ;;  %v10770_v14 = vld [vmem:[%s17749_s16 + $0x2c] sm:$0xf]  ;;  %v9536_v16 = vld [vmem:[%s17749_s16 + $0x3c] sm:$0xf0] }
 0x5cb   :  { %v5214_v18 = vpop.f32.mrf.mxu3  ;;  %6378 = vmatpush.bf16.msra.mxu1 %v9639_v35  ;;  %v9535_v35 = vor.u32 %v10772_v8, %v9534_v3  ;;  %v9756_v3 = vld [vmem:[%s17749_s16 + $0x1f4] sm:$0xf0]  ;;  %v9714_v8 = vld [vmem:[%s17749_s16 + $0x190] sm:$0xf] }
 0x5cc   :  { %v9614_v18 = vld [vmem:[%s17749_s16 + $0xc8] sm:$0xf] }
 0x5cd   :  { %v5251_v21 = vpop.f32.mrf.mxu2 }
 0x5d3   :  { %v5264_v25 = vpop.f32.mrf.mxu3 }
 0x5d5   :  { %v5238_v38 = vpop.f32.mrf.mxu1  ;;  %v5253_v26 = vpop.f32.mrf.mxu2 }
 0x5d6   :  { %v5239_v20 = vadd.f32 %v5238_v38, %v5226_v23  ;;  %v9974_v23 = vld [vmem:[%s17749_s16 + $0x398] sm:$0xf]  ;;  %v9616_v26 = vld [vmem:[%s17749_s16 + $0xdc] sm:$0xf0] }
 0x5d8   :  { %v5252_v27 = vadd.f32 %v5251_v21, %v5239_v20  ;;  %v10792_v21 = vld [vmem:[%s17749_s16 + $0xd8] sm:$0xf0]  ;;  %v10882_v20 = vld [vmem:[%s17749_s16 + $0x3a8] sm:$0xf0] }
 0x5da   :  { %v15984_v40 = vadd.f32 %v5264_v25, %v5252_v27  ;;  %v10790_v25 = vld [vmem:[%s17749_s16 + $0xcc] sm:$0xf]  ;;  %v9615_v27 = vor.u32 %v10792_v21, %v9614_v18  ;;  %v9874_v18 = vld [vmem:[%s17749_s16 + $0x2d0] sm:$0xf]  ;;  %v10857_v21 = vld [vmem:[%s17749_s16 + $0x2e0] sm:$0xf0] }
 0x5db   :  { %v5266_v31 = vpop.f32.mrf.mxu3 }
 0x5dc   :  { %v5386_v43 = vmul.f32 %v15984_v40, %v15984_v40  ;;  %5372 = vmatmul.f32.vlgmr.msra.gmra.mxu2 %v15984_v40  ;;  %6340 = vmatpush.bf16.msra.mxu3 %v9615_v27  ;;  %v9539_v27 = vor.u32 %v10770_v14, %v9536_v16  ;;  %v9694_v16 = vld [vmem:[%s17749_s16 + $0x168] sm:$0xf] }
 0x5dd   :  { %v5240_v11 = vpop.f32.mrf.mxu1  ;;  %5543 = vmatpush.msra.mxu2 %v5484_v58  ;;  %v10842_v58 = vld [vmem:[%s17749_s16 + $0x268] sm:$0xf0] }
 0x5de   :  { %5443 = vmatmul.f32.vlgmr.msrb.gmra.mxu1 %v5386_v43  ;;  %v9975_v43 = vor.u32 %v10882_v20, %v9974_v23  ;;  %v9594_v11 = vld [vmem:[%s17749_s16 + $0xa0] sm:$0xf]  ;;  %v9815_v62 = vor.u32 %v10842_v58, %v9814_v56  ;;  %v9774_v23 = vld [vmem:[%s17749_s16 + $0x208] sm:$0xf]  ;;  %v10767_v20 = vld [vmem:[%s17749_s16 + $0x10] sm:$0xf0] }
 0x5df   :  { %5544 = vmatpush.msra.mxu2 %v5481_v59  ;;  %v10775_v59 = vld [vmem:[%s17749_s16 + $0x54] sm:$0xf]  ;;  %v9782_v58 = vld [vmem:[%s17749_s16 + $0x210] sm:$0xf] }
 0x5e0   :  { %6364 = vmatpush.bf16.msra.mxu0 %v9975_v43  ;;  %v10840_v43 = vld [vmem:[%s17749_s16 + $0x25c] sm:$0xf] }
 0x627   :  { %v5333_v61 = vpop.f32.mrf.mxu0 }
 0x62f   :  { %v5404_v5 = vpop.f32.mrf.mxu3 }
 0x63b   :  { %v5353_v1 = vpop.f32.mrf.mxu1 }
 0x63c   :  { %v5354_v47 = vadd.f32 %v5353_v1, %v5333_v61  ;;  %v9619_v61 = vor.u32 %v10790_v25, %v9616_v26  ;;  %v10787_v1 = vld [vmem:[%s17749_s16 + $0xb0] sm:$0xf0]  ;;  %v10832_v26 = vld [vmem:[%s17749_s16 + $0x218] sm:$0xf0] }
 0x63d   :  { %v5424_v9 = vpop.f32.mrf.mxu0 }
 0x63e   :  { %v5425_v36 = vadd.f32 %v5424_v9, %v5404_v5  ;;  %v9954_v9 = vld [vmem:[%s17749_s16 + $0x370] sm:$0xf]  ;;  %v10877_v5 = vld [vmem:[%s17749_s16 + $0x380] sm:$0xf0]  ;;  %6379 = vmatpush.bf16.msra.mxu1 %v9619_v61 }
 0x63f   :  { %v10765_v61 = vld [vmem:[%s17749_s16 + $0x4] sm:$0xf] }
 0x65b   :  { %v5444_v46 = vpop.f32.mrf.mxu1 }
 0x65c   :  { %v5445_v15 = vadd.f32 %v5444_v46, %v5425_v36  ;;  %v10785_v36 = vld [vmem:[%s17749_s16 + $0xa4] sm:$0xf]  ;;  %v9596_v46 = vld [vmem:[%s17749_s16 + $0xb4] sm:$0xf0] }
 0x65e   :  { %v5447_v32 = vsel %vm5376_vm13, %v5445_v15, 0.0 }
 0x65f   :  { %v5448_v44 = vrot.slane %v5447_v32, 4  ;;  %v5373_v48 = vpop.f32.mrf.mxu2 }
 0x660   :  { %v5374_v13 = vadd.f32 %v5373_v48, %v5354_v47  ;;  %v9955_v47 = vor.u32 %v10877_v5, %v9954_v9  ;;  %v9934_v48 = vld [vmem:[%s17749_s16 + $0x348] sm:$0xf]  ;;  %v9822_v9 = vld [vmem:[%s17749_s16 + $0x260] sm:$0xf] }
 0x661   :  { %v5449_v17 = vadd.f32 %v5448_v44, %v5447_v32  ;;  %v5459_v32 = vld [vmem:[%s17750_s14] sm:$0x1]  ;;  %v9595_v44 = vor.u32 %v10787_v1, %v9594_v11  ;;  %v9816_v11 = vld [vmem:[%s17749_s16 + $0x26c] sm:$0xf0]  ;;  %v9516_v1 = vld [vmem:[%s17749_s16 + $0x14] sm:$0xf0] }
 0x662   :  { %v5377_v6 = vsel %vm5376_vm13, %v5374_v13, 0.0  ;;  %6365 = vmatpush.bf16.msra.mxu0 %v9955_v47  ;;  %v9819_v47 = vor.u32 %v10840_v43, %v9816_v11  ;;  %v9956_v43 = vld [vmem:[%s17749_s16 + $0x384] sm:$0xf0] }
 0x663   :  { %v5450_v22 = vrot.slane %v5449_v17, 2  ;;  %v5378_v28 = vrot.slane %v5377_v6, 4  ;;  %6341 = vmatpush.bf16.msra.mxu3 %v9595_v44  ;;  %v9519_v44 = vor.u32 %v10765_v61, %v9516_v1  ;;  %v9936_v61 = vld [vmem:[%s17749_s16 + $0x35c] sm:$0xf0] }
 0x665   :  { %v5451_v53 = vadd.f32 %v5450_v22, %v5449_v17  ;;  %v5379_v4 = vadd.f32 %v5378_v28, %v5377_v6  ;;  %v9599_v17 = vor.u32 %v10785_v36, %v9596_v46  ;;  %v9574_v6 = vld [vmem:[%s17749_s16 + $0x78] sm:$0xf]  ;;  %v10782_v22 = vld [vmem:[%s17749_s16 + $0x88] sm:$0xf0]  ;;  %v10872_v28 = vld [vmem:[%s17749_s16 + $0x358] sm:$0xf0] }
 0x666   :  { %v10843_v36 = vld [vmem:[%s17749_s16 + $0x270] sm:$0xf0]  ;;  %v9854_v46 = vld [vmem:[%s17749_s16 + $0x2a8] sm:$0xf] }
 0x667   :  { %v5380_v7 = vrot.slane %v5379_v4, 2  ;;  %v5452_v34 = vrot.slane %v5451_v53, 1  ;;  %6380 = vmatpush.bf16.msra.mxu1 %v9599_v17  ;;  %v9754_v17 = vld [vmem:[%s17749_s16 + $0x1e0] sm:$0xf] }
 0x669   :  { %v5381_v24 = vadd.f32 %v5380_v7, %v5379_v4  ;;  %v5453_v49 = vadd.f32 %v5452_v34, %v5451_v53  ;;  %v9935_v53 = vor.u32 %v10872_v28, %v9934_v48  ;;  %v10780_v4 = vld [vmem:[%s17749_s16 + $0x7c] sm:$0xf]  ;;  %v9576_v7 = vld [vmem:[%s17749_s16 + $0x8c] sm:$0xf0]  ;;  %v10835_v48 = vld [vmem:[%s17749_s16 + $0x234] sm:$0xf] }
 0x66b   :  { %v5382_v33 = vrot.slane %v5381_v24, 1  ;;  %v5455_v39 = vmul.f32 0.020833334, %v5453_v49  ;;  %6366 = vmatpush.bf16.msra.mxu0 %v9935_v53  ;;  %v9802_v53 = vld [vmem:[%s17749_s16 + $0x238] sm:$0xf] }
 0x66d   :  { %v5383_v54 = vadd.f32 %v5382_v33, %v5381_v24  ;;  %v9914_v24 = vld [vmem:[%s17749_s16 + $0x320] sm:$0xf]  ;;  %v10867_v33 = vld [vmem:[%s17749_s16 + $0x330] sm:$0xf0] }
 0x66f   :  { %v15989_v42 = vmul.f32 0.020833334, %v5383_v54  ;;  %v9575_v54 = vor.u32 %v10782_v22, %v9574_v6  ;;  %v10827_v6 = vld [vmem:[%s17749_s16 + $0x1f0] sm:$0xf0]  ;;  %v9823_v22 = vor.u32 %v10843_v36, %v9822_v9  ;;  %v10865_v9 = vld [vmem:[%s17749_s16 + $0x324] sm:$0xf] }
 0x671   :  { %v5456_v37 = vmul.f32 %v15989_v42, %v15989_v42  ;;  %6342 = vmatpush.bf16.msra.mxu3 %v9575_v54  ;;  %v9755_v54 = vor.u32 %v10827_v6, %v9754_v17 }
 0x673   :  { %v5457_v10 = vsub.f32 %v5455_v39, %v5456_v37  ;;  %v5472_v39 = vld [vmem:[%s17751_s15] sm:$0x1]  ;;  %v9579_v37 = vor.u32 %v10780_v4, %v9576_v7  ;;  %v10838_v4 = vld [vmem:[%s17749_s16 + $0x248] sm:$0xf0] }
 0x674   :  { %v9834_v7 = vld [vmem:[%s17749_s16 + $0x280] sm:$0xf] }
 0x675   :  { %v5458_v60 = vmax.f32 %v5457_v10, 0.0  ;;  %v9915_v10 = vor.u32 %v10867_v33, %v9914_v24  ;;  %6381 = vmatpush.bf16.msra.mxu1 %v9579_v37  ;;  %v9662_v33 = vld [vmem:[%s17749_s16 + $0x120] sm:$0xf] }
 0x676   :  { %v9776_v37 = vld [vmem:[%s17749_s16 + $0x21c] sm:$0xf0] }
 0x677   :  { %v5460_v63 = vadd.f32 1e-05, %v5458_v60  ;;  %v9556_v60 = vld [vmem:[%s17749_s16 + $0x64] sm:$0xf0]  ;;  %6367 = vmatpush.bf16.msra.mxu0 %v9915_v10 }
 0x678   :  { %v9559_v52 = vor.u32 %v10775_v59, %v9556_v60  ;;  %v10833_v59 = vld [vmem:[%s17749_s16 + $0x220] sm:$0xf0] }
 0x679   :  { %10961 = vrsqrt.f32 %v5460_v63  ;;  %vm5467_vm15 = vweird.f32 %v5460_v63 }
 0x67a   :  { %6382 = vmatpush.bf16.msra.mxu1 %v9559_v52  ;;  %v9762_v52 = vld [vmem:[%s17749_s16 + $0x1e8] sm:$0xf] }
 0x67b   :  { %6368 = vmatpush.bf16.msra.mxu0 %v9895_v57  ;;  %v9759_v57 = vor.u32 %v10825_v2, %v9756_v3  ;;  %v9702_v3 = vld [vmem:[%s17749_s16 + $0x170] sm:$0xf] }
 0x67e   :  { %6383 = vmatpush.bf16.msra.mxu1 %v9539_v27  ;;  %v10875_v27 = vld [vmem:[%s17749_s16 + $0x374] sm:$0xf] }
 0x67f   :  { %v10962_v30 = vpop.eup %10961  ;;  %v9959_v11 = vor.u32 %v10875_v27, %v9956_v43  ;;  %v10768_v27 = vld [vmem:[%s17749_s16 + $0x18] sm:$0xf0] }
 0x680   :  { %v5462_v19 = vmul.f32 %v10962_v30, %v5460_v63  ;;  %vm5468_vm14 = vweird.f32 %v10962_v30 }
 0x681   :  { %vm5469_vm1 = vmor %vm5467_vm15, %vm5468_vm14 }
 0x682   :  { %v5463_v38 = vmul.f32 %v10962_v30, %v5462_v19  ;;  %6384 = vmatpush.bf16.msra.mxu1 %v9519_v44  ;;  %v9896_v44 = vld [vmem:[%s17749_s16 + $0x30c] sm:$0xf0] }
 0x684   :  { %v5464_v31 = vmul.f32 0.5, %v5463_v38  ;;  %v9514_v38 = vld [vmem:[%s17749_s16] sm:$0xf] }
 0x685   :  { %v9515_v5 = vor.u32 %v10767_v20, %v9514_v38  ;;  %v10880_v38 = vld [vmem:[%s17749_s16 + $0x39c] sm:$0xf]  ;;  %v9976_v20 = vld [vmem:[%s17749_s16 + $0x3ac] sm:$0xf0] }
 0x686   :  { %v5465_v15 = vsub.f32 1.5, %v5464_v31  ;;  %v9875_v31 = vor.u32 %v10857_v21, %v9874_v18  ;;  %6429 = vmatpush.bf16.msrb.mxu1 %v9823_v22  ;;  %v9674_v21 = vld [vmem:[%s17749_s16 + $0x140] sm:$0xf] }
 0x687   :  { %v9742_v22 = vld [vmem:[%s17749_s16 + $0x1c0] sm:$0xf] }
 0x688   :  { %v5466_v13 = vmul.f32 %v10962_v30, %v5465_v15  ;;  %v10852_v15 = vld [vmem:[%s17749_s16 + $0x2b8] sm:$0xf0]  ;;  %6369 = vmatpush.bf16.msra.mxu0 %v9875_v31  ;;  %v10870_v31 = vld [vmem:[%s17749_s16 + $0x34c] sm:$0xf] }
 0x689   :  { %v9855_v28 = vor.u32 %v10852_v15, %v9854_v46  ;;  %v9939_v1 = vor.u32 %v10870_v31, %v9936_v61  ;;  %v10820_v46 = vld [vmem:[%s17749_s16 + $0x1bc] sm:$0xf]  ;;  %v9736_v15 = vld [vmem:[%s17749_s16 + $0x1cc] sm:$0xf0] }
 0x68a   :  { %v5470_v34 = vsel %vm5469_vm1, %v10962_v30, %v5466_v13  ;;  %v10837_v30 = vld [vmem:[%s17749_s16 + $0x240] sm:$0xf0]  ;;  %v9796_v13 = vld [vmem:[%s17749_s16 + $0x244] sm:$0xf0] }
 0x68b   :  { %v5471_v49 = vmul.f32 %v5470_v34, %v5459_v32  ;;  %v9795_v25 = vor.u32 %v10837_v30, %v9794_v29  ;;  %v9775_v32 = vor.u32 %v10832_v26, %v9774_v23  ;;  %v10847_v34 = vld [vmem:[%s17749_s16 + $0x290] sm:$0xf0]  ;;  %v9799_v24 = vor.u32 %v10835_v48, %v9796_v13  ;;  %v10828_v30 = vld [vmem:[%s17749_s16 + $0x1f8] sm:$0xf0]  ;;  %v9622_v48 = vld [vmem:[%s17749_s16 + $0xd0] sm:$0xf] }
 0x68c   :  { %6370 = vmatpush.bf16.msra.mxu0 %v9855_v28  ;;  %v9835_v56 = vor.u32 %v10847_v34, %v9834_v7  ;;  %v10807_v23 = vld [vmem:[%s17749_s16 + $0x150] sm:$0xf0]  ;;  %v9979_v26 = vor.u32 %v10880_v38, %v9976_v20  ;;  %v10793_v13 = vld [vmem:[%s17749_s16 + $0xe0] sm:$0xf0]  ;;  %v9716_v7 = vld [vmem:[%s17749_s16 + $0x1a4] sm:$0xf0] }
 0x68d   :  { %v5473_v55 = vmul.f32 %v5471_v49, %v15989_v42  ;;  %v9555_v42 = vor.u32 %v10777_v41, %v9554_v51  ;;  %v9734_v51 = vld [vmem:[%s17749_s16 + $0x1b8] sm:$0xf]  ;;  %v10822_v41 = vld [vmem:[%s17749_s16 + $0x1c8] sm:$0xf0]  ;;  %v9623_v6 = vor.u32 %v10793_v13, %v9622_v48  ;;  %v10823_v28 = vld [vmem:[%s17749_s16 + $0x1d0] sm:$0xf0] }
 0x68e   :  { %v9735_v0 = vor.u32 %v10822_v41, %v9734_v51  ;;  %v10855_v34 = vld [vmem:[%s17749_s16 + $0x2d4] sm:$0xf]  ;;  %v9722_v51 = vld [vmem:[%s17749_s16 + $0x198] sm:$0xf]  ;;  %v10818_v41 = vld [vmem:[%s17749_s16 + $0x1a8] sm:$0xf0] }
 0x68f   :  { %v5474_v63 = vsub.f32 %v5472_v39, %v5473_v55  ;;  %6343 = vmatpush.bf16.msra.mxu3 %v9555_v42  ;;  %v10830_v39 = vld [vmem:[%s17749_s16 + $0x20c] sm:$0xf]  ;;  %v9803_v55 = vor.u32 %v10838_v4, %v9802_v53  ;;  %v9743_v53 = vor.u32 %v10823_v28, %v9742_v22  ;;  %v10815_v4 = vld [vmem:[%s17749_s16 + $0x194] sm:$0xf]  ;;  %v9542_v38 = vld [vmem:[%s17749_s16 + $0x30] sm:$0xf] }
 0x690   :  { %v9779_v60 = vor.u32 %v10830_v39, %v9776_v37  ;;  %v10798_v42 = vld [vmem:[%s17749_s16 + $0x108] sm:$0xf0]  ;;  %6371 = vmatpush.bf16.msra.mxu0 %v9835_v56  ;;  %v10773_v20 = vld [vmem:[%s17749_s16 + $0x40] sm:$0xf0] }
 0x691   :  { %v5476_v45 = vperm.slane %v5474_v63, 0  ;;  %v9642_v63 = vld [vmem:[%s17749_s16 + $0xf8] sm:$0xf]  ;;  %6430 = vmatpush.bf16.msrb.mxu1 %v9803_v55  ;;  %v9723_v55 = vor.u32 %v10818_v41, %v9722_v51  ;;  %v10810_v56 = vld [vmem:[%s17749_s16 + $0x16c] sm:$0xf] }
 0x692   :  { %v9643_v29 = vor.u32 %v10798_v42, %v9642_v63  ;;  %v9582_v63 = vld [vmem:[%s17749_s16 + $0x80] sm:$0xf]  ;;  %v10783_v42 = vld [vmem:[%s17749_s16 + $0x90] sm:$0xf0]  ;;  %v10801_v48 = vld [vmem:[%s17749_s16 + $0x124] sm:$0xf] }
 0x693   :  { %v5478_v19 = vsel %vm1014_vm6, %v5471_v49, %v5476_v45  ;;  %6344 = vmatpush.bf16.msra.mxu3 %v9535_v35  ;;  %v10803_v49 = vld [vmem:[%s17749_s16 + $0x130] sm:$0xf0]  ;;  %v10817_v45 = vld [vmem:[%s17749_s16 + $0x1a0] sm:$0xf0]  ;;  %v9763_v35 = vor.u32 %v10828_v30, %v9762_v52  ;;  %v9583_v2 = vor.u32 %v10783_v42, %v9582_v63  ;;  %v10878_v51 = vld [vmem:[%s17749_s16 + $0x388] sm:$0xf0] }
 0x694   :  { %9509 = vmatmul.msk.f32.vlgmr.msrb.gmra.mxu2 %vm5485_vm2, %v5478_v19  ;;  %9510 = vmatmul.msk.f32.vlgmr.msrb.gmra.mxu3 %vm5485_vm2, %v5478_v19  ;;  %v9663_v10 = vor.u32 %v10803_v49, %v9662_v33  ;;  %v9715_v14 = vor.u32 %v10817_v45, %v9714_v8  ;;  %v9876_v33 = vld [vmem:[%s17749_s16 + $0x2e4] sm:$0xf0]  ;;  %v10813_v8 = vld [vmem:[%s17749_s16 + $0x180] sm:$0xf0]  ;;  %v10796_v41 = vld [vmem:[%s17749_s16 + $0xfc] sm:$0xf] }
 0x695   :  { %6351 = vmatpush.bf16.msrb.mxu2 %v9815_v62  ;;  %v9783_v62 = vor.u32 %v10833_v59, %v9782_v58  ;;  %v9602_v49 = vld [vmem:[%s17749_s16 + $0xa8] sm:$0xf]  ;;  %v9879_v39 = vor.u32 %v10855_v34, %v9876_v33  ;;  %v10850_v58 = vld [vmem:[%s17749_s16 + $0x2ac] sm:$0xf]  ;;  %v9703_v45 = vor.u32 %v10813_v8, %v9702_v3  ;;  %v10845_v52 = vld [vmem:[%s17749_s16 + $0x284] sm:$0xf] }
 0x696   :  { %6416 = vmatpush.bf16.msrb.mxu0 %v9663_v10  ;;  %v9696_v10 = vld [vmem:[%s17749_s16 + $0x17c] sm:$0xf0]  ;;  %v9962_v33 = vld [vmem:[%s17749_s16 + $0x378] sm:$0xf]  ;;  %v10791_v63 = vld [vmem:[%s17749_s16 + $0xd4] sm:$0xf] }
 0x697   :  { %6345 = vmatpush.bf16.msra.mxu3 %v9515_v5  ;;  %6431 = vmatpush.bf16.msrb.mxu1 %v9783_v62  ;;  %v9916_v5 = vld [vmem:[%s17749_s16 + $0x334] sm:$0xf0]  ;;  %v9699_v59 = vor.u32 %v10810_v56, %v9696_v10  ;;  %v10805_v62 = vld [vmem:[%s17749_s16 + $0x144] sm:$0xf]  ;;  %v10876_v56 = vld [vmem:[%s17749_s16 + $0x37c] sm:$0xf] }
 0x698   :  { %v9919_v36 = vor.u32 %v10865_v9, %v9916_v5  ;;  %v10841_v3 = vld [vmem:[%s17749_s16 + $0x264] sm:$0xf]  ;;  %v9824_v8 = vld [vmem:[%s17749_s16 + $0x274] sm:$0xf0] }
 0x699   :  { %6352 = vmatpush.bf16.msrb.mxu2 %v9795_v25  ;;  %v9675_v25 = vor.u32 %v10807_v23, %v9674_v21  ;;  %v10808_v21 = vld [vmem:[%s17749_s16 + $0x158] sm:$0xf0] }
 0x69a   :  { %6417 = vmatpush.bf16.msrb.mxu0 %v9643_v29  ;;  %v9676_v29 = vld [vmem:[%s17749_s16 + $0x154] sm:$0xf0] }
 0x69b   :  { %6390 = vmatpush.bf16.msrb.mxu3 %v9819_v47  ;;  %6432 = vmatpush.bf16.msrb.mxu1 %v9763_v35  ;;  %v10860_v47 = vld [vmem:[%s17749_s16 + $0x2fc] sm:$0xf]  ;;  %v9679_v30 = vor.u32 %v10805_v62, %v9676_v29  ;;  %v10871_v62 = vld [vmem:[%s17749_s16 + $0x354] sm:$0xf]  ;;  %v9944_v29 = vld [vmem:[%s17749_s16 + $0x364] sm:$0xf0] }
 0x69c   :  { %9511 = vmatmul.msk.f32.vlgmr.msra.gmra.mxu2 %vm5485_vm2, %v5478_v19  ;;  %v10812_v19 = vld [vmem:[%s17749_s16 + $0x178] sm:$0xf0]  ;;  %v9899_v17 = vor.u32 %v10860_v47, %v9896_v44  ;;  %v10883_v44 = vld [vmem:[%s17749_s16 + $0x3b0] sm:$0xf0] }
 0x69d   :  { %6353 = vmatpush.bf16.msrb.mxu2 %v9775_v32  ;;  %v9695_v18 = vor.u32 %v10812_v19, %v9694_v16  ;;  %v9739_v32 = vor.u32 %v10820_v46, %v9736_v15  ;;  %v10778_v16 = vld [vmem:[%s17749_s16 + $0x68] sm:$0xf0] }
 0x69e   :  { %6418 = vmatpush.bf16.msrb.mxu0 %v9623_v6  ;;  %v9984_v6 = vld [vmem:[%s17749_s16 + $0x3b4] sm:$0xf0] }
 0x69f   :  { %6391 = vmatpush.bf16.msrb.mxu3 %v9799_v24  ;;  %6433 = vmatpush.bf16.msrb.mxu1 %v9743_v53  ;;  %v9719_v24 = vor.u32 %v10815_v4, %v9716_v7 }
 0x6a1   :  { %6354 = vmatpush.bf16.msrb.mxu2 %v9755_v54  ;;  %v10788_v54 = vld [vmem:[%s17749_s16 + $0xb8] sm:$0xf0] }
 0x6a2   :  { %v9603_v37 = vor.u32 %v10788_v54, %v9602_v49 }
 0x6a3   :  { %6392 = vmatpush.bf16.msrb.mxu3 %v9779_v60  ;;  %6434 = vmatpush.bf16.msrb.mxu1 %v9723_v55  ;;  %v9856_v60 = vld [vmem:[%s17749_s16 + $0x2bc] sm:$0xf0]  ;;  %v9644_v55 = vld [vmem:[%s17749_s16 + $0x10c] sm:$0xf0] }
 0x6a4   :  { %6419 = vmatpush.bf16.msrb.mxu0 %v9603_v37 }
 0x6a5   :  { %6355 = vmatpush.bf16.msrb.mxu2 %v9735_v0  ;;  %v9859_v0 = vor.u32 %v10850_v58, %v9856_v60  ;;  %v9963_v58 = vor.u32 %v10878_v51, %v9962_v33  ;;  %v10873_v60 = vld [vmem:[%s17749_s16 + $0x360] sm:$0xf0]  ;;  %v9862_v33 = vld [vmem:[%s17749_s16 + $0x2b0] sm:$0xf] }
 0x6a7   :  { %6393 = vmatpush.bf16.msrb.mxu3 %v9759_v57  ;;  %6435 = vmatpush.bf16.msrb.mxu1 %v9703_v45  ;;  %v9836_v57 = vld [vmem:[%s17749_s16 + $0x294] sm:$0xf0]  ;;  %v9624_v45 = vld [vmem:[%s17749_s16 + $0xe4] sm:$0xf0] }
 0x6a8   :  { %6420 = vmatpush.bf16.msrb.mxu0 %v9583_v2  ;;  %v9839_v19 = vor.u32 %v10845_v52, %v9836_v57  ;;  %v9827_v57 = vor.u32 %v10841_v3, %v9824_v8  ;;  %v10816_v8 = vld [vmem:[%s17749_s16 + $0x19c] sm:$0xf] }
 0x6a9   :  { %6356 = vmatpush.bf16.msrb.mxu2 %v9715_v14  ;;  %v9562_v14 = vld [vmem:[%s17749_s16 + $0x58] sm:$0xf] }
 0x6aa   :  { %v9563_v35 = vor.u32 %v10778_v16, %v9562_v14  ;;  %v9922_v14 = vld [vmem:[%s17749_s16 + $0x328] sm:$0xf]  ;;  %v10868_v16 = vld [vmem:[%s17749_s16 + $0x338] sm:$0xf0] }
 0x6ab   :  { %6394 = vmatpush.bf16.msrb.mxu3 %v9739_v32  ;;  %v9982_v32 = vld [vmem:[%s17749_s16 + $0x3a0] sm:$0xf] }
 0x6ac   :  { %6421 = vmatpush.bf16.msrb.mxu0 %v9563_v35  ;;  %v9983_v7 = vor.u32 %v10883_v44, %v9982_v32  ;;  %v9627_v35 = vor.u32 %v10791_v63, %v9624_v45  ;;  %v9724_v45 = vld [vmem:[%s17749_s16 + $0x1ac] sm:$0xf0] }
 0x6ad   :  { %6357 = vmatpush.bf16.msrb.mxu2 %v9695_v18  ;;  %v9682_v18 = vld [vmem:[%s17749_s16 + $0x148] sm:$0xf] }
 0x6ae   :  { %v9683_v23 = vor.u32 %v10808_v21, %v9682_v18  ;;  %v9947_v18 = vor.u32 %v10871_v62, %v9944_v29  ;;  %v10786_v21 = vld [vmem:[%s17749_s16 + $0xac] sm:$0xf]  ;;  %v9844_v29 = vld [vmem:[%s17749_s16 + $0x29c] sm:$0xf0] }
 0x6af   :  { %6395 = vmatpush.bf16.msrb.mxu3 %v9719_v24  ;;  %v10846_v62 = vld [vmem:[%s17749_s16 + $0x28c] sm:$0xf] }
 0x6b0   :  { %6436 = vmatpush.bf16.msrb.mxu1 %v9683_v23  ;;  %v10836_v23 = vld [vmem:[%s17749_s16 + $0x23c] sm:$0xf] }
 0x6b1   :  { %6358 = vmatpush.bf16.msrb.mxu2 %v9675_v25  ;;  %v9543_v25 = vor.u32 %v10773_v20, %v9542_v38  ;;  %v9804_v38 = vld [vmem:[%s17749_s16 + $0x24c] sm:$0xf0]  ;;  %v9604_v20 = vld [vmem:[%s17749_s16 + $0xbc] sm:$0xf0] }
 0x6b3   :  { %6396 = vmatpush.bf16.msrb.mxu3 %v9699_v59  ;;  %6422 = vmatpush.bf16.msrb.mxu0 %v9543_v25  ;;  %v9942_v59 = vld [vmem:[%s17749_s16 + $0x350] sm:$0xf]  ;;  %v10866_v25 = vld [vmem:[%s17749_s16 + $0x32c] sm:$0xf] }
 0x6b5   :  { %6403 = vmatpush.bf16.msra.mxu2 %v9979_v26  ;;  %v9522_v26 = vld [vmem:[%s17749_s16 + $0x8] sm:$0xf] }
 0x6b6   :  { %v9523_v43 = vor.u32 %v10768_v27, %v9522_v26  ;;  %v9924_v26 = vld [vmem:[%s17749_s16 + $0x33c] sm:$0xf0]  ;;  %v9923_v27 = vor.u32 %v10868_v16, %v9922_v14  ;;  %v9830_v14 = vld [vmem:[%s17749_s16 + $0x268] sm:$0xf]  ;;  %v10844_v16 = vld [vmem:[%s17749_s16 + $0x278] sm:$0xf0] }
 0x6b7   :  { %6397 = vmatpush.bf16.msrb.mxu3 %v9679_v30  ;;  %v9943_v30 = vor.u32 %v10873_v60, %v9942_v59  ;;  %v9842_v59 = vld [vmem:[%s17749_s16 + $0x288] sm:$0xf] }
 0x6b8   :  { %6423 = vmatpush.bf16.msrb.mxu0 %v9523_v43  ;;  %v9807_v43 = vor.u32 %v10836_v23, %v9804_v38  ;;  %v10811_v38 = vld [vmem:[%s17749_s16 + $0x174] sm:$0xf] }
 0x6b9   :  { %6404 = vmatpush.bf16.msra.mxu2 %v9959_v11 }
 0x6bd   :  { %6405 = vmatpush.bf16.msra.mxu2 %v9939_v1 }
 0x6c1   :  { %6406 = vmatpush.bf16.msra.mxu2 %v9919_v36 }
 0x6c5   :  { %6407 = vmatpush.bf16.msra.mxu2 %v9899_v17 }
 0x6c9   :  { %6408 = vmatpush.bf16.msra.mxu2 %v9879_v39 }
 0x6cd   :  { %6409 = vmatpush.bf16.msra.mxu2 %v9859_v0  ;;  %v9647_v0 = vor.u32 %v10796_v41, %v9644_v55  ;;  %v9544_v41 = vld [vmem:[%s17749_s16 + $0x44] sm:$0xf0]  ;;  %v10821_v55 = vld [vmem:[%s17749_s16 + $0x1c4] sm:$0xf] }
 0x6d1   :  { %6410 = vmatpush.bf16.msra.mxu2 %v9839_v19 }
 0x717   :  { %v5506_v11 = vpop.f32.mrf.mxu2  ;;  %v5526_v31 = vpop.f32.mrf.mxu3 }
 0x718   :  { %v5549_v61 = vperm.slane %v5506_v11, 0  ;;  %v5550_v1 = vperm.slane %v5526_v31, 0  ;;  %v5555_v5 = vperm.slane %v5506_v11, 1  ;;  %v5556_v46 = vperm.slane %v5526_v31, 1 }
 0x719   :  { %v9607_v11 = vor.u32 %v10786_v21, %v9604_v20  ;;  %v9927_v31 = vor.u32 %v10866_v25, %v9924_v26  ;;  %v9847_v21 = vor.u32 %v10846_v62, %v9844_v29  ;;  %v9704_v20 = vld [vmem:[%s17749_s16 + $0x184] sm:$0xf0]  ;;  %v9831_v25 = vor.u32 %v10844_v16, %v9830_v14  ;;  %v9650_v26 = vld [vmem:[%s17749_s16 + $0x100] sm:$0xf]  ;;  %v16741_v62 = vld [vmem:[%s17752_s17 + $0x58] sm:$0xff] }
 0x71a   :  { %v5552_v9 = vmul.f32 %v5549_v61, %v15950_v50  ;;  %v5553_v36 = vmul.f32 %v5550_v1, %v15979_v12  ;;  %v9664_v50 = vld [vmem:[%s17749_s16 + $0x134] sm:$0xf0]  ;;  %v10881_v12 = vld [vmem:[%s17749_s16 + $0x3a4] sm:$0xf]  ;;  %v9902_v61 = vld [vmem:[%s17749_s16 + $0x300] sm:$0xf] }
 0x71b   :  { %v9667_v34 = vor.u32 %v10801_v48, %v9664_v50  ;;  %v9987_v24 = vor.u32 %v10881_v12, %v9984_v6  ;;  %v10863_v1 = vld [vmem:[%s17749_s16 + $0x310] sm:$0xf0]  ;;  %v9882_v50 = vld [vmem:[%s17749_s16 + $0x2d8] sm:$0xf]  ;;  %v10858_v12 = vld [vmem:[%s17749_s16 + $0x2e8] sm:$0xf0] }
 0x71c   :  { %v5558_v15 = vadd.f32 %v5555_v5, %v5552_v9  ;;  %v5559_v47 = vadd.f32 %v5556_v46, %v5553_v36  ;;  %v10781_v9 = vld [vmem:[%s17749_s16 + $0x84] sm:$0xf]  ;;  %v9584_v5 = vld [vmem:[%s17749_s16 + $0x94] sm:$0xf0]  ;;  %v10831_v36 = vld [vmem:[%s17749_s16 + $0x214] sm:$0xf]  ;;  %v9903_v32 = vor.u32 %v10863_v1, %v9902_v61 }
 0x71d   :  { %v9784_v46 = vld [vmem:[%s17749_s16 + $0x224] sm:$0xf0]  ;;  %v9587_v44 = vor.u32 %v10781_v9, %v9584_v5  ;;  %v9564_v6 = vld [vmem:[%s17749_s16 + $0x6c] sm:$0xf0]  ;;  %v10806_v1 = vld [vmem:[%s17749_s16 + $0x14c] sm:$0xf] }
 0x71e   :  { %v5561_v13 = vmul.f32 0.2, %v5558_v15  ;;  %v5562_v17 = vmul.f32 0.2, %v5559_v47  ;;  %v9787_v48 = vor.u32 %v10831_v36, %v9784_v46  ;;  %v9684_v9 = vld [vmem:[%s17749_s16 + $0x15c] sm:$0xf0] }
 0x71f   :  { %v5546_v22 = vpop.f32.mrf.mxu2  ;;  %v9630_v5 = vld [vmem:[%s17749_s16 + $0xd8] sm:$0xf]  ;;  %v10794_v46 = vld [vmem:[%s17749_s16 + $0xe8] sm:$0xf0] }
 0x720   :  { %v5564_v28 = vmax.f32 %v5558_v15, %v5561_v13  ;;  %v5565_v53 = vmax.f32 %v5559_v47, %v5562_v17  ;;  %v5551_v4 = vperm.slane %v5546_v22, 0  ;;  %v5557_v37 = vperm.slane %v5546_v22, 1  ;;  %v10861_v15 = vld [vmem:[%s17749_s16 + $0x304] sm:$0xf]  ;;  %v9904_v47 = vld [vmem:[%s17749_s16 + $0x314] sm:$0xf0] }
 0x721   :  { %v10776_v13 = vld [vmem:[%s17749_s16 + $0x5c] sm:$0xf]  ;;  %v9907_v17 = vor.u32 %v10861_v15, %v9904_v47  ;;  %v10826_v22 = vld [vmem:[%s17749_s16 + $0x1ec] sm:$0xf]  ;;  %v9990_v15 = vld [vmem:[%s17749_s16 + $0x3a8] sm:$0xf] }
 0x722   :  { %v16429_v49 = vpack.c.bf16 %v5564_v28, %v5564_v28  ;;  %v16431_v54 = vpack.c.bf16 %v5565_v53, %v5565_v53  ;;  %v5554_v39 = vmul.f32 %v5551_v4, %v15984_v40  ;;  %v9964_v40 = vld [vmem:[%s17749_s16 + $0x38c] sm:$0xf0]  ;;  %v9764_v28 = vld [vmem:[%s17749_s16 + $0x1fc] sm:$0xf0]  ;;  %v10856_v53 = vld [vmem:[%s17749_s16 + $0x2dc] sm:$0xf] }
 0x723   :  { %v9967_v2 = vor.u32 %v10876_v56, %v9964_v40  ;;  %v9884_v4 = vld [vmem:[%s17749_s16 + $0x2ec] sm:$0xf0]  ;;  %v9744_v56 = vld [vmem:[%s17749_s16 + $0x1d4] sm:$0xf0]  ;;  %v10851_v40 = vld [vmem:[%s17749_s16 + $0x2b4] sm:$0xf] }
 0x724   :  { %v5560_v10 = vadd.f32 %v5557_v37, %v5554_v39  ;;  %6346 = vmatmul.bf16.vlgmr.msra.gmra.mxu3 %v16429_v49  ;;  %6359 = vmatmul.bf16.vlgmr.msrb.gmra.mxu2 %v16431_v54  ;;  %v10853_v39 = vld [vmem:[%s17749_s16 + $0x2c0] sm:$0xf0]  ;;  %v10771_v37 = vld [vmem:[%s17749_s16 + $0x34] sm:$0xf]  ;;  %v9887_v51 = vor.u32 %v10856_v53, %v9884_v4  ;;  %v9747_v63 = vor.u32 %v10821_v55, %v9744_v56  ;;  %v10884_v47 = vld [vmem:[%s17749_s16 + $0x3b8] sm:$0xf0] }
 0x725   :  { %6385 = vmatmul.bf16.vlgmr.msra.gmra.mxu1 %v16429_v49  ;;  %6442 = vmatpush.bf16.msra.mxu3 %v9983_v7  ;;  %v9883_v7 = vor.u32 %v10858_v12, %v9882_v50  ;;  %v9547_v60 = vor.u32 %v10771_v37, %v9544_v41  ;;  %v9631_v50 = vor.u32 %v10794_v46, %v9630_v5  ;;  %v9770_v53 = vld [vmem:[%s17749_s16 + $0x1f0] sm:$0xf]  ;;  %v10829_v4 = vld [vmem:[%s17749_s16 + $0x200] sm:$0xf0]  ;;  %v10874_v41 = vld [vmem:[%s17749_s16 + $0x368] sm:$0xf0] }
 0x726   :  { %v5563_v42 = vmul.f32 0.2, %v5560_v10  ;;  %6455 = vmatpush.bf16.msrb.mxu2 %v9667_v34  ;;  %6481 = vmatpush.bf16.msra.mxu1 %v9987_v24  ;;  %v9567_v34 = vor.u32 %v10776_v13, %v9564_v6  ;;  %v9767_v24 = vor.u32 %v10826_v22, %v9764_v28  ;;  %v9991_v12 = vor.u32 %v10884_v47, %v9990_v15  ;;  %v9610_v13 = vld [vmem:[%s17749_s16 + $0xb0] sm:$0xf]  ;;  %v10789_v6 = vld [vmem:[%s17749_s16 + $0xc0] sm:$0xf0] }
 0x727   :  { %v9970_v22 = vld [vmem:[%s17749_s16 + $0x380] sm:$0xf]  ;;  %v10879_v28 = vld [vmem:[%s17749_s16 + $0x390] sm:$0xf0]  ;;  %v9771_v37 = vor.u32 %v10829_v4, %v9770_v53  ;;  %v9750_v56 = vld [vmem:[%s17749_s16 + $0x1c8] sm:$0xf] }
 0x728   :  { %v5566_v52 = vmax.f32 %v5560_v10, %v5563_v42  ;;  %v9864_v10 = vld [vmem:[%s17749_s16 + $0x2c4] sm:$0xf0]  ;;  %v10848_v42 = vld [vmem:[%s17749_s16 + $0x298] sm:$0xf0]  ;;  %v16699_v55 = vld [vmem:[%s17752_s17 + $0x70] sm:$0xff] }
 0x729   :  { %6443 = vmatpush.bf16.msra.mxu3 %v9963_v58  ;;  %v9863_v58 = vor.u32 %v10853_v39, %v9862_v33  ;;  %v9867_v3 = vor.u32 %v10851_v40, %v9864_v10  ;;  %v10784_v33 = vld [vmem:[%s17749_s16 + $0x98] sm:$0xf0]  ;;  %v16711_v10 = vld [vmem:[%s17752_s17 + $0x68] sm:$0xff]  ;;  %v16807_v15 = vld [vmem:[%s17752_s17 + $0x30] sm:$0xff] }
 0x72a   :  { %v16482_v19 = vpack.c.bf16 %v5566_v52, %v5566_v52  ;;  %6456 = vmatpush.bf16.msrb.mxu2 %v9647_v0  ;;  %6482 = vmatpush.bf16.msra.mxu1 %v9967_v2  ;;  %v10766_v0 = vld [vmem:[%s17749_s16 + $0xc] sm:$0xf]  ;;  %v9524_v2 = vld [vmem:[%s17749_s16 + $0x1c] sm:$0xf0]  ;;  %v9670_v52 = vld [vmem:[%s17749_s16 + $0x128] sm:$0xf] }
 0x72b   :  { %v16687_v39 = vld [vmem:[%s17752_s17 + $0x78] sm:$0xff]  ;;  %v10774_v16 = vld [vmem:[%s17749_s16 + $0x48] sm:$0xf0] }
 0x72c   :  { %6372 = vmatmul.bf16.vlgmr.msra.gmra.mxu0 %v16482_v19  ;;  %v10824_v40 = vld [vmem:[%s17749_s16 + $0x1d8] sm:$0xf0]  ;;  %v16850_v53 = vld [vmem:[%s17752_s17 + $0xe8] sm:$0xff] }
 0x72d   :  { %6444 = vmatpush.bf16.msra.mxu3 %v9943_v30  ;;  %6468 = vmatpush.bf16.msra.mxu0 %v9827_v57  ;;  %v10804_v30 = vld [vmem:[%s17749_s16 + $0x138] sm:$0xf0]  ;;  %v9843_v57 = vor.u32 %v10848_v42, %v9842_v59  ;;  %v9751_v42 = vor.u32 %v10824_v40, %v9750_v56  ;;  %v16855_v4 = vld [vmem:[%s17752_s17 + $0x168] sm:$0xff] }
 0x72e   :  { %6457 = vmatpush.bf16.msrb.mxu2 %v9627_v35  ;;  %6483 = vmatpush.bf16.msra.mxu1 %v9947_v18  ;;  %v9527_v35 = vor.u32 %v10766_v0, %v9524_v2  ;;  %v9727_v18 = vor.u32 %v10816_v8, %v9724_v45  ;;  %v9671_v23 = vor.u32 %v10804_v30, %v9670_v52  ;;  %v10779_v0 = vld [vmem:[%s17749_s16 + $0x70] sm:$0xf0]  ;;  %v9930_v2 = vld [vmem:[%s17749_s16 + $0x330] sm:$0xf]  ;;  %v9730_v8 = vld [vmem:[%s17749_s16 + $0x1a0] sm:$0xf] }
 0x72f   :  { %v10819_v45 = vld [vmem:[%s17749_s16 + $0x1b0] sm:$0xf0]  ;;  %v9550_v30 = vld [vmem:[%s17749_s16 + $0x38] sm:$0xf]  ;;  %v16914_v56 = vld [vmem:[%s17752_s17 + $0xc8] sm:$0xff] }
 0x730   :  { %v9731_v14 = vor.u32 %v10819_v45, %v9730_v8  ;;  %v16801_v5 = vld [vmem:[%s17752_s17 + $0x38] sm:$0xff]  ;;  %v16927_v40 = vld [vmem:[%s17752_s17 + $0x148] sm:$0xff]  ;;  %v16978_v8 = vld [vmem:[%s17752_s17 + $0x90] sm:$0xff] }
 0x731   :  { %6445 = vmatpush.bf16.msra.mxu3 %v9923_v27  ;;  %6469 = vmatpush.bf16.msra.mxu0 %v9807_v43  ;;  %v10799_v27 = vld [vmem:[%s17749_s16 + $0x110] sm:$0xf0]  ;;  %v9810_v43 = vld [vmem:[%s17749_s16 + $0x240] sm:$0xf]  ;;  %v16985_v45 = vld [vmem:[%s17752_s17 + $0x28] sm:$0xff] }
 0x732   :  { %6458 = vmatpush.bf16.msrb.mxu2 %v9607_v11  ;;  %6484 = vmatpush.bf16.msra.mxu1 %v9927_v31  ;;  %v10839_v11 = vld [vmem:[%s17749_s16 + $0x250] sm:$0xf0]  ;;  %v9707_v31 = vor.u32 %v10811_v38, %v9704_v20  ;;  %v9651_v61 = vor.u32 %v10799_v27, %v9650_v26  ;;  %v16771_v38 = vld [vmem:[%s17752_s17 + $0x48] sm:$0xff]  ;;  %v9551_v20 = vor.u32 %v10774_v16, %v9550_v30  ;;  %v9530_v26 = vld [vmem:[%s17749_s16 + $0x10] sm:$0xf] }
 0x733   :  { %v9811_v36 = vor.u32 %v10839_v11, %v9810_v43  ;;  %v16780_v27 = vld [vmem:[%s17752_s17 + $0x40] sm:$0xff]  ;;  %v17002_v30 = vld [vmem:[%s17752_s17 + $0x1d0] sm:$0xff] }
 0x734   :  { %6398 = vmatmul.bf16.vlgmr.msrb.gmra.mxu3 %v16431_v54  ;;  %6411 = vmatmul.bf16.vlgmr.msra.gmra.mxu2 %v16482_v19  ;;  %v10769_v11 = vld [vmem:[%s17749_s16 + $0x20] sm:$0xf0] }
 0x735   :  { %6437 = vmatmul.bf16.vlgmr.msrb.gmra.mxu1 %v16431_v54  ;;  %6446 = vmatpush.bf16.msra.mxu3 %v9903_v32  ;;  %v9790_v32 = vld [vmem:[%s17749_s16 + $0x218] sm:$0xf]  ;;  %v17012_v16 = vld [vmem:[%s17752_s17 + $0x80] sm:$0xff] }
 0x736   :  { %6459 = vmatpush.bf16.msrb.mxu2 %v9587_v44  ;;  %6470 = vmatpush.bf16.msra.mxu0 %v9787_v48  ;;  %v10834_v44 = vld [vmem:[%s17749_s16 + $0x228] sm:$0xf0]  ;;  %v9687_v48 = vor.u32 %v10806_v1, %v9684_v9  ;;  %v9690_v1 = vld [vmem:[%s17749_s16 + $0x150] sm:$0xf]  ;;  %v10809_v9 = vld [vmem:[%s17749_s16 + $0x160] sm:$0xf0] }
 0x737   :  { %6485 = vmatpush.bf16.msra.mxu1 %v9907_v17  ;;  %v9791_v17 = vor.u32 %v10834_v44, %v9790_v32  ;;  %v9691_v47 = vor.u32 %v10809_v9, %v9690_v1  ;;  %v9870_v32 = vld [vmem:[%s17749_s16 + $0x2b8] sm:$0xf]  ;;  %v10854_v44 = vld [vmem:[%s17749_s16 + $0x2c8] sm:$0xf0]  ;;  %v17098_v1 = vld [vmem:[%s17752_s17 + $0x110] sm:$0xff] }
 0x738   :  { %v17103_v9 = vld [vmem:[%s17752_s17 + $0x1a0] sm:$0xff] }
 0x739   :  { %6447 = vmatpush.bf16.msra.mxu3 %v9883_v7  ;;  %v9611_v7 = vor.u32 %v10789_v6, %v9610_v13  ;;  %v9850_v13 = vld [vmem:[%s17749_s16 + $0x290] sm:$0xf] }
 0x73a   :  { %6460 = vmatpush.bf16.msrb.mxu2 %v9567_v34  ;;  %6471 = vmatpush.bf16.msra.mxu0 %v9767_v24  ;;  %v9971_v34 = vor.u32 %v10879_v28, %v9970_v22  ;;  %v9590_v24 = vld [vmem:[%s17749_s16 + $0x88] sm:$0xf]  ;;  %v16837_v6 = vld [vmem:[%s17752_s17 + $0xf0] sm:$0xff] }
 0x73b   :  { %6486 = vmatpush.bf16.msra.mxu1 %v9887_v51  ;;  %v9950_v51 = vld [vmem:[%s17749_s16 + $0x358] sm:$0xf]  ;;  %v16843_v22 = vld [vmem:[%s17752_s17 + $0x170] sm:$0xff] }
 0x73c   :  { %6424 = vmatmul.bf16.vlgmr.msrb.gmra.mxu0 %v16429_v49  ;;  %v9951_v59 = vor.u32 %v10874_v41, %v9950_v51  ;;  %v16904_v51 = vld [vmem:[%s17752_s17 + $0x1e8] sm:$0xff]  ;;  %v16909_v41 = vld [vmem:[%s17752_s17 + $0x150] sm:$0xff] }
 0x73d   :  { %6448 = vmatpush.bf16.msra.mxu3 %v9863_v58  ;;  %v9591_v58 = vor.u32 %v10784_v33, %v9590_v24  ;;  %v16886_v24 = vld [vmem:[%s17752_s17 + $0x1f0] sm:$0xff]  ;;  %v16891_v33 = vld [vmem:[%s17752_s17 + $0x158] sm:$0xff] }
 0x73e   :  { %6461 = vmatpush.bf16.msrb.mxu2 %v9547_v60  ;;  %6472 = vmatpush.bf16.msra.mxu0 %v9747_v63  ;;  %v9570_v60 = vld [vmem:[%s17749_s16 + $0x60] sm:$0xf] }
 0x73f   :  { %6487 = vmatpush.bf16.msra.mxu1 %v9867_v3  ;;  %v16720_v63 = vld [vmem:[%s17752_s17 + $0x60] sm:$0xff]  ;;  %v9571_v29 = vor.u32 %v10779_v0, %v9570_v60  ;;  %v16945_v60 = vld [vmem:[%s17752_s17 + $0xb8] sm:$0xff]  ;;  %v16960_v0 = vld [vmem:[%s17752_s17 + $0xa8] sm:$0xff] }
 0x740   :  { %v10869_v3 = vld [vmem:[%s17749_s16 + $0x340] sm:$0xf0] }
 0x741   :  { %6449 = vmatpush.bf16.msra.mxu3 %v9843_v57  ;;  %v9931_v52 = vor.u32 %v10869_v3, %v9930_v2  ;;  %v16750_v57 = vld [vmem:[%s17752_s17 + $0x50] sm:$0xff]  ;;  %v16966_v2 = vld [vmem:[%s17752_s17 + $0xa0] sm:$0xff]  ;;  %v16972_v3 = vld [vmem:[%s17752_s17 + $0x98] sm:$0xff] }
 0x742   :  { %6462 = vmatpush.bf16.msrb.mxu2 %v9527_v35  ;;  %6473 = vmatpush.bf16.msra.mxu0 %v9727_v18  ;;  %v9910_v35 = vld [vmem:[%s17749_s16 + $0x308] sm:$0xf]  ;;  %v10864_v18 = vld [vmem:[%s17749_s16 + $0x318] sm:$0xf0] }
 0x743   :  { %6488 = vmatpush.bf16.msra.mxu1 %v9847_v21  ;;  %v9710_v21 = vld [vmem:[%s17749_s16 + $0x178] sm:$0xf] }
 0x744   :  { %6450 = vmatmul.bf16.vlgmr.msra.gmra.mxu3 %v16482_v19 }
 0x745   :  { %6494 = vmatpush.bf16.msrb.mxu3 %v9671_v23  ;;  %6463 = vmatmul.bf16.vlgmr.msrb.gmra.mxu2 %v16429_v49  ;;  %v10814_v23 = vld [vmem:[%s17749_s16 + $0x188] sm:$0xf0] }
 0x746   :  { %6507 = vmatpush.bf16.msra.mxu2 %v9831_v25  ;;  %6474 = vmatpush.bf16.msra.mxu0 %v9707_v31  ;;  %v9911_v25 = vor.u32 %v10864_v18, %v9910_v35  ;;  %v9711_v43 = vor.u32 %v10814_v23, %v9710_v21  ;;  %v9890_v31 = vld [vmem:[%s17749_s16 + $0x2e0] sm:$0xf]  ;;  %v17019_v35 = vld [vmem:[%s17752_s17 + $0x138] sm:$0xff]  ;;  %v17024_v18 = vld [vmem:[%s17752_s17 + $0x1c8] sm:$0xff] }
 0x747   :  { %6489 = vmatmul.bf16.vlgmr.msra.gmra.mxu1 %v16482_v19  ;;  %v17029_v21 = vld [vmem:[%s17752_s17 + $0x18] sm:$0xff]  ;;  %v17036_v23 = vld [vmem:[%s17752_s17 + $0x130] sm:$0xff] }
 0x748   :  { %6608 = vmatpush.msrb.mxu1 %v16687_v39 }
 0x749   :  { %6495 = vmatpush.bf16.msrb.mxu3 %v9651_v61  ;;  %v10859_v61 = vld [vmem:[%s17749_s16 + $0x2f0] sm:$0xf0] }
 0x74a   :  { %6508 = vmatpush.bf16.msra.mxu2 %v9811_v36  ;;  %6475 = vmatpush.bf16.msra.mxu0 %v9687_v48  ;;  %v9531_v36 = vor.u32 %v10769_v11, %v9530_v26  ;;  %v9891_v46 = vor.u32 %v10859_v61, %v9890_v31  ;;  %v16819_v48 = vld [vmem:[%s17752_s17 + $0xf8] sm:$0xff]  ;;  %v17055_v26 = vld [vmem:[%s17752_s17 + $0x128] sm:$0xff]  ;;  %v17072_v11 = vld [vmem:[%s17752_s17 + $0x120] sm:$0xff] }
 0x74b   :  { %6609 = vmatpush.msrb.mxu1 %v16699_v55  ;;  %v6533_v31 = vld [vmem:[%s17752_s17] sm:$0xff]  ;;  %v17092_v61 = vld [vmem:[%s17752_s17 + $0x1a8] sm:$0xff] }
 0x74d   :  { %6496 = vmatpush.bf16.msrb.mxu3 %v9631_v50  ;;  %6476 = vmatmul.bf16.vlgmr.msra.gmra.mxu0 %v16431_v54  ;;  %v16824_v50 = vld [vmem:[%s17752_s17 + $0x178] sm:$0xff] }
 0x74e   :  { %6520 = vmatpush.bf16.msrb.mxu0 %v9991_v12  ;;  %6509 = vmatpush.bf16.msra.mxu2 %v9791_v17  ;;  %v9871_v12 = vor.u32 %v10854_v44, %v9870_v32  ;;  %v10849_v17 = vld [vmem:[%s17749_s16 + $0x2a0] sm:$0xf0] }
 0x74f   :  { %6610 = vmatpush.msrb.mxu1 %v16711_v10  ;;  %v9851_v28 = vor.u32 %v10849_v17, %v9850_v13 }
 0x751   :  { %6497 = vmatpush.bf16.msrb.mxu3 %v9611_v7  ;;  %6611 = vmatpush.msrb.mxu1 %v16720_v63  ;;  %v16874_v7 = vld [vmem:[%s17752_s17 + $0x160] sm:$0xff] }
 0x752   :  { %6521 = vmatpush.bf16.msrb.mxu0 %v9971_v34  ;;  %6510 = vmatpush.bf16.msra.mxu2 %v9771_v37  ;;  %v16879_v34 = vld [vmem:[%s17752_s17 + $0xd8] sm:$0xff]  ;;  %v16896_v37 = vld [vmem:[%s17752_s17 + $0xd0] sm:$0xff] }
 0x753   :  { %6612 = vmatpush.msrb.mxu1 %v16741_v62 }
 0x755   :  { %6498 = vmatpush.bf16.msrb.mxu3 %v9591_v58  ;;  %6613 = vmatpush.msrb.mxu1 %v16750_v57  ;;  %v16932_v58 = vld [vmem:[%s17752_s17 + $0xc0] sm:$0xff] }
 0x756   :  { %6522 = vmatpush.bf16.msrb.mxu0 %v9951_v59  ;;  %6511 = vmatpush.bf16.msra.mxu2 %v9751_v42  ;;  %v16940_v59 = vld [vmem:[%s17752_s17 + $0x1d8] sm:$0xff]  ;;  %v16953_v42 = vld [vmem:[%s17752_s17 + $0xb0] sm:$0xff] }
 0x757   :  { %6614 = vmatpush.msrb.mxu1 %v16771_v38 }
 0x759   :  { %6499 = vmatpush.bf16.msrb.mxu3 %v9571_v29  ;;  %6615 = vmatpush.msrb.mxu1 %v16780_v27  ;;  %v16990_v29 = vld [vmem:[%s17752_s17 + $0x88] sm:$0xff] }
 0x75a   :  { %6523 = vmatpush.bf16.msrb.mxu0 %v9931_v52  ;;  %6512 = vmatpush.bf16.msra.mxu2 %v9731_v14  ;;  %v16995_v52 = vld [vmem:[%s17752_s17 + $0x140] sm:$0xff] }
 0x75b   :  { %6616 = vmatpush.msrb.mxu1 %v16801_v5  ;;  %v17007_v14 = vld [vmem:[%s17752_s17 + $0x20] sm:$0xff] }
 0x75d   :  { %6500 = vmatpush.bf16.msrb.mxu3 %v9551_v20  ;;  %6617 = vmatpush.msrb.mxu1 %v16807_v15  ;;  %v17041_v20 = vld [vmem:[%s17752_s17 + $0x1c0] sm:$0xff] }
 0x75e   :  { %6524 = vmatpush.bf16.msrb.mxu0 %v9911_v25  ;;  %6513 = vmatpush.bf16.msra.mxu2 %v9711_v43  ;;  %v6535_v25 = vld [vmem:[%s17752_s17 + $0x10] sm:$0xff]  ;;  %v17060_v43 = vld [vmem:[%s17752_s17 + $0x1b8] sm:$0xff] }
 0x75f   :  { %6618 = vmatpush.msrb.mxu1 %v16985_v45 }
 0x761   :  { %6501 = vmatpush.bf16.msrb.mxu3 %v9531_v36  ;;  %6619 = vmatpush.msrb.mxu1 %v17007_v14  ;;  %v17116_v36 = vld [vmem:[%s17752_s17 + $0x198] sm:$0xff] }
 0x762   :  { %6525 = vmatpush.bf16.msrb.mxu0 %v9891_v46  ;;  %6514 = vmatpush.bf16.msra.mxu2 %v9691_v47  ;;  %v17129_v46 = vld [vmem:[%s17752_s17 + $0x190] sm:$0xff]  ;;  %v17146_v47 = vld [vmem:[%s17752_s17 + $0x180] sm:$0xff] }
 0x763   :  { %6620 = vmatpush.msrb.mxu1 %v17029_v21 }
 0x764   :  { %6502 = vmatmul.bf16.vlgmr.msrb.gmra.mxu3 %v16429_v49  ;;  %v16862_v49 = vld [vmem:[%s17752_s17 + $0xe0] sm:$0xff] }
 0x765   :  { %6628 = vmatpush.msra.mxu3 %v16819_v48  ;;  %6515 = vmatmul.bf16.vlgmr.msra.gmra.mxu2 %v16431_v54  ;;  %v16867_v54 = vld [vmem:[%s17752_s17 + $0x1f8] sm:$0xff] }
 0x766   :  { %6648 = vmatpush.msrb.mxu2 %v16824_v50  ;;  %6526 = vmatpush.bf16.msrb.mxu0 %v9871_v12 }
 0x767   :  { %6629 = vmatpush.msra.mxu3 %v16837_v6  ;;  %6621 = vmatpush.msrb.mxu1 %v6535_v25 }
 0x768   :  { %6649 = vmatpush.msrb.mxu2 %v16843_v22 }
 0x769   :  { %6630 = vmatpush.msra.mxu3 %v16850_v53 }
 0x76a   :  { %6650 = vmatpush.msrb.mxu2 %v16855_v4  ;;  %6527 = vmatpush.bf16.msrb.mxu0 %v9851_v28  ;;  %v6600_v28 = vld [vmem:[%s17752_s17 + $0x218] sm:$0xff] }
 0x76b   :  { %6631 = vmatpush.msra.mxu3 %v16862_v49 }
 0x76c   :  { %6651 = vmatpush.msrb.mxu2 %v16874_v7 }
 0x76d   :  { %6528 = vmatmul.bf16.vlgmr.msrb.gmra.mxu0 %v16482_v19  ;;  %6632 = vmatpush.msra.mxu3 %v16879_v34  ;;  %v16922_v19 = vld [vmem:[%s17752_s17 + $0x1e0] sm:$0xff] }
 0x76e   :  { %6668 = vmatpush.msra.mxu0 %v16867_v54  ;;  %6652 = vmatpush.msrb.mxu2 %v16891_v33 }
 0x76f   :  { %6633 = vmatpush.msra.mxu3 %v16896_v37 }
 0x770   :  { %6669 = vmatpush.msra.mxu0 %v16886_v24  ;;  %6653 = vmatpush.msrb.mxu2 %v16909_v41 }
 0x771   :  { %6634 = vmatpush.msra.mxu3 %v16914_v56 }
 0x772   :  { %6670 = vmatpush.msra.mxu0 %v16904_v51  ;;  %6654 = vmatpush.msrb.mxu2 %v16927_v40 }
 0x773   :  { %6635 = vmatpush.msra.mxu3 %v16932_v58 }
 0x774   :  { %6671 = vmatpush.msra.mxu0 %v16922_v19  ;;  %6655 = vmatpush.msrb.mxu2 %v16995_v52 }
 0x775   :  { %6636 = vmatpush.msra.mxu3 %v16945_v60 }
 0x776   :  { %6672 = vmatpush.msra.mxu0 %v16940_v59  ;;  %6656 = vmatpush.msrb.mxu2 %v17019_v35 }
 0x777   :  { %6637 = vmatpush.msra.mxu3 %v16953_v42 }
 0x778   :  { %6673 = vmatpush.msra.mxu0 %v17002_v30  ;;  %6657 = vmatpush.msrb.mxu2 %v17036_v23 }
 0x779   :  { %6638 = vmatpush.msra.mxu3 %v16960_v0 }
 0x77a   :  { %6674 = vmatpush.msra.mxu0 %v17024_v18  ;;  %6658 = vmatpush.msrb.mxu2 %v17055_v26 }
 0x77b   :  { %6639 = vmatpush.msra.mxu3 %v16966_v2 }
 0x77c   :  { %6675 = vmatpush.msra.mxu0 %v17041_v20  ;;  %6659 = vmatpush.msrb.mxu2 %v17072_v11 }
 0x77d   :  { %6640 = vmatpush.msra.mxu3 %v16972_v3 }
 0x77e   :  { %6676 = vmatpush.msra.mxu0 %v17060_v43 }
 0x77f   :  { %6641 = vmatpush.msra.mxu3 %v16978_v8 }
 0x781   :  { %6642 = vmatpush.msra.mxu3 %v16990_v29 }
 0x783   :  { %6643 = vmatpush.msra.mxu3 %v17012_v16 }
 0x785   :  { %6724 = vmatpush.msrb.mxu3 %v16687_v39  ;;  %v6534_v39 = vld [vmem:[%s17752_s17 + $0x8] sm:$0xff] }
 0x786   :  { %6622 = vmatpush.msrb.mxu1 %v6534_v39 }
 0x787   :  { %6725 = vmatpush.msrb.mxu3 %v16699_v55  ;;  %v17077_v55 = vld [vmem:[%s17752_s17 + $0x1b0] sm:$0xff] }
 0x788   :  { %6677 = vmatpush.msra.mxu0 %v17077_v55  ;;  %6623 = vmatpush.msrb.mxu1 %v6533_v31 }
 0x789   :  { %6726 = vmatpush.msrb.mxu3 %v16711_v10  ;;  %v17087_v10 = vld [vmem:[%s17752_s17 + $0x118] sm:$0xff] }
 0x78a   :  { %6660 = vmatpush.msrb.mxu2 %v17087_v10  ;;  %6678 = vmatpush.msra.mxu0 %v17092_v61 }
 0x78b   :  { %6727 = vmatpush.msrb.mxu3 %v16720_v63  ;;  %v17111_v63 = vld [vmem:[%s17752_s17 + $0x108] sm:$0xff] }
 0x78c   :  { %6661 = vmatpush.msrb.mxu2 %v17098_v1  ;;  %6679 = vmatpush.msra.mxu0 %v17103_v9 }
 0x78d   :  { %6728 = vmatpush.msrb.mxu3 %v16741_v62  ;;  %v17124_v62 = vld [vmem:[%s17752_s17 + $0x100] sm:$0xff] }
 0x78e   :  { %6662 = vmatpush.msrb.mxu2 %v17111_v63  ;;  %6680 = vmatpush.msra.mxu0 %v17116_v36 }
 0x78f   :  { %6729 = vmatpush.msrb.mxu3 %v16750_v57  ;;  %v17137_v57 = vld [vmem:[%s17752_s17 + $0x188] sm:$0xff] }
 0x790   :  { %6663 = vmatpush.msrb.mxu2 %v17124_v62  ;;  %6681 = vmatpush.msra.mxu0 %v17129_v46 }
 0x791   :  { %6730 = vmatpush.msrb.mxu3 %v16771_v38 }
 0x792   :  { %6764 = vmatpush.msra.mxu2 %v16824_v50  ;;  %6682 = vmatpush.msra.mxu0 %v17137_v57 }
 0x793   :  { %6731 = vmatpush.msrb.mxu3 %v16780_v27  ;;  %v6604_v27 = vld [vmem:[%s17752_s17 + $0x238] sm:$0xff] }
 0x794   :  { %6765 = vmatpush.msra.mxu2 %v16843_v22  ;;  %6683 = vmatpush.msra.mxu0 %v17146_v47  ;;  %v6601_v22 = vld [vmem:[%s17752_s17 + $0x220] sm:$0xff] }
 0x795   :  { %6732 = vmatpush.msrb.mxu3 %v16801_v5  ;;  %v6603_v5 = vld [vmem:[%s17752_s17 + $0x230] sm:$0xff]  ;;  %6696 = vmatpush.msra.mxu1 %v6604_v27 }
 0x796   :  { %6766 = vmatpush.msra.mxu2 %v16855_v4  ;;  %6784 = vmatpush.msrb.mxu0 %v16867_v54  ;;  %v6599_v4 = vld [vmem:[%s17752_s17 + $0x210] sm:$0xff] }
 0x797   :  { %6733 = vmatpush.msrb.mxu3 %v16807_v15  ;;  %v6602_v15 = vld [vmem:[%s17752_s17 + $0x228] sm:$0xff]  ;;  %6697 = vmatpush.msra.mxu1 %v6603_v5 }
 0x798   :  { %6767 = vmatpush.msra.mxu2 %v16874_v7  ;;  %6785 = vmatpush.msrb.mxu0 %v16886_v24  ;;  %v6598_v24 = vld [vmem:[%s17752_s17 + $0x208] sm:$0xff] }
 0x799   :  { %6734 = vmatpush.msrb.mxu3 %v16985_v45  ;;  %6698 = vmatpush.msra.mxu1 %v6602_v15 }
 0x79a   :  { %6768 = vmatpush.msra.mxu2 %v16891_v33  ;;  %6786 = vmatpush.msrb.mxu0 %v16904_v51  ;;  %v6597_v33 = vld [vmem:[%s17752_s17 + $0x200] sm:$0xff] }
 0x79b   :  { %6735 = vmatpush.msrb.mxu3 %v17007_v14  ;;  %6699 = vmatpush.msra.mxu1 %v6601_v22 }
 0x79c   :  { %6769 = vmatpush.msra.mxu2 %v16909_v41  ;;  %6787 = vmatpush.msrb.mxu0 %v16922_v19 }
 0x79d   :  { %6736 = vmatpush.msrb.mxu3 %v17029_v21  ;;  %6700 = vmatpush.msra.mxu1 %v6600_v28 }
 0x79e   :  { %6770 = vmatpush.msra.mxu2 %v16927_v40  ;;  %6788 = vmatpush.msrb.mxu0 %v16940_v59 }
 0x79f   :  { %6737 = vmatpush.msrb.mxu3 %v6535_v25  ;;  %6701 = vmatpush.msra.mxu1 %v6599_v4 }
 0x7a0   :  { %6771 = vmatpush.msra.mxu2 %v16995_v52  ;;  %6789 = vmatpush.msrb.mxu0 %v17002_v30 }
 0x7a1   :  { %6738 = vmatpush.msrb.mxu3 %v6534_v39  ;;  %6702 = vmatpush.msra.mxu1 %v6598_v24 }
 0x7a2   :  { %v6386_v38 = vpop.f32.mrf.mxu1  ;;  %6772 = vmatpush.msra.mxu2 %v17019_v35  ;;  %6790 = vmatpush.msrb.mxu0 %v17024_v18 }
 0x7a3   :  { %6739 = vmatpush.msrb.mxu3 %v6533_v31  ;;  %6703 = vmatpush.msra.mxu1 %v6597_v33 }
 0x7a4   :  { %6773 = vmatpush.msra.mxu2 %v17036_v23  ;;  %6791 = vmatpush.msrb.mxu0 %v17041_v20 }
 0x7a6   :  { %6774 = vmatpush.msra.mxu2 %v17055_v26  ;;  %6792 = vmatpush.msrb.mxu0 %v17060_v43 }
 0x7a7   :  { %v6347_v32 = vpop.f32.mrf.mxu3  ;;  %v6360_v44 = vpop.f32.mrf.mxu2 }
 0x7a8   :  { %v6361_v50 = vadd.f32 %v6360_v44, %v6347_v32  ;;  %6775 = vmatpush.msra.mxu2 %v17072_v11  ;;  %6793 = vmatpush.msrb.mxu0 %v17077_v55 }
 0x7a9   :  { %v6373_v12 = vpop.f32.mrf.mxu0 }
 0x7aa   :  { %v17181_v13 = vadd.f32 %v6373_v12, %v6361_v50  ;;  %v6388_v17 = vpop.f32.mrf.mxu1  ;;  %6776 = vmatpush.msra.mxu2 %v17087_v10  ;;  %6794 = vmatpush.msrb.mxu0 %v17092_v61 }
 0x7ac   :  { %6624 = vmatmul.f32.vlgmr.msrb.gmra.mxu1 %v17181_v13  ;;  %6777 = vmatpush.msra.mxu2 %v17098_v1  ;;  %v6716_v14 = vmul.f32 %v17181_v13, %v17181_v13 }
 0x7ad   :  { %6795 = vmatpush.msrb.mxu0 %v17103_v9  ;;  %6744 = vmatpush.msrb.mxu1 %v16819_v48 }
 0x7ae   :  { %6778 = vmatpush.msra.mxu2 %v17111_v63 }
 0x7af   :  { %v6349_v54 = vpop.f32.mrf.mxu3  ;;  %v6362_v7 = vpop.f32.mrf.mxu2  ;;  %6796 = vmatpush.msrb.mxu0 %v17116_v36  ;;  %6745 = vmatpush.msrb.mxu1 %v16837_v6 }
 0x7b0   :  { %6779 = vmatpush.msra.mxu2 %v17124_v62 }
 0x7b1   :  { %v6375_v51 = vpop.f32.mrf.mxu0  ;;  %6797 = vmatpush.msrb.mxu0 %v17129_v46  ;;  %6746 = vmatpush.msrb.mxu1 %v16850_v53 }
 0x7b2   :  { %v6438_v41 = vpop.f32.mrf.mxu1  ;;  %v6857_v51 = vld [vmem:[%s17753_s18 + $0x8] sm:$0xff] }
 0x7b3   :  { %6798 = vmatpush.msrb.mxu0 %v17137_v57  ;;  %6747 = vmatpush.msrb.mxu1 %v16862_v49 }
 0x7b5   :  { %6799 = vmatpush.msrb.mxu0 %v17146_v47  ;;  %6748 = vmatpush.msrb.mxu1 %v16879_v34 }
 0x7b7   :  { %v6399_v19 = vpop.f32.mrf.mxu3  ;;  %v6412_v40 = vpop.f32.mrf.mxu2  ;;  %6749 = vmatpush.msrb.mxu1 %v16896_v37 }
 0x7b8   :  { %v6400_v59 = vadd.f32 %v6399_v19, %v6386_v38 }
 0x7b9   :  { %v6425_v45 = vpop.f32.mrf.mxu0  ;;  %6750 = vmatpush.msrb.mxu1 %v16914_v56 }
 0x7ba   :  { %v17216_v52 = vadd.f32 %v6412_v40, %v6400_v59  ;;  %v6440_v30 = vpop.f32.mrf.mxu1  ;;  %v6439_v34 = vadd.f32 %v6438_v41, %v6425_v45  ;;  %v6858_v41 = vld [vmem:[%s17753_s18 + $0x10] sm:$0xff] }
 0x7bb   :  { %6751 = vmatpush.msrb.mxu1 %v16932_v58 }
 0x7bc   :  { %6644 = vmatmul.f32.vlgmr.msra.gmra.mxu3 %v17216_v52  ;;  %v6717_v55 = vmul.f32 %v17216_v52, %v17216_v52 }
 0x7bd   :  { %6812 = vmatpush.msra.mxu3 %v6604_v27  ;;  %6752 = vmatpush.msrb.mxu1 %v16945_v60 }
 0x7bf   :  { %v6401_v48 = vpop.f32.mrf.mxu3  ;;  %v6414_v6 = vpop.f32.mrf.mxu2  ;;  %6813 = vmatpush.msra.mxu3 %v6603_v5  ;;  %6753 = vmatpush.msrb.mxu1 %v16953_v42 }
 0x7c1   :  { %v6427_v53 = vpop.f32.mrf.mxu0  ;;  %6814 = vmatpush.msra.mxu3 %v6602_v15  ;;  %6754 = vmatpush.msrb.mxu1 %v16960_v0 }
 0x7c3   :  { %6815 = vmatpush.msra.mxu3 %v6601_v22  ;;  %6755 = vmatpush.msrb.mxu1 %v16966_v2 }
 0x7c4   :  { %v6490_v49 = vpop.f32.mrf.mxu1  ;;  %6740 = vmatmul.f32.vlgmr.msrb.gmra.mxu3 %v6716_v14 }
 0x7c5   :  { %6816 = vmatpush.msra.mxu3 %v6600_v28  ;;  %6756 = vmatpush.msrb.mxu1 %v16972_v3 }
 0x7c7   :  { %v6451_v37 = vpop.f32.mrf.mxu3  ;;  %6817 = vmatpush.msra.mxu3 %v6599_v4  ;;  %6757 = vmatpush.msrb.mxu1 %v16978_v8 }
 0x7c8   :  { %v17228_v35 = vadd.f32 %v6451_v37, %v6439_v34  ;;  %v6464_v56 = vpop.f32.mrf.mxu2  ;;  %v6860_v37 = vld [vmem:[%s17753_s18 + $0x20] sm:$0xff] }
 0x7c9   :  { %6818 = vmatpush.msra.mxu3 %v6598_v24  ;;  %6758 = vmatpush.msrb.mxu1 %v16990_v29 }
 0x7ca   :  { %v6477_v18 = vpop.f32.mrf.mxu0  ;;  %6664 = vmatmul.f32.vlgmr.msrb.gmra.mxu2 %v17228_v35  ;;  %v6718_v0 = vmul.f32 %v17228_v35, %v17228_v35 }
 0x7cb   :  { %v6478_v58 = vadd.f32 %v6477_v18, %v6464_v56  ;;  %6819 = vmatpush.msra.mxu3 %v6597_v33  ;;  %6759 = vmatpush.msrb.mxu1 %v17012_v16  ;;  %v6856_v33 = vld [vmem:[%s17753_s18] sm:$0xff]  ;;  %v6859_v56 = vld [vmem:[%s17753_s18 + $0x18] sm:$0xff] }
 0x7cc   :  { %v6492_v21 = vpop.f32.mrf.mxu1  ;;  %6900 = vmatpush.msrb.mxu2 %v6857_v51  ;;  %v10249_v51 = vld [vmem:[%s17754_s21 + $0x1f0] sm:$0xf] }
 0x7cd   :  { %v17234_v60 = vadd.f32 %v6490_v49, %v6478_v58  ;;  %v10057_v58 = vld [vmem:[%s17754_s21 + $0x70] sm:$0xf]  ;;  %v10900_v21 = vld [vmem:[%s17754_s21 + $0x74] sm:$0xf0] }
 0x7cf   :  { %6684 = vmatmul.f32.vlgmr.msra.gmra.mxu0 %v17234_v60  ;;  %v6453_v42 = vpop.f32.mrf.mxu3  ;;  %v6719_v2 = vmul.f32 %v17234_v60, %v17234_v60 }
 0x7d0   :  { %v6466_v23 = vpop.f32.mrf.mxu2  ;;  %6920 = vmatpush.msra.mxu0 %v6858_v41  ;;  %v10058_v42 = vor.u32 %v10900_v21, %v10057_v58  ;;  %v10009_v21 = vld [vmem:[%s17754_s21 + $0x10] sm:$0xf] }
 0x7d1   :  { %v10916_v23 = vld [vmem:[%s17754_s21 + $0xf4] sm:$0xf0] }
 0x7d2   :  { %v6479_v20 = vpop.f32.mrf.mxu0  ;;  %6780 = vmatmul.f32.vlgmr.msra.gmra.mxu2 %v6718_v0  ;;  %v10121_v0 = vld [vmem:[%s17754_s21 + $0xf0] sm:$0xf]  ;;  %7435 = vmatpush.bf16.msrb.mxu3 %v10058_v42  ;;  %v10888_v42 = vld [vmem:[%s17754_s21 + $0x14] sm:$0xf0] }
 0x7d3   :  { %6960 = vmatpush.msra.mxu2 %v6860_v37  ;;  %v10049_v20 = vld [vmem:[%s17754_s21 + $0x60] sm:$0xf] }
 0x7d7   :  { %6800 = vmatmul.f32.vlgmr.msrb.gmra.mxu0 %v6719_v2 }
 0x7e7   :  { %v6503_v3 = vpop.f32.mrf.mxu3 }
 0x7e8   :  { %v6516_v25 = vpop.f32.mrf.mxu2 }
 0x7e9   :  { %v6517_v8 = vadd.f32 %v6516_v25, %v6503_v3  ;;  %v10122_v3 = vor.u32 %v10916_v23, %v10121_v0  ;;  %v10898_v25 = vld [vmem:[%s17754_s21 + $0x64] sm:$0xf0]  ;;  %v10073_v0 = vld [vmem:[%s17754_s21 + $0x90] sm:$0xf]  ;;  %v10904_v23 = vld [vmem:[%s17754_s21 + $0x94] sm:$0xf0] }
 0x7ea   :  { %v6529_v26 = vpop.f32.mrf.mxu0 }
 0x7eb   :  { %v17244_v43 = vadd.f32 %v6529_v26, %v6517_v8  ;;  %v10050_v26 = vor.u32 %v10898_v25, %v10049_v20  ;;  %7448 = vmatpush.bf16.msrb.mxu0 %v10122_v3  ;;  %v10928_v3 = vld [vmem:[%s17754_s21 + $0x154] sm:$0xf0] }
 0x7ed   :  { %v6720_v39 = vmul.f32 %v17244_v43, %v17244_v43  ;;  %9992 = vmatmul.msk.f32.vlgmr.msra.gmra.mxu1 %vm1080_vm7, %v17244_v43  ;;  %7436 = vmatpush.bf16.msrb.mxu3 %v10050_v26  ;;  %v10233_v26 = vld [vmem:[%s17754_s21 + $0x1d0] sm:$0xf] }
 0x7ee   :  { %6880 = vmatpush.msra.mxu1 %v6856_v33  ;;  %v10932_v33 = vld [vmem:[%s17754_s21 + $0x174] sm:$0xf0] }
 0x7ef   :  { %9993 = vmatmul.msk.f32.vlgmr.msra.gmra.mxu3 %vm1080_vm7, %v6720_v39  ;;  %v6505_v29 = vpop.f32.mrf.mxu3  ;;  %v10113_v39 = vld [vmem:[%s17754_s21 + $0xe0] sm:$0xf] }
 0x7f0   :  { %v6518_v16 = vpop.f32.mrf.mxu2  ;;  %v10914_v29 = vld [vmem:[%s17754_s21 + $0xe4] sm:$0xf0] }
 0x7f1   :  { %v10041_v16 = vld [vmem:[%s17754_s21 + $0x50] sm:$0xf] }
 0x7f2   :  { %v6531_v11 = vpop.f32.mrf.mxu0 }
 0x7f5   :  { %6760 = vmatmul.f32.vlgmr.msrb.gmra.mxu1 %v6717_v55  ;;  %v10114_v55 = vor.u32 %v10914_v29, %v10113_v39  ;;  %v10944_v39 = vld [vmem:[%s17754_s21 + $0x1d4] sm:$0xf0]  ;;  %v10074_v29 = vor.u32 %v10904_v23, %v10073_v0  ;;  %v10273_v0 = vld [vmem:[%s17754_s21 + $0x220] sm:$0xf] }
 0x7f6   :  { %6940 = vmatpush.msrb.mxu1 %v6859_v56 }
 0x7f7   :  { %7449 = vmatpush.bf16.msrb.mxu0 %v10114_v55  ;;  %v10926_v55 = vld [vmem:[%s17754_s21 + $0x144] sm:$0xf0] }
 0x829   :  { %v6625_v10 = vpop.f32.mrf.mxu1 }
 0x83f   :  { %v6645_v31 = vpop.f32.mrf.mxu3 }
 0x840   :  { %v6646_v1 = vadd.f32 %v6645_v31, %v6625_v10  ;;  %v10896_v31 = vld [vmem:[%s17754_s21 + $0x54] sm:$0xf0]  ;;  %v10105_v10 = vld [vmem:[%s17754_s21 + $0xd0] sm:$0xf] }
 0x847   :  { %v6741_v38 = vpop.f32.mrf.mxu3 }
 0x84c   :  { %v6685_v63 = vpop.f32.mrf.mxu0 }
 0x84d   :  { %v6665_v61 = vpop.f32.mrf.mxu2 }
 0x84e   :  { %v6666_v9 = vadd.f32 %v6665_v61, %v6646_v1  ;;  %v10042_v1 = vor.u32 %v10896_v31, %v10041_v16  ;;  %v10234_v31 = vor.u32 %v10944_v39, %v10233_v26  ;;  %v10931_v26 = vld [vmem:[%s17754_s21 + $0x174] sm:$0xf]  ;;  %v10187_v39 = vld [vmem:[%s17754_s21 + $0x178] sm:$0xf0] }
 0x850   :  { %v6686_v36 = vadd.f32 %v6685_v63, %v6666_v9  ;;  %v10912_v9 = vld [vmem:[%s17754_s21 + $0xd4] sm:$0xf0]  ;;  %7437 = vmatpush.bf16.msrb.mxu3 %v10042_v1 }
 0x851   :  { %v10106_v63 = vor.u32 %v10912_v9, %v10105_v10  ;;  %v10225_v10 = vld [vmem:[%s17754_s21 + $0x1c0] sm:$0xf]  ;;  %v10153_v9 = vld [vmem:[%s17754_s21 + $0x130] sm:$0xf] }
 0x853   :  { %7450 = vmatpush.bf16.msrb.mxu0 %v10106_v63  ;;  %v10924_v63 = vld [vmem:[%s17754_s21 + $0x134] sm:$0xf0] }
 0x854   :  { %v6801_v12 = vpop.f32.mrf.mxu0 }
 0x855   :  { %v6781_v32 = vpop.f32.mrf.mxu2 }
 0x86a   :  { %v6705_v62 = vpop.f32.mrf.mxu1 }
 0x86b   :  { %v6706_v46 = vadd.f32 %v6705_v62, %v6686_v36  ;;  %v10033_v36 = vld [vmem:[%s17754_s21 + $0x40] sm:$0xf]  ;;  %v10894_v62 = vld [vmem:[%s17754_s21 + $0x44] sm:$0xf0] }
 0x86d   :  { %v6709_v57 = vsel %vm6708_vm3, %v6706_v46, 0.0 }
 0x86e   :  { %v6710_v47 = vrot.slane %v6709_v57, 4 }
 0x870   :  { %v6711_v27 = vadd.f32 %v6710_v47, %v6709_v57  ;;  %v10097_v57 = vld [vmem:[%s17754_s21 + $0xc0] sm:$0xf]  ;;  %v10910_v47 = vld [vmem:[%s17754_s21 + $0xc4] sm:$0xf0] }
 0x872   :  { %v6761_v5 = vpop.f32.mrf.mxu1  ;;  %v6712_v44 = vrot.slane %v6711_v27, 2  ;;  %v6821_v28 = vpop.f32.mrf.mxu3 }
 0x873   :  { %v6762_v15 = vadd.f32 %v6761_v5, %v6741_v38  ;;  %v6836_v38 = vld [vmem:[%s17755_s19] sm:$0x1]  ;;  %v10034_v5 = vor.u32 %v10894_v62, %v10033_v36  ;;  %v10217_v62 = vld [vmem:[%s17754_s21 + $0x1b0] sm:$0xf] }
 0x874   :  { %v6713_v22 = vadd.f32 %v6712_v44, %v6711_v27  ;;  %v10892_v44 = vld [vmem:[%s17754_s21 + $0x34] sm:$0xf0] }
 0x875   :  { %v6782_v50 = vadd.f32 %v6781_v32, %v6762_v15  ;;  %v10098_v15 = vor.u32 %v10910_v47, %v10097_v57  ;;  %v10025_v32 = vld [vmem:[%s17754_s21 + $0x30] sm:$0xf]  ;;  %7438 = vmatpush.bf16.msrb.mxu3 %v10034_v5  ;;  %v10154_v57 = vor.u32 %v10924_v63, %v10153_v9  ;;  %v10145_v47 = vld [vmem:[%s17754_s21 + $0x120] sm:$0xf]  ;;  %v10099_v9 = vld [vmem:[%s17754_s21 + $0xc8] sm:$0xf0] }
 0x876   :  { %v6714_v7 = vrot.slane %v6713_v22, 1  ;;  %v10209_v5 = vld [vmem:[%s17754_s21 + $0x1a0] sm:$0xf]  ;;  %v10929_v63 = vld [vmem:[%s17754_s21 + $0x164] sm:$0xf] }
 0x877   :  { %v6802_v17 = vadd.f32 %v6801_v12, %v6782_v50  ;;  %v10089_v12 = vld [vmem:[%s17754_s21 + $0xb0] sm:$0xf]  ;;  %7451 = vmatpush.bf16.msrb.mxu0 %v10098_v15  ;;  %v10938_v15 = vld [vmem:[%s17754_s21 + $0x1a4] sm:$0xf0] }
 0x878   :  { %v6715_v40 = vadd.f32 %v6714_v7, %v6713_v22 }
 0x879   :  { %v6822_v4 = vadd.f32 %v6821_v28, %v6802_v17  ;;  %v10908_v17 = vld [vmem:[%s17754_s21 + $0xb4] sm:$0xf0]  ;;  %v6849_v28 = vld [vmem:[%s17756_s20] sm:$0x1] }
 0x87a   :  { %v17264_v30 = vmul.f32 0.0069444445, %v6715_v40  ;;  %v10090_v7 = vor.u32 %v10908_v17, %v10089_v12  ;;  %v10017_v40 = vld [vmem:[%s17754_s21 + $0x20] sm:$0xf]  ;;  %v10210_v12 = vor.u32 %v10938_v15, %v10209_v5  ;;  %v10950_v5 = vld [vmem:[%s17754_s21 + $0x204] sm:$0xf0] }
 0x87b   :  { %v6824_v54 = vsel %vm6708_vm3, %v6822_v4, 0.0  ;;  %v10026_v4 = vor.u32 %v10892_v44, %v10025_v32  ;;  %v10137_v44 = vld [vmem:[%s17754_s21 + $0x110] sm:$0xf] }
 0x87c   :  { %v6825_v24 = vrot.slane %v6824_v54, 4  ;;  %v6833_v53 = vmul.f32 %v17264_v30, %v17264_v30  ;;  %7452 = vmatpush.bf16.msrb.mxu0 %v10090_v7 }
 0x87d   :  { %7439 = vmatpush.bf16.msrb.mxu3 %v10026_v4  ;;  %v10915_v4 = vld [vmem:[%s17754_s21 + $0xf4] sm:$0xf] }
 0x87e   :  { %v6826_v19 = vadd.f32 %v6825_v24, %v6824_v54  ;;  %v10185_v24 = vld [vmem:[%s17754_s21 + $0x170] sm:$0xf] }
 0x880   :  { %v6827_v59 = vrot.slane %v6826_v19, 2 }
 0x882   :  { %v6828_v45 = vadd.f32 %v6827_v59, %v6826_v19  ;;  %v10948_v19 = vld [vmem:[%s17754_s21 + $0x1f4] sm:$0xf0]  ;;  %v10890_v59 = vld [vmem:[%s17754_s21 + $0x24] sm:$0xf0] }
 0x883   :  { %v10018_v37 = vor.u32 %v10890_v59, %v10017_v40  ;;  %v10936_v40 = vld [vmem:[%s17754_s21 + $0x194] sm:$0xf0]  ;;  %v10281_v59 = vld [vmem:[%s17754_s21 + $0x230] sm:$0xf] }
 0x884   :  { %v6829_v48 = vrot.slane %v6828_v45, 1 }
 0x885   :  { %7440 = vmatpush.bf16.msrb.mxu3 %v10018_v37 }
 0x886   :  { %v6830_v6 = vadd.f32 %v6829_v48, %v6828_v45  ;;  %v10081_v45 = vld [vmem:[%s17754_s21 + $0xa0] sm:$0xf] }
 0x888   :  { %v6832_v14 = vmul.f32 0.0069444445, %v6830_v6  ;;  %v10186_v6 = vor.u32 %v10932_v33, %v10185_v24  ;;  %v10001_v33 = vld [vmem:[%s17754_s21] sm:$0xf] }
 0x88a   :  { %v6834_v49 = vsub.f32 %v6832_v14, %v6833_v53  ;;  %v10177_v53 = vld [vmem:[%s17754_s21 + $0x160] sm:$0xf]  ;;  %v10930_v14 = vld [vmem:[%s17754_s21 + $0x164] sm:$0xf0] }
 0x88b   :  { %v10178_v20 = vor.u32 %v10930_v14, %v10177_v53 }
 0x88c   :  { %v6835_v34 = vmax.f32 %v6834_v49, 0.0  ;;  %v10250_v49 = vor.u32 %v10948_v19, %v10249_v51  ;;  %v10886_v51 = vld [vmem:[%s17754_s21 + $0x4] sm:$0xf0]  ;;  %v10201_v19 = vld [vmem:[%s17754_s21 + $0x190] sm:$0xf] }
 0x88e   :  { %v6837_v18 = vadd.f32 1e-05, %v6835_v34  ;;  %v10241_v34 = vld [vmem:[%s17754_s21 + $0x1e0] sm:$0xf] }
 0x890   :  { %10963 = vrsqrt.f32 %v6837_v18  ;;  %vm6844_vm5 = vweird.f32 %v6837_v18 }
 0x896   :  { %v10964_v2 = vpop.eup %10963 }
 0x897   :  { %v6839_v8 = vmul.f32 %v10964_v2, %v6837_v18  ;;  %vm6845_vm4 = vweird.f32 %v10964_v2  ;;  %v10946_v18 = vld [vmem:[%s17754_s21 + $0x1e4] sm:$0xf0] }
 0x898   :  { %vm6846_vm8 = vmor %vm6844_vm5, %vm6845_vm4  ;;  %v10242_v25 = vor.u32 %v10946_v18, %v10241_v34  ;;  %v10902_v34 = vld [vmem:[%s17754_s21 + $0x84] sm:$0xf0]  ;;  %v10059_v18 = vld [vmem:[%s17754_s21 + $0x78] sm:$0xf0] }
 0x899   :  { %v6840_v11 = vmul.f32 %v10964_v2, %v6839_v8  ;;  %v10010_v8 = vor.u32 %v10888_v42, %v10009_v21  ;;  %v10193_v21 = vld [vmem:[%s17754_s21 + $0x180] sm:$0xf]  ;;  %v10934_v42 = vld [vmem:[%s17754_s21 + $0x184] sm:$0xf0] }
 0x89a   :  { %v10194_v23 = vor.u32 %v10934_v42, %v10193_v21  ;;  %v10921_v21 = vld [vmem:[%s17754_s21 + $0x124] sm:$0xf] }
 0x89b   :  { %v6841_v61 = vmul.f32 0.5, %v6840_v11  ;;  %v10161_v11 = vld [vmem:[%s17754_s21 + $0x140] sm:$0xf]  ;;  %7441 = vmatpush.bf16.msrb.mxu3 %v10010_v8 }
 0x89c   :  { %v10162_v1 = vor.u32 %v10926_v55, %v10161_v11  ;;  %v10051_v11 = vld [vmem:[%s17754_s21 + $0x68] sm:$0xf0] }
 0x89d   :  { %v6842_v46 = vsub.f32 1.5, %v6841_v61  ;;  %v10942_v61 = vld [vmem:[%s17754_s21 + $0x1c4] sm:$0xf0] }
 0x89e   :  { %v10226_v36 = vor.u32 %v10942_v61, %v10225_v10  ;;  %v10952_v10 = vld [vmem:[%s17754_s21 + $0x214] sm:$0xf0] }
 0x89f   :  { %v6843_v27 = vmul.f32 %v10964_v2, %v6842_v46  ;;  %v10940_v46 = vld [vmem:[%s17754_s21 + $0x1b4] sm:$0xf0] }
 0x8a1   :  { %v6847_v50 = vsel %vm6846_vm8, %v10964_v2, %v6843_v27  ;;  %v10169_v2 = vld [vmem:[%s17754_s21 + $0x150] sm:$0xf]  ;;  %v10218_v27 = vor.u32 %v10940_v46, %v10217_v62  ;;  %v10179_v62 = vld [vmem:[%s17754_s21 + $0x168] sm:$0xf0] }
 0x8a2   :  { %v6848_v22 = vmul.f32 %v6847_v50, %v6836_v38  ;;  %v10170_v16 = vor.u32 %v10928_v3, %v10169_v2  ;;  %v10922_v38 = vld [vmem:[%s17754_s21 + $0x124] sm:$0xf0]  ;;  %v10920_v50 = vld [vmem:[%s17754_s21 + $0x114] sm:$0xf0]  ;;  %v10911_v2 = vld [vmem:[%s17754_s21 + $0xd4] sm:$0xf]  ;;  %v10182_v46 = vor.u32 %v10929_v63, %v10179_v62 }
 0x8a3   :  { %v10146_v32 = vor.u32 %v10922_v38, %v10145_v47  ;;  %v10138_v17 = vor.u32 %v10920_v50, %v10137_v44  ;;  %v10107_v3 = vld [vmem:[%s17754_s21 + $0xd8] sm:$0xf0]  ;;  %v10927_v50 = vld [vmem:[%s17754_s21 + $0x154] sm:$0xf] }
 0x8a4   :  { %v6850_v54 = vmul.f32 %v6848_v22, %v17264_v30  ;;  %v10906_v30 = vld [vmem:[%s17754_s21 + $0xa4] sm:$0xf0]  ;;  %v10110_v8 = vor.u32 %v10911_v2, %v10107_v3  ;;  %v10043_v47 = vld [vmem:[%s17754_s21 + $0x58] sm:$0xf0] }
 0x8a5   :  { %v10082_v58 = vor.u32 %v10906_v30, %v10081_v45  ;;  %v10202_v45 = vor.u32 %v10936_v40, %v10201_v19  ;;  %v10956_v30 = vld [vmem:[%s17754_s21 + $0x234] sm:$0xf0]  ;;  %v10091_v44 = vld [vmem:[%s17754_s21 + $0xb8] sm:$0xf0]  ;;  %v10891_v40 = vld [vmem:[%s17754_s21 + $0x34] sm:$0xf] }
 0x8a6   :  { %v6851_v41 = vsub.f32 %v6849_v28, %v6850_v54  ;;  %v10918_v28 = vld [vmem:[%s17754_s21 + $0x104] sm:$0xf0]  ;;  %v10123_v54 = vld [vmem:[%s17754_s21 + $0xf8] sm:$0xf0]  ;;  %v10282_v53 = vor.u32 %v10956_v30, %v10281_v59  ;;  %v10903_v30 = vld [vmem:[%s17754_s21 + $0x94] sm:$0xf] }
 0x8a7   :  { %7453 = vmatpush.bf16.msrb.mxu0 %v10082_v58  ;;  %v10126_v24 = vor.u32 %v10915_v4, %v10123_v54  ;;  %v10035_v4 = vld [vmem:[%s17754_s21 + $0x48] sm:$0xf0]  ;;  %v10027_v59 = vld [vmem:[%s17754_s21 + $0x38] sm:$0xf0] }
 0x8a8   :  { %v6853_v48 = vperm.slane %v6851_v41, 0  ;;  %v10002_v41 = vor.u32 %v10886_v51, %v10001_v33  ;;  %v10925_v33 = vld [vmem:[%s17754_s21 + $0x144] sm:$0xf]  ;;  %v10011_v2 = vld [vmem:[%s17754_s21 + $0x18] sm:$0xf0] }
 0x8aa   :  { %v6855_v56 = vsel %vm1014_vm6, %v6848_v22, %v6853_v48  ;;  %v10129_v22 = vld [vmem:[%s17754_s21 + $0x100] sm:$0xf]  ;;  %v10913_v48 = vld [vmem:[%s17754_s21 + $0xe4] sm:$0xf]  ;;  %7442 = vmatpush.bf16.msrb.mxu3 %v10002_v41  ;;  %v10163_v41 = vld [vmem:[%s17754_s21 + $0x148] sm:$0xf0] }
 0x8ab   :  { %9994 = vmatmul.msk.f32.vlgmr.msra.gmra.mxu1 %vm6861_vm9, %v6855_v56  ;;  %9995 = vmatmul.msk.f32.vlgmr.msrb.gmra.mxu2 %vm6861_vm9, %v6855_v56  ;;  %v10130_v7 = vor.u32 %v10918_v28, %v10129_v22  ;;  %v10893_v28 = vld [vmem:[%s17754_s21 + $0x44] sm:$0xf]  ;;  %v10166_v19 = vor.u32 %v10925_v33, %v10163_v41  ;;  %vm7572_vm6 = vcmask 519170  }
 0x8ac   :  { %9996 = vmatmul.msk.f32.vlgmr.msra.gmra.mxu0 %vm6861_vm9, %v6855_v56  ;;  %7461 = vmatpush.bf16.msra.mxu1 %v10186_v6  ;;  %v10115_v6 = vld [vmem:[%s17754_s21 + $0xe8] sm:$0xf0]  ;;  %v10038_v54 = vor.u32 %v10893_v28, %v10035_v4  ;;  %v10945_v33 = vld [vmem:[%s17754_s21 + $0x1e4] sm:$0xf] }
 0x8ad   :  { %7474 = vmatpush.bf16.msrb.mxu2 %v10250_v49  ;;  %7454 = vmatpush.bf16.msrb.mxu0 %v10074_v29  ;;  %v10118_v14 = vor.u32 %v10913_v48, %v10115_v6  ;;  %v10065_v49 = vld [vmem:[%s17754_s21 + $0x80] sm:$0xf]  ;;  %v10190_v29 = vor.u32 %v10931_v26, %v10187_v39  ;;  %v10075_v48 = vld [vmem:[%s17754_s21 + $0x98] sm:$0xf0]  ;;  %v10923_v6 = vld [vmem:[%s17754_s21 + $0x134] sm:$0xf] }
 0x8ae   :  { %v10066_v37 = vor.u32 %v10902_v34, %v10065_v49  ;;  %7491 = vmatpush.bf16.msra.mxu3 %v10282_v53  ;;  %v10078_v53 = vor.u32 %v10903_v30, %v10075_v48  ;;  %v10889_v34 = vld [vmem:[%s17754_s21 + $0x24] sm:$0xf]  ;;  %v10943_v30 = vld [vmem:[%s17754_s21 + $0x1d4] sm:$0xf] }
 0x8af   :  { %v10885_v39 = vld [vmem:[%s17754_s21 + $0x4] sm:$0xf] }
 0x8b0   :  { %7462 = vmatpush.bf16.msra.mxu1 %v10178_v20  ;;  %v10954_v20 = vld [vmem:[%s17754_s21 + $0x224] sm:$0xf0] }
 0x8b1   :  { %7475 = vmatpush.bf16.msrb.mxu2 %v10242_v25  ;;  %7455 = vmatpush.bf16.msrb.mxu0 %v10066_v37  ;;  %v10274_v25 = vor.u32 %v10954_v20, %v10273_v0  ;;  %v10019_v37 = vld [vmem:[%s17754_s21 + $0x28] sm:$0xf0]  ;;  %v10887_v20 = vld [vmem:[%s17754_s21 + $0x14] sm:$0xf] }
 0x8b2   :  { %v10147_v0 = vld [vmem:[%s17754_s21 + $0x128] sm:$0xf0]  ;;  %v10014_v3 = vor.u32 %v10887_v20, %v10011_v2  ;;  %v10941_v20 = vld [vmem:[%s17754_s21 + $0x1c4] sm:$0xf] }
 0x8b3   :  { %9997 = vmatmul.msk.f32.vlgmr.msrb.gmra.mxu1 %vm6861_vm9, %v6855_v56  ;;  %9998 = vmatmul.msk.f32.vlgmr.msra.gmra.mxu2 %vm6861_vm9, %v6855_v56  ;;  %v10899_v56 = vld [vmem:[%s17754_s21 + $0x74] sm:$0xf] }
 0x8b4   :  { %7463 = vmatpush.bf16.msra.mxu1 %v10170_v16  ;;  %v10062_v58 = vor.u32 %v10899_v56, %v10059_v18  ;;  %v10897_v16 = vld [vmem:[%s17754_s21 + $0x64] sm:$0xf]  ;;  %7492 = vmatpush.bf16.msra.mxu3 %v10274_v25  ;;  %v10022_v56 = vor.u32 %v10889_v34, %v10019_v37  ;;  %v10919_v25 = vld [vmem:[%s17754_s21 + $0x114] sm:$0xf] }
 0x8b5   :  { %7476 = vmatpush.bf16.msrb.mxu2 %v10234_v31  ;;  %v10054_v55 = vor.u32 %v10897_v16, %v10051_v11  ;;  %v10265_v31 = vld [vmem:[%s17754_s21 + $0x210] sm:$0xf]  ;;  %v10901_v18 = vld [vmem:[%s17754_s21 + $0x84] sm:$0xf] }
 0x8b6   :  { %7500 = vmatpush.bf16.msra.mxu0 %v10062_v58  ;;  %v10266_v61 = vor.u32 %v10952_v10, %v10265_v31  ;;  %v10067_v58 = vld [vmem:[%s17754_s21 + $0x88] sm:$0xf0]  ;;  %v10917_v16 = vld [vmem:[%s17754_s21 + $0x104] sm:$0xf] }
 0x8b7   :  { %v10070_v42 = vor.u32 %v10901_v18, %v10067_v58  ;;  %v10953_v58 = vld [vmem:[%s17754_s21 + $0x224] sm:$0xf] }
 0x8b8   :  { %7464 = vmatpush.bf16.msra.mxu1 %v10162_v1  ;;  %v10909_v1 = vld [vmem:[%s17754_s21 + $0xc4] sm:$0xf]  ;;  %7493 = vmatpush.bf16.msra.mxu3 %v10266_v61 }
 0x8b9   :  { %7477 = vmatpush.bf16.msrb.mxu2 %v10226_v36  ;;  %v10102_v36 = vor.u32 %v10909_v1, %v10099_v9 }
 0x8ba   :  { %7501 = vmatpush.bf16.msra.mxu0 %v10054_v55  ;;  %v10131_v55 = vld [vmem:[%s17754_s21 + $0x108] sm:$0xf0] }
 0x8bb   :  { %v10134_v10 = vor.u32 %v10917_v16, %v10131_v55  ;;  %v10219_v16 = vld [vmem:[%s17754_s21 + $0x1b8] sm:$0xf0]  ;;  %v10949_v55 = vld [vmem:[%s17754_s21 + $0x204] sm:$0xf] }
 0x8bc   :  { %7465 = vmatpush.bf16.msra.mxu1 %v10154_v57  ;;  %v10895_v57 = vld [vmem:[%s17754_s21 + $0x54] sm:$0xf] }
 0x8bd   :  { %7478 = vmatpush.bf16.msrb.mxu2 %v10218_v27  ;;  %v10046_v38 = vor.u32 %v10895_v57, %v10043_v47  ;;  %v10257_v27 = vld [vmem:[%s17754_s21 + $0x200] sm:$0xf] }
 0x8be   :  { %v10258_v15 = vor.u32 %v10950_v5, %v10257_v27  ;;  %v10947_v27 = vld [vmem:[%s17754_s21 + $0x1f4] sm:$0xf] }
 0x8bf   :  { %7502 = vmatpush.bf16.msra.mxu0 %v10046_v38 }
 0x8c0   :  { %7466 = vmatpush.bf16.msra.mxu1 %v10146_v32  ;;  %v10907_v32 = vld [vmem:[%s17754_s21 + $0xb4] sm:$0xf]  ;;  %7494 = vmatpush.bf16.msra.mxu3 %v10258_v15 }
 0x8c1   :  { %7479 = vmatpush.bf16.msrb.mxu2 %v10210_v12  ;;  %v10094_v12 = vor.u32 %v10907_v32, %v10091_v44  ;;  %v10251_v32 = vld [vmem:[%s17754_s21 + $0x1f8] sm:$0xf0] }
 0x8c2   :  { %v10254_v28 = vor.u32 %v10947_v27, %v10251_v32 }
 0x8c3   :  { %7503 = vmatpush.bf16.msra.mxu0 %v10038_v54 }
 0x8c4   :  { %7467 = vmatpush.bf16.msra.mxu1 %v10138_v17  ;;  %v10171_v17 = vld [vmem:[%s17754_s21 + $0x158] sm:$0xf0] }
 0x8c5   :  { %7480 = vmatpush.bf16.msrb.mxu2 %v10202_v45  ;;  %v10174_v22 = vor.u32 %v10927_v50, %v10171_v17  ;;  %v10030_v45 = vor.u32 %v10891_v40, %v10027_v59  ;;  %v10955_v40 = vld [vmem:[%s17754_s21 + $0x234] sm:$0xf] }
 0x8c7   :  { %7504 = vmatpush.bf16.msra.mxu0 %v10030_v45 }
 0x8c8   :  { %7468 = vmatpush.bf16.msra.mxu1 %v10130_v7  ;;  %v10905_v7 = vld [vmem:[%s17754_s21 + $0xa4] sm:$0xf] }
 0x8c9   :  { %7481 = vmatpush.bf16.msrb.mxu2 %v10194_v23  ;;  %v10150_v23 = vor.u32 %v10921_v21, %v10147_v0  ;;  %v10275_v21 = vld [vmem:[%s17754_s21 + $0x228] sm:$0xf0] }
 0x8ca   :  { %v10278_v2 = vor.u32 %v10953_v58, %v10275_v21 }
 0x8cb   :  { %7505 = vmatpush.bf16.msra.mxu0 %v10022_v56 }
 0x8cc   :  { %7513 = vmatpush.bf16.msrb.mxu1 %v10126_v24  ;;  %v10083_v24 = vld [vmem:[%s17754_s21 + $0xa8] sm:$0xf0] }
 0x8cd   :  { %7526 = vmatpush.bf16.msra.mxu2 %v10190_v29  ;;  %v10086_v51 = vor.u32 %v10905_v7, %v10083_v24  ;;  %v10003_v29 = vld [vmem:[%s17754_s21 + $0x8] sm:$0xf0] }
 0x8ce   :  { %v10006_v11 = vor.u32 %v10885_v39, %v10003_v29  ;;  %v10939_v29 = vld [vmem:[%s17754_s21 + $0x1b4] sm:$0xf] }
 0x8cf   :  { %7506 = vmatpush.bf16.msra.mxu0 %v10014_v3 }
 0x8d0   :  { %7514 = vmatpush.bf16.msrb.mxu1 %v10118_v14  ;;  %v10155_v14 = vld [vmem:[%s17754_s21 + $0x138] sm:$0xf0] }
 0x8d1   :  { %7527 = vmatpush.bf16.msra.mxu2 %v10182_v46  ;;  %v10158_v49 = vor.u32 %v10923_v6, %v10155_v14  ;;  %v10235_v14 = vld [vmem:[%s17754_s21 + $0x1d8] sm:$0xf0] }
 0x8d3   :  { %7507 = vmatpush.bf16.msra.mxu0 %v10006_v11 }
 0x8d4   :  { %7515 = vmatpush.bf16.msrb.mxu1 %v10110_v8  ;;  %v10139_v8 = vld [vmem:[%s17754_s21 + $0x118] sm:$0xf0] }
 0x8d5   :  { %7528 = vmatpush.bf16.msra.mxu2 %v10174_v22  ;;  %v10142_v26 = vor.u32 %v10919_v25, %v10139_v8  ;;  %v10951_v25 = vld [vmem:[%s17754_s21 + $0x214] sm:$0xf]  ;;  %v10267_v8 = vld [vmem:[%s17754_s21 + $0x218] sm:$0xf0] }
 0x8d6   :  { %v10270_v11 = vor.u32 %v10951_v25, %v10267_v8 }
 0x8d8   :  { %7516 = vmatpush.bf16.msrb.mxu1 %v10102_v36 }
 0x8d9   :  { %7529 = vmatpush.bf16.msra.mxu2 %v10166_v19 }
 0x8dc   :  { %7517 = vmatpush.bf16.msrb.mxu1 %v10094_v12 }
 0x8dd   :  { %7530 = vmatpush.bf16.msra.mxu2 %v10158_v49 }
 0x8e0   :  { %7518 = vmatpush.bf16.msrb.mxu1 %v10086_v51  ;;  %v10243_v51 = vld [vmem:[%s17754_s21 + $0x1e8] sm:$0xf0] }
 0x8e1   :  { %7531 = vmatpush.bf16.msra.mxu2 %v10150_v23  ;;  %v10246_v45 = vor.u32 %v10945_v33, %v10243_v51 }
 0x8e4   :  { %7519 = vmatpush.bf16.msrb.mxu1 %v10078_v53 }
 0x8e5   :  { %7532 = vmatpush.bf16.msra.mxu2 %v10142_v26 }
 0x8e8   :  { %7520 = vmatpush.bf16.msrb.mxu1 %v10070_v42  ;;  %v10238_v42 = vor.u32 %v10943_v30, %v10235_v14 }
 0x8e9   :  { %7533 = vmatpush.bf16.msra.mxu2 %v10134_v10  ;;  %v10222_v10 = vor.u32 %v10939_v29, %v10219_v16 }
 0x928   :  { %v6882_v31 = vpop.f32.mrf.mxu1 }
 0x929   :  { %v6965_v61 = vperm.slane %v6882_v31, 0  ;;  %v6922_v1 = vpop.f32.mrf.mxu0  ;;  %v6975_v36 = vperm.slane %v6882_v31, 1  ;;  %v10259_v31 = vld [vmem:[%s17754_s21 + $0x208] sm:$0xf0] }
 0x92a   :  { %v6967_v9 = vperm.slane %v6922_v1, 0  ;;  %v6977_v46 = vperm.slane %v6922_v1, 1  ;;  %v10937_v1 = vld [vmem:[%s17754_s21 + $0x1a4] sm:$0xf] }
 0x92b   :  { %v6970_v63 = vmul.f32 %v6965_v61, %v17181_v13 }
 0x92c   :  { %v6972_v62 = vmul.f32 %v6967_v9, %v17228_v35  ;;  %v10211_v9 = vld [vmem:[%s17754_s21 + $0x1a8] sm:$0xf0] }
 0x92d   :  { %v6980_v57 = vadd.f32 %v6975_v36, %v6970_v63  ;;  %v10262_v63 = vor.u32 %v10949_v55, %v10259_v31  ;;  %v10214_v36 = vor.u32 %v10937_v1, %v10211_v9 }
 0x92e   :  { %v6982_v47 = vadd.f32 %v6977_v46, %v6972_v62  ;;  %v6902_v38 = vpop.f32.mrf.mxu2  ;;  %v10935_v62 = vld [vmem:[%s17754_s21 + $0x194] sm:$0xf]  ;;  %v10203_v46 = vld [vmem:[%s17754_s21 + $0x198] sm:$0xf0] }
 0x92f   :  { %v6985_v5 = vmul.f32 0.2, %v6980_v57  ;;  %v6966_v15 = vperm.slane %v6902_v38, 0  ;;  %v6976_v12 = vperm.slane %v6902_v38, 1  ;;  %v10195_v38 = vld [vmem:[%s17754_s21 + $0x188] sm:$0xf0] }
 0x930   :  { %v6987_v44 = vmul.f32 0.2, %v6982_v47  ;;  %v6942_v13 = vpop.f32.mrf.mxu1 }
 0x931   :  { %v6990_v50 = vmax.f32 %v6980_v57, %v6985_v5  ;;  %v6971_v35 = vmul.f32 %v6966_v15, %v17216_v52  ;;  %v6968_v17 = vperm.slane %v6942_v13, 0  ;;  %v6978_v24 = vperm.slane %v6942_v13, 1 }
 0x932   :  { %v6992_v22 = vmax.f32 %v6982_v47, %v6987_v44  ;;  %v10206_v57 = vor.u32 %v10935_v62, %v10203_v46  ;;  %v10933_v47 = vld [vmem:[%s17754_s21 + $0x184] sm:$0xf] }
 0x933   :  { %v17656_v4 = vpack.c.bf16 %v6990_v50, %v6990_v50  ;;  %v6981_v54 = vadd.f32 %v6976_v12, %v6971_v35  ;;  %v6973_v7 = vmul.f32 %v6968_v17, %v17234_v60  ;;  %v10283_v60 = vld [vmem:[%s17754_s21 + $0x238] sm:$0xf0]  ;;  %v10198_v27 = vor.u32 %v10933_v47, %v10195_v38 }
 0x934   :  { %v6997_v41 = vpack.c.bf16 %v6992_v22, %v6992_v22  ;;  %v10286_v49 = vor.u32 %v10955_v40, %v10283_v60 }
 0x935   :  { %v6986_v52 = vmul.f32 0.2, %v6981_v54  ;;  %v6983_v19 = vadd.f32 %v6978_v24, %v6973_v7  ;;  %7443 = vmatmul.bf16.vlgmr.msrb.gmra.mxu3 %v17656_v4 }
 0x936   :  { %7469 = vmatmul.bf16.vlgmr.msra.gmra.mxu1 %v6997_v41  ;;  %v6962_v59 = vpop.f32.mrf.mxu2  ;;  %7539 = vmatpush.bf16.msrb.mxu3 %v10254_v28 }
 0x937   :  { %v6991_v48 = vmax.f32 %v6981_v54, %v6986_v52  ;;  %v6988_v6 = vmul.f32 0.2, %v6983_v19  ;;  %v6969_v53 = vperm.slane %v6962_v59, 0  ;;  %v6979_v18 = vperm.slane %v6962_v59, 1 }
 0x939   :  { %v6996_v34 = vpack.c.bf16 %v6991_v48, %v6991_v48  ;;  %v6993_v37 = vmax.f32 %v6983_v19, %v6988_v6  ;;  %v6974_v56 = vmul.f32 %v6969_v53, %v17244_v43  ;;  %v10227_v43 = vld [vmem:[%s17754_s21 + $0x1c8] sm:$0xf0] }
 0x93a   :  { %7540 = vmatpush.bf16.msrb.mxu3 %v10246_v45  ;;  %v10230_v26 = vor.u32 %v10941_v20, %v10227_v43 }
 0x93b   :  { %v6998_v0 = vpack.c.bf16 %v6993_v37, %v6993_v37  ;;  %v6984_v23 = vadd.f32 %v6979_v18, %v6974_v56  ;;  %7456 = vmatmul.bf16.vlgmr.msrb.gmra.mxu0 %v6996_v34 }
 0x93c   :  { %7556 = vmatpush.bf16.msrb.mxu0 %v10286_v49 }
 0x93d   :  { %v6989_v3 = vmul.f32 0.2, %v6984_v23  ;;  %7482 = vmatmul.bf16.vlgmr.msrb.gmra.mxu2 %v6998_v0 }
 0x93e   :  { %7541 = vmatpush.bf16.msrb.mxu3 %v10238_v42 }
 0x93f   :  { %v6994_v39 = vmax.f32 %v6984_v23, %v6989_v3 }
 0x940   :  { %7557 = vmatpush.bf16.msrb.mxu0 %v10278_v2 }
 0x941   :  { %v6999_v61 = vpack.c.bf16 %v6994_v39, %v6994_v39 }
 0x942   :  { %7542 = vmatpush.bf16.msrb.mxu3 %v10230_v26 }
 0x944   :  { %7558 = vmatpush.bf16.msrb.mxu0 %v10270_v11 }
 0x945   :  { %10287 = vmatmul.msk.bf16.vlgmr.msra.gmra.mxu3 %vm1080_vm7, %v6999_v61 }
 0x946   :  { %7521 = vmatmul.bf16.vlgmr.msrb.gmra.mxu1 %v6996_v34  ;;  %7543 = vmatpush.bf16.msrb.mxu3 %v10222_v10 }
 0x948   :  { %7559 = vmatpush.bf16.msrb.mxu0 %v10262_v63 }
 0x94a   :  { %7544 = vmatpush.bf16.msrb.mxu3 %v10214_v36 }
 0x94b   :  { %7508 = vmatmul.bf16.vlgmr.msra.gmra.mxu0 %v17656_v4 }
 0x94d   :  { %7534 = vmatmul.bf16.vlgmr.msra.gmra.mxu2 %v6997_v41 }
 0x94e   :  { %7545 = vmatpush.bf16.msrb.mxu3 %v10206_v57 }
 0x952   :  { %7546 = vmatpush.bf16.msrb.mxu3 %v10198_v27 }
 0x955   :  { %7547 = vmatmul.bf16.vlgmr.msrb.gmra.mxu3 %v6998_v0 }
 0x95b   :  { %10288 = vmatmul.msk.bf16.vlgmr.msrb.gmra.mxu0 %vm1080_vm7, %v6999_v61  ;;  %vm7573_vm7 = vmor %vm7572_vm6, %vm390_vm0 }
 0x9b3   :  { %v7470_v5 = vpop.f32.mrf.mxu1 }
 0x9b8   :  { %v7444_v15 = vpop.f32.mrf.mxu3  ;;  %v7457_v32 = vpop.f32.mrf.mxu0 }
 0x9b9   :  { %v7458_v33 = vadd.f32 %v7457_v32, %v7444_v15 }
 0x9bb   :  { %v7472_v44 = vpop.f32.mrf.mxu1  ;;  %v7471_v41 = vadd.f32 %v7470_v5, %v7458_v33 }
 0x9c0   :  { %v7446_v13 = vpop.f32.mrf.mxu3  ;;  %v7459_v50 = vpop.f32.mrf.mxu0 }
 0x9c1   :  { %v7483_v35 = vpop.f32.mrf.mxu2 }
 0x9c2   :  { %v7484_v60 = vadd.f32 %v7483_v35, %v7471_v41 }
 0x9c3   :  { %v7522_v12 = vpop.f32.mrf.mxu1 }
 0x9c8   :  { %v7496_v17 = vpop.f32.mrf.mxu3  ;;  %v7509_v22 = vpop.f32.mrf.mxu0 }
 0x9c9   :  { %v7485_v28 = vpop.f32.mrf.mxu2  ;;  %v7523_v51 = vadd.f32 %v7522_v12, %v7509_v22  ;;  %v7497_v30 = vadd.f32 %v7496_v17, %v7484_v60 }
 0x9cb   :  { %v7524_v4 = vpop.f32.mrf.mxu1 }
 0x9d0   :  { %v7498_v54 = vpop.f32.mrf.mxu3  ;;  %v7511_v7 = vpop.f32.mrf.mxu0 }
 0x9d1   :  { %v7535_v24 = vpop.f32.mrf.mxu2 }
 0x9d2   :  { %v7536_v52 = vadd.f32 %v7535_v24, %v7523_v51 }
 0x9d8   :  { %v7548_v19 = vpop.f32.mrf.mxu3  ;;  %v7561_v40 = vpop.f32.mrf.mxu0 }
 0x9d9   :  { %v7537_v59 = vpop.f32.mrf.mxu2  ;;  %v7549_v45 = vadd.f32 %v7548_v19, %v7536_v52 }
 0x9db   :  { %v7562_v48 = vadd.f32 %v7561_v40, %v7549_v45 }
 0x9dd   :  { %10965 = vtanh.f32 %v7562_v48 }
 0x9de   :  { %10967 = vtanh.f32 %v7497_v30 }
 0x9e0   :  { %v7550_v6 = vpop.f32.mrf.mxu3  ;;  %v7563_v53 = vpop.f32.mrf.mxu0 }
 0x9e3   :  { %v10966_v14 = vpop.eup %10965 }
 0x9e4   :  { %v7569_v49 = vrot.slane %v10966_v14, 6  ;;  %v10968_v34 = vpop.eup %10967 }
 0x9e6   :  { %v7570_v37 = vsel %vm390_vm0, %v10968_v34, %v7569_v49 }
 0x9e7   :  { %7574 = vst.msk [vmem:[%s17757_s22] sm:$0xf] %vm7573_vm7, %v7570_v37 }

</bundles_post_ra>
